<compile_context>
chip_gen: v7x
topology: tpu7x:2x2x1
jax: 0.10.0
libtpu: 0.0.40
codegen_flags: <defaults>
</compile_context>

<pallas_src>
import numpy as np
import jax
import jax.numpy as jnp
from jax import lax
from jax.experimental import pallas as pl
from jax.experimental.pallas import tpu as pltpu

# ---- problem sizes (consistent with Net: GraphConv(20,128), TopK(0.8), lin 256->128->64->1)
G = 4            # graph groups per pallas_call (grid axis, "parallel")
B = 8            # graphs per group -> per-step lane-dense (B, H) = (8, 128) output tile
N = 128          # nodes per group  -> fills the MXU M dimension
N_PER_GRAPH = N // B
F_IN = 20        # real input node feature dim (padded to H lanes)
H = 128          # hidden dim
RATIO = 0.8      # TopKPooling ratio
NEG = -1e30      # "-inf" for masking

# ---- aux slab rows (f32: biases, pre-normalized pool vectors, final 64->1 layer)
R_CB1, R_CP1 = 0, 1
R_CB2, R_CP2 = 2, 3
R_CB3, R_CP3 = 4, 5
R_LB1, R_LB2 = 6, 7
R_LW3, R_LB3 = 8, 9
AUX_ROWS = 16


# ------------------------------------------------------------------ one conv+pool+readout block
def _block(x, A, mask_col, mask_row, W, b, pn, mt, mtT_b, lower, same):
    # ---- GraphConv: out = x@Ws + (A@x)@Wr + b, fused [x|agg] @ [[Ws],[Wr]] (K=256 MXU pass)
    # TODO(synk): on v5e (128-deep MXU) split back into x@Ws + agg@Wr and skip the concat.
    xb = x.astype(jnp.bfloat16)
    agg = jnp.dot(A.astype(jnp.bfloat16), xb, preferred_element_type=jnp.float32)
    xa = jnp.concatenate([xb, agg.astype(jnp.bfloat16)], axis=-1)       # (N, 2H) bf16
    h = jnp.maximum(jnp.dot(xa, W, preferred_element_type=jnp.float32) + b, 0.0)

    # ---- TopKPooling (mask emulation, no compaction)
    score = jnp.sum(h * pn, axis=-1, keepdims=True)                     # (N,1) VPU + lane reduce
    score_m = jnp.where(mask_col > 0, score, NEG)                       # dead nodes never win
    score_r = jnp.transpose(score_m)                                    # (1,N)
    gt = (score_r > score_m).astype(jnp.float32)
    tie = (score_r == score_m).astype(jnp.float32) * lower              # lower index wins ties
    base = same * mask_row                                              # same-graph & alive (N,N)
    rank = jnp.sum(base * (gt + tie), axis=1, keepdims=True)            # (N,1) rank within graph
    count = jnp.sum(base, axis=1, keepdims=True)                        # alive nodes in my graph
    keep = (rank < jnp.ceil(RATIO * count)).astype(jnp.float32)
    nm_col = mask_col * keep                                            # (N,1)
    nm_row = jnp.transpose(nm_col)                                      # (1,N)
    h = h * jnp.tanh(score) * nm_col                                    # gate + zero dropped rows
    A_new = A * nm_col * nm_row                                         # induced subgraph

    # ---- readout: [global_max_pool || global_mean_pool] over alive nodes of each graph
    h_neg = jnp.where(nm_col > 0, h, NEG)
    maxs = []
    for g in range(B):                                                  # unrolled per-graph max
        in_g = mt[:, g:g + 1]                                           # (N,1)
        sel = jnp.where(in_g > 0, h_neg, NEG)
        maxs.append(jnp.max(sel, axis=0, keepdims=True))                # (1,H)
    xmax = jnp.concatenate(maxs, axis=0)                                # (B,H)
    # mean via MXU segment-sum (dead rows of h are already zero) + EUP reciprocal
    numer = jnp.dot(mtT_b, h.astype(jnp.bfloat16),
                    preferred_element_type=jnp.float32)                 # (B,H)
    cnt = jnp.sum(mtT_b * nm_row, axis=1, keepdims=True)                # (B,1), exact 0/1 math
    xmean = numer * pl.reciprocal(jnp.maximum(cnt, 1.0), approx=True)
    read = jnp.concatenate([xmax, xmean], axis=1)                       # (B,2H)
    return h, A_new, nm_col, nm_row, read


# ------------------------------------------------------------------ the Pallas kernel
def net_kernel(x_ref, A_ref, mt_ref, mtT_ref,
               wc1_ref, wc2_ref, wc3_ref, wmlp_ref, aux_ref, out_ref):
    x = x_ref[...]                                        # (N,H)  f32
    A = A_ref[...]                                        # (N,N)  f32
    mt = mt_ref[...]                                      # (N,B)  f32 0/1
    mtT = mtT_ref[...]                                    # (B,N)  f32 0/1
    aux = aux_ref[...]                                    # (AUX_ROWS,H) f32

    mt_b = mt.astype(jnp.bfloat16)
    mtT_b = mtT.astype(jnp.bfloat16)
    # same-graph indicator derived in-kernel (replaces the old N x N SAME input DMA)
    same = jnp.dot(mt_b, mtT_b, preferred_element_type=jnp.float32)     # (N,N)
    # hoisted TopK rank helpers, shared by the three blocks (JAX does not CSE iota)
    ii = lax.broadcasted_iota(jnp.int32, (N, N), 0)
    jj = lax.broadcasted_iota(jnp.int32, (N, N), 1)
    lower = (jj < ii).astype(jnp.float32)

    mask_col = jnp.ones((N, 1), jnp.float32)
    mask_row = jnp.ones((1, N), jnp.float32)

    h, A, mask_col, mask_row, x1 = _block(
        x, A, mask_col, mask_row, wc1_ref[...],
        aux[R_CB1:R_CB1 + 1, :], aux[R_CP1:R_CP1 + 1, :], mt, mtT_b, lower, same)
    h, A, mask_col, mask_row, x2 = _block(
        h, A, mask_col, mask_row, wc2_ref[...],
        aux[R_CB2:R_CB2 + 1, :], aux[R_CP2:R_CP2 + 1, :], mt, mtT_b, lower, same)
    h, A, mask_col, mask_row, x3 = _block(
        h, A, mask_col, mask_row, wc3_ref[...],
        aux[R_CB3:R_CB3 + 1, :], aux[R_CP3:R_CP3 + 1, :], mt, mtT_b, lower, same)

    z = x1 + x2 + x3                                                    # (B, 2H)

    w1 = wmlp_ref[0:2 * H, :]                                           # (2H,H) bf16
    w2 = wmlp_ref[2 * H:3 * H, :]                                       # (H,H)  bf16 (cols 0..63)
    bl1 = aux[R_LB1:R_LB1 + 1, :]
    bl2 = aux[R_LB2:R_LB2 + 1, :]
    wl3 = aux[R_LW3:R_LW3 + 1, :]                                       # (1,H) f32, lanes 0..63
    bl3 = aux[R_LB3:R_LB3 + 1, 0:1]                                     # (1,1)

    z = jnp.maximum(jnp.dot(z.astype(jnp.bfloat16), w1,
                            preferred_element_type=jnp.float32) + bl1, 0.0)
    # F.dropout(p=0.5, training=False) -> identity in eval mode
    z = jnp.maximum(jnp.dot(z.astype(jnp.bfloat16), w2,
                            preferred_element_type=jnp.float32) + bl2, 0.0)
    logit = jnp.sum(z * wl3, axis=-1, keepdims=True) + bl3              # (B,1), lane reduce
    # lane-dense store: logits broadcast across all 128 lanes -> full unmasked (8,128) vst
    out_ref[...] = jnp.broadcast_to(jax.nn.sigmoid(logit), (B, H))


# ------------------------------------------------------------------ wrapper
def net_forward(x, A, mt, mtT, wc1, wc2, wc3, wmlp, aux):
    cost = pl.CostEstimate(
        flops=int(G * (3 * (2 * N * N * H + 2 * N * (2 * H) * H)
                       + 2 * B * (2 * H) * H + 2 * B * H * H)),
        transcendentals=int(G * (3 * N + B)),
        bytes_accessed=int(x.size * 4 + A.size * 4 + mt.size * 4 + mtT.size * 4
                           + (wc1.size + wc2.size + wc3.size + wmlp.size) * 2
                           + aux.size * 4 + G * B * H * 4),
    )
    return pl.pallas_call(
        net_kernel,
        out_shape=jax.ShapeDtypeStruct((G, B, H), jnp.float32),
        grid=(G,),
        in_specs=[
            pl.BlockSpec((None, N, H), lambda g: (g, 0, 0)),    # x     per group
            pl.BlockSpec((None, N, N), lambda g: (g, 0, 0)),    # A     per group
            pl.BlockSpec((None, N, B), lambda g: (g, 0, 0)),    # MT    per group
            pl.BlockSpec((None, B, N), lambda g: (g, 0, 0)),    # MT^T  per group
            pl.BlockSpec((2 * H, H), lambda g: (0, 0)),         # conv1 weights (VMEM-resident)
            pl.BlockSpec((2 * H, H), lambda g: (0, 0)),         # conv2 weights (VMEM-resident)
            pl.BlockSpec((2 * H, H), lambda g: (0, 0)),         # conv3 weights (VMEM-resident)
            pl.BlockSpec((3 * H, H), lambda g: (0, 0)),         # MLP weights   (VMEM-resident)
            pl.BlockSpec((AUX_ROWS, H), lambda g: (0, 0)),      # biases / pool vectors
        ],
        out_specs=pl.BlockSpec((None, B, H), lambda g: (g, 0, 0)),
        compiler_params=pltpu.CompilerParams(
            dimension_semantics=("parallel",)),                 # shards groups across v7x TCs
        cost_estimate=cost,
    )(x, A, mt, mtT, wc1, wc2, wc3, wmlp, aux)


# ------------------------------------------------------------------ host-side parameter packing
def pack_conv_w(Ws, Wr):
    """bf16 fused [[Ws],[Wr]] weight slab for one GraphConv (rows padded to H for block 1)."""
    slab = np.zeros((2 * H, H), np.float32)
    Ws = np.asarray(Ws, np.float32); Wr = np.asarray(Wr, np.float32)
    slab[0:Ws.shape[0]] = Ws
    slab[H:H + Wr.shape[0]] = Wr
    return jnp.asarray(slab, dtype=jnp.bfloat16)


def pack_mlp_w(wl1, wl2):
    """bf16 MLP weight slab: lin1 (2H,H) rows 0..2H-1, lin2 (H,64) rows 2H..3H-1 (cols padded)."""
    slab = np.zeros((3 * H, H), np.float32)
    slab[0:2 * H] = np.asarray(wl1, np.float32)
    wl2 = np.asarray(wl2, np.float32)
    slab[2 * H:3 * H, 0:wl2.shape[1]] = wl2
    return jnp.asarray(slab, dtype=jnp.bfloat16)


def pack_aux(b1, p1, b2, p2, b3, p3, bl1, bl2, wl3, bl3):
    """f32 aux slab: conv biases, pre-normalized pool vectors, MLP biases, final 64->1 row."""
    def _norm(p):
        v = np.asarray(p, np.float32).reshape(-1)
        return v / np.linalg.norm(v)
    slab = np.zeros((AUX_ROWS, H), np.float32)
    slab[R_CB1] = np.asarray(b1, np.float32).reshape(-1)
    slab[R_CP1] = _norm(p1)
    slab[R_CB2] = np.asarray(b2, np.float32).reshape(-1)
    slab[R_CP2] = _norm(p2)
    slab[R_CB3] = np.asarray(b3, np.float32).reshape(-1)
    slab[R_CP3] = _norm(p3)
    slab[R_LB1] = np.asarray(bl1, np.float32).reshape(-1)
    slab[R_LB2, 0:64] = np.asarray(bl2, np.float32).reshape(-1)
    slab[R_LW3, 0:64] = np.asarray(wl3, np.float32).reshape(-1)
    slab[R_LB3, 0] = float(np.asarray(bl3, np.float32).reshape(-1)[0])
    return jnp.asarray(slab)


def make_params(key):
    def glorot(k, shape):
        fan_in, fan_out = shape[0], shape[-1]
        s = np.float32(np.sqrt(2.0 / (fan_in + fan_out)))
        return jax.random.normal(k, shape, jnp.float32) * s

    ks = jax.random.split(key, 18)
    raw = dict(
        ws1=glorot(ks[0], (F_IN, H)), wr1=glorot(ks[1], (F_IN, H)),
        b1=0.01 * jax.random.normal(ks[2], (H,), jnp.float32), p1=glorot(ks[3], (H, 1)),
        ws2=glorot(ks[4], (H, H)), wr2=glorot(ks[5], (H, H)),
        b2=0.01 * jax.random.normal(ks[6], (H,), jnp.float32), p2=glorot(ks[7], (H, 1)),
        ws3=glorot(ks[8], (H, H)), wr3=glorot(ks[9], (H, H)),
        b3=0.01 * jax.random.normal(ks[10], (H,), jnp.float32), p3=glorot(ks[11], (H, 1)),
        wl1=glorot(ks[12], (2 * H, H)), bl1=0.01 * jax.random.normal(ks[13], (H,), jnp.float32),
        wl2=glorot(ks[14], (H, 64)), bl2=0.01 * jax.random.normal(ks[15], (64,), jnp.float32),
        wl3=glorot(ks[16], (64, 1)), bl3=0.01 * jax.random.normal(ks[17], (1,), jnp.float32),
    )
    return raw


def pack_params(raw):
    wc1 = pack_conv_w(raw["ws1"], raw["wr1"])
    wc2 = pack_conv_w(raw["ws2"], raw["wr2"])
    wc3 = pack_conv_w(raw["ws3"], raw["wr3"])
    wmlp = pack_mlp_w(raw["wl1"], raw["wl2"])
    aux = pack_aux(raw["b1"], raw["p1"], raw["b2"], raw["p2"], raw["b3"], raw["p3"],
                   raw["bl1"], raw["bl2"], raw["wl3"], raw["bl3"])
    return wc1, wc2, wc3, wmlp, aux


# ------------------------------------------------------------------ graph construction
def make_graphs():
    # G groups; each group holds B graphs of N_PER_GRAPH nodes (ring + chord, bidirectional).
    A_np = np.zeros((G, N, N), np.float32)
    MT_np = np.zeros((G, N, B), np.float32)
    for g in range(B):
        base = g * N_PER_GRAPH
        for i in range(N_PER_GRAPH):
            MT_np[:, base + i, g] = 1.0
            src = base + i
            for off in (1, 3):
                dst = base + (i + off) % N_PER_GRAPH
                A_np[:, dst, src] = 1.0   # src -> dst
                A_np[:, src, dst] = 1.0   # dst -> src
    MTT_np = np.ascontiguousarray(np.transpose(MT_np, (0, 2, 1)))       # (G, B, N)
    return jnp.asarray(A_np), jnp.asarray(MT_np), jnp.asarray(MTT_np)


if __name__ == "__main__":
    key = jax.random.PRNGKey(0)
    kx, kp = jax.random.split(key)
    x = jax.random.normal(kx, (G, N, F_IN), jnp.float32)
    x_pad = jnp.zeros((G, N, H), jnp.float32).at[:, :, :F_IN].set(x)    # lane-pad features to H
    A, MT, MTT = make_graphs()
    raw = make_params(kp)
    wc1, wc2, wc3, wmlp, aux = pack_params(raw)

    out = net_forward(x_pad, A, MT, MTT, wc1, wc2, wc3, wmlp, aux)
    out = jax.block_until_ready(out)
    preds = out[:, :, 0].reshape(G * B, 1)       # (num_graphs, 1), matching Net's output shape
    assert preds.shape == (G * B, 1)
    assert bool(jnp.all(jnp.isfinite(preds)))
    assert bool(jnp.all((preds >= 0.0) & (preds <= 1.0)))
    print("KERNEL_OK")
</pallas_src>

<mosaic_0001>
module attributes {stable_mosaic.version = 11 : i64} {
  func.func @net_kernel(%arg0: i32, %arg1: memref<1x128x128xf32, #tpu.memory_space<vmem>>, %arg2: memref<1x128x128xf32, #tpu.memory_space<vmem>>, %arg3: memref<1x128x8xf32, #tpu.memory_space<vmem>>, %arg4: memref<1x8x128xf32, #tpu.memory_space<vmem>>, %arg5: memref<256x128xbf16, #tpu.memory_space<vmem>>, %arg6: memref<256x128xbf16, #tpu.memory_space<vmem>>, %arg7: memref<256x128xbf16, #tpu.memory_space<vmem>>, %arg8: memref<384x128xbf16, #tpu.memory_space<vmem>>, %arg9: memref<16x128xf32, #tpu.memory_space<vmem>>, %arg10: memref<1x8x128xf32, #tpu.memory_space<vmem>>) attributes {dimension_semantics = [#tpu.dimension_semantics<parallel>], iteration_bounds = array<i64: 4>, scalar_prefetch = 0 : i64, scratch_operands = 0 : i64, tpu.core_type = #tpu.core_type<tc>, window_params = [{transform_indices = @transform_0, window_bounds = array<i64: 1, 128, 128>}, {transform_indices = @transform_1, window_bounds = array<i64: 1, 128, 128>}, {transform_indices = @transform_2, window_bounds = array<i64: 1, 128, 8>}, {transform_indices = @transform_3, window_bounds = array<i64: 1, 8, 128>}, {pipeline_mode = #tpu.pipeline_mode<synchronous>, transform_indices = @transform_4, window_bounds = array<i64: 256, 128>}, {pipeline_mode = #tpu.pipeline_mode<synchronous>, transform_indices = @transform_5, window_bounds = array<i64: 256, 128>}, {pipeline_mode = #tpu.pipeline_mode<synchronous>, transform_indices = @transform_6, window_bounds = array<i64: 256, 128>}, {pipeline_mode = #tpu.pipeline_mode<synchronous>, transform_indices = @transform_7, window_bounds = array<i64: 384, 128>}, {pipeline_mode = #tpu.pipeline_mode<synchronous>, transform_indices = @transform_8, window_bounds = array<i64: 16, 128>}, {transform_indices = @transform_9, window_bounds = array<i64: 1, 8, 128>}]} {
    %c0 = arith.constant 0 : index
    %c0_0 = arith.constant 0 : index
    %c0_1 = arith.constant 0 : index
    %0 = vector.load %arg1[%c0, %c0_0, %c0_1] : memref<1x128x128xf32, #tpu.memory_space<vmem>>, vector<1x128x128xf32>
    %1 = vector.shape_cast %0 : vector<1x128x128xf32> to vector<128x128xf32>
    %c0_2 = arith.constant 0 : index
    %c0_3 = arith.constant 0 : index
    %c0_4 = arith.constant 0 : index
    %2 = vector.load %arg2[%c0_2, %c0_3, %c0_4] : memref<1x128x128xf32, #tpu.memory_space<vmem>>, vector<1x128x128xf32>
    %3 = vector.shape_cast %2 : vector<1x128x128xf32> to vector<128x128xf32>
    %c0_5 = arith.constant 0 : index
    %c0_6 = arith.constant 0 : index
    %c0_7 = arith.constant 0 : index
    %4 = vector.load %arg3[%c0_5, %c0_6, %c0_7] : memref<1x128x8xf32, #tpu.memory_space<vmem>>, vector<1x128x8xf32>
    %5 = vector.shape_cast %4 : vector<1x128x8xf32> to vector<128x8xf32>
    %c0_8 = arith.constant 0 : index
    %c0_9 = arith.constant 0 : index
    %c0_10 = arith.constant 0 : index
    %6 = vector.load %arg4[%c0_8, %c0_9, %c0_10] : memref<1x8x128xf32, #tpu.memory_space<vmem>>, vector<1x8x128xf32>
    %7 = vector.shape_cast %6 : vector<1x8x128xf32> to vector<8x128xf32>
    %c0_11 = arith.constant 0 : index
    %c0_12 = arith.constant 0 : index
    %8 = vector.load %arg9[%c0_11, %c0_12] : memref<16x128xf32, #tpu.memory_space<vmem>>, vector<16x128xf32>
    %9 = arith.truncf %5 : vector<128x8xf32> to vector<128x8xbf16>
    %10 = arith.truncf %7 : vector<8x128xf32> to vector<8x128xbf16>
    %cst = arith.constant dense<0.000000e+00> : vector<128x128xf32>
    %11 = tpu.matmul %9, %10, %cst {dimension_numbers = #tpu.dot_dimension_numbers<[1], [0], [0], [1], [0, 0, 1, 1], [], []>} : vector<128x8xbf16>, vector<8x128xbf16>, vector<128x128xf32> -> vector<128x128xf32>
    %12 = tpu.iota {dimensions = array<i32: 0>} : vector<128x128xi32>
    %13 = tpu.iota {dimensions = array<i32: 1>} : vector<128x128xi32>
    %14 = arith.cmpi slt, %13, %12 : vector<128x128xi32>
    %15 = arith.extui %14 : vector<128x128xi1> to vector<128x128xi32>
    %16 = arith.sitofp %15 : vector<128x128xi32> to vector<128x128xf32>
    %cst_13 = arith.constant 1.000000e+00 : f32
    %17 = vector.broadcast %cst_13 : f32 to vector<128x1xf32>
    %cst_14 = arith.constant 1.000000e+00 : f32
    %18 = vector.broadcast %cst_14 : f32 to vector<1x128xf32>
    %c0_15 = arith.constant 0 : index
    %c0_16 = arith.constant 0 : index
    %19 = vector.load %arg5[%c0_15, %c0_16] : memref<256x128xbf16, #tpu.memory_space<vmem>>, vector<256x128xbf16>
    %20 = vector.extract_strided_slice %8 {offsets = [0, 0], sizes = [1, 128], strides = [1, 1]} : vector<16x128xf32> to vector<1x128xf32>
    %21 = vector.extract_strided_slice %8 {offsets = [1, 0], sizes = [1, 128], strides = [1, 1]} : vector<16x128xf32> to vector<1x128xf32>
    %22 = arith.truncf %1 : vector<128x128xf32> to vector<128x128xbf16>
    %23 = arith.truncf %3 : vector<128x128xf32> to vector<128x128xbf16>
    %cst_17 = arith.constant dense<0.000000e+00> : vector<128x128xf32>
    %24 = tpu.matmul %23, %22, %cst_17 {dimension_numbers = #tpu.dot_dimension_numbers<[1], [0], [0], [1], [0, 0, 1, 1], [], []>} : vector<128x128xbf16>, vector<128x128xbf16>, vector<128x128xf32> -> vector<128x128xf32>
    %25 = arith.truncf %24 : vector<128x128xf32> to vector<128x128xbf16>
    %26 = tpu.concatenate %22, %25 in 1 : vector<128x128xbf16>, vector<128x128xbf16> -> vector<128x256xbf16>
    %cst_18 = arith.constant dense<0.000000e+00> : vector<128x128xf32>
    %27 = tpu.matmul %26, %19, %cst_18 {dimension_numbers = #tpu.dot_dimension_numbers<[1], [0], [0], [1], [0, 0, 1, 1], [], []>} : vector<128x256xbf16>, vector<256x128xbf16>, vector<128x128xf32> -> vector<128x128xf32>
    %28 = vector.broadcast %20 : vector<1x128xf32> to vector<128x128xf32>
    %29 = arith.addf %27, %28 : vector<128x128xf32>
    %cst_19 = arith.constant 0.000000e+00 : f32
    %30 = vector.broadcast %cst_19 : f32 to vector<128x128xf32>
    %31 = arith.maximumf %29, %30 : vector<128x128xf32>
    %32 = vector.broadcast %21 : vector<1x128xf32> to vector<128x128xf32>
    %33 = arith.mulf %31, %32 : vector<128x128xf32>
    %cst_20 = arith.constant dense<0.000000e+00> : vector<128xf32>
    %34 = vector.multi_reduction <add>, %33, %cst_20 [1] : vector<128x128xf32> to vector<128xf32>
    %35 = vector.shape_cast %34 : vector<128xf32> to vector<128x1xf32>
    %cst_21 = arith.constant 0.000000e+00 : f32
    %36 = vector.broadcast %cst_21 : f32 to vector<128x1xf32>
    %37 = arith.cmpf ogt, %17, %36 : vector<128x1xf32>
    %cst_22 = arith.constant -1.000000e+30 : f32
    %38 = vector.broadcast %cst_22 : f32 to vector<128x1xf32>
    %39 = arith.select %37, %35, %38 : vector<128x1xi1>, vector<128x1xf32>
    %40 = tpu.transpose %39, [1, 0] : vector<128x1xf32> -> vector<1x128xf32>
    %41 = vector.broadcast %40 : vector<1x128xf32> to vector<128x128xf32>
    %42 = vector.broadcast %39 : vector<128x1xf32> to vector<128x128xf32>
    %43 = arith.cmpf ogt, %41, %42 : vector<128x128xf32>
    %44 = arith.extui %43 : vector<128x128xi1> to vector<128x128xi32>
    %45 = arith.sitofp %44 : vector<128x128xi32> to vector<128x128xf32>
    %46 = vector.broadcast %40 : vector<1x128xf32> to vector<128x128xf32>
    %47 = vector.broadcast %39 : vector<128x1xf32> to vector<128x128xf32>
    %48 = arith.cmpf oeq, %46, %47 : vector<128x128xf32>
    %49 = arith.extui %48 : vector<128x128xi1> to vector<128x128xi32>
    %50 = arith.sitofp %49 : vector<128x128xi32> to vector<128x128xf32>
    %51 = arith.mulf %50, %16 : vector<128x128xf32>
    %52 = vector.broadcast %18 : vector<1x128xf32> to vector<128x128xf32>
    %53 = arith.mulf %11, %52 : vector<128x128xf32>
    %54 = arith.addf %45, %51 : vector<128x128xf32>
    %55 = arith.mulf %53, %54 : vector<128x128xf32>
    %cst_23 = arith.constant dense<0.000000e+00> : vector<128xf32>
    %56 = vector.multi_reduction <add>, %55, %cst_23 [1] : vector<128x128xf32> to vector<128xf32>
    %57 = vector.shape_cast %56 : vector<128xf32> to vector<128x1xf32>
    %cst_24 = arith.constant dense<0.000000e+00> : vector<128xf32>
    %58 = vector.multi_reduction <add>, %53, %cst_24 [1] : vector<128x128xf32> to vector<128xf32>
    %59 = vector.shape_cast %58 : vector<128xf32> to vector<128x1xf32>
    %cst_25 = arith.constant 8.000000e-01 : f32
    %60 = vector.broadcast %cst_25 : f32 to vector<128x1xf32>
    %61 = arith.mulf %60, %59 : vector<128x1xf32>
    %62 = math.ceil %61 : vector<128x1xf32>
    %63 = arith.cmpf olt, %57, %62 : vector<128x1xf32>
    %64 = arith.extui %63 : vector<128x1xi1> to vector<128x1xi32>
    %65 = arith.sitofp %64 : vector<128x1xi32> to vector<128x1xf32>
    %66 = arith.mulf %17, %65 : vector<128x1xf32>
    %67 = tpu.transpose %66, [1, 0] : vector<128x1xf32> -> vector<1x128xf32>
    %68 = math.tanh %35 : vector<128x1xf32>
    %69 = vector.broadcast %68 : vector<128x1xf32> to vector<128x128xf32>
    %70 = arith.mulf %31, %69 : vector<128x128xf32>
    %71 = vector.broadcast %66 : vector<128x1xf32> to vector<128x128xf32>
    %72 = arith.mulf %70, %71 : vector<128x128xf32>
    %73 = vector.broadcast %66 : vector<128x1xf32> to vector<128x128xf32>
    %74 = arith.mulf %3, %73 : vector<128x128xf32>
    %75 = vector.broadcast %67 : vector<1x128xf32> to vector<128x128xf32>
    %76 = arith.mulf %74, %75 : vector<128x128xf32>
    %cst_26 = arith.constant 0.000000e+00 : f32
    %77 = vector.broadcast %cst_26 : f32 to vector<128x1xf32>
    %78 = arith.cmpf ogt, %66, %77 : vector<128x1xf32>
    %cst_27 = arith.constant -1.000000e+30 : f32
    %79 = vector.shape_cast %78 : vector<128x1xi1> to vector<128x1xi1>
    %80 = vector.broadcast %79 : vector<128x1xi1> to vector<128x128xi1>
    %81 = vector.broadcast %cst_27 : f32 to vector<128x128xf32>
    %82 = arith.select %80, %72, %81 : vector<128x128xi1>, vector<128x128xf32>
    %83 = vector.extract_strided_slice %5 {offsets = [0, 0], sizes = [128, 1], strides = [1, 1]} : vector<128x8xf32> to vector<128x1xf32>
    %cst_28 = arith.constant 0.000000e+00 : f32
    %84 = vector.broadcast %cst_28 : f32 to vector<128x1xf32>
    %85 = arith.cmpf ogt, %83, %84 : vector<128x1xf32>
    %cst_29 = arith.constant -1.000000e+30 : f32
    %86 = vector.shape_cast %85 : vector<128x1xi1> to vector<128x1xi1>
    %87 = vector.broadcast %86 : vector<128x1xi1> to vector<128x128xi1>
    %88 = vector.broadcast %cst_29 : f32 to vector<128x128xf32>
    %89 = arith.select %87, %82, %88 : vector<128x128xi1>, vector<128x128xf32>
    %cst_30 = arith.constant dense<0xFF800000> : vector<128xf32>
    %90 = vector.multi_reduction <maximumf>, %89, %cst_30 [0] : vector<128x128xf32> to vector<128xf32>
    %91 = vector.shape_cast %90 : vector<128xf32> to vector<1x128xf32>
    %92 = vector.extract_strided_slice %5 {offsets = [0, 1], sizes = [128, 1], strides = [1, 1]} : vector<128x8xf32> to vector<128x1xf32>
    %cst_31 = arith.constant 0.000000e+00 : f32
    %93 = vector.broadcast %cst_31 : f32 to vector<128x1xf32>
    %94 = arith.cmpf ogt, %92, %93 : vector<128x1xf32>
    %cst_32 = arith.constant -1.000000e+30 : f32
    %95 = vector.shape_cast %94 : vector<128x1xi1> to vector<128x1xi1>
    %96 = vector.broadcast %95 : vector<128x1xi1> to vector<128x128xi1>
    %97 = vector.broadcast %cst_32 : f32 to vector<128x128xf32>
    %98 = arith.select %96, %82, %97 : vector<128x128xi1>, vector<128x128xf32>
    %cst_33 = arith.constant dense<0xFF800000> : vector<128xf32>
    %99 = vector.multi_reduction <maximumf>, %98, %cst_33 [0] : vector<128x128xf32> to vector<128xf32>
    %100 = vector.shape_cast %99 : vector<128xf32> to vector<1x128xf32>
    %101 = vector.extract_strided_slice %5 {offsets = [0, 2], sizes = [128, 1], strides = [1, 1]} : vector<128x8xf32> to vector<128x1xf32>
    %cst_34 = arith.constant 0.000000e+00 : f32
    %102 = vector.broadcast %cst_34 : f32 to vector<128x1xf32>
    %103 = arith.cmpf ogt, %101, %102 : vector<128x1xf32>
    %cst_35 = arith.constant -1.000000e+30 : f32
    %104 = vector.shape_cast %103 : vector<128x1xi1> to vector<128x1xi1>
    %105 = vector.broadcast %104 : vector<128x1xi1> to vector<128x128xi1>
    %106 = vector.broadcast %cst_35 : f32 to vector<128x128xf32>
    %107 = arith.select %105, %82, %106 : vector<128x128xi1>, vector<128x128xf32>
    %cst_36 = arith.constant dense<0xFF800000> : vector<128xf32>
    %108 = vector.multi_reduction <maximumf>, %107, %cst_36 [0] : vector<128x128xf32> to vector<128xf32>
    %109 = vector.shape_cast %108 : vector<128xf32> to vector<1x128xf32>
    %110 = vector.extract_strided_slice %5 {offsets = [0, 3], sizes = [128, 1], strides = [1, 1]} : vector<128x8xf32> to vector<128x1xf32>
    %cst_37 = arith.constant 0.000000e+00 : f32
    %111 = vector.broadcast %cst_37 : f32 to vector<128x1xf32>
    %112 = arith.cmpf ogt, %110, %111 : vector<128x1xf32>
    %cst_38 = arith.constant -1.000000e+30 : f32
    %113 = vector.shape_cast %112 : vector<128x1xi1> to vector<128x1xi1>
    %114 = vector.broadcast %113 : vector<128x1xi1> to vector<128x128xi1>
    %115 = vector.broadcast %cst_38 : f32 to vector<128x128xf32>
    %116 = arith.select %114, %82, %115 : vector<128x128xi1>, vector<128x128xf32>
    %cst_39 = arith.constant dense<0xFF800000> : vector<128xf32>
    %117 = vector.multi_reduction <maximumf>, %116, %cst_39 [0] : vector<128x128xf32> to vector<128xf32>
    %118 = vector.shape_cast %117 : vector<128xf32> to vector<1x128xf32>
    %119 = vector.extract_strided_slice %5 {offsets = [0, 4], sizes = [128, 1], strides = [1, 1]} : vector<128x8xf32> to vector<128x1xf32>
    %cst_40 = arith.constant 0.000000e+00 : f32
    %120 = vector.broadcast %cst_40 : f32 to vector<128x1xf32>
    %121 = arith.cmpf ogt, %119, %120 : vector<128x1xf32>
    %cst_41 = arith.constant -1.000000e+30 : f32
    %122 = vector.shape_cast %121 : vector<128x1xi1> to vector<128x1xi1>
    %123 = vector.broadcast %122 : vector<128x1xi1> to vector<128x128xi1>
    %124 = vector.broadcast %cst_41 : f32 to vector<128x128xf32>
    %125 = arith.select %123, %82, %124 : vector<128x128xi1>, vector<128x128xf32>
    %cst_42 = arith.constant dense<0xFF800000> : vector<128xf32>
    %126 = vector.multi_reduction <maximumf>, %125, %cst_42 [0] : vector<128x128xf32> to vector<128xf32>
    %127 = vector.shape_cast %126 : vector<128xf32> to vector<1x128xf32>
    %128 = vector.extract_strided_slice %5 {offsets = [0, 5], sizes = [128, 1], strides = [1, 1]} : vector<128x8xf32> to vector<128x1xf32>
    %cst_43 = arith.constant 0.000000e+00 : f32
    %129 = vector.broadcast %cst_43 : f32 to vector<128x1xf32>
    %130 = arith.cmpf ogt, %128, %129 : vector<128x1xf32>
    %cst_44 = arith.constant -1.000000e+30 : f32
    %131 = vector.shape_cast %130 : vector<128x1xi1> to vector<128x1xi1>
    %132 = vector.broadcast %131 : vector<128x1xi1> to vector<128x128xi1>
    %133 = vector.broadcast %cst_44 : f32 to vector<128x128xf32>
    %134 = arith.select %132, %82, %133 : vector<128x128xi1>, vector<128x128xf32>
    %cst_45 = arith.constant dense<0xFF800000> : vector<128xf32>
    %135 = vector.multi_reduction <maximumf>, %134, %cst_45 [0] : vector<128x128xf32> to vector<128xf32>
    %136 = vector.shape_cast %135 : vector<128xf32> to vector<1x128xf32>
    %137 = vector.extract_strided_slice %5 {offsets = [0, 6], sizes = [128, 1], strides = [1, 1]} : vector<128x8xf32> to vector<128x1xf32>
    %cst_46 = arith.constant 0.000000e+00 : f32
    %138 = vector.broadcast %cst_46 : f32 to vector<128x1xf32>
    %139 = arith.cmpf ogt, %137, %138 : vector<128x1xf32>
    %cst_47 = arith.constant -1.000000e+30 : f32
    %140 = vector.shape_cast %139 : vector<128x1xi1> to vector<128x1xi1>
    %141 = vector.broadcast %140 : vector<128x1xi1> to vector<128x128xi1>
    %142 = vector.broadcast %cst_47 : f32 to vector<128x128xf32>
    %143 = arith.select %141, %82, %142 : vector<128x128xi1>, vector<128x128xf32>
    %cst_48 = arith.constant dense<0xFF800000> : vector<128xf32>
    %144 = vector.multi_reduction <maximumf>, %143, %cst_48 [0] : vector<128x128xf32> to vector<128xf32>
    %145 = vector.shape_cast %144 : vector<128xf32> to vector<1x128xf32>
    %146 = vector.extract_strided_slice %5 {offsets = [0, 7], sizes = [128, 1], strides = [1, 1]} : vector<128x8xf32> to vector<128x1xf32>
    %cst_49 = arith.constant 0.000000e+00 : f32
    %147 = vector.broadcast %cst_49 : f32 to vector<128x1xf32>
    %148 = arith.cmpf ogt, %146, %147 : vector<128x1xf32>
    %cst_50 = arith.constant -1.000000e+30 : f32
    %149 = vector.shape_cast %148 : vector<128x1xi1> to vector<128x1xi1>
    %150 = vector.broadcast %149 : vector<128x1xi1> to vector<128x128xi1>
    %151 = vector.broadcast %cst_50 : f32 to vector<128x128xf32>
    %152 = arith.select %150, %82, %151 : vector<128x128xi1>, vector<128x128xf32>
    %cst_51 = arith.constant dense<0xFF800000> : vector<128xf32>
    %153 = vector.multi_reduction <maximumf>, %152, %cst_51 [0] : vector<128x128xf32> to vector<128xf32>
    %154 = vector.shape_cast %153 : vector<128xf32> to vector<1x128xf32>
    %155 = tpu.concatenate %91, %100, %109, %118, %127, %136, %145, %154 in 0 : vector<1x128xf32>, vector<1x128xf32>, vector<1x128xf32>, vector<1x128xf32>, vector<1x128xf32>, vector<1x128xf32>, vector<1x128xf32>, vector<1x128xf32> -> vector<8x128xf32>
    %156 = arith.truncf %72 : vector<128x128xf32> to vector<128x128xbf16>
    %cst_52 = arith.constant dense<0.000000e+00> : vector<8x128xf32>
    %157 = tpu.matmul %10, %156, %cst_52 {dimension_numbers = #tpu.dot_dimension_numbers<[1], [0], [0], [1], [0, 0, 1, 1], [], []>} : vector<8x128xbf16>, vector<128x128xbf16>, vector<8x128xf32> -> vector<8x128xf32>
    %158 = arith.extf %10 : vector<8x128xbf16> to vector<8x128xf32>
    %159 = vector.broadcast %67 : vector<1x128xf32> to vector<8x128xf32>
    %160 = arith.mulf %158, %159 : vector<8x128xf32>
    %cst_53 = arith.constant dense<0.000000e+00> : vector<8xf32>
    %161 = vector.multi_reduction <add>, %160, %cst_53 [1] : vector<8x128xf32> to vector<8xf32>
    %162 = vector.shape_cast %161 : vector<8xf32> to vector<8x1xf32>
    %cst_54 = arith.constant 1.000000e+00 : f32
    %163 = vector.broadcast %cst_54 : f32 to vector<8x1xf32>
    %164 = arith.maximumf %162, %163 : vector<8x1xf32>
    %165 = tpu.reciprocal %164 {approx = true} : vector<8x1xf32> -> vector<8x1xf32>
    %166 = vector.broadcast %165 : vector<8x1xf32> to vector<8x128xf32>
    %167 = arith.mulf %157, %166 : vector<8x128xf32>
    %168 = tpu.concatenate %155, %167 in 1 : vector<8x128xf32>, vector<8x128xf32> -> vector<8x256xf32>
    %c0_55 = arith.constant 0 : index
    %c0_56 = arith.constant 0 : index
    %169 = vector.load %arg6[%c0_55, %c0_56] : memref<256x128xbf16, #tpu.memory_space<vmem>>, vector<256x128xbf16>
    %170 = vector.extract_strided_slice %8 {offsets = [2, 0], sizes = [1, 128], strides = [1, 1]} : vector<16x128xf32> to vector<1x128xf32>
    %171 = vector.extract_strided_slice %8 {offsets = [3, 0], sizes = [1, 128], strides = [1, 1]} : vector<16x128xf32> to vector<1x128xf32>
    %172 = arith.truncf %72 : vector<128x128xf32> to vector<128x128xbf16>
    %173 = arith.truncf %76 : vector<128x128xf32> to vector<128x128xbf16>
    %cst_57 = arith.constant dense<0.000000e+00> : vector<128x128xf32>
    %174 = tpu.matmul %173, %172, %cst_57 {dimension_numbers = #tpu.dot_dimension_numbers<[1], [0], [0], [1], [0, 0, 1, 1], [], []>} : vector<128x128xbf16>, vector<128x128xbf16>, vector<128x128xf32> -> vector<128x128xf32>
    %175 = arith.truncf %174 : vector<128x128xf32> to vector<128x128xbf16>
    %176 = tpu.concatenate %172, %175 in 1 : vector<128x128xbf16>, vector<128x128xbf16> -> vector<128x256xbf16>
    %cst_58 = arith.constant dense<0.000000e+00> : vector<128x128xf32>
    %177 = tpu.matmul %176, %169, %cst_58 {dimension_numbers = #tpu.dot_dimension_numbers<[1], [0], [0], [1], [0, 0, 1, 1], [], []>} : vector<128x256xbf16>, vector<256x128xbf16>, vector<128x128xf32> -> vector<128x128xf32>
    %178 = vector.broadcast %170 : vector<1x128xf32> to vector<128x128xf32>
    %179 = arith.addf %177, %178 : vector<128x128xf32>
    %cst_59 = arith.constant 0.000000e+00 : f32
    %180 = vector.broadcast %cst_59 : f32 to vector<128x128xf32>
    %181 = arith.maximumf %179, %180 : vector<128x128xf32>
    %182 = vector.broadcast %171 : vector<1x128xf32> to vector<128x128xf32>
    %183 = arith.mulf %181, %182 : vector<128x128xf32>
    %cst_60 = arith.constant dense<0.000000e+00> : vector<128xf32>
    %184 = vector.multi_reduction <add>, %183, %cst_60 [1] : vector<128x128xf32> to vector<128xf32>
    %185 = vector.shape_cast %184 : vector<128xf32> to vector<128x1xf32>
    %cst_61 = arith.constant 0.000000e+00 : f32
    %186 = vector.broadcast %cst_61 : f32 to vector<128x1xf32>
    %187 = arith.cmpf ogt, %66, %186 : vector<128x1xf32>
    %cst_62 = arith.constant -1.000000e+30 : f32
    %188 = vector.broadcast %cst_62 : f32 to vector<128x1xf32>
    %189 = arith.select %187, %185, %188 : vector<128x1xi1>, vector<128x1xf32>
    %190 = tpu.transpose %189, [1, 0] : vector<128x1xf32> -> vector<1x128xf32>
    %191 = vector.broadcast %190 : vector<1x128xf32> to vector<128x128xf32>
    %192 = vector.broadcast %189 : vector<128x1xf32> to vector<128x128xf32>
    %193 = arith.cmpf ogt, %191, %192 : vector<128x128xf32>
    %194 = arith.extui %193 : vector<128x128xi1> to vector<128x128xi32>
    %195 = arith.sitofp %194 : vector<128x128xi32> to vector<128x128xf32>
    %196 = vector.broadcast %190 : vector<1x128xf32> to vector<128x128xf32>
    %197 = vector.broadcast %189 : vector<128x1xf32> to vector<128x128xf32>
    %198 = arith.cmpf oeq, %196, %197 : vector<128x128xf32>
    %199 = arith.extui %198 : vector<128x128xi1> to vector<128x128xi32>
    %200 = arith.sitofp %199 : vector<128x128xi32> to vector<128x128xf32>
    %201 = arith.mulf %200, %16 : vector<128x128xf32>
    %202 = vector.broadcast %67 : vector<1x128xf32> to vector<128x128xf32>
    %203 = arith.mulf %11, %202 : vector<128x128xf32>
    %204 = arith.addf %195, %201 : vector<128x128xf32>
    %205 = arith.mulf %203, %204 : vector<128x128xf32>
    %cst_63 = arith.constant dense<0.000000e+00> : vector<128xf32>
    %206 = vector.multi_reduction <add>, %205, %cst_63 [1] : vector<128x128xf32> to vector<128xf32>
    %207 = vector.shape_cast %206 : vector<128xf32> to vector<128x1xf32>
    %cst_64 = arith.constant dense<0.000000e+00> : vector<128xf32>
    %208 = vector.multi_reduction <add>, %203, %cst_64 [1] : vector<128x128xf32> to vector<128xf32>
    %209 = vector.shape_cast %208 : vector<128xf32> to vector<128x1xf32>
    %cst_65 = arith.constant 8.000000e-01 : f32
    %210 = vector.broadcast %cst_65 : f32 to vector<128x1xf32>
    %211 = arith.mulf %210, %209 : vector<128x1xf32>
    %212 = math.ceil %211 : vector<128x1xf32>
    %213 = arith.cmpf olt, %207, %212 : vector<128x1xf32>
    %214 = arith.extui %213 : vector<128x1xi1> to vector<128x1xi32>
    %215 = arith.sitofp %214 : vector<128x1xi32> to vector<128x1xf32>
    %216 = arith.mulf %66, %215 : vector<128x1xf32>
    %217 = tpu.transpose %216, [1, 0] : vector<128x1xf32> -> vector<1x128xf32>
    %218 = math.tanh %185 : vector<128x1xf32>
    %219 = vector.broadcast %218 : vector<128x1xf32> to vector<128x128xf32>
    %220 = arith.mulf %181, %219 : vector<128x128xf32>
    %221 = vector.broadcast %216 : vector<128x1xf32> to vector<128x128xf32>
    %222 = arith.mulf %220, %221 : vector<128x128xf32>
    %223 = vector.broadcast %216 : vector<128x1xf32> to vector<128x128xf32>
    %224 = arith.mulf %76, %223 : vector<128x128xf32>
    %225 = vector.broadcast %217 : vector<1x128xf32> to vector<128x128xf32>
    %226 = arith.mulf %224, %225 : vector<128x128xf32>
    %cst_66 = arith.constant 0.000000e+00 : f32
    %227 = vector.broadcast %cst_66 : f32 to vector<128x1xf32>
    %228 = arith.cmpf ogt, %216, %227 : vector<128x1xf32>
    %cst_67 = arith.constant -1.000000e+30 : f32
    %229 = vector.shape_cast %228 : vector<128x1xi1> to vector<128x1xi1>
    %230 = vector.broadcast %229 : vector<128x1xi1> to vector<128x128xi1>
    %231 = vector.broadcast %cst_67 : f32 to vector<128x128xf32>
    %232 = arith.select %230, %222, %231 : vector<128x128xi1>, vector<128x128xf32>
    %233 = vector.extract_strided_slice %5 {offsets = [0, 0], sizes = [128, 1], strides = [1, 1]} : vector<128x8xf32> to vector<128x1xf32>
    %cst_68 = arith.constant 0.000000e+00 : f32
    %234 = vector.broadcast %cst_68 : f32 to vector<128x1xf32>
    %235 = arith.cmpf ogt, %233, %234 : vector<128x1xf32>
    %cst_69 = arith.constant -1.000000e+30 : f32
    %236 = vector.shape_cast %235 : vector<128x1xi1> to vector<128x1xi1>
    %237 = vector.broadcast %236 : vector<128x1xi1> to vector<128x128xi1>
    %238 = vector.broadcast %cst_69 : f32 to vector<128x128xf32>
    %239 = arith.select %237, %232, %238 : vector<128x128xi1>, vector<128x128xf32>
    %cst_70 = arith.constant dense<0xFF800000> : vector<128xf32>
    %240 = vector.multi_reduction <maximumf>, %239, %cst_70 [0] : vector<128x128xf32> to vector<128xf32>
    %241 = vector.shape_cast %240 : vector<128xf32> to vector<1x128xf32>
    %242 = vector.extract_strided_slice %5 {offsets = [0, 1], sizes = [128, 1], strides = [1, 1]} : vector<128x8xf32> to vector<128x1xf32>
    %cst_71 = arith.constant 0.000000e+00 : f32
    %243 = vector.broadcast %cst_71 : f32 to vector<128x1xf32>
    %244 = arith.cmpf ogt, %242, %243 : vector<128x1xf32>
    %cst_72 = arith.constant -1.000000e+30 : f32
    %245 = vector.shape_cast %244 : vector<128x1xi1> to vector<128x1xi1>
    %246 = vector.broadcast %245 : vector<128x1xi1> to vector<128x128xi1>
    %247 = vector.broadcast %cst_72 : f32 to vector<128x128xf32>
    %248 = arith.select %246, %232, %247 : vector<128x128xi1>, vector<128x128xf32>
    %cst_73 = arith.constant dense<0xFF800000> : vector<128xf32>
    %249 = vector.multi_reduction <maximumf>, %248, %cst_73 [0] : vector<128x128xf32> to vector<128xf32>
    %250 = vector.shape_cast %249 : vector<128xf32> to vector<1x128xf32>
    %251 = vector.extract_strided_slice %5 {offsets = [0, 2], sizes = [128, 1], strides = [1, 1]} : vector<128x8xf32> to vector<128x1xf32>
    %cst_74 = arith.constant 0.000000e+00 : f32
    %252 = vector.broadcast %cst_74 : f32 to vector<128x1xf32>
    %253 = arith.cmpf ogt, %251, %252 : vector<128x1xf32>
    %cst_75 = arith.constant -1.000000e+30 : f32
    %254 = vector.shape_cast %253 : vector<128x1xi1> to vector<128x1xi1>
    %255 = vector.broadcast %254 : vector<128x1xi1> to vector<128x128xi1>
    %256 = vector.broadcast %cst_75 : f32 to vector<128x128xf32>
    %257 = arith.select %255, %232, %256 : vector<128x128xi1>, vector<128x128xf32>
    %cst_76 = arith.constant dense<0xFF800000> : vector<128xf32>
    %258 = vector.multi_reduction <maximumf>, %257, %cst_76 [0] : vector<128x128xf32> to vector<128xf32>
    %259 = vector.shape_cast %258 : vector<128xf32> to vector<1x128xf32>
    %260 = vector.extract_strided_slice %5 {offsets = [0, 3], sizes = [128, 1], strides = [1, 1]} : vector<128x8xf32> to vector<128x1xf32>
    %cst_77 = arith.constant 0.000000e+00 : f32
    %261 = vector.broadcast %cst_77 : f32 to vector<128x1xf32>
    %262 = arith.cmpf ogt, %260, %261 : vector<128x1xf32>
    %cst_78 = arith.constant -1.000000e+30 : f32
    %263 = vector.shape_cast %262 : vector<128x1xi1> to vector<128x1xi1>
    %264 = vector.broadcast %263 : vector<128x1xi1> to vector<128x128xi1>
    %265 = vector.broadcast %cst_78 : f32 to vector<128x128xf32>
    %266 = arith.select %264, %232, %265 : vector<128x128xi1>, vector<128x128xf32>
    %cst_79 = arith.constant dense<0xFF800000> : vector<128xf32>
    %267 = vector.multi_reduction <maximumf>, %266, %cst_79 [0] : vector<128x128xf32> to vector<128xf32>
    %268 = vector.shape_cast %267 : vector<128xf32> to vector<1x128xf32>
    %269 = vector.extract_strided_slice %5 {offsets = [0, 4], sizes = [128, 1], strides = [1, 1]} : vector<128x8xf32> to vector<128x1xf32>
    %cst_80 = arith.constant 0.000000e+00 : f32
    %270 = vector.broadcast %cst_80 : f32 to vector<128x1xf32>
    %271 = arith.cmpf ogt, %269, %270 : vector<128x1xf32>
    %cst_81 = arith.constant -1.000000e+30 : f32
    %272 = vector.shape_cast %271 : vector<128x1xi1> to vector<128x1xi1>
    %273 = vector.broadcast %272 : vector<128x1xi1> to vector<128x128xi1>
    %274 = vector.broadcast %cst_81 : f32 to vector<128x128xf32>
    %275 = arith.select %273, %232, %274 : vector<128x128xi1>, vector<128x128xf32>
    %cst_82 = arith.constant dense<0xFF800000> : vector<128xf32>
    %276 = vector.multi_reduction <maximumf>, %275, %cst_82 [0] : vector<128x128xf32> to vector<128xf32>
    %277 = vector.shape_cast %276 : vector<128xf32> to vector<1x128xf32>
    %278 = vector.extract_strided_slice %5 {offsets = [0, 5], sizes = [128, 1], strides = [1, 1]} : vector<128x8xf32> to vector<128x1xf32>
    %cst_83 = arith.constant 0.000000e+00 : f32
    %279 = vector.broadcast %cst_83 : f32 to vector<128x1xf32>
    %280 = arith.cmpf ogt, %278, %279 : vector<128x1xf32>
    %cst_84 = arith.constant -1.000000e+30 : f32
    %281 = vector.shape_cast %280 : vector<128x1xi1> to vector<128x1xi1>
    %282 = vector.broadcast %281 : vector<128x1xi1> to vector<128x128xi1>
    %283 = vector.broadcast %cst_84 : f32 to vector<128x128xf32>
    %284 = arith.select %282, %232, %283 : vector<128x128xi1>, vector<128x128xf32>
    %cst_85 = arith.constant dense<0xFF800000> : vector<128xf32>
    %285 = vector.multi_reduction <maximumf>, %284, %cst_85 [0] : vector<128x128xf32> to vector<128xf32>
    %286 = vector.shape_cast %285 : vector<128xf32> to vector<1x128xf32>
    %287 = vector.extract_strided_slice %5 {offsets = [0, 6], sizes = [128, 1], strides = [1, 1]} : vector<128x8xf32> to vector<128x1xf32>
    %cst_86 = arith.constant 0.000000e+00 : f32
    %288 = vector.broadcast %cst_86 : f32 to vector<128x1xf32>
    %289 = arith.cmpf ogt, %287, %288 : vector<128x1xf32>
    %cst_87 = arith.constant -1.000000e+30 : f32
    %290 = vector.shape_cast %289 : vector<128x1xi1> to vector<128x1xi1>
    %291 = vector.broadcast %290 : vector<128x1xi1> to vector<128x128xi1>
    %292 = vector.broadcast %cst_87 : f32 to vector<128x128xf32>
    %293 = arith.select %291, %232, %292 : vector<128x128xi1>, vector<128x128xf32>
    %cst_88 = arith.constant dense<0xFF800000> : vector<128xf32>
    %294 = vector.multi_reduction <maximumf>, %293, %cst_88 [0] : vector<128x128xf32> to vector<128xf32>
    %295 = vector.shape_cast %294 : vector<128xf32> to vector<1x128xf32>
    %296 = vector.extract_strided_slice %5 {offsets = [0, 7], sizes = [128, 1], strides = [1, 1]} : vector<128x8xf32> to vector<128x1xf32>
    %cst_89 = arith.constant 0.000000e+00 : f32
    %297 = vector.broadcast %cst_89 : f32 to vector<128x1xf32>
    %298 = arith.cmpf ogt, %296, %297 : vector<128x1xf32>
    %cst_90 = arith.constant -1.000000e+30 : f32
    %299 = vector.shape_cast %298 : vector<128x1xi1> to vector<128x1xi1>
    %300 = vector.broadcast %299 : vector<128x1xi1> to vector<128x128xi1>
    %301 = vector.broadcast %cst_90 : f32 to vector<128x128xf32>
    %302 = arith.select %300, %232, %301 : vector<128x128xi1>, vector<128x128xf32>
    %cst_91 = arith.constant dense<0xFF800000> : vector<128xf32>
    %303 = vector.multi_reduction <maximumf>, %302, %cst_91 [0] : vector<128x128xf32> to vector<128xf32>
    %304 = vector.shape_cast %303 : vector<128xf32> to vector<1x128xf32>
    %305 = tpu.concatenate %241, %250, %259, %268, %277, %286, %295, %304 in 0 : vector<1x128xf32>, vector<1x128xf32>, vector<1x128xf32>, vector<1x128xf32>, vector<1x128xf32>, vector<1x128xf32>, vector<1x128xf32>, vector<1x128xf32> -> vector<8x128xf32>
    %306 = arith.truncf %222 : vector<128x128xf32> to vector<128x128xbf16>
    %cst_92 = arith.constant dense<0.000000e+00> : vector<8x128xf32>
    %307 = tpu.matmul %10, %306, %cst_92 {dimension_numbers = #tpu.dot_dimension_numbers<[1], [0], [0], [1], [0, 0, 1, 1], [], []>} : vector<8x128xbf16>, vector<128x128xbf16>, vector<8x128xf32> -> vector<8x128xf32>
    %308 = arith.extf %10 : vector<8x128xbf16> to vector<8x128xf32>
    %309 = vector.broadcast %217 : vector<1x128xf32> to vector<8x128xf32>
    %310 = arith.mulf %308, %309 : vector<8x128xf32>
    %cst_93 = arith.constant dense<0.000000e+00> : vector<8xf32>
    %311 = vector.multi_reduction <add>, %310, %cst_93 [1] : vector<8x128xf32> to vector<8xf32>
    %312 = vector.shape_cast %311 : vector<8xf32> to vector<8x1xf32>
    %cst_94 = arith.constant 1.000000e+00 : f32
    %313 = vector.broadcast %cst_94 : f32 to vector<8x1xf32>
    %314 = arith.maximumf %312, %313 : vector<8x1xf32>
    %315 = tpu.reciprocal %314 {approx = true} : vector<8x1xf32> -> vector<8x1xf32>
    %316 = vector.broadcast %315 : vector<8x1xf32> to vector<8x128xf32>
    %317 = arith.mulf %307, %316 : vector<8x128xf32>
    %318 = tpu.concatenate %305, %317 in 1 : vector<8x128xf32>, vector<8x128xf32> -> vector<8x256xf32>
    %c0_95 = arith.constant 0 : index
    %c0_96 = arith.constant 0 : index
    %319 = vector.load %arg7[%c0_95, %c0_96] : memref<256x128xbf16, #tpu.memory_space<vmem>>, vector<256x128xbf16>
    %320 = vector.extract_strided_slice %8 {offsets = [4, 0], sizes = [1, 128], strides = [1, 1]} : vector<16x128xf32> to vector<1x128xf32>
    %321 = vector.extract_strided_slice %8 {offsets = [5, 0], sizes = [1, 128], strides = [1, 1]} : vector<16x128xf32> to vector<1x128xf32>
    %322 = arith.truncf %222 : vector<128x128xf32> to vector<128x128xbf16>
    %323 = arith.truncf %226 : vector<128x128xf32> to vector<128x128xbf16>
    %cst_97 = arith.constant dense<0.000000e+00> : vector<128x128xf32>
    %324 = tpu.matmul %323, %322, %cst_97 {dimension_numbers = #tpu.dot_dimension_numbers<[1], [0], [0], [1], [0, 0, 1, 1], [], []>} : vector<128x128xbf16>, vector<128x128xbf16>, vector<128x128xf32> -> vector<128x128xf32>
    %325 = arith.truncf %324 : vector<128x128xf32> to vector<128x128xbf16>
    %326 = tpu.concatenate %322, %325 in 1 : vector<128x128xbf16>, vector<128x128xbf16> -> vector<128x256xbf16>
    %cst_98 = arith.constant dense<0.000000e+00> : vector<128x128xf32>
    %327 = tpu.matmul %326, %319, %cst_98 {dimension_numbers = #tpu.dot_dimension_numbers<[1], [0], [0], [1], [0, 0, 1, 1], [], []>} : vector<128x256xbf16>, vector<256x128xbf16>, vector<128x128xf32> -> vector<128x128xf32>
    %328 = vector.broadcast %320 : vector<1x128xf32> to vector<128x128xf32>
    %329 = arith.addf %327, %328 : vector<128x128xf32>
    %cst_99 = arith.constant 0.000000e+00 : f32
    %330 = vector.broadcast %cst_99 : f32 to vector<128x128xf32>
    %331 = arith.maximumf %329, %330 : vector<128x128xf32>
    %332 = vector.broadcast %321 : vector<1x128xf32> to vector<128x128xf32>
    %333 = arith.mulf %331, %332 : vector<128x128xf32>
    %cst_100 = arith.constant dense<0.000000e+00> : vector<128xf32>
    %334 = vector.multi_reduction <add>, %333, %cst_100 [1] : vector<128x128xf32> to vector<128xf32>
    %335 = vector.shape_cast %334 : vector<128xf32> to vector<128x1xf32>
    %cst_101 = arith.constant 0.000000e+00 : f32
    %336 = vector.broadcast %cst_101 : f32 to vector<128x1xf32>
    %337 = arith.cmpf ogt, %216, %336 : vector<128x1xf32>
    %cst_102 = arith.constant -1.000000e+30 : f32
    %338 = vector.broadcast %cst_102 : f32 to vector<128x1xf32>
    %339 = arith.select %337, %335, %338 : vector<128x1xi1>, vector<128x1xf32>
    %340 = tpu.transpose %339, [1, 0] : vector<128x1xf32> -> vector<1x128xf32>
    %341 = vector.broadcast %340 : vector<1x128xf32> to vector<128x128xf32>
    %342 = vector.broadcast %339 : vector<128x1xf32> to vector<128x128xf32>
    %343 = arith.cmpf ogt, %341, %342 : vector<128x128xf32>
    %344 = arith.extui %343 : vector<128x128xi1> to vector<128x128xi32>
    %345 = arith.sitofp %344 : vector<128x128xi32> to vector<128x128xf32>
    %346 = vector.broadcast %340 : vector<1x128xf32> to vector<128x128xf32>
    %347 = vector.broadcast %339 : vector<128x1xf32> to vector<128x128xf32>
    %348 = arith.cmpf oeq, %346, %347 : vector<128x128xf32>
    %349 = arith.extui %348 : vector<128x128xi1> to vector<128x128xi32>
    %350 = arith.sitofp %349 : vector<128x128xi32> to vector<128x128xf32>
    %351 = arith.mulf %350, %16 : vector<128x128xf32>
    %352 = vector.broadcast %217 : vector<1x128xf32> to vector<128x128xf32>
    %353 = arith.mulf %11, %352 : vector<128x128xf32>
    %354 = arith.addf %345, %351 : vector<128x128xf32>
    %355 = arith.mulf %353, %354 : vector<128x128xf32>
    %cst_103 = arith.constant dense<0.000000e+00> : vector<128xf32>
    %356 = vector.multi_reduction <add>, %355, %cst_103 [1] : vector<128x128xf32> to vector<128xf32>
    %357 = vector.shape_cast %356 : vector<128xf32> to vector<128x1xf32>
    %cst_104 = arith.constant dense<0.000000e+00> : vector<128xf32>
    %358 = vector.multi_reduction <add>, %353, %cst_104 [1] : vector<128x128xf32> to vector<128xf32>
    %359 = vector.shape_cast %358 : vector<128xf32> to vector<128x1xf32>
    %cst_105 = arith.constant 8.000000e-01 : f32
    %360 = vector.broadcast %cst_105 : f32 to vector<128x1xf32>
    %361 = arith.mulf %360, %359 : vector<128x1xf32>
    %362 = math.ceil %361 : vector<128x1xf32>
    %363 = arith.cmpf olt, %357, %362 : vector<128x1xf32>
    %364 = arith.extui %363 : vector<128x1xi1> to vector<128x1xi32>
    %365 = arith.sitofp %364 : vector<128x1xi32> to vector<128x1xf32>
    %366 = arith.mulf %216, %365 : vector<128x1xf32>
    %367 = tpu.transpose %366, [1, 0] : vector<128x1xf32> -> vector<1x128xf32>
    %368 = math.tanh %335 : vector<128x1xf32>
    %369 = vector.broadcast %368 : vector<128x1xf32> to vector<128x128xf32>
    %370 = arith.mulf %331, %369 : vector<128x128xf32>
    %371 = vector.broadcast %366 : vector<128x1xf32> to vector<128x128xf32>
    %372 = arith.mulf %370, %371 : vector<128x128xf32>
    %cst_106 = arith.constant 0.000000e+00 : f32
    %373 = vector.broadcast %cst_106 : f32 to vector<128x1xf32>
    %374 = arith.cmpf ogt, %366, %373 : vector<128x1xf32>
    %cst_107 = arith.constant -1.000000e+30 : f32
    %375 = vector.shape_cast %374 : vector<128x1xi1> to vector<128x1xi1>
    %376 = vector.broadcast %375 : vector<128x1xi1> to vector<128x128xi1>
    %377 = vector.broadcast %cst_107 : f32 to vector<128x128xf32>
    %378 = arith.select %376, %372, %377 : vector<128x128xi1>, vector<128x128xf32>
    %379 = vector.extract_strided_slice %5 {offsets = [0, 0], sizes = [128, 1], strides = [1, 1]} : vector<128x8xf32> to vector<128x1xf32>
    %cst_108 = arith.constant 0.000000e+00 : f32
    %380 = vector.broadcast %cst_108 : f32 to vector<128x1xf32>
    %381 = arith.cmpf ogt, %379, %380 : vector<128x1xf32>
    %cst_109 = arith.constant -1.000000e+30 : f32
    %382 = vector.shape_cast %381 : vector<128x1xi1> to vector<128x1xi1>
    %383 = vector.broadcast %382 : vector<128x1xi1> to vector<128x128xi1>
    %384 = vector.broadcast %cst_109 : f32 to vector<128x128xf32>
    %385 = arith.select %383, %378, %384 : vector<128x128xi1>, vector<128x128xf32>
    %cst_110 = arith.constant dense<0xFF800000> : vector<128xf32>
    %386 = vector.multi_reduction <maximumf>, %385, %cst_110 [0] : vector<128x128xf32> to vector<128xf32>
    %387 = vector.shape_cast %386 : vector<128xf32> to vector<1x128xf32>
    %388 = vector.extract_strided_slice %5 {offsets = [0, 1], sizes = [128, 1], strides = [1, 1]} : vector<128x8xf32> to vector<128x1xf32>
    %cst_111 = arith.constant 0.000000e+00 : f32
    %389 = vector.broadcast %cst_111 : f32 to vector<128x1xf32>
    %390 = arith.cmpf ogt, %388, %389 : vector<128x1xf32>
    %cst_112 = arith.constant -1.000000e+30 : f32
    %391 = vector.shape_cast %390 : vector<128x1xi1> to vector<128x1xi1>
    %392 = vector.broadcast %391 : vector<128x1xi1> to vector<128x128xi1>
    %393 = vector.broadcast %cst_112 : f32 to vector<128x128xf32>
    %394 = arith.select %392, %378, %393 : vector<128x128xi1>, vector<128x128xf32>
    %cst_113 = arith.constant dense<0xFF800000> : vector<128xf32>
    %395 = vector.multi_reduction <maximumf>, %394, %cst_113 [0] : vector<128x128xf32> to vector<128xf32>
    %396 = vector.shape_cast %395 : vector<128xf32> to vector<1x128xf32>
    %397 = vector.extract_strided_slice %5 {offsets = [0, 2], sizes = [128, 1], strides = [1, 1]} : vector<128x8xf32> to vector<128x1xf32>
    %cst_114 = arith.constant 0.000000e+00 : f32
    %398 = vector.broadcast %cst_114 : f32 to vector<128x1xf32>
    %399 = arith.cmpf ogt, %397, %398 : vector<128x1xf32>
    %cst_115 = arith.constant -1.000000e+30 : f32
    %400 = vector.shape_cast %399 : vector<128x1xi1> to vector<128x1xi1>
    %401 = vector.broadcast %400 : vector<128x1xi1> to vector<128x128xi1>
    %402 = vector.broadcast %cst_115 : f32 to vector<128x128xf32>
    %403 = arith.select %401, %378, %402 : vector<128x128xi1>, vector<128x128xf32>
    %cst_116 = arith.constant dense<0xFF800000> : vector<128xf32>
    %404 = vector.multi_reduction <maximumf>, %403, %cst_116 [0] : vector<128x128xf32> to vector<128xf32>
    %405 = vector.shape_cast %404 : vector<128xf32> to vector<1x128xf32>
    %406 = vector.extract_strided_slice %5 {offsets = [0, 3], sizes = [128, 1], strides = [1, 1]} : vector<128x8xf32> to vector<128x1xf32>
    %cst_117 = arith.constant 0.000000e+00 : f32
    %407 = vector.broadcast %cst_117 : f32 to vector<128x1xf32>
    %408 = arith.cmpf ogt, %406, %407 : vector<128x1xf32>
    %cst_118 = arith.constant -1.000000e+30 : f32
    %409 = vector.shape_cast %408 : vector<128x1xi1> to vector<128x1xi1>
    %410 = vector.broadcast %409 : vector<128x1xi1> to vector<128x128xi1>
    %411 = vector.broadcast %cst_118 : f32 to vector<128x128xf32>
    %412 = arith.select %410, %378, %411 : vector<128x128xi1>, vector<128x128xf32>
    %cst_119 = arith.constant dense<0xFF800000> : vector<128xf32>
    %413 = vector.multi_reduction <maximumf>, %412, %cst_119 [0] : vector<128x128xf32> to vector<128xf32>
    %414 = vector.shape_cast %413 : vector<128xf32> to vector<1x128xf32>
    %415 = vector.extract_strided_slice %5 {offsets = [0, 4], sizes = [128, 1], strides = [1, 1]} : vector<128x8xf32> to vector<128x1xf32>
    %cst_120 = arith.constant 0.000000e+00 : f32
    %416 = vector.broadcast %cst_120 : f32 to vector<128x1xf32>
    %417 = arith.cmpf ogt, %415, %416 : vector<128x1xf32>
    %cst_121 = arith.constant -1.000000e+30 : f32
    %418 = vector.shape_cast %417 : vector<128x1xi1> to vector<128x1xi1>
    %419 = vector.broadcast %418 : vector<128x1xi1> to vector<128x128xi1>
    %420 = vector.broadcast %cst_121 : f32 to vector<128x128xf32>
    %421 = arith.select %419, %378, %420 : vector<128x128xi1>, vector<128x128xf32>
    %cst_122 = arith.constant dense<0xFF800000> : vector<128xf32>
    %422 = vector.multi_reduction <maximumf>, %421, %cst_122 [0] : vector<128x128xf32> to vector<128xf32>
    %423 = vector.shape_cast %422 : vector<128xf32> to vector<1x128xf32>
    %424 = vector.extract_strided_slice %5 {offsets = [0, 5], sizes = [128, 1], strides = [1, 1]} : vector<128x8xf32> to vector<128x1xf32>
    %cst_123 = arith.constant 0.000000e+00 : f32
    %425 = vector.broadcast %cst_123 : f32 to vector<128x1xf32>
    %426 = arith.cmpf ogt, %424, %425 : vector<128x1xf32>
    %cst_124 = arith.constant -1.000000e+30 : f32
    %427 = vector.shape_cast %426 : vector<128x1xi1> to vector<128x1xi1>
    %428 = vector.broadcast %427 : vector<128x1xi1> to vector<128x128xi1>
    %429 = vector.broadcast %cst_124 : f32 to vector<128x128xf32>
    %430 = arith.select %428, %378, %429 : vector<128x128xi1>, vector<128x128xf32>
    %cst_125 = arith.constant dense<0xFF800000> : vector<128xf32>
    %431 = vector.multi_reduction <maximumf>, %430, %cst_125 [0] : vector<128x128xf32> to vector<128xf32>
    %432 = vector.shape_cast %431 : vector<128xf32> to vector<1x128xf32>
    %433 = vector.extract_strided_slice %5 {offsets = [0, 6], sizes = [128, 1], strides = [1, 1]} : vector<128x8xf32> to vector<128x1xf32>
    %cst_126 = arith.constant 0.000000e+00 : f32
    %434 = vector.broadcast %cst_126 : f32 to vector<128x1xf32>
    %435 = arith.cmpf ogt, %433, %434 : vector<128x1xf32>
    %cst_127 = arith.constant -1.000000e+30 : f32
    %436 = vector.shape_cast %435 : vector<128x1xi1> to vector<128x1xi1>
    %437 = vector.broadcast %436 : vector<128x1xi1> to vector<128x128xi1>
    %438 = vector.broadcast %cst_127 : f32 to vector<128x128xf32>
    %439 = arith.select %437, %378, %438 : vector<128x128xi1>, vector<128x128xf32>
    %cst_128 = arith.constant dense<0xFF800000> : vector<128xf32>
    %440 = vector.multi_reduction <maximumf>, %439, %cst_128 [0] : vector<128x128xf32> to vector<128xf32>
    %441 = vector.shape_cast %440 : vector<128xf32> to vector<1x128xf32>
    %442 = vector.extract_strided_slice %5 {offsets = [0, 7], sizes = [128, 1], strides = [1, 1]} : vector<128x8xf32> to vector<128x1xf32>
    %cst_129 = arith.constant 0.000000e+00 : f32
    %443 = vector.broadcast %cst_129 : f32 to vector<128x1xf32>
    %444 = arith.cmpf ogt, %442, %443 : vector<128x1xf32>
    %cst_130 = arith.constant -1.000000e+30 : f32
    %445 = vector.shape_cast %444 : vector<128x1xi1> to vector<128x1xi1>
    %446 = vector.broadcast %445 : vector<128x1xi1> to vector<128x128xi1>
    %447 = vector.broadcast %cst_130 : f32 to vector<128x128xf32>
    %448 = arith.select %446, %378, %447 : vector<128x128xi1>, vector<128x128xf32>
    %cst_131 = arith.constant dense<0xFF800000> : vector<128xf32>
    %449 = vector.multi_reduction <maximumf>, %448, %cst_131 [0] : vector<128x128xf32> to vector<128xf32>
    %450 = vector.shape_cast %449 : vector<128xf32> to vector<1x128xf32>
    %451 = tpu.concatenate %387, %396, %405, %414, %423, %432, %441, %450 in 0 : vector<1x128xf32>, vector<1x128xf32>, vector<1x128xf32>, vector<1x128xf32>, vector<1x128xf32>, vector<1x128xf32>, vector<1x128xf32>, vector<1x128xf32> -> vector<8x128xf32>
    %452 = arith.truncf %372 : vector<128x128xf32> to vector<128x128xbf16>
    %cst_132 = arith.constant dense<0.000000e+00> : vector<8x128xf32>
    %453 = tpu.matmul %10, %452, %cst_132 {dimension_numbers = #tpu.dot_dimension_numbers<[1], [0], [0], [1], [0, 0, 1, 1], [], []>} : vector<8x128xbf16>, vector<128x128xbf16>, vector<8x128xf32> -> vector<8x128xf32>
    %454 = arith.extf %10 : vector<8x128xbf16> to vector<8x128xf32>
    %455 = vector.broadcast %367 : vector<1x128xf32> to vector<8x128xf32>
    %456 = arith.mulf %454, %455 : vector<8x128xf32>
    %cst_133 = arith.constant dense<0.000000e+00> : vector<8xf32>
    %457 = vector.multi_reduction <add>, %456, %cst_133 [1] : vector<8x128xf32> to vector<8xf32>
    %458 = vector.shape_cast %457 : vector<8xf32> to vector<8x1xf32>
    %cst_134 = arith.constant 1.000000e+00 : f32
    %459 = vector.broadcast %cst_134 : f32 to vector<8x1xf32>
    %460 = arith.maximumf %458, %459 : vector<8x1xf32>
    %461 = tpu.reciprocal %460 {approx = true} : vector<8x1xf32> -> vector<8x1xf32>
    %462 = vector.broadcast %461 : vector<8x1xf32> to vector<8x128xf32>
    %463 = arith.mulf %453, %462 : vector<8x128xf32>
    %464 = tpu.concatenate %451, %463 in 1 : vector<8x128xf32>, vector<8x128xf32> -> vector<8x256xf32>
    %465 = arith.addf %168, %318 : vector<8x256xf32>
    %466 = arith.addf %465, %464 : vector<8x256xf32>
    %c0_135 = arith.constant 0 : index
    %c0_136 = arith.constant 0 : index
    %467 = vector.load %arg8[%c0_135, %c0_136] : memref<384x128xbf16, #tpu.memory_space<vmem>>, vector<256x128xbf16>
    %c256 = arith.constant 256 : index
    %c0_137 = arith.constant 0 : index
    %468 = vector.load %arg8[%c256, %c0_137] : memref<384x128xbf16, #tpu.memory_space<vmem>>, vector<128x128xbf16>
    %469 = vector.extract_strided_slice %8 {offsets = [6, 0], sizes = [1, 128], strides = [1, 1]} : vector<16x128xf32> to vector<1x128xf32>
    %470 = vector.extract_strided_slice %8 {offsets = [7, 0], sizes = [1, 128], strides = [1, 1]} : vector<16x128xf32> to vector<1x128xf32>
    %471 = vector.extract_strided_slice %8 {offsets = [8, 0], sizes = [1, 128], strides = [1, 1]} : vector<16x128xf32> to vector<1x128xf32>
    %472 = vector.extract_strided_slice %8 {offsets = [9, 0], sizes = [1, 1], strides = [1, 1]} : vector<16x128xf32> to vector<1x1xf32>
    %473 = arith.truncf %466 : vector<8x256xf32> to vector<8x256xbf16>
    %cst_138 = arith.constant dense<0.000000e+00> : vector<8x128xf32>
    %474 = tpu.matmul %473, %467, %cst_138 {dimension_numbers = #tpu.dot_dimension_numbers<[1], [0], [0], [1], [0, 0, 1, 1], [], []>} : vector<8x256xbf16>, vector<256x128xbf16>, vector<8x128xf32> -> vector<8x128xf32>
    %475 = vector.broadcast %469 : vector<1x128xf32> to vector<8x128xf32>
    %476 = arith.addf %474, %475 : vector<8x128xf32>
    %cst_139 = arith.constant 0.000000e+00 : f32
    %477 = vector.broadcast %cst_139 : f32 to vector<8x128xf32>
    %478 = arith.maximumf %476, %477 : vector<8x128xf32>
    %479 = arith.truncf %478 : vector<8x128xf32> to vector<8x128xbf16>
    %cst_140 = arith.constant dense<0.000000e+00> : vector<8x128xf32>
    %480 = tpu.matmul %479, %468, %cst_140 {dimension_numbers = #tpu.dot_dimension_numbers<[1], [0], [0], [1], [0, 0, 1, 1], [], []>} : vector<8x128xbf16>, vector<128x128xbf16>, vector<8x128xf32> -> vector<8x128xf32>
    %481 = vector.broadcast %470 : vector<1x128xf32> to vector<8x128xf32>
    %482 = arith.addf %480, %481 : vector<8x128xf32>
    %cst_141 = arith.constant 0.000000e+00 : f32
    %483 = vector.broadcast %cst_141 : f32 to vector<8x128xf32>
    %484 = arith.maximumf %482, %483 : vector<8x128xf32>
    %485 = vector.broadcast %471 : vector<1x128xf32> to vector<8x128xf32>
    %486 = arith.mulf %484, %485 : vector<8x128xf32>
    %cst_142 = arith.constant dense<0.000000e+00> : vector<8xf32>
    %487 = vector.multi_reduction <add>, %486, %cst_142 [1] : vector<8x128xf32> to vector<8xf32>
    %488 = vector.shape_cast %487 : vector<8xf32> to vector<8x1xf32>
    %489 = vector.broadcast %472 : vector<1x1xf32> to vector<8x1xf32>
    %490 = arith.addf %488, %489 : vector<8x1xf32>
    %491 = arith.negf %490 : vector<8x1xf32>
    %492 = math.exp %491 : vector<8x1xf32>
    %cst_143 = arith.constant 1.000000e+00 : f32
    %493 = vector.broadcast %cst_143 : f32 to vector<8x1xf32>
    %494 = arith.addf %493, %492 : vector<8x1xf32>
    %495 = arith.divf %493, %494 : vector<8x1xf32>
    %496 = vector.shape_cast %495 : vector<8x1xf32> to vector<8x1xf32>
    %497 = vector.broadcast %496 : vector<8x1xf32> to vector<8x128xf32>
    %c0_144 = arith.constant 0 : index
    %c0_145 = arith.constant 0 : index
    %c0_146 = arith.constant 0 : index
    %498 = vector.load %arg10[%c0_144, %c0_145, %c0_146] : memref<1x8x128xf32, #tpu.memory_space<vmem>>, vector<1x8x128xf32>
    %499 = vector.shape_cast %498 : vector<1x8x128xf32> to vector<8x128xf32>
    %500 = vector.shape_cast %497 : vector<8x128xf32> to vector<1x8x128xf32>
    tpu.vector_store %arg10[%c0_144, %c0_145, %c0_146], %500 {strides = array<i32>} : memref<1x8x128xf32, #tpu.memory_space<vmem>>, vector<1x8x128xf32>,
    return
  }
  func.func @transform_0(%arg0: i32) -> (i32, i32, i32) {
    %c0_i32 = arith.constant 0 : i32
    %c0_i32_0 = arith.constant 0 : i32
    %c0_i32_1 = arith.constant 0 : i32
    return %arg0, %c0_i32, %c0_i32_0 : i32, i32, i32
  }
  func.func @transform_1(%arg0: i32) -> (i32, i32, i32) {
    %c0_i32 = arith.constant 0 : i32
    %c0_i32_0 = arith.constant 0 : i32
    %c0_i32_1 = arith.constant 0 : i32
    return %arg0, %c0_i32, %c0_i32_0 : i32, i32, i32
  }
  func.func @transform_2(%arg0: i32) -> (i32, i32, i32) {
    %c0_i32 = arith.constant 0 : i32
    %c0_i32_0 = arith.constant 0 : i32
    %c0_i32_1 = arith.constant 0 : i32
    return %arg0, %c0_i32, %c0_i32_0 : i32, i32, i32
  }
  func.func @transform_3(%arg0: i32) -> (i32, i32, i32) {
    %c0_i32 = arith.constant 0 : i32
    %c0_i32_0 = arith.constant 0 : i32
    %c0_i32_1 = arith.constant 0 : i32
    return %arg0, %c0_i32, %c0_i32_0 : i32, i32, i32
  }
  func.func @transform_4(%arg0: i32) -> (i32, i32) {
    %c0_i32 = arith.constant 0 : i32
    %c0_i32_0 = arith.constant 0 : i32
    %c0_i32_1 = arith.constant 0 : i32
    return %c0_i32, %c0_i32_0 : i32, i32
  }
  func.func @transform_5(%arg0: i32) -> (i32, i32) {
    %c0_i32 = arith.constant 0 : i32
    %c0_i32_0 = arith.constant 0 : i32
    %c0_i32_1 = arith.constant 0 : i32
    return %c0_i32, %c0_i32_0 : i32, i32
  }
  func.func @transform_6(%arg0: i32) -> (i32, i32) {
    %c0_i32 = arith.constant 0 : i32
    %c0_i32_0 = arith.constant 0 : i32
    %c0_i32_1 = arith.constant 0 : i32
    return %c0_i32, %c0_i32_0 : i32, i32
  }
  func.func @transform_7(%arg0: i32) -> (i32, i32) {
    %c0_i32 = arith.constant 0 : i32
    %c0_i32_0 = arith.constant 0 : i32
    %c0_i32_1 = arith.constant 0 : i32
    return %c0_i32, %c0_i32_0 : i32, i32
  }
  func.func @transform_8(%arg0: i32) -> (i32, i32) {
    %c0_i32 = arith.constant 0 : i32
    %c0_i32_0 = arith.constant 0 : i32
    %c0_i32_1 = arith.constant 0 : i32
    return %c0_i32, %c0_i32_0 : i32, i32
  }
  func.func @transform_9(%arg0: i32) -> (i32, i32, i32) {
    %c0_i32 = arith.constant 0 : i32
    %c0_i32_0 = arith.constant 0 : i32
    %c0_i32_1 = arith.constant 0 : i32
    return %arg0, %c0_i32, %c0_i32_0 : i32, i32, i32
  }
}

</mosaic_0001>

<bundles_post_ra>
// kernel: tpu_custom_call.1
= control target key start
LH: loop header
LB: loop body
LE: loop exit
PB: predicated region body
PF: predicated region fallthrough
CT: control target
= control target key end

     0   :  { %s12170_s0 = inlined_call_operand.vmem [shape: f32[4,128,128], index: 0, kind: input, shape index: {}]   ;;  %s12171_s1 = inlined_call_operand.hbm [shape: f32[4,128,128], index: 1, kind: input, shape index: {}]   ;;  %s12172_s2 = inlined_call_operand.vmem [shape: f32[4,128,8], index: 2, kind: input, shape index: {}]   ;;  %s12173_s3 = inlined_call_operand.vmem [shape: f32[4,8,128], index: 3, kind: input, shape index: {}]   ;;  %s12174_s4 = inlined_call_operand.hbm [shape: bf16[256,128], index: 4, kind: input, shape index: {}]   ;;  %s12175_s5 = inlined_call_operand.hbm [shape: bf16[256,128], index: 5, kind: input, shape index: {}]   ;;  %s12176_s6 = inlined_call_operand.hbm [shape: bf16[256,128], index: 6, kind: input, shape index: {}]   ;;  %s12177_s7 = inlined_call_operand.hbm [shape: bf16[384,128], index: 7, kind: input, shape index: {}]   ;;  %s12178_s8 = inlined_call_operand.vmem [shape: f32[16,128], index: 8, kind: input, shape index: {}]   ;;  %s12179_s9 = inlined_call_operand.hbm [shape: f32[4,8,128], index: 9, kind: output, shape index: {}]  }
   0x1   :  { %12846 = sst [smem:[#allocation211_spill]] %s12179_s9 }
   0x2   :  { %14 = vsyncpa [#allocation3], 0 }
   0x3   :  { %16 = vsyncpa [#allocation3 + $0x1], 0 }
   0x4   :  { %17 = vsyncpa [#allocation6], 0 }
   0x5   :  { %18 = vsyncpa [#allocation9], 0 }
   0x6   :  { %19 = vsyncpa [#allocation4], 0 }
   0x7   :  { %21 = vsyncpa [#allocation4 + $0x1], 0  ;;  %s7048_s30 = smov 0   ;;  %s7050_s10 = smov 0  }
   0x8   :  { %s7052_s11 = smov 0   ;;  %s7054_s12 = smov 0  }
   0x9 LB: > { %12847 = sst [smem:[#allocation16_spill]] %s6964_s30  ;;  %s7069_s13 = sadd.s32 4294967295, %s6976_s12   ;;  %s6976_s12 = sphi %s7054_s12, %s13950_s12   ;;  %s6972_s11 = sphi %s7052_s11, %s13949_s11   ;;  %s6968_s10 = sphi %s7050_s10, %s13948_s10   ;;  %s6964_s30 = sphi %s7048_s30, %s13947_s30  }
   0xa   : > { %s5644_s14 = sadd.s32 4294967294, %s6976_s12   ;;  %p73_p0 = scmp.ne.s32.totalorder %s6968_s10, %s6964_s30 }
   0xb   : > { %p12180_p1 = scmp.eq.s32.totalorder %s7069_s13, 0  ;;  %p260_p3 = scmp.eq.s32.totalorder %s5644_s14, 3 }
   0xc   : > { %p5645_p5 = scmp.ge.s32.totalorder %s6976_s12, 1  ;;  %p267_p7 = scmp.lt.s32.totalorder %s6976_s12, 5 }
   0xd   : > { %p7078_p4 = por %p12180_p1, %p73_p0  ;;  %p7083_p6 = por %p260_p3, %p73_p0 }
   0xe   : > { %p7088_p8 = pnand %p5645_p5, %p267_p7  ;;  %s6978_s18 = smov [#allocation5]  }
   0xf   : > { %s12848_s15 = scalar_select %p7078_p4, 1, 0 }
  0x10   : > { %s12849_s16 = scalar_select %p7083_p6, 1, 0 }
  0x11   : > { %s12851_s17 = scalar_select %p7088_p8, 1, 0 }
  0x12   : > { %12850 = sst [smem:[#allocation17_spill]] %s12849_s16  ;;  %s279_s19 = sshll.u32 %s6978_s18, 4  ;;  %s7092_s19 = int_to_ptr.vmem [resolvable:$true] %s279_s19 }
  0x13   : > { %p6436_p9 = pneg %p7088_p8  ;;  %s6979_s21 = smov [#allocation8]  }
  0x14   : > { %s305_s22 = sshll.u32 %s6979_s21, 4  ;;  %s6980_s23 = smov [#allocation7]   ;;  %s7102_s22 = int_to_ptr.vmem [resolvable:$true] %s305_s22 }
  0x15   : > { %p7098_p10 = pnand %p6436_p9, %p12180_p1  ;;  %s7104_s24 = sshll.u32 %s6980_s23, 4  ;;  %s293_s24 = int_to_ptr.vmem [resolvable:$true] %s7104_s24 }
  0x16   : > { %s6760_s27 = scalar_lea.hbm %s12174_s4, 2048 }
  0x17   : > { %p6761_p11 = scmp.ne.s32.totalorder %s12174_s4, %s6760_s27  ;;  %p7114_p12 = pneg %p7098_p10 }
  0x18   : > { %p6767_p3 = scmp.lt.u32.totalorder %s6760_s27, %s12174_s4 }
  0x19   : > { %p6763_p13 = pnand %p7114_p12, %p6761_p11 }
  0x1b   : > { %p6764_p0 = pneg %p6763_p13 }
  0x1d   : > { %p6769_p5 = pnand %p6767_p3, %p6764_p0 }
  0x1f   : > { %6772 = shalt.err (!%p6769_p5)
}
  0x20   : > { %s6773_s23 = scalar_lea.vmem %s7092_s19, 2048  ;;  %p6781_p2 = scmp.lt.s32.totalorder %s7092_s19, %s7092_s19 }
  0x21   : > { %p6774_p7 = scmp.ne.s32.totalorder %s7092_s19, %s6773_s23  ;;  %p6782_p6 = scmp.lt.s32.totalorder %s6773_s23, %s6773_s23 }
  0x23   : > { %p6776_p9 = pnand %p6774_p7, %p7114_p12  ;;  %p6783_p11 = por %p6782_p6, %p6781_p2 }
  0x25   : > { %p6777_p1 = pneg %p6776_p9 }
  0x27   : > { %p6784_p13 = pnand %p6783_p11, %p6777_p1 }
  0x29   : > { %6787 = shalt.err (!%p6784_p13)
}
  0x2a   : > { %s6981_s25 = smov 64   ;;  %s6982_s26 = smov 4  }
  0x2b   : > { %6439 = dma.hbm_to_vmem [thread:$0]  (!%p7098_p10), %s12174_s4, 2048, %s7092_s19, [#allocation6], %s6981_s25, %s6981_s25, %s6982_s26  }
  0x2c   : > { %s6788_s21 = scalar_lea.hbm %s12176_s6, 2048 }
  0x2d   : > { %p6789_p1 = scmp.ne.s32.totalorder %s12176_s6, %s6788_s21  ;;  %p6795_p0 = scmp.lt.u32.totalorder %s6788_s21, %s12176_s6 }
  0x2f   : > { %p6791_p2 = pnand %p6789_p1, %p7114_p12 }
  0x31   : > { %p6792_p6 = pneg %p6791_p2 }
  0x33   : > { %p6797_p3 = pnand %p6795_p0, %p6792_p6 }
  0x35   : > { %6800 = shalt.err (!%p6797_p3)
}
  0x36   : > { %s6801_s19 = scalar_lea.vmem %s7102_s22, 2048  ;;  %p6809_p11 = scmp.lt.s32.totalorder %s7102_s22, %s7102_s22 }
  0x37   : > { %p6802_p5 = scmp.ne.s32.totalorder %s7102_s22, %s6801_s19  ;;  %p6810_p13 = scmp.lt.s32.totalorder %s6801_s19, %s6801_s19 }
  0x39   : > { %p6804_p7 = pnand %p6802_p5, %p7114_p12  ;;  %p6811_p1 = por %p6810_p13, %p6809_p11 }
  0x3b   : > { %p6805_p9 = pneg %p6804_p7 }
  0x3d   : > { %p6812_p2 = pnand %p6811_p1, %p6805_p9 }
  0x3f   : > { %6815 = shalt.err (!%p6812_p2)
}
  0x40   : > { %6445 = dma.hbm_to_vmem [thread:$0]  (!%p7098_p10), %s12176_s6, 2048, %s7102_s22, [#allocation9], %s6981_s25, %s6981_s25, %s6982_s26  }
  0x41   : > { %s6816_s28 = scalar_lea.hbm %s12175_s5, 2048 }
  0x42   : > { %p6817_p6 = scmp.ne.s32.totalorder %s12175_s5, %s6816_s28  ;;  %p6823_p5 = scmp.lt.u32.totalorder %s6816_s28, %s12175_s5 }
  0x44   : > { %p6819_p0 = pnand %p6817_p6, %p7114_p12 }
  0x46   : > { %p6820_p3 = pneg %p6819_p0 }
  0x48   : > { %p6825_p7 = pnand %p6823_p5, %p6820_p3 }
  0x4a   : > { %6828 = shalt.err (!%p6825_p7)
}
  0x4b   : > { %s6829_s19 = scalar_lea.vmem %s293_s24, 2048  ;;  %p6837_p1 = scmp.lt.s32.totalorder %s293_s24, %s293_s24 }
  0x4c   : > { %p6830_p9 = scmp.ne.s32.totalorder %s293_s24, %s6829_s19  ;;  %p6838_p2 = scmp.lt.s32.totalorder %s6829_s19, %s6829_s19 }
  0x4e   : > { %p6832_p11 = pnand %p6830_p9, %p7114_p12  ;;  %p6839_p4 = por %p6838_p2, %p6837_p1 }
  0x50   : > { %p6833_p13 = pneg %p6832_p11 }
  0x52   : > { %p6840_p8 = pnand %p6839_p4, %p6833_p13 }
  0x54   : > { %6843 = shalt.err (!%p6840_p8)
}
  0x55   : > { %6442 = dma.hbm_to_vmem [thread:$0]  (!%p7098_p10), %s12175_s5, 2048, %s293_s24, [#allocation6], %s6981_s25, %s6981_s25, %s6982_s26  }
  0x56   : > { %s6983_s30 = smov [#allocation10]   ;;  %s6844_s29 = scalar_lea.hbm %s12177_s7, 3072 }
  0x57   : > { %s318_s16 = sshll.u32 %s6983_s30, 4  ;;  %p6845_p4 = scmp.ne.s32.totalorder %s12177_s7, %s6844_s29  ;;  %s319_s16 = int_to_ptr.vmem [resolvable:$true] %s318_s16 }
  0x58   : > { %p6851_p0 = scmp.lt.u32.totalorder %s6844_s29, %s12177_s7 }
  0x59   : > { %p6847_p8 = pnand %p6845_p4, %p7114_p12 }
  0x5b   : > { %p6848_p6 = pneg %p6847_p8 }
  0x5d   : > { %p6853_p3 = pnand %p6851_p0, %p6848_p6 }
  0x5f   : > { %6856 = shalt.err (!%p6853_p3)
}
  0x60   : > { %s6857_s24 = scalar_lea.vmem %s319_s16, 3072  ;;  %p6865_p11 = scmp.lt.s32.totalorder %s319_s16, %s319_s16 }
  0x61   : > { %p6858_p5 = scmp.ne.s32.totalorder %s319_s16, %s6857_s24  ;;  %p6866_p13 = scmp.lt.s32.totalorder %s6857_s24, %s6857_s24 }
  0x63   : > { %p6860_p7 = pnand %p6858_p5, %p7114_p12  ;;  %p6867_p1 = por %p6866_p13, %p6865_p11 }
  0x65   : > { %p6861_p9 = pneg %p6860_p7 }
  0x67   : > { %p6868_p2 = pnand %p6867_p1, %p6861_p9 }
  0x69   : > { %6871 = shalt.err (!%p6868_p2)
}
  0x6a   : > { %6448 = dma.hbm_to_vmem [thread:$0]  (!%p7098_p10), %s12177_s7, 3072, %s319_s16, [#allocation9], %s6981_s25, %s6981_s25, %s6982_s26  }
  0x6b   : > { %s7208_s14 = sadd.s32 1, %s6976_s12   ;;  %s60_s20 = sadd.s32 1, %s6972_s11 }
  0x6c   : > { %s57_s30 = ssub.s32 %s6976_s12, %s7208_s14  ;;  %p67_p12 = scmp.ne.s32.totalorder %s6972_s11, %s6968_s10 }
  0x6d   : > { %p58_p4 = scmp.eq.s32.totalorder %s57_s30, 0  ;;  %p68_p8 = scmp.eq.s32.totalorder %s6976_s12, 0 }
  0x6e   : > { %p12854_p6 = scmp.eq.s32.totalorder %s7069_s13, 3  ;;  %p6461_p3 = scmp.lt.s32.totalorder %s6976_s12, 4 }
  0x6f   : > { %s7224_s28 = scalar_select %p58_p4, %s6972_s11, %s60_s20  }
  0x70   : > { %p7218_p0 = por %p12854_p6, %p67_p12  ;;  %p69_p5 = por %p68_p8, %p67_p12 }
  0x71   : > { %s343_s29 = sand.u32 1, %s6972_s11   ;;  %s5911_s25 = sshll.u32 %s6976_s12, 11 }
  0x72   : > { %s5651_s18 = sshll.u32 %s343_s29, 7  ;;  %s7231_s21 = scalar_lea.hbm %s12171_s1, %s5911_s25 }
  0x73   : > { %s347_s23 = scalar_lea.vmem [#allocation2], %s5651_s18  ;;  %p7235_p10 = pnand %p6461_p3, %p69_p5 }
  0x74   : > { %s354_s19 = sshll.u32 %s347_s23, 4  ;;  %s7239_s22 = scalar_lea.sflag [#allocation3], %s343_s29  ;;  %s7233_s19 = int_to_ptr.vmem [resolvable:$true] %s354_s19 }
  0x75   : > { %s6872_s9 = scalar_lea.hbm %s7231_s21, 2048  ;;  %p6874_p9 = pneg %p7235_p10 }
  0x76   : > { %p6873_p7 = scmp.ne.s32.totalorder %s7231_s21, %s6872_s9  ;;  %s6877_s18 = scalar_lea.hbm %s12171_s1, 8192 }
  0x77   : > { %p6878_p1 = scmp.lt.u32.totalorder %s7231_s21, %s12171_s1  ;;  %p6879_p2 = scmp.lt.u32.totalorder %s6877_s18, %s6872_s9 }
  0x78   : > { %p6875_p11 = pnand %p6874_p9, %p6873_p7  ;;  %p6881_p4 = scmp.lt.u32.totalorder %s6872_s9, %s7231_s21 }
  0x79   : > { %p6880_p12 = por %p6879_p2, %p6878_p1 }
  0x7a   : > { %p6876_p13 = pneg %p6875_p11 }
  0x7b   : > { %p6882_p8 = por %p6881_p4, %p6880_p12 }
  0x7d   : > { %p6883_p6 = pnand %p6882_p8, %p6876_p13 }
  0x7f   : > { %6886 = shalt.err (!%p6883_p6)
}
  0x80   : > { %s6887_s29 = scalar_lea.vmem %s7233_s19, 2048  ;;  %s6984_s16 = smov [#allocation2]  }
  0x81   : > { %p6888_p3 = scmp.ne.s32.totalorder %s7233_s19, %s6887_s29  ;;  %s6892_s23 = sshll.u32 %s6984_s16, 4  ;;  %s6893_s23 = int_to_ptr.vmem [resolvable:$false] %s6892_s23 }
  0x82   : > { %s6894_s20 = scalar_lea.vmem %s6893_s23, 4096  ;;  %p6895_p11 = scmp.lt.s32.totalorder %s7233_s19, %s6893_s23 }
  0x83   : > { %p6890_p5 = pnand %p6888_p3, %p6874_p9  ;;  %p6896_p1 = scmp.lt.s32.totalorder %s6894_s20, %s6887_s29 }
  0x85   : > { %p6891_p7 = pneg %p6890_p5  ;;  %p6897_p2 = por %p6896_p1, %p6895_p11 }
  0x87   : > { %p6898_p12 = pnand %p6897_p2, %p6891_p7 }
  0x89   : > { %6901 = shalt.err (!%p6898_p12)
}
  0x8a   : > { %s6985_s9 = smov 128   ;;  %s6986_s30 = smov 8  }
  0x8b   : > { %6452 = dma.hbm_to_vmem [thread:$0]  (!%p7235_p10), %s7231_s21, 2048, %s7233_s19, %s7239_s22, %s6985_s9, %s6985_s9, %s6986_s30  }
  0x8c   : > { %p12857_p9 = scmp.ne.s32.totalorder %s12851_s17, 0 }
  0x8e   : > { %381 = sbr.rel (%p12857_p9) target bundleno = 4333 (0x10ed), region = 56 }
  0x95   : > { %s7270_s18 = sand.u32 1, %s6968_s10   ;;  %p12858_p13 = scmp.ne.s32.totalorder %s12848_s15, 0 }
  0x96   : > { %s5655_s25 = sshll.u32 %s7270_s18, 7  ;;  %s384_s26 = scalar_lea.sflag [#allocation3], %s7270_s18 }
  0x97   : > { %s7274_s29 = scalar_lea.vmem [#allocation2], %s5655_s25 }
  0x98   : > { %6947 = dma.done.wait (%p12858_p13), %s384_s26, 2048  }
  0x99   : > { %6949 = vsyncadd (%p12858_p13), %s384_s26, 4294965248  ;;  %p12859_p10 = scmp.eq.s32.totalorder %s7069_s13, 0 }
  0x9b   : > { %6951 = dma.done.wait (%p12859_p10), [#allocation6], 4096   ;;  %p12860_p4 = pmov %p12859_p10 }
  0x9d   : > { %6953 = vsyncadd (%p12860_p4), [#allocation6], 4294963200  ;;  %p12861_p8 = pmov %p12860_p4 }
  0x9e   : > { %p12862_p6 = pmov %p12860_p4 }
  0x9f   : > { %6955 = dma.done.wait (%p12861_p8), [#allocation9], 5120  }
  0xa0   : > { %6957 = vsyncadd (%p12862_p6), [#allocation9], 4294962176  ;;  %p452_p3 = scmp.lt.s32.totalorder %s7069_s13, 3  ;;  %v483_v9 = vld [vmem:[%s7274_s29] sm:$0xff]  ;;  %v484_v10 = vld [vmem:[%s7274_s29 + $0x8] sm:$0xff]  ;;  %vm12336_vm0 = vcmask 1043456  }
  0xa1   : > { %v760_v13 = vpack.c.bf16 %v484_v10, %v483_v9  ;;  %vm527_vm1 = vcmask 64512   ;;  %v6547_v28 = vld [vmem:[#allocation5 + $0x40] sm:$0xff]   ;;  %v6549_v32 = vld [vmem:[#allocation5 + $0x48] sm:$0xff]   ;;  %v6551_v43 = vld [vmem:[#allocation5 + $0x50] sm:$0xff]   ;;  %s5487_s15 = scalar_lea.sflag [#allocation4], %s7270_s18 }
  0xa2   : > { %s453_s17 = scalar_select %p452_p3, %s7069_s13, 3  ;;  %v6548_v30 = vld [vmem:[#allocation5] sm:$0xff]   ;;  %v6550_v38 = vld [vmem:[#allocation5 + $0x8] sm:$0xff]   ;;  %v6552_v46 = vld [vmem:[#allocation5 + $0x10] sm:$0xff]  }
  0xa3   : > { %6255 = vmatprep.mubr.bf16.mxu1 %v760_v13  ;;  %v6553_v49 = vld [vmem:[#allocation5 + $0x58] sm:$0xff]   ;;  %v485_v54 = vld [vmem:[%s7274_s29 + $0x10] sm:$0xff]  ;;  %v6555_v57 = vld [vmem:[#allocation5 + $0x60] sm:$0xff]  }
  0xa4   : > { %s5912_s21 = sshll.u32 %s453_s17, 7  ;;  %s5665_s22 = sshll.u32 %s453_s17, 3  ;;  %v6554_v51 = vld [vmem:[#allocation5 + $0x18] sm:$0xff]   ;;  %v487_v58 = vld [vmem:[%s7274_s29 + $0x20] sm:$0xff]  ;;  %v488_v61 = vld [vmem:[%s7274_s29 + $0x28] sm:$0xff] }
  0xa5   : > { %s7293_s24 = scalar_lea.vmem %s12170_s0, %s5912_s21  ;;  %s465_s20 = scalar_lea.vmem %s12173_s3, %s5665_s22  ;;  %v486_v55 = vld [vmem:[%s7274_s29 + $0x18] sm:$0xff]  ;;  %v6556_v63 = vld [vmem:[#allocation5 + $0x20] sm:$0xff]   ;;  %v6559_v10 = vld [vmem:[#allocation5 + $0x70] sm:$0xff]  }
  0xa6   : > { %v467_v0 = vld [vmem:[%s7293_s24] sm:$0xff]  ;;  %v468_v1 = vld [vmem:[%s7293_s24 + $0x8] sm:$0xff]  ;;  %v469_v2 = vld [vmem:[%s7293_s24 + $0x10] sm:$0xff]  ;;  %s7321_s25 = scalar_lea.vmem %s12172_s2, %s5912_s21 }
  0xa7   : > { %v7298_v3 = vpack.c.bf16 %v468_v1, %v467_v0  ;;  %v470_v4 = vld [vmem:[%s7293_s24 + $0x18] sm:$0xff]  ;;  %v471_v6 = vld [vmem:[%s7293_s24 + $0x20] sm:$0xff]  ;;  %v472_v7 = vld [vmem:[%s7293_s24 + $0x28] sm:$0xff]  ;;  %v761_v1 = vpack.c.bf16 %v486_v55, %v485_v54 }
  0xa8   : > { %v7301_v5 = vpack.c.bf16 %v470_v4, %v469_v2  ;;  %v7308_v8 = vpack.c.bf16 %v472_v7, %v471_v6  ;;  %v473_v11 = vld [vmem:[%s7293_s24 + $0x30] sm:$0xff]  ;;  %v474_v12 = vld [vmem:[%s7293_s24 + $0x38] sm:$0xff]  ;;  %v475_v15 = vld [vmem:[%s7293_s24 + $0x40] sm:$0xff]  ;;  %v762_v4 = vpack.c.bf16 %v488_v61, %v487_v58 }
  0xa9   : > { %6239 = vmatprep.subr.bf16.mxu1 %v7298_v3  ;;  %v7324_v14 = vpack.c.bf16 %v474_v12, %v473_v11  ;;  %v476_v16 = vld [vmem:[%s7293_s24 + $0x48] sm:$0xff]  ;;  %v515_v17 = vld [vmem:[%s465_s20] sm:$0xff]  ;;  %v501_v21 = vld [vmem:[%s7321_s25 + $0x10] sm:$0xff]  ;;  %s5660_s20 = sshll.u32 %s7270_s18, 3 }
  0xaa   : > { %6240 = vmatpush3.bf16.msra.mxu1 %v7298_v3  ;;  %v7328_v18 = vpack.c.bf16 %v515_v17, %v515_v17  ;;  %v499_v19 = vld [vmem:[%s7321_s25] sm:$0xff]  ;;  %v500_v20 = vld [vmem:[%s7321_s25 + $0x8] sm:$0xff]  ;;  %v502_v23 = vld [vmem:[%s7321_s25 + $0x18] sm:$0xff]  ;;  %v7336_v24 = vpack.c.bf16 %v476_v16, %v475_v15  ;;  %s451_s9 = scalar_lea.vmem [#allocation11], %s5660_s20 }
  0xab   : > { %6241 = vmatprep.subr.bf16.mxu1 %v7301_v5  ;;  %v518_v22 = vpack.c.bf16 %v500_v20, %v499_v19  ;;  %v477_v25 = vld [vmem:[%s7293_s24 + $0x50] sm:$0xff]  ;;  %v519_v27 = vpack.c.bf16 %v502_v23, %v501_v21  ;;  %v478_v29 = vld [vmem:[%s7293_s24 + $0x58] sm:$0xff]  ;;  %v479_v31 = vld [vmem:[%s7293_s24 + $0x60] sm:$0xff]  ;;  %s5500_s30 = sshll.u32 %s451_s9, 4  ;;  %s12124_s30 = int_to_ptr.vmem [resolvable:$true] %s5500_s30 }
  0xac   : > { %12863 = vst [vmem:[#allocation18_spill] sm:$0xff] %v7328_v18  ;;  %6415 = vmatprep.subr.msk.bf16.mxu0 %vm12336_vm0, %v7328_v18  ;;  %v554_v26 = vsel %vm12336_vm0, %v7328_v18, 0  ;;  %v503_v33 = vld [vmem:[%s7321_s25 + $0x20] sm:$0xff]  ;;  %v504_v34 = vld [vmem:[%s7321_s25 + $0x28] sm:$0xff]  ;;  %v7350_v35 = vpack.c.bf16 %v478_v29, %v477_v25  ;;  %v505_v39 = vld [vmem:[%s7321_s25 + $0x30] sm:$0xff]  ;;  %s6902_s19 = scalar_lea.vmem %s12124_s30, 128 }
  0xad   : > { %6222 = vmatpush3.bf16.msra.mxu0 %v554_v26  ;;  %6223 = vmatprep.mubr.msk.bf16.mxu0 %vm527_vm1, %v518_v22  ;;  %v480_v36 = vld [vmem:[%s7293_s24 + $0x68] sm:$0xff]  ;;  %v520_v37 = vpack.c.bf16 %v504_v34, %v503_v33  ;;  %v506_v40 = vld [vmem:[%s7321_s25 + $0x38] sm:$0xff]  ;;  %v481_v41 = vld [vmem:[%s7293_s24 + $0x70] sm:$0xff]  ;;  %p6903_p5 = scmp.ne.s32.totalorder %s12124_s30, %s6902_s19 }
  0xae   : > { %6242 = vmatpush3.bf16.msra.mxu1 %v7301_v5  ;;  %5939 = vmatprep.subr.bf16.mxu0 %v6547_v28  ;;  %v482_v42 = vld [vmem:[%s7293_s24 + $0x78] sm:$0xff]  ;;  %v7361_v44 = vpack.c.bf16 %v480_v36, %v479_v31  ;;  %v521_v45 = vpack.c.bf16 %v506_v40, %v505_v39  ;;  %v507_v47 = vld [vmem:[%s7321_s25 + $0x40] sm:$0xff]  ;;  %v508_v48 = vld [vmem:[%s7321_s25 + $0x48] sm:$0xff]  ;;  %s6997_s24 = smov [#allocation11]  }
  0xaf   : > { %6243 = vmatprep.subr.bf16.mxu1 %v7308_v8  ;;  %v522_v50 = vpack.c.bf16 %v508_v48, %v507_v47  ;;  %v7367_v52 = vpack.c.bf16 %v482_v42, %v481_v41  ;;  %v509_v53 = vld [vmem:[%s7321_s25 + $0x50] sm:$0xff]  ;;  %v510_v56 = vld [vmem:[%s7321_s25 + $0x58] sm:$0xff]  ;;  %v511_v59 = vld [vmem:[%s7321_s25 + $0x60] sm:$0xff]  ;;  %p6904_p7 = pnand %p6903_p5, %p7218_p0 }
  0xb0   : > { %6224 = vmatmul.mubr.msk.bf16.vlgmr.msra.gmra.mrb[0].mxu0 %vm527_vm1, %v519_v27  ;;  %v512_v60 = vld [vmem:[%s7321_s25 + $0x68] sm:$0xff]  ;;  %v523_v62 = vpack.c.bf16 %v510_v56, %v509_v53  ;;  %v513_v7 = vld [vmem:[%s7321_s25 + $0x70] sm:$0xff]  ;;  %v514_v9 = vld [vmem:[%s7321_s25 + $0x78] sm:$0xff] }
  0xb1   : > { %5940 = vmatpush3.bf16.msra.mxu0 %v6548_v30  ;;  %6227 = vmatprep.mubr.msk.bf16.mxu0 %vm527_vm1, %v520_v37  ;;  %v524_v0 = vpack.c.bf16 %v512_v60, %v511_v59  ;;  %v6557_v2 = vld [vmem:[#allocation5 + $0x68] sm:$0xff]   ;;  %v489_v11 = vld [vmem:[%s7274_s29 + $0x30] sm:$0xff]  ;;  %v490_v12 = vld [vmem:[%s7274_s29 + $0x38] sm:$0xff]  ;;  %v525_v17 = vpack.c.bf16 %v514_v9, %v513_v7  ;;  %p6905_p11 = pneg %p6904_p7 }
  0xb2   : > { %6244 = vmatpush3.bf16.msra.mxu1 %v7308_v8  ;;  %5941 = vmatprep.subr.bf16.mxu0 %v6549_v32  ;;  %v6558_v6 = vld [vmem:[#allocation5 + $0x28] sm:$0xff]   ;;  %v491_v13 = vld [vmem:[%s7274_s29 + $0x40] sm:$0xff]  ;;  %v6560_v16 = vld [vmem:[#allocation5 + $0x30] sm:$0xff]   ;;  %v763_v19 = vpack.c.bf16 %v490_v12, %v489_v11 }
  0xb3   : > { %6245 = vmatprep.subr.bf16.mxu1 %v7324_v14  ;;  %v492_v15 = vld [vmem:[%s7274_s29 + $0x48] sm:$0xff]  ;;  %v493_v21 = vld [vmem:[%s7274_s29 + $0x50] sm:$0xff]  ;;  %v494_v22 = vld [vmem:[%s7274_s29 + $0x58] sm:$0xff] }
  0xb4   : > { %v764_v20 = vpack.c.bf16 %v492_v15, %v491_v13  ;;  %v495_v23 = vld [vmem:[%s7274_s29 + $0x60] sm:$0xff]  ;;  %v496_v25 = vld [vmem:[%s7274_s29 + $0x68] sm:$0xff]  ;;  %v765_v26 = vpack.c.bf16 %v494_v22, %v493_v21  ;;  %v497_v28 = vld [vmem:[%s7274_s29 + $0x70] sm:$0xff] }
  0xb5   : > { %5942 = vmatpush3.bf16.msra.mxu0 %v6550_v38  ;;  %v766_v27 = vpack.c.bf16 %v496_v25, %v495_v23  ;;  %v498_v29 = vld [vmem:[%s7274_s29 + $0x78] sm:$0xff] }
  0xb6   : > { %6246 = vmatpush3.bf16.msra.mxu1 %v7324_v14  ;;  %5943 = vmatprep.subr.bf16.mxu0 %v6551_v43  ;;  %v767_v30 = vpack.c.bf16 %v498_v29, %v497_v28  ;;  %v6561_v31 = vld [vmem:[#allocation5 + $0x78] sm:$0xff]  }
  0xb7   : > { %6247 = vmatprep.subr.bf16.mxu1 %v7336_v24  ;;  %v6562_v32 = vld [vmem:[#allocation5 + $0x38] sm:$0xff]  }
  0xb8   : > { %6228 = vmatmul.mubr.msk.bf16.gmra.mrb[4].mxu0 %vm527_vm1, %v521_v45 }
  0xb9   : > { %5944 = vmatpush3.bf16.msra.mxu0 %v6552_v46  ;;  %6231 = vmatprep.mubr.msk.bf16.mxu0 %vm527_vm1, %v522_v50 }
  0xba   : > { %6248 = vmatpush3.bf16.msra.mxu1 %v7336_v24  ;;  %5945 = vmatprep.subr.bf16.mxu0 %v6553_v49 }
  0xbb   : > { %6249 = vmatprep.subr.bf16.mxu1 %v7350_v35 }
  0xbd   : > { %5946 = vmatpush3.bf16.msra.mxu0 %v6554_v51 }
  0xbe   : > { %6250 = vmatpush3.bf16.msra.mxu1 %v7350_v35  ;;  %5947 = vmatprep.subr.bf16.mxu0 %v6555_v57 }
  0xbf   : > { %6251 = vmatprep.subr.bf16.mxu1 %v7361_v44 }
  0xc0   : > { %6232 = vmatmul.mubr.msk.bf16.gmra.mrb[8].mxu0 %vm527_vm1, %v523_v62 }
  0xc1   : > { %5948 = vmatpush3.bf16.msra.mxu0 %v6556_v63  ;;  %6235 = vmatprep.mubr.msk.bf16.mxu0 %vm527_vm1, %v524_v0 }
  0xc2   : > { %6252 = vmatpush3.bf16.msra.mxu1 %v7361_v44  ;;  %5949 = vmatprep.subr.bf16.mxu0 %v6557_v2 }
  0xc3   : > { %6253 = vmatprep.subr.bf16.mxu1 %v7367_v52 }
  0xc5   : > { %5950 = vmatpush3.bf16.msra.mxu0 %v6558_v6 }
  0xc6   : > { %6254 = vmatpush3.bf16.msra.mxu1 %v7367_v52  ;;  %5951 = vmatprep.subr.bf16.mxu0 %v6559_v10 }
  0xc8   : > { %6236 = vmatmul.mubr.msk.bf16.gmra.mrb[12].mxu0 %vm527_vm1, %v525_v17 }
  0xc9   : > { %6256 = vmatmul.mubr.bf16.vlgmr.msra.gmra.mrb[0].mxu1 %v761_v1  ;;  %5952 = vmatpush3.bf16.msra.mxu0 %v6560_v16 }
  0xca   : > { %6259 = vmatprep.mubr.bf16.mxu1 %v762_v4  ;;  %5953 = vmatprep.subr.bf16.mxu0 %v6561_v31 }
  0xcd   : > { %5954 = vmatpush3.bf16.msra.mxu0 %v6562_v32 }
  0xd1   : > { %6260 = vmatmul.mubr.bf16.gmra.mrb[4].mxu1 %v763_v19 }
  0xd2   : > { %6263 = vmatprep.mubr.bf16.mxu1 %v764_v20 }
  0xd9   : > { %6264 = vmatmul.mubr.bf16.gmra.mrb[8].mxu1 %v765_v26 }
  0xda   : > { %6267 = vmatprep.mubr.bf16.mxu1 %v766_v27 }
  0xe1   : > { %6268 = vmatmul.mubr.bf16.gmra.mrb[12].mxu1 %v767_v30 }
 0x183   : > { %v7397_v33 = vpop.f32.mrb[0].mxu0 }
 0x184   : > { %12864 = vst [vmem:[#allocation19_spill] sm:$0xff] %v7397_v33  ;;  %v7399_v34 = vpop.f32.mrb[1].mxu0 }
 0x185   : > { %12865 = vst [vmem:[#allocation20_spill] sm:$0xff] %v7399_v34  ;;  %v7401_v36 = vpop.f32.mrb[2].mxu0 }
 0x186   : > { %12866 = vst [vmem:[#allocation21_spill] sm:$0xff] %v7401_v36  ;;  %v7403_v37 = vpop.f32.mrb[3].mxu0 }
 0x187   : > { %12867 = vst [vmem:[#allocation22_spill] sm:$0xff] %v7403_v37 }
 0x18b   : > { %v7405_v38 = vpop.f32.mrb[4].mxu0 }
 0x18c   : > { %12868 = vst [vmem:[#allocation23_spill] sm:$0xff] %v7405_v38  ;;  %v7407_v39 = vpop.f32.mrb[5].mxu0 }
 0x18d   : > { %12869 = vst [vmem:[#allocation24_spill] sm:$0xff] %v7407_v39  ;;  %v7409_v40 = vpop.f32.mrb[6].mxu0 }
 0x18e   : > { %12870 = vst [vmem:[#allocation25_spill] sm:$0xff] %v7409_v40  ;;  %v7411_v41 = vpop.f32.mrb[7].mxu0 }
 0x18f   : > { %12871 = vst [vmem:[#allocation26_spill] sm:$0xff] %v7411_v41 }
 0x193   : > { %v7413_v42 = vpop.f32.mrb[8].mxu0 }
 0x194   : > { %12872 = vst [vmem:[#allocation27_spill] sm:$0xff] %v7413_v42  ;;  %v7415_v43 = vpop.f32.mrb[9].mxu0 }
 0x195   : > { %12873 = vst [vmem:[#allocation28_spill] sm:$0xff] %v7415_v43  ;;  %v7417_v46 = vpop.f32.mrb[10].mxu0 }
 0x196   : > { %12874 = vst [vmem:[#allocation29_spill] sm:$0xff] %v7417_v46  ;;  %v7419_v48 = vpop.f32.mrb[11].mxu0 }
 0x197   : > { %12875 = vst [vmem:[#allocation30_spill] sm:$0xff] %v7419_v48 }
 0x19b   : > { %v7421_v54 = vpop.f32.mrb[12].mxu0 }
 0x19c   : > { %v6257_v45 = vpop.f32.mrb[0].mxu1  ;;  %12876 = vst [vmem:[#allocation31_spill] sm:$0xff] %v7421_v54  ;;  %v7424_v55 = vpop.f32.mrb[13].mxu0 }
 0x19d   : > { %v802_v47 = vpop.f32.mrb[1].mxu1  ;;  %12877 = vst [vmem:[#allocation32_spill] sm:$0xff] %v7424_v55  ;;  %v7426_v57 = vpop.f32.mrb[14].mxu0 }
 0x19e   : > { %v6258_v49 = vpop.f32.mrb[2].mxu1  ;;  %12878 = vst [vmem:[#allocation33_spill] sm:$0xff] %v7426_v57  ;;  %v7428_v59 = vpop.f32.mrb[15].mxu0 }
 0x19f   : > { %v866_v50 = vpack.c.bf16 %v6258_v49, %v6257_v45  ;;  %v805_v51 = vpop.f32.mrb[3].mxu1  ;;  %12879 = vst [vmem:[#allocation34_spill] sm:$0xff] %v7428_v59 }
 0x1a0   : > { %v865_v53 = vpack.c.bf16 %v805_v51, %v802_v47 }
 0x1a2   : > { %1005 = vmatprep.mubr.bf16.mxu0 %v865_v53 }
 0x1a3   : > { %1006 = vmatmul.mubr.bf16.vlgmr.msra.gmra.mrb[16].mxu0 %v7298_v3 }
 0x1a4   : > { %1013 = vmatprep.mubr.bf16.mxu0 %v866_v50  ;;  %v6261_v56 = vpop.f32.mrb[4].mxu1 }
 0x1a5   : > { %v818_v58 = vpop.f32.mrb[5].mxu1 }
 0x1a6   : > { %v6262_v60 = vpop.f32.mrb[6].mxu1 }
 0x1a7   : > { %v868_v61 = vpack.c.bf16 %v6262_v60, %v6261_v56  ;;  %v821_v62 = vpop.f32.mrb[7].mxu1 }
 0x1a8   : > { %v867_v63 = vpack.c.bf16 %v821_v62, %v818_v58 }
 0x1ab   : > { %1014 = vmatmul.mubr.bf16.gmra.mrb[20].mxu0 %v7301_v5  ;;  %v653_v5 = vlaneseq }
 0x1ac   : > { %1021 = vmatprep.mubr.bf16.mxu0 %v867_v63  ;;  %v6265_v0 = vpop.f32.mrb[8].mxu1 }
 0x1ad   : > { %v834_v1 = vpop.f32.mrb[9].mxu1 }
 0x1ae   : > { %v6266_v2 = vpop.f32.mrb[10].mxu1 }
 0x1af   : > { %v870_v3 = vpack.c.bf16 %v6266_v2, %v6265_v0  ;;  %v837_v4 = vpop.f32.mrb[11].mxu1 }
 0x1b0   : > { %v869_v6 = vpack.c.bf16 %v837_v4, %v834_v1 }
 0x1b3   : > { %1022 = vmatmul.mubr.bf16.gmra.mrb[24].mxu0 %v7308_v8  ;;  %v7438_v8 = vshrl.u32 %v653_v5, 7 }
 0x1b4   : > { %1029 = vmatprep.mubr.bf16.mxu0 %v868_v61  ;;  %v6269_v7 = vpop.f32.mrb[12].mxu1 }
 0x1b5   : > { %v850_v9 = vpop.f32.mrb[13].mxu1  ;;  %12880 = vst [vmem:[#allocation35_spill] sm:$0xff] %v7438_v8  ;;  %v7441_v15 = vsub.s32 0, %v7438_v8 }
 0x1b6   : > { %v6270_v10 = vpop.f32.mrb[14].mxu1 }
 0x1b7   : > { %v872_v11 = vpack.c.bf16 %v6270_v10, %v6269_v7  ;;  %v853_v12 = vpop.f32.mrb[15].mxu1  ;;  %12881 = vst [vmem:[#allocation36_spill] sm:$0xff] %v7441_v15 }
 0x1b8   : > { %v871_v13 = vpack.c.bf16 %v853_v12, %v850_v9 }
 0x1bb   : > { %1030 = vmatmul.mubr.bf16.gmra.mrb[28].mxu0 %v7324_v14  ;;  %v516_v14 = vld [vmem:[%s12178_s8] sm:$0xff] }
 0x1bc   : > { %1037 = vmatprep.mubr.bf16.mxu0 %v869_v6 }
 0x1c3   : > { %1038 = vmatmul.mubr.bf16.gmra.mrb[32].mxu0 %v7336_v24 }
 0x1c4   : > { %1045 = vmatprep.mubr.bf16.mxu0 %v870_v3 }
 0x1cb   : > { %1046 = vmatmul.mubr.bf16.gmra.mrb[36].mxu0 %v7350_v35  ;;  %v7447_v35 = vrot.slane %v516_v14, %v7441_v15 }
 0x1cc   : > { %1053 = vmatprep.mubr.bf16.mxu0 %v871_v13 }
 0x1d3   : > { %1054 = vmatmul.mubr.bf16.gmra.mrb[40].mxu0 %v7361_v44  ;;  %v12186_v44 = vsub.s32 1, %v7438_v8 }
 0x1d4   : > { %1061 = vmatprep.mubr.bf16.mxu0 %v872_v11 }
 0x1d5   : > { %v7455_v22 = vrot.slane %v516_v14, %v12186_v44 }
 0x1db   : > { %1062 = vmatmul.mubr.bf16.gmra.mrb[44].mxu0 %v7367_v52 }
 0x276   : > { %v5955_v24 = vpop.f32.mrb[16].mxu0 }
 0x277   : > { %v5956_v16 = vpop.f32.mrb[17].mxu0 }
 0x278   : > { %v5957_v17 = vadd.f32 %v5956_v16, %v5955_v24  ;;  %v5958_v52 = vpop.f32.mrb[18].mxu0 }
 0x279   : > { %v5959_v19 = vpop.f32.mrb[19].mxu0 }
 0x27a   : > { %v5960_v20 = vadd.f32 %v5959_v19, %v5958_v52  ;;  %v7451_v21 = vadd.f32 %v5957_v17, %v7447_v35 }
 0x27c   : > { %v7458_v23 = vadd.f32 %v5960_v20, %v7447_v35  ;;  %v12202_v25 = vmax.f32 %v7451_v21, 0.0 }
 0x27e   : > { %v12201_v26 = vmax.f32 %v7458_v23, 0.0  ;;  %v5961_v27 = vpop.f32.mrb[20].mxu0  ;;  %v1090_v28 = vmul.f32 %v7455_v22, %v12202_v25 }
 0x27f   : > { %v5962_v29 = vpop.f32.mrb[21].mxu0 }
 0x280   : > { %v5963_v30 = vadd.f32 %v5962_v29, %v5961_v27  ;;  %v5964_v31 = vpop.f32.mrb[22].mxu0  ;;  %1106 = vadd.xlane.f32.xlu0 %v1090_v28  ;;  %v1091_v47 = vmul.f32 %v7455_v22, %v12201_v26 }
 0x281   : > { %v5965_v32 = vpop.f32.mrb[23].mxu0 }
 0x282   : > { %v5966_v45 = vadd.f32 %v5965_v32, %v5964_v31  ;;  %v7469_v49 = vadd.f32 %v5963_v30, %v7447_v35 }
 0x284   : > { %v7472_v50 = vadd.f32 %v5966_v45, %v7447_v35  ;;  %1108 = vadd.xlane.f32.xlu0 %v1091_v47  ;;  %v12200_v51 = vmax.f32 %v7469_v49, 0.0 }
 0x286   : > { %v12199_v53 = vmax.f32 %v7472_v50, 0.0  ;;  %v5967_v56 = vpop.f32.mrb[24].mxu0  ;;  %v1092_v58 = vmul.f32 %v7455_v22, %v12200_v51 }
 0x287   : > { %v5968_v60 = vpop.f32.mrb[25].mxu0 }
 0x288   : > { %v5969_v61 = vadd.f32 %v5968_v60, %v5967_v56  ;;  %1110 = vadd.xlane.f32.xlu1 %v1092_v58  ;;  %v5970_v62 = vpop.f32.mrb[26].mxu0  ;;  %v1093_v2 = vmul.f32 %v7455_v22, %v12199_v53 }
 0x289   : > { %v5971_v63 = vpop.f32.mrb[27].mxu0 }
 0x28a   : > { %v7480_v0 = vadd.f32 %v5969_v61, %v7447_v35  ;;  %v5972_v1 = vadd.f32 %v5971_v63, %v5970_v62 }
 0x28c   : > { %v12198_v3 = vmax.f32 %v7480_v0, 0.0  ;;  %v7487_v4 = vadd.f32 %v5972_v1, %v7447_v35  ;;  %1112 = vadd.xlane.f32.xlu1 %v1093_v2 }
 0x28e   : > { %v12197_v6 = vmax.f32 %v7487_v4, 0.0  ;;  %v5973_v7 = vpop.f32.mrb[28].mxu0  ;;  %v1094_v9 = vmul.f32 %v7455_v22, %v12198_v3 }
 0x28f   : > { %v5974_v10 = vpop.f32.mrb[29].mxu0 }
 0x290   : > { %v5975_v11 = vadd.f32 %v5974_v10, %v5973_v7  ;;  %v5976_v12 = vpop.f32.mrb[30].mxu0  ;;  %1114 = vadd.xlane.f32.xlu0 %v1094_v9  ;;  %v1095_v13 = vmul.f32 %v7455_v22, %v12197_v6 }
 0x291   : > { %v5977_v14 = vpop.f32.mrb[31].mxu0 }
 0x292   : > { %v7497_v24 = vadd.f32 %v5975_v11, %v7447_v35  ;;  %v5978_v16 = vadd.f32 %v5977_v14, %v5976_v12  ;;  %1116 = vadd.xlane.f32.xlu1 %v1095_v13 }
 0x294   : > { %v12196_v17 = vmax.f32 %v7497_v24, 0.0  ;;  %v7501_v52 = vadd.f32 %v5978_v16, %v7447_v35 }
 0x296   : > { %v12195_v19 = vmax.f32 %v7501_v52, 0.0  ;;  %v5979_v20 = vpop.f32.mrb[32].mxu0  ;;  %v1096_v27 = vmul.f32 %v7455_v22, %v12196_v17 }
 0x297   : > { %v5980_v28 = vpop.f32.mrb[33].mxu0 }
 0x298   : > { %v5981_v29 = vadd.f32 %v5980_v28, %v5979_v20  ;;  %1118 = vadd.xlane.f32.xlu0 %v1096_v27  ;;  %v5982_v30 = vpop.f32.mrb[34].mxu0  ;;  %v1097_v31 = vmul.f32 %v7455_v22, %v12195_v19 }
 0x299   : > { %v5983_v32 = vpop.f32.mrb[35].mxu0 }
 0x29a   : > { %v7511_v45 = vadd.f32 %v5981_v29, %v7447_v35  ;;  %v5984_v47 = vadd.f32 %v5983_v32, %v5982_v30  ;;  %1120 = vadd.xlane.f32.xlu1 %v1097_v31 }
 0x29c   : > { %v12194_v56 = vmax.f32 %v7511_v45, 0.0  ;;  %v7515_v58 = vadd.f32 %v5984_v47, %v7447_v35 }
 0x29e   : > { %v12193_v60 = vmax.f32 %v7515_v58, 0.0  ;;  %v5985_v61 = vpop.f32.mrb[36].mxu0  ;;  %v1098_v62 = vmul.f32 %v7455_v22, %v12194_v56  ;;  %v656_v56 = vadd.s32 16, %v7438_v8 }
 0x29f   : > { %v5986_v63 = vpop.f32.mrb[37].mxu0 }
 0x2a0   : > { %v5987_v1 = vadd.f32 %v5986_v63, %v5985_v61  ;;  %v5988_v2 = vpop.f32.mrb[38].mxu0  ;;  %1122 = vadd.xlane.f32.xlu0 %v1098_v62  ;;  %v1099_v7 = vmul.f32 %v7455_v22, %v12193_v60  ;;  %v655_v60 = vadd.s32 8, %v7438_v8 }
 0x2a1   : > { %v5989_v9 = vpop.f32.mrb[39].mxu0 }
 0x2a2   : > { %v7525_v10 = vadd.f32 %v5987_v1, %v7447_v35  ;;  %v5990_v11 = vadd.f32 %v5989_v9, %v5988_v2  ;;  %1124 = vadd.xlane.f32.xlu1 %v1099_v7 }
 0x2a4   : > { %v12192_v12 = vmax.f32 %v7525_v10, 0.0  ;;  %v7529_v13 = vadd.f32 %v5990_v11, %v7447_v35 }
 0x2a6   : > { %v12191_v14 = vmax.f32 %v7529_v13, 0.0  ;;  %v5991_v16 = vpop.f32.mrb[40].mxu0  ;;  %v1100_v20 = vmul.f32 %v7455_v22, %v12192_v12  ;;  %v7632_v12 = vand.u32 127, %v653_v5  ;;  %v657_v5 = vadd.s32 24, %v7438_v8 }
 0x2a7   : > { %v5992_v27 = vpop.f32.mrb[41].mxu0 }
 0x2a8   : > { %v5993_v28 = vadd.f32 %v5992_v27, %v5991_v16  ;;  %1126 = vadd.xlane.f32.xlu0 %v1100_v20  ;;  %v5994_v29 = vpop.f32.mrb[42].mxu0  ;;  %v1101_v30 = vmul.f32 %v7455_v22, %v12191_v14  ;;  %vm672_vm2 = vcmp.lt.s32.totalorder %v7632_v12, %v7438_v8  ;;  %vm673_vm3 = vcmp.lt.s32.totalorder %v7632_v12, %v655_v60 }
 0x2a9   : > { %v5995_v31 = vpop.f32.mrb[43].mxu0  ;;  %vm674_vm4 = vcmp.lt.s32.totalorder %v7632_v12, %v656_v56  ;;  %vm675_vm10 = vcmp.lt.s32.totalorder %v7632_v12, %v657_v5 }
 0x2aa   : > { %v7539_v32 = vadd.f32 %v5993_v28, %v7447_v35  ;;  %v5996_v47 = vadd.f32 %v5995_v31, %v5994_v29  ;;  %1128 = vadd.xlane.f32.xlu1 %v1101_v30 }
 0x2ac   : > { %v12190_v61 = vmax.f32 %v7539_v32, 0.0  ;;  %v7543_v62 = vadd.f32 %v5996_v47, %v7447_v35 }
 0x2ae   : > { %v12189_v63 = vmax.f32 %v7543_v62, 0.0  ;;  %v5997_v1 = vpop.f32.mrb[44].mxu0  ;;  %v1102_v2 = vmul.f32 %v7455_v22, %v12190_v61 }
 0x2af   : > { %v5998_v7 = vpop.f32.mrb[45].mxu0 }
 0x2b0   : > { %v5999_v9 = vadd.f32 %v5998_v7, %v5997_v1  ;;  %v6000_v11 = vpop.f32.mrb[46].mxu0  ;;  %1130 = vadd.xlane.f32.xlu0 %v1102_v2  ;;  %v1103_v16 = vmul.f32 %v7455_v22, %v12189_v63 }
 0x2b1   : > { %v6001_v20 = vpop.f32.mrb[47].mxu0 }
 0x2b2   : > { %v7553_v27 = vadd.f32 %v5999_v9, %v7447_v35  ;;  %v6002_v28 = vadd.f32 %v6001_v20, %v6000_v11  ;;  %1132 = vadd.xlane.f32.xlu1 %v1103_v16 }
 0x2b4   : > { %v12188_v29 = vmax.f32 %v7553_v27, 0.0  ;;  %v7557_v30 = vadd.f32 %v6002_v28, %v7447_v35 }
 0x2b6   : > { %12882 = vst [vmem:[#allocation37_spill] sm:$0xff] %v7557_v30  ;;  %v12187_v31 = vmax.f32 %v7557_v30, 0.0  ;;  %v1104_v47 = vmul.f32 %v7455_v22, %v12188_v29 }
 0x2b8   : > { %1134 = vadd.xlane.f32.xlu0 %v1104_v47  ;;  %v1105_v1 = vmul.f32 %v7455_v22, %v12187_v31  ;;  %v12240_v22 = vmov 0.0  }
 0x2b9   : > { %6271 = vmatprep.subr.bf16.mxu1 %v12240_v22  ;;  %v7643_v6 = vsel %vm672_vm2, 1.0, %v12240_v22  ;;  %v7646_v3 = vsel %vm673_vm3, 1.0, %v12240_v22  ;;  %v7666_v26 = vsel %vm674_vm4, 1.0, %v12240_v22  ;;  %v7679_v30 = vsel %vm675_vm10, 1.0, %v12240_v22 }
 0x2ba   : > { %1136 = vadd.xlane.f32.xlu1 %v1105_v1  ;;  %12883 = vst [vmem:[#allocation38_spill] sm:$0xff] %v7643_v6  ;;  %12884 = vst [vmem:[#allocation39_spill] sm:$0xff] %v7646_v3 }
 0x2bb   : > { %12885 = vst [vmem:[#allocation40_spill] sm:$0xff] %v7666_v26  ;;  %12886 = vst [vmem:[#allocation41_spill] sm:$0xff] %v7679_v30 }
 0x2be   : > { %1367 = vadd.xlane.f32.xlu1 %v7399_v34 }
 0x2c2   : > { %1369 = vadd.xlane.f32.xlu1 %v7403_v37 }
 0x2c6   : > { %1371 = vadd.xlane.f32.xlu1 %v7397_v33 }
 0x2ca   : > { %1373 = vadd.xlane.f32.xlu1 %v7401_v36 }
 0x2ce   : > { %1375 = vadd.xlane.f32.xlu1 %v7407_v39 }
 0x2d2   : > { %1377 = vadd.xlane.f32.xlu1 %v7411_v41 }
 0x2d6   : > { %1379 = vadd.xlane.f32.xlu1 %v7405_v38 }
 0x2da   : > { %1381 = vadd.xlane.f32.xlu1 %v7409_v40 }
 0x2de   : > { %1383 = vadd.xlane.f32.xlu1 %v7415_v43 }
 0x2e2   : > { %1385 = vadd.xlane.f32.xlu1 %v7419_v48 }
 0x2e6   : > { %1387 = vadd.xlane.f32.xlu1 %v7413_v42 }
 0x2ea   : > { %1389 = vadd.xlane.f32.xlu1 %v7417_v46 }
 0x2ee   : > { %1391 = vadd.xlane.f32.xlu1 %v7424_v55 }
 0x2f2   : > { %1393 = vadd.xlane.f32.xlu1 %v7428_v59 }
 0x2f6   : > { %1397 = vadd.xlane.f32.xlu1 %v7426_v57 }
 0x30d   : > { %v7581_v35 = vpop.xlane.xlu0 %1106 }
 0x30e   : > { %1155 = vxpose.xlu0.b32.start [1/16] (narrow) %v7581_v35, 8  ;;  %6619 = vtanh.f32 %v7581_v35 }
 0x311   : > { %v7585_v2 = vpop.xlane.xlu0 %1108 }
 0x312   : > { %1156 = vxpose.xlu0.b32.cont [2/16] (narrow) %v7585_v2, 8  ;;  %6621 = vtanh.f32 %v7585_v2 }
 0x315   : > { %v7588_v7 = vpop.xlane.xlu1 %1110 }
 0x316   : > { %1157 = vxpose.xlu0.b32.cont [3/16] (narrow) %v7588_v7, 8  ;;  %6623 = vtanh.f32 %v7588_v7 }
 0x319   : > { %v7591_v9 = vpop.xlane.xlu1 %1112 }
 0x31a   : > { %1158 = vxpose.xlu0.b32.cont [4/16] (narrow) %v7591_v9, 8  ;;  %6625 = vtanh.f32 %v7591_v9 }
 0x31d   : > { %v7594_v11 = vpop.xlane.xlu0 %1114 }
 0x31e   : > { %1159 = vxpose.xlu0.b32.cont [5/16] (narrow) %v7594_v11, 8  ;;  %6627 = vtanh.f32 %v7594_v11 }
 0x31f   : > { %v7597_v16 = vpop.xlane.xlu1 %1116 }
 0x320   : > { %6629 = vtanh.f32 %v7597_v16 }
 0x322   : > { %1160 = vxpose.xlu0.b32.cont [6/16] (narrow) %v7597_v16, 8 }
 0x325   : > { %v7600_v20 = vpop.xlane.xlu0 %1118 }
 0x326   : > { %1161 = vxpose.xlu0.b32.cont [7/16] (narrow) %v7600_v20, 8  ;;  %6631 = vtanh.f32 %v7600_v20 }
 0x327   : > { %v7603_v28 = vpop.xlane.xlu1 %1120 }
 0x328   : > { %6633 = vtanh.f32 %v7603_v28 }
 0x32a   : > { %1162 = vxpose.xlu0.b32.cont [8/16] (narrow) %v7603_v28, 8 }
 0x32d   : > { %v7606_v47 = vpop.xlane.xlu0 %1122 }
 0x32e   : > { %1163 = vxpose.xlu0.b32.cont [9/16] (narrow) %v7606_v47, 8  ;;  %6635 = vtanh.f32 %v7606_v47 }
 0x32f   : > { %v7609_v1 = vpop.xlane.xlu1 %1124 }
 0x330   : > { %6637 = vtanh.f32 %v7609_v1 }
 0x332   : > { %1164 = vxpose.xlu0.b32.cont [10/16] (narrow) %v7609_v1, 8 }
 0x335   : > { %v7612_v44 = vpop.xlane.xlu0 %1126 }
 0x336   : > { %1165 = vxpose.xlu0.b32.cont [11/16] (narrow) %v7612_v44, 8  ;;  %6639 = vtanh.f32 %v7612_v44 }
 0x337   : > { %v7615_v31 = vpop.xlane.xlu1 %1128 }
 0x338   : > { %6641 = vtanh.f32 %v7615_v31 }
 0x33a   : > { %1166 = vxpose.xlu0.b32.cont [12/16] (narrow) %v7615_v31, 8 }
 0x33d   : > { %v7618_v29 = vpop.xlane.xlu0 %1130 }
 0x33e   : > { %1167 = vxpose.xlu0.b32.cont [13/16] (narrow) %v7618_v29, 8  ;;  %6643 = vtanh.f32 %v7618_v29 }
 0x33f   : > { %v7621_v63 = vpop.xlane.xlu1 %1132 }
 0x340   : > { %6645 = vtanh.f32 %v7621_v63 }
 0x342   : > { %1168 = vxpose.xlu0.b32.cont [14/16] (narrow) %v7621_v63, 8 }
 0x345   : > { %v7624_v61 = vpop.xlane.xlu0 %1134 }
 0x346   : > { %1169 = vxpose.xlu0.b32.cont [15/16] (narrow) %v7624_v61, 8  ;;  %6647 = vtanh.f32 %v7624_v61 }
 0x347   : > { %v7627_v14 = vpop.xlane.xlu1 %1136 }
 0x348   : > { %6649 = vtanh.f32 %v7627_v14 }
 0x34a   : > { %1170 = vxpose.xlu0.b32.end [16/16] (narrow) %v7627_v14, 8 }
 0x377   : > { %1395 = vadd.xlane.f32.xlu0 %v7421_v54 }
 0x38e   : > { %v1171_v19 = vpop.trf.xlu0 }
 0x38f   : > { %v7640_v17 = vrot.slane %v1171_v19, %v7441_v15 }
 0x391   : > { %vm1191_vm5 = vcmp.gt.f32.partialorder %v7640_v17, %v7581_v35  ;;  %vm1239_vm6 = vcmp.eq.f32.partialorder %v7640_v17, %v7581_v35  ;;  %vm1240_vm7 = vcmp.eq.f32.partialorder %v7640_v17, %v7585_v2  ;;  %vm1192_vm8 = vcmp.gt.f32.partialorder %v7640_v17, %v7585_v2 }
 0x392   : > { %v5722_v19 = vsel %vm1239_vm6, 1.0, %v12240_v22  ;;  %v5723_v60 = vsel %vm1240_vm7, 1.0, %v12240_v22  ;;  %vm1241_vm9 = vcmp.eq.f32.partialorder %v7640_v17, %v7588_v7  ;;  %v5706_v51 = vsel %vm1191_vm5, 1.0, %v12240_v22 }
 0x393   : > { %v1287_v53 = vmul.f32 %v5722_v19, %v7643_v6  ;;  %v1288_v56 = vmul.f32 %v5723_v60, %v7646_v3  ;;  %v5724_v25 = vsel %vm1241_vm9, 1.0, %v12240_v22  ;;  %vm1242_vm11 = vcmp.eq.f32.partialorder %v7640_v17, %v7591_v9 }
 0x394   : > { %v658_v19 = vadd.s32 32, %v7438_v8  ;;  %v5707_v60 = vsel %vm1192_vm8, 1.0, %v12240_v22  ;;  %vm1193_vm12 = vcmp.gt.f32.partialorder %v7640_v17, %v7588_v7  ;;  %v1289_v18 = vmul.f32 %v5724_v25, %v7666_v26 }
 0x395   : > { %v1303_v15 = vadd.f32 %v5706_v51, %v1287_v53  ;;  %v1304_v6 = vadd.f32 %v5707_v60, %v1288_v56  ;;  %v5725_v51 = vsel %vm1242_vm11, 1.0, %v12240_v22  ;;  %vm1243_vm14 = vcmp.eq.f32.partialorder %v7640_v17, %v7594_v11 }
 0x396   : > { %vm676_vm13 = vcmp.lt.s32.totalorder %v7632_v12, %v658_v19  ;;  %v659_v53 = vadd.s32 40, %v7438_v8  ;;  %vm1194_vm15 = vcmp.gt.f32.partialorder %v7640_v17, %v7591_v9  ;;  %v1290_v25 = vmul.f32 %v5725_v51, %v7679_v30 }
 0x397   : > { %v1319_v3 = vmul.f32 %v1303_v15, %v7399_v34  ;;  %v5708_v15 = vsel %vm1193_vm12, 1.0, %v12240_v22  ;;  %v1320_v5 = vmul.f32 %v1304_v6, %v7403_v37  ;;  %v7692_v60 = vsel %vm676_vm13, 1.0, %v12240_v22 }
 0x398   : > { %v1305_v56 = vadd.f32 %v5708_v15, %v1289_v18  ;;  %12887 = vst [vmem:[#allocation42_spill] sm:$0xff] %v7692_v60  ;;  %vm677_vm1 = vcmp.lt.s32.totalorder %v7632_v12, %v659_v53  ;;  %vm1244_vm2 = vcmp.eq.f32.partialorder %v7640_v17, %v7597_v16  ;;  %v660_v19 = vadd.s32 48, %v7438_v8 }
 0x399   : > { %1335 = vadd.xlane.f32.xlu1 %v1319_v3  ;;  %v5726_v3 = vsel %vm1243_vm14, 1.0, %v12240_v22  ;;  %v5709_v18 = vsel %vm1194_vm15, 1.0, %v12240_v22  ;;  %vm1195_vm3 = vcmp.gt.f32.partialorder %v7640_v17, %v7594_v11  ;;  %v7705_v30 = vsel %vm677_vm1, 1.0, %v12240_v22 }
 0x39a   : > { %v1321_v6 = vmul.f32 %v7397_v33, %v1305_v56  ;;  %v1306_v15 = vadd.f32 %v5709_v18, %v1290_v25  ;;  %v1291_v51 = vmul.f32 %v5726_v3, %v7692_v60  ;;  %12888 = vst [vmem:[#allocation43_spill] sm:$0xff] %v7705_v30  ;;  %v5727_v53 = vsel %vm1244_vm2, 1.0, %v12240_v22 }
 0x39b   : > { %vm678_vm4 = vcmp.lt.s32.totalorder %v7632_v12, %v660_v19  ;;  %vm1245_vm5 = vcmp.eq.f32.partialorder %v7640_v17, %v7600_v20  ;;  %v5710_v56 = vsel %vm1195_vm3, 1.0, %v12240_v22  ;;  %vm1196_vm6 = vcmp.gt.f32.partialorder %v7640_v17, %v7597_v16 }
 0x39c   : > { %v1322_v25 = vmul.f32 %v7401_v36, %v1306_v15  ;;  %v1307_v18 = vadd.f32 %v5710_v56, %v1291_v51  ;;  %v1292_v3 = vmul.f32 %v5727_v53, %v7705_v30  ;;  %v7718_v60 = vsel %vm678_vm4, 1.0, %v12240_v22 }
 0x39d   : > { %1337 = vadd.xlane.f32.xlu1 %v1320_v5  ;;  %v661_v5 = vadd.s32 56, %v7438_v8  ;;  %12889 = vst [vmem:[#allocation44_spill] sm:$0xff] %v7718_v60  ;;  %v5728_v19 = vsel %vm1245_vm5, 1.0, %v12240_v22  ;;  %vm1246_vm8 = vcmp.eq.f32.partialorder %v7640_v17, %v7603_v28  ;;  %v5711_v15 = vsel %vm1196_vm6, 1.0, %v12240_v22 }
 0x39e   : > { %v1323_v51 = vmul.f32 %v1307_v18, %v7407_v39  ;;  %v1308_v56 = vadd.f32 %v5711_v15, %v1292_v3  ;;  %vm1197_vm9 = vcmp.gt.f32.partialorder %v7640_v17, %v7600_v20  ;;  %v1293_v53 = vmul.f32 %v5728_v19, %v7718_v60 }
 0x39f   : > { %vm679_vm7 = vcmp.lt.s32.totalorder %v7632_v12, %v661_v5  ;;  %v5729_v5 = vsel %vm1246_vm8, 1.0, %v12240_v22  ;;  %vm1247_vm11 = vcmp.eq.f32.partialorder %v7640_v17, %v7606_v47  ;;  %v5712_v18 = vsel %vm1197_vm9, 1.0, %v12240_v22 }
 0x3a0   : > { %v7731_v30 = vsel %vm679_vm7, 1.0, %v12240_v22  ;;  %v1324_v3 = vmul.f32 %v1308_v56, %v7411_v41  ;;  %v1309_v15 = vadd.f32 %v5712_v18, %v1293_v53  ;;  %vm1198_vm12 = vcmp.gt.f32.partialorder %v7640_v17, %v7603_v28 }
 0x3a1   : > { %1339 = vadd.xlane.f32.xlu1 %v1321_v6  ;;  %v662_v6 = vadd.s32 64, %v7438_v8  ;;  %12890 = vst [vmem:[#allocation45_spill] sm:$0xff] %v7731_v30  ;;  %v1294_v19 = vmul.f32 %v5729_v5, %v7731_v30  ;;  %vm1248_vm14 = vcmp.eq.f32.partialorder %v7640_v17, %v7609_v1  ;;  %v5713_v56 = vsel %vm1198_vm12, 1.0, %v12240_v22 }
 0x3a2   : > { %v1325_v53 = vmul.f32 %v7405_v38, %v1309_v15  ;;  %vm1199_vm15 = vcmp.gt.f32.partialorder %v7640_v17, %v7606_v47  ;;  %vm1249_vm2 = vcmp.eq.f32.partialorder %v7640_v17, %v7612_v44  ;;  %vm1200_vm3 = vcmp.gt.f32.partialorder %v7640_v17, %v7609_v1 }
 0x3a3   : > { %vm680_vm10 = vcmp.lt.s32.totalorder %v7632_v12, %v662_v6  ;;  %v5730_v6 = vsel %vm1247_vm11, 1.0, %v12240_v22  ;;  %v1310_v18 = vadd.f32 %v5713_v56, %v1294_v19  ;;  %v5714_v15 = vsel %vm1199_vm15, 1.0, %v12240_v22 }
 0x3a4   : > { %v7744_v60 = vsel %vm680_vm10, 1.0, %v12240_v22  ;;  %vm1250_vm5 = vcmp.eq.f32.partialorder %v7640_v17, %v7615_v31  ;;  %vm1201_vm6 = vcmp.gt.f32.partialorder %v7640_v17, %v7612_v44  ;;  %vm1251_vm8 = vcmp.eq.f32.partialorder %v7640_v17, %v7618_v29 }
 0x3a5   : > { %1341 = vadd.xlane.f32.xlu1 %v1322_v25  ;;  %v663_v25 = vadd.s32 72, %v7438_v8  ;;  %12891 = vst [vmem:[#allocation46_spill] sm:$0xff] %v7744_v60  ;;  %v1295_v5 = vmul.f32 %v5730_v6, %v7744_v60  ;;  %v1326_v19 = vmul.f32 %v7409_v40, %v1310_v18  ;;  %v5715_v18 = vsel %vm1200_vm3, 1.0, %v12240_v22 }
 0x3a6   : > { %vm1202_vm9 = vcmp.gt.f32.partialorder %v7640_v17, %v7615_v31  ;;  %vm1252_vm11 = vcmp.eq.f32.partialorder %v7640_v17, %v7621_v63  ;;  %vm1203_vm12 = vcmp.gt.f32.partialorder %v7640_v17, %v7618_v29  ;;  %vm1204_vm15 = vcmp.gt.f32.partialorder %v7640_v17, %v7621_v63 }
 0x3a7   : > { %vm681_vm13 = vcmp.lt.s32.totalorder %v7632_v12, %v663_v25  ;;  %v5731_v25 = vsel %vm1248_vm14, 1.0, %v12240_v22  ;;  %v1311_v56 = vadd.f32 %v5714_v15, %v1295_v5  ;;  %vm1253_vm14 = vcmp.eq.f32.partialorder %v7640_v17, %v7624_v61 }
 0x3a8   : > { %v7757_v30 = vsel %vm681_vm13, 1.0, %v12240_v22  ;;  %vm1205_vm3 = vcmp.gt.f32.partialorder %v7640_v17, %v7624_v61  ;;  %v12901_v7 = vmax.f32 %v7458_v23, 0.0  ;;  %v12902_v16 = vmax.f32 %v7469_v49, 0.0 }
 0x3a9   : > { %1343 = vadd.xlane.f32.xlu1 %v1323_v51  ;;  %v664_v51 = vadd.s32 80, %v7438_v8  ;;  %12892 = vst [vmem:[#allocation47_spill] sm:$0xff] %v7757_v30  ;;  %v1296_v6 = vmul.f32 %v5731_v25, %v7757_v30  ;;  %v1327_v5 = vmul.f32 %v1311_v56, %v7415_v43  ;;  %v5716_v56 = vsel %vm1201_vm6, 1.0, %v12240_v22 }
 0x3aa   : > { %v12899_v43 = vmov 0.0   ;;  %v12905_v28 = vmax.f32 %v7480_v0, 0.0  ;;  %v12910_v1 = vmax.f32 %v7497_v24, 0.0  ;;  %v12916_v31 = vmax.f32 %v7511_v45, 0.0 }
 0x3ab   : > { %vm682_vm1 = vcmp.lt.s32.totalorder %v7632_v12, %v664_v51  ;;  %v5732_v51 = vsel %vm1249_vm2, 1.0, %v12240_v22  ;;  %v1312_v15 = vadd.f32 %v5715_v18, %v1296_v6  ;;  %vm1254_vm2 = vcmp.eq.f32.partialorder %v7640_v17, %v7627_v14 }
 0x3ac   : > { %v7770_v60 = vsel %vm682_vm1, 1.0, %v12240_v22  ;;  %v12922_v63 = vmax.f32 %v7525_v10, 0.0 }
 0x3ad   : > { %1345 = vadd.xlane.f32.xlu1 %v1324_v3  ;;  %v665_v3 = vadd.s32 88, %v7438_v8  ;;  %12893 = vst [vmem:[#allocation48_spill] sm:$0xff] %v7770_v60  ;;  %v1297_v25 = vmul.f32 %v5732_v51, %v7770_v60  ;;  %v1328_v6 = vmul.f32 %v1312_v15, %v7419_v48  ;;  %v5717_v15 = vsel %vm1202_vm9, 1.0, %v12240_v22 }
 0x3af   : > { %vm683_vm4 = vcmp.lt.s32.totalorder %v7632_v12, %v665_v3  ;;  %v5733_v3 = vsel %vm1250_vm5, 1.0, %v12240_v22  ;;  %v1313_v18 = vadd.f32 %v5716_v56, %v1297_v25  ;;  %vm12354_vm5 = vmmov 0  }
 0x3b0   : > { %v7783_v30 = vsel %vm683_vm4, 1.0, %v12240_v22  ;;  %vm1206_vm4 = vcmp.gt.f32.partialorder %v7640_v17, %v7627_v14  ;;  %6287 = vmatprep.mubr.msk.bf16.mxu1 %vm12354_vm5, %v12240_v22  ;;  %v12928_v14 = vmax.f32 %v7539_v32, 0.0 }
 0x3b1   : > { %1347 = vadd.xlane.f32.xlu1 %v1325_v53  ;;  %v666_v53 = vadd.s32 96, %v7438_v8  ;;  %12894 = vst [vmem:[#allocation49_spill] sm:$0xff] %v7783_v30  ;;  %v1298_v51 = vmul.f32 %v5733_v3, %v7783_v30  ;;  %v1329_v25 = vmul.f32 %v7413_v42, %v1313_v18  ;;  %v5718_v18 = vsel %vm1203_vm12, 1.0, %v12240_v22  ;;  %v6620_v42 = vpop.eup %6619 }
 0x3b2   : > { %v6622_v48 = vpop.eup %6621 }
 0x3b3   : > { %vm684_vm7 = vcmp.lt.s32.totalorder %v7632_v12, %v666_v53  ;;  %v5734_v53 = vsel %vm1251_vm8, 1.0, %v12240_v22  ;;  %v1314_v56 = vadd.f32 %v5717_v15, %v1298_v51 }
 0x3b4   : > { %v7796_v60 = vsel %vm684_vm7, 1.0, %v12240_v22 }
 0x3b5   : > { %1349 = vadd.xlane.f32.xlu1 %v1326_v19  ;;  %v667_v19 = vadd.s32 104, %v7438_v8  ;;  %12895 = vst [vmem:[#allocation50_spill] sm:$0xff] %v7796_v60  ;;  %v1299_v3 = vmul.f32 %v5734_v53, %v7796_v60  ;;  %v1330_v51 = vmul.f32 %v7417_v46, %v1314_v56 }
 0x3b7   : > { %vm685_vm10 = vcmp.lt.s32.totalorder %v7632_v12, %v667_v19  ;;  %v5735_v19 = vsel %vm1252_vm11, 1.0, %v12240_v22  ;;  %v1315_v15 = vadd.f32 %v5718_v18, %v1299_v3 }
 0x3b8   : > { %v7809_v30 = vsel %vm685_vm10, 1.0, %v12240_v22 }
 0x3b9   : > { %1351 = vadd.xlane.f32.xlu1 %v1327_v5  ;;  %v668_v5 = vadd.s32 112, %v7438_v8  ;;  %12896 = vst [vmem:[#allocation51_spill] sm:$0xff] %v7809_v30  ;;  %v1300_v53 = vmul.f32 %v5735_v19, %v7809_v30  ;;  %v1331_v56 = vmul.f32 %v1315_v15, %v7424_v55 }
 0x3bb   : > { %vm686_vm13 = vcmp.lt.s32.totalorder %v7632_v12, %v668_v5  ;;  %v5736_v5 = vsel %vm1253_vm14, 1.0, %v12240_v22 }
 0x3bc   : > { %v7822_v60 = vsel %vm686_vm13, 1.0, %v12240_v22 }
 0x3bd   : > { %1353 = vadd.xlane.f32.xlu1 %v1328_v6  ;;  %v669_v6 = vadd.s32 120, %v7438_v8  ;;  %12897 = vst [vmem:[#allocation52_spill] sm:$0xff] %v7822_v60  ;;  %v1301_v19 = vmul.f32 %v5736_v5, %v7822_v60  ;;  %v5721_v5 = vsel %vm1206_vm4, 1.0, %v12240_v22 }
 0x3bf   : > { %vm687_vm1 = vcmp.lt.s32.totalorder %v7632_v12, %v669_v6  ;;  %v5720_v12 = vsel %vm1205_vm3, 1.0, %v12240_v22 }
 0x3c0   : > { %v7834_v18 = vsel %vm687_vm1, 1.0, %v12240_v22  ;;  %v1317_v30 = vadd.f32 %v5720_v12, %v1301_v19 }
 0x3c1   : > { %1355 = vadd.xlane.f32.xlu1 %v1329_v25  ;;  %v5719_v25 = vsel %vm1204_vm15, 1.0, %v12240_v22  ;;  %12898 = vst [vmem:[#allocation53_spill] sm:$0xff] %v7834_v18 }
 0x3c2   : > { %v1316_v3 = vadd.f32 %v5719_v25, %v1300_v53  ;;  %v1368_v53 = vpop.xlane.xlu1 %1367  ;;  %v1333_v25 = vmul.f32 %v7421_v54, %v1317_v30 }
 0x3c4   : > { %v1332_v6 = vmul.f32 %v1316_v3, %v7428_v59 }
 0x3c5   : > { %1357 = vadd.xlane.f32.xlu1 %v1330_v51  ;;  %v5737_v51 = vsel %vm1254_vm2, 1.0, %v12240_v22 }
 0x3c6   : > { %v1302_v15 = vmul.f32 %v5737_v51, %v7834_v18  ;;  %v1370_v26 = vpop.xlane.xlu1 %1369 }
 0x3c7   : > { %v1400_v55 = vmul.f32 0.8, %v1370_v26  ;;  %v1528_v26 = vmul.f32 %v6622_v48, %v12901_v7  ;;  %v6624_v48 = vpop.eup %6623 }
 0x3c8   : > { %v1318_v60 = vadd.f32 %v5721_v5, %v1302_v15 }
 0x3c9   : > { %1359 = vadd.xlane.f32.xlu1 %v1331_v56  ;;  %v1416_v41 = vceil.f32 %v1400_v55 }
 0x3ca   : > { %v1334_v56 = vmul.f32 %v7426_v57, %v1318_v60  ;;  %v1372_v8 = vpop.xlane.xlu1 %1371 }
 0x3cb   : > { %v1401_v35 = vmul.f32 0.8, %v1372_v8 }
 0x3cd   : > { %1361 = vadd.xlane.f32.xlu1 %v1332_v6  ;;  %v1417_v9 = vceil.f32 %v1401_v35  ;;  %v12903_v35 = vmax.f32 %v7472_v50, 0.0 }
 0x3ce   : > { %v1374_v3 = vpop.xlane.xlu1 %1373 }
 0x3d1   : > { %1363 = vadd.xlane.f32.xlu1 %v1333_v25 }
 0x3d2   : > { %v1376_v19 = vpop.xlane.xlu1 %1375 }
 0x3d3   : > { %v1403_v11 = vmul.f32 0.8, %v1376_v19 }
 0x3d5   : > { %1365 = vadd.xlane.f32.xlu1 %v1334_v56  ;;  %v1399_v56 = vmul.f32 0.8, %v1368_v53  ;;  %v12900_v53 = vmax.f32 %v7451_v21, 0.0  ;;  %v6626_v21 = vpop.eup %6625  ;;  %v1419_v19 = vceil.f32 %v1403_v11  ;;  %v12906_v11 = vmax.f32 %v7487_v4, 0.0 }
 0x3d6   : > { %v1378_v17 = vpop.xlane.xlu1 %1377  ;;  %v6628_v49 = vpop.eup %6627 }
 0x3d7   : > { %v1415_v18 = vceil.f32 %v1399_v56  ;;  %v1527_v39 = vmul.f32 %v6620_v42, %v12900_v53  ;;  %v1529_v56 = vmul.f32 %v6624_v48, %v12902_v16  ;;  %v1404_v7 = vmul.f32 0.8, %v1378_v17 }
 0x3da   : > { %v7847_v51 = vpop.xlane.xlu1 %1379 }
 0x3db   : > { %v1405_v48 = vmul.f32 0.8, %v7847_v51 }
 0x3dd   : > { %v1421_v51 = vceil.f32 %v1405_v48 }
 0x3de   : > { %v7849_v12 = vpop.xlane.xlu1 %1381 }
 0x3e2   : > { %v7851_v6 = vpop.xlane.xlu1 %1383 }
 0x3e6   : > { %v7853_v30 = vpop.xlane.xlu1 %1385 }
 0x3ea   : > { %v7855_v15 = vpop.xlane.xlu1 %1387 }
 0x3ee   : > { %v7857_v60 = vpop.xlane.xlu1 %1389 }
 0x3f2   : > { %v7859_v5 = vpop.xlane.xlu1 %1391 }
 0x3f6   : > { %v7861_v25 = vpop.xlane.xlu1 %1393 }
 0x3fa   : > { %v7865_v22 = vpop.xlane.xlu1 %1397 }
 0x426   : > { %v1336_v46 = vpop.xlane.xlu1 %1335 }
 0x427   : > { %vm1431_vm6 = vcmp.lt.f32.partialorder %v1336_v46, %v1415_v18  ;;  %v1402_v18 = vmul.f32 0.8, %v1374_v3 }
 0x428   : > { %v7870_v38 = vsel %vm1431_vm6, 1.0, %v12899_v43 }
 0x429   : > { %1479 = vxpose.xlu1.b32.start [1/16] (narrow) %v7870_v38, 8  ;;  %v7882_v55 = vmul.f32 %v7870_v38, %v1527_v39  ;;  %v1418_v39 = vceil.f32 %v1402_v18  ;;  %v6630_v18 = vpop.eup %6629 }
 0x42a   : > { %v1338_v2 = vpop.xlane.xlu1 %1337  ;;  %v6632_v0 = vpop.eup %6631 }
 0x42b   : > { %vm1432_vm7 = vcmp.lt.f32.partialorder %v1338_v2, %v1416_v41  ;;  %v1530_v2 = vmul.f32 %v6626_v21, %v12903_v35 }
 0x42c   : > { %v7879_v46 = vsel %vm1432_vm7, 1.0, %v12899_v43 }
 0x42d   : > { %v7885_v8 = vmul.f32 %v7879_v46, %v1528_v26  ;;  %1480 = vxpose.xlu1.b32.cont [2/16] (narrow) %v7879_v46, 8 }
 0x42e   : > { %v1340_v42 = vpop.xlane.xlu1 %1339 }
 0x42f   : > { %vm1433_vm8 = vcmp.lt.f32.partialorder %v1340_v42, %v1417_v9  ;;  %v7891_v41 = vpack.c.bf16 %v7885_v8, %v7882_v55  ;;  %v1420_v42 = vceil.f32 %v1404_v7 }
 0x430   : > { %v7894_v23 = vsel %vm1433_vm8, 1.0, %v12899_v43  ;;  %vm1595_vm8 = vcmp.gt.f32.partialorder %v7870_v38, 0.0 }
 0x431   : > { %6272 = vmatpush3.bf16.msra.mxu1 %v7891_v41  ;;  %1481 = vxpose.xlu1.b32.cont [3/16] (narrow) %v7894_v23, 8  ;;  %v7908_v26 = vmul.f32 %v7894_v23, %v1529_v56  ;;  %v1406_v56 = vmul.f32 0.8, %v7849_v12 }
 0x432   : > { %v1342_v3 = vpop.xlane.xlu1 %1341  ;;  %6273 = vmatprep.subr.bf16.mxu1 %v12899_v43 }
 0x433   : > { %vm1434_vm9 = vcmp.lt.f32.partialorder %v1342_v3, %v1418_v39  ;;  %v1531_v39 = vmul.f32 %v6628_v49, %v12905_v28  ;;  %v1532_v3 = vmul.f32 %v6630_v18, %v12906_v11  ;;  %v1422_v7 = vceil.f32 %v1406_v56 }
 0x434   : > { %v7905_v53 = vsel %vm1434_vm9, 1.0, %v12899_v43  ;;  %v1407_v49 = vmul.f32 0.8, %v7851_v6  ;;  %v1533_v18 = vmul.f32 %v6632_v0, %v12910_v1  ;;  %v1408_v28 = vmul.f32 0.8, %v7853_v30 }
 0x435   : > { %v7911_v9 = vmul.f32 %v7905_v53, %v1530_v2  ;;  %1482 = vxpose.xlu1.b32.cont [4/16] (narrow) %v7905_v53, 8  ;;  %v1409_v56 = vmul.f32 0.8, %v7855_v15  ;;  %vm1596_vm9 = vcmp.gt.f32.partialorder %v7879_v46, 0.0 }
 0x436   : > { %v1344_v50 = vpop.xlane.xlu1 %1343  ;;  %v1423_v6 = vceil.f32 %v1407_v49 }
 0x437   : > { %vm1435_vm10 = vcmp.lt.f32.partialorder %v1344_v50, %v1419_v19  ;;  %v7917_v20 = vpack.c.bf16 %v7911_v9, %v7908_v26  ;;  %v6634_v19 = vpop.eup %6633  ;;  %v1425_v15 = vceil.f32 %v1409_v56  ;;  %v1412_v56 = vmul.f32 0.8, %v7861_v25 }
 0x438   : > { %v7920_v17 = vsel %vm1435_vm10, 1.0, %v12899_v43  ;;  %v6636_v24 = vpop.eup %6635  ;;  %vm1597_vm10 = vcmp.gt.f32.partialorder %v7894_v23, 0.0 }
 0x439   : > { %12904 = vst [vmem:[#allocation54_spill] sm:$0xff] %v7920_v17  ;;  %6274 = vmatpush3.bf16.msra.mxu1 %v7917_v20  ;;  %1483 = vxpose.xlu1.b32.cont [5/16] (narrow) %v7920_v17, 8  ;;  %v7936_v35 = vmul.f32 %v7920_v17, %v1531_v39 }
 0x43a   : > { %v1346_v21 = vpop.xlane.xlu1 %1345  ;;  %6275 = vmatprep.subr.bf16.mxu1 %v12899_v43 }
 0x43b   : > { %vm1436_vm11 = vcmp.lt.f32.partialorder %v1346_v21, %v1420_v42  ;;  %v12911_v42 = vmax.f32 %v7501_v52, 0.0 }
 0x43c   : > { %v7932_v16 = vsel %vm1436_vm11, 1.0, %v12899_v43  ;;  %vm1598_vm11 = vcmp.gt.f32.partialorder %v7905_v53, 0.0 }
 0x43d   : > { %12907 = vst [vmem:[#allocation55_spill] sm:$0xff] %v7932_v16  ;;  %v7939_v2 = vmul.f32 %v7932_v16, %v1532_v3  ;;  %1484 = vxpose.xlu1.b32.cont [6/16] (narrow) %v7932_v16, 8  ;;  %v1534_v48 = vmul.f32 %v6634_v19, %v12911_v42  ;;  %v6638_v3 = vpop.eup %6637  ;;  %v12917_v19 = vmax.f32 %v7515_v58, 0.0 }
 0x43e   : > { %v1348_v4 = vpop.xlane.xlu1 %1347  ;;  %v6640_v45 = vpop.eup %6639 }
 0x43f   : > { %12908 = vst [vmem:[#allocation56_spill] sm:$0xff] %v7939_v2  ;;  %vm1437_vm12 = vcmp.lt.f32.partialorder %v1348_v4, %v1421_v51  ;;  %v7945_v47 = vpack.c.bf16 %v7939_v2, %v7936_v35  ;;  %v1424_v51 = vceil.f32 %v1408_v28  ;;  %v1535_v4 = vmul.f32 %v6636_v24, %v12916_v31  ;;  %v6642_v42 = vpop.eup %6641 }
 0x440   : > { %v7948_v12 = vsel %vm1437_vm12, 1.0, %v12899_v43  ;;  %v1537_v24 = vmul.f32 %v6640_v45, %v12922_v63  ;;  %v6644_v10 = vpop.eup %6643  ;;  %vm1599_vm12 = vcmp.gt.f32.partialorder %v7920_v17, 0.0 }
 0x441   : > { %12909 = vst [vmem:[#allocation57_spill] sm:$0xff] %v7948_v12  ;;  %6276 = vmatpush3.bf16.msra.mxu1 %v7945_v47  ;;  %1485 = vxpose.xlu1.b32.cont [7/16] (narrow) %v7948_v12, 8  ;;  %v7964_v39 = vmul.f32 %v7948_v12, %v1533_v18  ;;  %v1539_v45 = vmul.f32 %v6644_v10, %v12928_v14  ;;  %v12934_v10 = vmax.f32 %v7553_v27, 0.0  ;;  %v12940_v27 = vld [vmem:[#allocation18_spill] sm:$0xff] }
 0x442   : > { %v1350_v50 = vpop.xlane.xlu1 %1349  ;;  %6277 = vmatprep.subr.bf16.mxu1 %v12899_v43 }
 0x443   : > { %vm1438_vm13 = vcmp.lt.f32.partialorder %v1350_v50, %v1422_v7  ;;  %12913 = vst [vmem:[#allocation59_spill] sm:$0xff] %v7964_v39  ;;  %v1536_v7 = vmul.f32 %v6638_v3, %v12917_v19  ;;  %v1410_v50 = vmul.f32 0.8, %v7857_v60  ;;  %v6646_v19 = vpop.eup %6645 }
 0x444   : > { %v7960_v21 = vsel %vm1438_vm13, 1.0, %v12899_v43  ;;  %v6648_v32 = vpop.eup %6647  ;;  %vm1600_vm13 = vcmp.gt.f32.partialorder %v7932_v16, 0.0 }
 0x445   : > { %12912 = vst [vmem:[#allocation58_spill] sm:$0xff] %v7960_v21  ;;  %v7967_v11 = vmul.f32 %v7960_v21, %v1534_v48  ;;  %1486 = vxpose.xlu1.b32.cont [8/16] (narrow) %v7960_v21, 8  ;;  %v1426_v48 = vceil.f32 %v1410_v50 }
 0x446   : > { %v1352_v52 = vpop.xlane.xlu1 %1351 }
 0x447   : > { %12914 = vst [vmem:[#allocation60_spill] sm:$0xff] %v7967_v11  ;;  %vm1439_vm14 = vcmp.lt.f32.partialorder %v1352_v52, %v1423_v6  ;;  %v7973_v44 = vpack.c.bf16 %v7967_v11, %v7964_v39  ;;  %v1411_v6 = vmul.f32 0.8, %v7859_v5  ;;  %v12923_v52 = vmax.f32 %v7529_v13, 0.0  ;;  %v1396_v13 = vpop.xlane.xlu0 %1395 }
 0x448   : > { %v7976_v30 = vsel %vm1439_vm14, 1.0, %v12899_v43  ;;  %vm1601_vm14 = vcmp.gt.f32.partialorder %v7948_v12, 0.0 }
 0x449   : > { %12915 = vst [vmem:[#allocation61_spill] sm:$0xff] %v7976_v30  ;;  %6278 = vmatpush3.bf16.msra.mxu1 %v7973_v44  ;;  %1487 = vxpose.xlu1.b32.cont [9/16] (narrow) %v7976_v30, 8  ;;  %v7992_v1 = vmul.f32 %v7976_v30, %v1535_v4  ;;  %v1538_v3 = vmul.f32 %v6642_v42, %v12923_v52  ;;  %v1427_v5 = vceil.f32 %v1411_v6  ;;  %v1414_v6 = vmul.f32 0.8, %v7865_v22 }
 0x44a   : > { %v1354_v0 = vpop.xlane.xlu1 %1353  ;;  %6279 = vmatprep.subr.bf16.mxu1 %v12899_v43 }
 0x44b   : > { %vm1440_vm15 = vcmp.lt.f32.partialorder %v1354_v0, %v1424_v51  ;;  %12919 = vst [vmem:[#allocation63_spill] sm:$0xff] %v7992_v1  ;;  %v1430_v22 = vceil.f32 %v1414_v6 }
 0x44c   : > { %v7988_v49 = vsel %vm1440_vm15, 1.0, %v12899_v43  ;;  %vm1602_vm15 = vcmp.gt.f32.partialorder %v7960_v21, 0.0 }
 0x44d   : > { %12918 = vst [vmem:[#allocation62_spill] sm:$0xff] %v7988_v49  ;;  %v7995_v18 = vmul.f32 %v7988_v49, %v1536_v7  ;;  %1488 = vxpose.xlu1.b32.cont [10/16] (narrow) %v7988_v49, 8  ;;  %v1428_v7 = vceil.f32 %v1412_v56 }
 0x44e   : > { %v1356_v58 = vpop.xlane.xlu1 %1355 }
 0x44f   : > { %12920 = vst [vmem:[#allocation64_spill] sm:$0xff] %v7995_v18  ;;  %vm1441_vm1 = vcmp.lt.f32.partialorder %v1356_v58, %v1425_v15  ;;  %v8001_v29 = vpack.c.bf16 %v7995_v18, %v7992_v1  ;;  %v1413_v15 = vmul.f32 0.8, %v1396_v13  ;;  %v12929_v58 = vmax.f32 %v7543_v62, 0.0  ;;  %v6572_v1 = vld [vmem:[#allocation7 + $0x20] sm:$0xff]  }
 0x450   : > { %v8004_v60 = vsel %vm1441_vm1, 1.0, %v12899_v43  ;;  %v1541_v13 = vmul.f32 %v6648_v32, %v12934_v10  ;;  %v6728_v10 = vld [vmem:[%s7274_s29 + $0x18] sm:$0xff]  ;;  %vm12362_vm1 = vcmp.gt.f32.partialorder %v7976_v30, 0.0 }
 0x451   : > { %12921 = vst [vmem:[#allocation65_spill] sm:$0xff] %v8004_v60  ;;  %6280 = vmatpush3.bf16.msra.mxu1 %v8001_v29  ;;  %1489 = vxpose.xlu1.b32.cont [11/16] (narrow) %v8004_v60, 8  ;;  %v8020_v0 = vmul.f32 %v8004_v60, %v1537_v24  ;;  %v1540_v42 = vmul.f32 %v6646_v19, %v12929_v58 }
 0x452   : > { %v1358_v28 = vpop.xlane.xlu1 %1357  ;;  %6281 = vmatprep.subr.bf16.mxu1 %v12899_v43 }
 0x453   : > { %vm1442_vm2 = vcmp.lt.f32.partialorder %v1358_v28, %v1426_v48  ;;  %12925 = vst [vmem:[#allocation67_spill] sm:$0xff] %v8020_v0  ;;  %v1429_v28 = vceil.f32 %v1413_v15 }
 0x454   : > { %v8016_v51 = vsel %vm1442_vm2, 1.0, %v12899_v43  ;;  %vm1604_vm2 = vcmp.gt.f32.partialorder %v7988_v49, 0.0 }
 0x455   : > { %12924 = vst [vmem:[#allocation66_spill] sm:$0xff] %v8016_v51  ;;  %v8023_v31 = vmul.f32 %v8016_v51, %v1538_v3  ;;  %1490 = vxpose.xlu1.b32.cont [12/16] (narrow) %v8016_v51, 8  ;;  %v6650_v3 = vpop.eup %6649 }
 0x456   : > { %v1360_v4 = vpop.xlane.xlu1 %1359 }
 0x457   : > { %12926 = vst [vmem:[#allocation68_spill] sm:$0xff] %v8023_v31  ;;  %vm1443_vm3 = vcmp.lt.f32.partialorder %v1360_v4, %v1427_v5  ;;  %v8029_v61 = vpack.c.bf16 %v8023_v31, %v8020_v0  ;;  %v12935_v4 = vld [vmem:[#allocation37_spill] sm:$0xff]  ;;  %v6570_v31 = vld [vmem:[#allocation7 + $0x18] sm:$0xff]  }
 0x458   : > { %v8032_v25 = vsel %vm1443_vm3, 1.0, %v12899_v43  ;;  %v12936_v19 = vmax.f32 %v12935_v4, 0.0  ;;  %v6729_v4 = vld [vmem:[%s7274_s29 + $0x20] sm:$0xff]  ;;  %vm12340_vm3 = vcmp.gt.f32.partialorder %v8004_v60, 0.0 }
 0x459   : > { %12927 = vst [vmem:[#allocation69_spill] sm:$0xff] %v8032_v25  ;;  %6282 = vmatpush3.bf16.msra.mxu1 %v8029_v61  ;;  %1491 = vxpose.xlu1.b32.cont [13/16] (narrow) %v8032_v25, 8  ;;  %v8046_v63 = vmul.f32 %v8032_v25, %v1539_v45 }
 0x45a   : > { %v1362_v50 = vpop.xlane.xlu1 %1361  ;;  %6283 = vmatprep.subr.bf16.mxu1 %v12899_v43 }
 0x45b   : > { %vm1444_vm4 = vcmp.lt.f32.partialorder %v1362_v50, %v1428_v7  ;;  %12931 = vst [vmem:[#allocation71_spill] sm:$0xff] %v8046_v63  ;;  %v1542_v7 = vmul.f32 %v6650_v3, %v12936_v19  ;;  %v1563_v19 = vmul.f32 %v6729_v4, %v7920_v17 }
 0x45c   : > { %v8042_v48 = vsel %vm1444_vm4, 1.0, %v12899_v43  ;;  %vm12358_vm4 = vcmp.gt.f32.partialorder %v8016_v51, 0.0 }
 0x45d   : > { %12930 = vst [vmem:[#allocation70_spill] sm:$0xff] %v8042_v48  ;;  %v8049_v24 = vmul.f32 %v8042_v48, %v1540_v42  ;;  %1492 = vxpose.xlu1.b32.cont [14/16] (narrow) %v8042_v48, 8  ;;  %v6725_v42 = vld [vmem:[%s7274_s29 + $0x10] sm:$0xff] }
 0x45e   : > { %v1364_v52 = vpop.xlane.xlu1 %1363  ;;  %v1561_v6 = vmul.f32 %v6725_v42, %v7894_v23 }
 0x45f   : > { %12932 = vst [vmem:[#allocation72_spill] sm:$0xff] %v8049_v24  ;;  %vm1445_vm6 = vcmp.lt.f32.partialorder %v1364_v52, %v1429_v28  ;;  %v8054_v62 = vpack.c.bf16 %v8049_v24, %v8046_v63  ;;  %v12941_v28 = vld [vmem:[#allocation36_spill] sm:$0xff]  ;;  %v6732_v24 = vld [vmem:[%s7274_s29 + $0x38] sm:$0xff] }
 0x460   : > { %v8057_v5 = vsel %vm1445_vm6, 1.0, %v12899_v43  ;;  %v6726_v52 = vld [vmem:[%s7274_s29] sm:$0xff]  ;;  %v1566_v0 = vmul.f32 %v6732_v24, %v7960_v21  ;;  %vm12364_vm6 = vcmp.gt.f32.partialorder %v8032_v25, 0.0 }
 0x461   : > { %12933 = vst [vmem:[#allocation73_spill] sm:$0xff] %v8057_v5  ;;  %6284 = vmatpush3.bf16.msra.mxu1 %v8054_v62  ;;  %1493 = vxpose.xlu1.b32.cont [15/16] (narrow) %v8057_v5, 8  ;;  %v8070_v50 = vmul.f32 %v8057_v5, %v1541_v13  ;;  %v1559_v3 = vmul.f32 %v6726_v52, %v7870_v38  ;;  %vm12347_vm0 = vcmp.gt.f32.partialorder %v8057_v5, 0.0 }
 0x462   : > { %v1366_v56 = vpop.xlane.xlu1 %1365  ;;  %6285 = vmatprep.subr.bf16.mxu1 %v12899_v43  ;;  %v1562_v13 = vmul.f32 %v6728_v10, %v7905_v53 }
 0x463   : > { %vm1446_vm7 = vcmp.lt.f32.partialorder %v1366_v56, %v1430_v22  ;;  %12938 = vst [vmem:[#allocation74_spill] sm:$0xff] %v8070_v50  ;;  %v6727_v22 = vld [vmem:[%s7274_s29 + $0x8] sm:$0xff] }
 0x464   : > { %v8067_v15 = vsel %vm1446_vm7, 1.0, %v12899_v43  ;;  %v1560_v56 = vmul.f32 %v6727_v22, %v7879_v46  ;;  %vm12348_vm7 = vcmp.gt.f32.partialorder %v8042_v48, 0.0 }
 0x465   : > { %12937 = vst [vmem:[#allocation37_spill] sm:$0xff] %v8067_v15  ;;  %v8073_v14 = vmul.f32 %v8067_v15, %v1542_v7  ;;  %1494 = vxpose.xlu1.b32.end [16/16] (narrow) %v8067_v15, 8  ;;  %v6730_v7 = vld [vmem:[%s7274_s29 + $0x28] sm:$0xff] }
 0x467   : > { %12939 = vst [vmem:[#allocation75_spill] sm:$0xff] %v8073_v14  ;;  %v8078_v45 = vpack.c.bf16 %v8073_v14, %v8070_v50  ;;  %v1564_v50 = vmul.f32 %v6730_v7, %v7932_v16  ;;  %v6578_v14 = vld [vmem:[#allocation7 + $0x38] sm:$0xff]   ;;  %v12995_v16 = vld [vmem:[#allocation52_spill] sm:$0xff] }
 0x469   : > { %6286 = vmatpush3.bf16.msra.mxu1 %v8078_v45 }
 0x46a   : > { %6291 = vmatprep.subr.bf16.mxu1 %v7891_v41 }
 0x46c   : > { %6288 = vmatmul.mubr.bf16.vlgmr.msra.gmra.mrb[16].mxu1 %v12940_v27  ;;  %v6575_v27 = vld [vmem:[#allocation7 + $0x70] sm:$0xff]  }
 0x46d   : > { %6292 = vmatpush3.bf16.msra.mxu1 %v7891_v41 }
 0x46e   : > { %6293 = vmatprep.subr.bf16.mxu1 %v7917_v20 }
 0x471   : > { %6294 = vmatpush3.bf16.msra.mxu1 %v7917_v20 }
 0x472   : > { %6295 = vmatprep.subr.bf16.mxu1 %v7945_v47 }
 0x475   : > { %6296 = vmatpush3.bf16.msra.mxu1 %v7945_v47 }
 0x476   : > { %6297 = vmatprep.subr.bf16.mxu1 %v7973_v44 }
 0x479   : > { %6298 = vmatpush3.bf16.msra.mxu1 %v7973_v44 }
 0x47a   : > { %6299 = vmatprep.subr.bf16.mxu1 %v8001_v29 }
 0x47d   : > { %6300 = vmatpush3.bf16.msra.mxu1 %v8001_v29 }
 0x47e   : > { %6301 = vmatprep.subr.bf16.mxu1 %v8029_v61 }
 0x481   : > { %6302 = vmatpush3.bf16.msra.mxu1 %v8029_v61 }
 0x482   : > { %6303 = vmatprep.subr.bf16.mxu1 %v8054_v62 }
 0x485   : > { %6304 = vmatpush3.bf16.msra.mxu1 %v8054_v62 }
 0x486   : > { %6305 = vmatprep.subr.bf16.mxu1 %v8078_v45 }
 0x489   : > { %6306 = vmatpush3.bf16.msra.mxu1 %v8078_v45 }
 0x48a   : > { %6323 = vmatprep.subr.bf16.mxu1 %v12899_v43 }
 0x4a9   : > { %v1495_v58 = vpop.trf.xlu1 }
 0x4aa   : > { %v8102_v32 = vrot.slane %v1495_v58, %v12941_v28 }
 0x4ac   : > { %12942 = vst [vmem:[#allocation76_spill] sm:$0xff] %v8102_v32  ;;  %v8116_v58 = vmul.f32 %v8102_v32, %v7399_v34  ;;  %v8119_v42 = vmul.f32 %v8102_v32, %v1559_v3  ;;  %v8122_v52 = vmul.f32 %v8102_v32, %v1560_v56  ;;  %v8125_v22 = vmul.f32 %v8102_v32, %v1561_v6  ;;  %v6733_v34 = vld [vmem:[%s7274_s29 + $0x40] sm:$0xff] }
 0x4ad   : > { %v8128_v10 = vmul.f32 %v8102_v32, %v1562_v13  ;;  %v8131_v4 = vmul.f32 %v8102_v32, %v1563_v19  ;;  %v8134_v7 = vmul.f32 %v8102_v32, %v1564_v50  ;;  %v8143_v56 = vmul.f32 %v8102_v32, %v7403_v37  ;;  %v6731_v50 = vld [vmem:[%s7274_s29 + $0x30] sm:$0xff] }
 0x4ae   : > { %12943 = vst [vmem:[#allocation77_spill] sm:$0xff] %v8119_v42  ;;  %12944 = vst [vmem:[#allocation78_spill] sm:$0xff] %v8122_v52  ;;  %3221 = vadd.xlane.f32.xlu1 %v8116_v58  ;;  %v2599_v3 = vpack.c.bf16 %v8122_v52, %v8119_v42  ;;  %v1565_v19 = vmul.f32 %v6731_v50, %v7948_v12  ;;  %v8164_v24 = vmul.f32 %v7397_v33, %v8102_v32  ;;  %v6735_v33 = vld [vmem:[%s7274_s29 + $0x50] sm:$0xff]  ;;  %v6569_v42 = vld [vmem:[#allocation7 + $0x58] sm:$0xff]  }
 0x4af   : > { %12945 = vst [vmem:[#allocation79_spill] sm:$0xff] %v8125_v22  ;;  %12946 = vst [vmem:[#allocation80_spill] sm:$0xff] %v8128_v10  ;;  %v2600_v6 = vpack.c.bf16 %v8128_v10, %v8125_v22  ;;  %v2601_v13 = vpack.c.bf16 %v8134_v7, %v8131_v4  ;;  %v6734_v10 = vld [vmem:[%s7274_s29 + $0x48] sm:$0xff]  ;;  %v8178_v50 = vmul.f32 %v8102_v32, %v7428_v59  ;;  %v6736_v59 = vld [vmem:[%s7274_s29 + $0x58] sm:$0xff] }
 0x4b0   : > { %12947 = vst [vmem:[#allocation81_spill] sm:$0xff] %v8131_v4  ;;  %12948 = vst [vmem:[#allocation82_spill] sm:$0xff] %v8134_v7  ;;  %6307 = vmatprep.mubr.bf16.mxu1 %v2599_v3  ;;  %v1567_v3 = vmul.f32 %v6733_v34, %v7976_v30  ;;  %v1568_v37 = vmul.f32 %v6734_v10, %v7988_v49  ;;  %v8157_v22 = vmul.f32 %v8102_v32, %v1565_v19  ;;  %v6740_v4 = vld [vmem:[%s7274_s29 + $0x78] sm:$0xff] }
 0x4b1   : > { %6308 = vmatmul.mubr.bf16.vlgmr.msra.gmra.mrb[20].mxu1 %v2600_v6  ;;  %v8160_v6 = vmul.f32 %v8102_v32, %v1566_v0  ;;  %v8174_v10 = vmul.f32 %v7409_v40, %v8102_v32  ;;  %v8182_v0 = vmul.f32 %v7421_v54, %v8102_v32  ;;  %v1569_v54 = vmul.f32 %v6735_v33, %v8004_v60  ;;  %v12955_v33 = vld [vmem:[#allocation24_spill] sm:$0xff] }
 0x4b2   : > { %3223 = vadd.xlane.f32.xlu1 %v8143_v56  ;;  %6311 = vmatprep.mubr.bf16.mxu1 %v2601_v13  ;;  %12949 = vst [vmem:[#allocation83_spill] sm:$0xff] %v8157_v22  ;;  %v8167_v13 = vmul.f32 %v8102_v32, %v1567_v3  ;;  %v8170_v34 = vmul.f32 %v8102_v32, %v1568_v37 }
 0x4b3   : > { %12950 = vst [vmem:[#allocation84_spill] sm:$0xff] %v8160_v6  ;;  %v8187_v37 = vmul.f32 %v7426_v57, %v8102_v32  ;;  %v2602_v19 = vpack.c.bf16 %v8160_v6, %v8157_v22  ;;  %v8193_v3 = vmul.f32 %v7401_v36, %v8102_v32  ;;  %v1570_v7 = vmul.f32 %v6736_v59, %v8016_v51  ;;  %v6737_v57 = vld [vmem:[%s7274_s29 + $0x60] sm:$0xff]  ;;  %v6738_v36 = vld [vmem:[%s7274_s29 + $0x68] sm:$0xff] }
 0x4b4   : > { %12951 = vst [vmem:[#allocation85_spill] sm:$0xff] %v8167_v13  ;;  %12952 = vst [vmem:[#allocation86_spill] sm:$0xff] %v8170_v34  ;;  %v2603_v40 = vpack.c.bf16 %v8170_v34, %v8167_v13  ;;  %v1571_v6 = vmul.f32 %v6737_v57, %v8032_v25  ;;  %v1572_v22 = vmul.f32 %v6738_v36, %v8042_v48 }
 0x4b5   : > { %v8207_v34 = vmul.f32 %v8102_v32, %v1569_v54  ;;  %v8214_v59 = vmul.f32 %v8102_v32, %v12955_v33  ;;  %v12958_v54 = vld [vmem:[#allocation26_spill] sm:$0xff] }
 0x4b6   : > { %3225 = vadd.xlane.f32.xlu1 %v8164_v24  ;;  %v8217_v13 = vmul.f32 %v8102_v32, %v1571_v6  ;;  %v8227_v57 = vmul.f32 %v8102_v32, %v12958_v54  ;;  %v6739_v33 = vld [vmem:[%s7274_s29 + $0x70] sm:$0xff]  ;;  %s13943_s29 = sld [smem:[#allocation211_spill]] }
 0x4b7   : > { %12953 = vst [vmem:[#allocation87_spill] sm:$0xff] %v8207_v34  ;;  %v1573_v6 = vmul.f32 %v6739_v33, %v8057_v5 }
 0x4b8   : > { %12956 = vst [vmem:[#allocation89_spill] sm:$0xff] %v8217_v13 }
 0x4b9   : > { %6312 = vmatmul.mubr.bf16.gmra.mrb[24].mxu1 %v2602_v19  ;;  %v8210_v19 = vmul.f32 %v8102_v32, %v1570_v7  ;;  %v8237_v52 = vmul.f32 %v8102_v32, %v1573_v6  ;;  %v6564_v6 = vld [vmem:[#allocation7] sm:$0xff]  }
 0x4ba   : > { %3227 = vadd.xlane.f32.xlu1 %v8193_v3  ;;  %6315 = vmatprep.mubr.bf16.mxu1 %v2603_v40  ;;  %v8220_v40 = vmul.f32 %v8102_v32, %v1572_v22  ;;  %v1574_v22 = vmul.f32 %v6740_v4, %v8067_v15 }
 0x4bb   : > { %12954 = vst [vmem:[#allocation88_spill] sm:$0xff] %v8210_v19  ;;  %v2604_v36 = vpack.c.bf16 %v8210_v19, %v8207_v34  ;;  %12959 = vst [vmem:[#allocation91_spill] sm:$0xff] %v8237_v52  ;;  %v12961_v34 = vld [vmem:[#allocation23_spill] sm:$0xff] }
 0x4bc   : > { %12957 = vst [vmem:[#allocation90_spill] sm:$0xff] %v8220_v40  ;;  %v2605_v7 = vpack.c.bf16 %v8220_v40, %v8217_v13  ;;  %v8240_v19 = vmul.f32 %v8102_v32, %v1574_v22  ;;  %v8244_v54 = vmul.f32 %v12961_v34, %v8102_v32  ;;  %v12963_v22 = vld [vmem:[#allocation30_spill] sm:$0xff]  ;;  %v6566_v13 = vld [vmem:[#allocation7 + $0x8] sm:$0xff]  }
 0x4bd   : > { %v8258_v40 = vmul.f32 %v8102_v32, %v12963_v22  ;;  %v6568_v22 = vld [vmem:[#allocation7 + $0x10] sm:$0xff]  }
 0x4be   : > { %3229 = vadd.xlane.f32.xlu1 %v8214_v59  ;;  %12960 = vst [vmem:[#allocation92_spill] sm:$0xff] %v8240_v19  ;;  %v2606_v33 = vpack.c.bf16 %v8240_v19, %v8237_v52  ;;  %v12964_v19 = vld [vmem:[#allocation27_spill] sm:$0xff] }
 0x4bf   : > { %v8263_v52 = vmul.f32 %v12964_v19, %v8102_v32  ;;  %v6567_v19 = vld [vmem:[#allocation7 + $0x50] sm:$0xff]  }
 0x4c1   : > { %6316 = vmatmul.mubr.bf16.gmra.mrb[28].mxu1 %v2604_v36  ;;  %v12962_v36 = vld [vmem:[#allocation28_spill] sm:$0xff] }
 0x4c2   : > { %3231 = vadd.xlane.f32.xlu1 %v8227_v57  ;;  %6319 = vmatprep.mubr.bf16.mxu1 %v2605_v7  ;;  %v8251_v4 = vmul.f32 %v8102_v32, %v12962_v36  ;;  %v6563_v7 = vld [vmem:[#allocation7 + $0x40] sm:$0xff]   ;;  %v12965_v36 = vld [vmem:[#allocation29_spill] sm:$0xff] }
 0x4c3   : > { %6028 = vmatprep.subr.bf16.mxu0 %v6563_v7  ;;  %v8268_v34 = vmul.f32 %v12965_v36, %v8102_v32  ;;  %v12966_v7 = vld [vmem:[#allocation32_spill] sm:$0xff] }
 0x4c4   : > { %6029 = vmatpush3.bf16.msra.mxu0 %v6564_v6  ;;  %v8273_v6 = vmul.f32 %v8102_v32, %v12966_v7  ;;  %v6571_v36 = vld [vmem:[#allocation7 + $0x60] sm:$0xff]   ;;  %v6576_v32 = vld [vmem:[#allocation7 + $0x30] sm:$0xff]   ;;  %v6577_v7 = vld [vmem:[#allocation7 + $0x78] sm:$0xff]  }
 0x4c6   : > { %3233 = vadd.xlane.f32.xlu1 %v8244_v54 }
 0x4c9   : > { %6320 = vmatmul.mubr.bf16.gmra.mrb[32].mxu1 %v2606_v33  ;;  %v6565_v33 = vld [vmem:[#allocation7 + $0x48] sm:$0xff]  }
 0x4ca   : > { %3237 = vadd.xlane.f32.xlu1 %v8251_v4  ;;  %6339 = vmatprep.mubr.msk.bf16.mxu1 %vm12354_vm5, %v12899_v43 }
 0x4cb   : > { %6030 = vmatprep.subr.bf16.mxu0 %v6565_v33  ;;  %v6573_v33 = vld [vmem:[#allocation7 + $0x68] sm:$0xff]  }
 0x4cc   : > { %6031 = vmatpush3.bf16.msra.mxu0 %v6566_v13  ;;  %v6574_v13 = vld [vmem:[#allocation7 + $0x28] sm:$0xff]  }
 0x4cd   : > { %6032 = vmatprep.subr.bf16.mxu0 %v6567_v19 }
 0x4ce   : > { %3239 = vadd.xlane.f32.xlu1 %v8258_v40 }
 0x4d0   : > { %6033 = vmatpush3.bf16.msra.mxu0 %v6568_v22 }
 0x4d1   : > { %6034 = vmatprep.subr.bf16.mxu0 %v6569_v42 }
 0x4d2   : > { %3241 = vadd.xlane.f32.xlu1 %v8263_v52 }
 0x4d4   : > { %6035 = vmatpush3.bf16.msra.mxu0 %v6570_v31 }
 0x4d5   : > { %6036 = vmatprep.subr.bf16.mxu0 %v6571_v36 }
 0x4d6   : > { %3243 = vadd.xlane.f32.xlu1 %v8268_v34 }
 0x4d8   : > { %6037 = vmatpush3.bf16.msra.mxu0 %v6572_v1 }
 0x4d9   : > { %6038 = vmatprep.subr.bf16.mxu0 %v6573_v33 }
 0x4da   : > { %3245 = vadd.xlane.f32.xlu1 %v8273_v6 }
 0x4dc   : > { %6039 = vmatpush3.bf16.msra.mxu0 %v6574_v13 }
 0x4dd   : > { %6040 = vmatprep.subr.bf16.mxu0 %v6575_v27 }
 0x4e0   : > { %6041 = vmatpush3.bf16.msra.mxu0 %v6576_v32 }
 0x4e1   : > { %6042 = vmatprep.subr.bf16.mxu0 %v6577_v7 }
 0x4e4   : > { %6043 = vmatpush3.bf16.msra.mxu0 %v6578_v14 }
 0x53f   : > { %v8276_v19 = vpop.f32.mrb[16].mxu1 }
 0x540   : > { %12967 = vst [vmem:[#allocation93_spill] sm:$0xff] %v8276_v19  ;;  %v6289_v42 = vpop.f32.mrb[17].mxu1 }
 0x541   : > { %v2557_v31 = vpop.f32.mrb[18].mxu1 }
 0x542   : > { %v6290_v22 = vpop.f32.mrb[19].mxu1 }
 0x584   : > { %v6309_v63 = vpop.f32.mrb[20].mxu1 }
 0x585   : > { %v2641_v18 = vpop.f32.mrb[21].mxu1 }
 0x586   : > { %v6310_v36 = vpop.f32.mrb[22].mxu1 }
 0x587   : > { %v2705_v1 = vpack.c.bf16 %v6310_v36, %v6309_v63  ;;  %v2644_v11 = vpop.f32.mrb[23].mxu1 }
 0x588   : > { %v2704_v33 = vpack.c.bf16 %v2644_v11, %v2641_v18 }
 0x58a   : > { %2844 = vmatprep.mubr.bf16.mxu0 %v2704_v33 }
 0x58b   : > { %2845 = vmatmul.mubr.bf16.vlgmr.msra.gmra.mrb[48].mxu0 %v7891_v41 }
 0x58c   : > { %v6313_v27 = vpop.f32.mrb[24].mxu1  ;;  %2852 = vmatprep.mubr.bf16.mxu0 %v2705_v1 }
 0x58d   : > { %v2657_v32 = vpop.f32.mrb[25].mxu1 }
 0x58e   : > { %v6314_v13 = vpop.f32.mrb[26].mxu1 }
 0x58f   : > { %v2707_v7 = vpack.c.bf16 %v6314_v13, %v6313_v27  ;;  %v2660_v14 = vpop.f32.mrb[27].mxu1 }
 0x590   : > { %v2706_v39 = vpack.c.bf16 %v2660_v14, %v2657_v32  ;;  %v6741_v32 = vld [vmem:[%s12178_s8] sm:$0xff] }
 0x593   : > { %2853 = vmatmul.mubr.bf16.gmra.mrb[52].mxu0 %v7917_v20  ;;  %v12968_v20 = vld [vmem:[#allocation35_spill] sm:$0xff] }
 0x594   : > { %v6317_v42 = vpop.f32.mrb[28].mxu1  ;;  %2860 = vmatprep.mubr.bf16.mxu0 %v2706_v39 }
 0x595   : > { %v2673_v31 = vpop.f32.mrb[29].mxu1 }
 0x596   : > { %v6318_v22 = vpop.f32.mrb[30].mxu1 }
 0x597   : > { %v2709_v19 = vpack.c.bf16 %v6318_v22, %v6317_v42  ;;  %v2676_v63 = vpop.f32.mrb[31].mxu1 }
 0x598   : > { %v2708_v36 = vpack.c.bf16 %v2676_v63, %v2673_v31 }
 0x59b   : > { %2861 = vmatmul.mubr.bf16.gmra.mrb[56].mxu0 %v7945_v47  ;;  %v2714_v47 = vsub.s32 2, %v12968_v20 }
 0x59c   : > { %v6321_v11 = vpop.f32.mrb[32].mxu1  ;;  %2868 = vmatprep.mubr.bf16.mxu0 %v2707_v7 }
 0x59d   : > { %v2689_v41 = vpop.f32.mrb[33].mxu1 }
 0x59e   : > { %v6322_v18 = vpop.f32.mrb[34].mxu1 }
 0x59f   : > { %v2711_v1 = vpack.c.bf16 %v6322_v18, %v6321_v11  ;;  %v2692_v33 = vpop.f32.mrb[35].mxu1 }
 0x5a0   : > { %v2710_v27 = vpack.c.bf16 %v2692_v33, %v2689_v41 }
 0x5a3   : > { %2869 = vmatmul.mubr.bf16.gmra.mrb[60].mxu0 %v7973_v44  ;;  %v8290_v44 = vrot.slane %v6741_v32, %v2714_v47 }
 0x5a4   : > { %2876 = vmatprep.mubr.bf16.mxu0 %v2708_v36 }
 0x5ab   : > { %2877 = vmatmul.mubr.bf16.gmra.mrb[64].mxu0 %v8001_v29  ;;  %v2927_v29 = vsub.s32 3, %v12968_v20 }
 0x5ac   : > { %2884 = vmatprep.mubr.bf16.mxu0 %v2709_v19 }
 0x5b3   : > { %2885 = vmatmul.mubr.bf16.gmra.mrb[68].mxu0 %v8029_v61 }
 0x5b4   : > { %2892 = vmatprep.mubr.bf16.mxu0 %v2710_v27 }
 0x5bb   : > { %2893 = vmatmul.mubr.bf16.gmra.mrb[72].mxu0 %v8054_v62 }
 0x5bc   : > { %2900 = vmatprep.mubr.bf16.mxu0 %v2711_v1 }
 0x5c3   : > { %2901 = vmatmul.mubr.bf16.gmra.mrb[76].mxu0 %v8078_v45  ;;  %v8296_v45 = vrot.slane %v6741_v32, %v2927_v29 }
 0x65e   : > { %v6044_v39 = vpop.f32.mrb[48].mxu0 }
 0x65f   : > { %v6045_v19 = vpop.f32.mrb[49].mxu0 }
 0x660   : > { %v6046_v13 = vadd.f32 %v6045_v19, %v6044_v39  ;;  %v6047_v61 = vpop.f32.mrb[50].mxu0 }
 0x661   : > { %v6048_v7 = vpop.f32.mrb[51].mxu0 }
 0x662   : > { %v8294_v62 = vadd.f32 %v6046_v13, %v8290_v44  ;;  %v6049_v14 = vadd.f32 %v6048_v7, %v6047_v61 }
 0x664   : > { %v12300_v42 = vmax.f32 %v8294_v62, 0.0  ;;  %v8300_v31 = vadd.f32 %v6049_v14, %v8290_v44 }
 0x666   : > { %v12299_v22 = vmax.f32 %v8300_v31, 0.0  ;;  %v6050_v63 = vpop.f32.mrb[52].mxu0  ;;  %v2929_v36 = vmul.f32 %v8296_v45, %v12300_v42 }
 0x667   : > { %v6051_v11 = vpop.f32.mrb[53].mxu0 }
 0x668   : > { %v6052_v41 = vadd.f32 %v6051_v11, %v6050_v63  ;;  %v6053_v18 = vpop.f32.mrb[54].mxu0  ;;  %2945 = vadd.xlane.f32.xlu0 %v2929_v36  ;;  %v2930_v47 = vmul.f32 %v8296_v45, %v12299_v22 }
 0x669   : > { %v6054_v1 = vpop.f32.mrb[55].mxu0 }
 0x66a   : > { %v8307_v33 = vadd.f32 %v6052_v41, %v8290_v44  ;;  %v6055_v27 = vadd.f32 %v6054_v1, %v6053_v18 }
 0x66c   : > { %12969 = vst [vmem:[#allocation94_spill] sm:$0xff] %v8307_v33  ;;  %v12296_v39 = vmax.f32 %v8307_v33, 0.0  ;;  %v8314_v32 = vadd.f32 %v6055_v27, %v8290_v44  ;;  %2947 = vadd.xlane.f32.xlu0 %v2930_v47 }
 0x66e   : > { %12970 = vst [vmem:[#allocation95_spill] sm:$0xff] %v8314_v32  ;;  %v12295_v29 = vmax.f32 %v8314_v32, 0.0  ;;  %v6056_v19 = vpop.f32.mrb[56].mxu0  ;;  %v2931_v13 = vmul.f32 %v8296_v45, %v12296_v39 }
 0x66f   : > { %v6057_v61 = vpop.f32.mrb[57].mxu0 }
 0x670   : > { %v6058_v7 = vadd.f32 %v6057_v61, %v6056_v19  ;;  %2949 = vadd.xlane.f32.xlu0 %v2931_v13  ;;  %v6059_v14 = vpop.f32.mrb[58].mxu0  ;;  %v2932_v41 = vmul.f32 %v8296_v45, %v12295_v29 }
 0x671   : > { %v6060_v63 = vpop.f32.mrb[59].mxu0 }
 0x672   : > { %v8321_v36 = vadd.f32 %v6058_v7, %v8290_v44  ;;  %v6061_v11 = vadd.f32 %v6060_v63, %v6059_v14 }
 0x674   : > { %12971 = vst [vmem:[#allocation96_spill] sm:$0xff] %v8321_v36  ;;  %v12297_v18 = vmax.f32 %v8321_v36, 0.0  ;;  %v8328_v1 = vadd.f32 %v6061_v11, %v8290_v44  ;;  %2951 = vadd.xlane.f32.xlu0 %v2932_v41 }
 0x676   : > { %12972 = vst [vmem:[#allocation97_spill] sm:$0xff] %v8328_v1  ;;  %v12298_v27 = vmax.f32 %v8328_v1, 0.0  ;;  %v6062_v47 = vpop.f32.mrb[60].mxu0  ;;  %v2933_v19 = vmul.f32 %v8296_v45, %v12297_v18 }
 0x677   : > { %v6063_v13 = vpop.f32.mrb[61].mxu0 }
 0x678   : > { %v6064_v61 = vadd.f32 %v6063_v13, %v6062_v47  ;;  %v6065_v7 = vpop.f32.mrb[62].mxu0  ;;  %2953 = vadd.xlane.f32.xlu0 %v2933_v19  ;;  %v2934_v11 = vmul.f32 %v8296_v45, %v12298_v27 }
 0x679   : > { %v6066_v14 = vpop.f32.mrb[63].mxu0 }
 0x67a   : > { %v8335_v63 = vadd.f32 %v6064_v61, %v8290_v44  ;;  %v6067_v29 = vadd.f32 %v6066_v14, %v6065_v7 }
 0x67c   : > { %12973 = vst [vmem:[#allocation98_spill] sm:$0xff] %v8335_v63  ;;  %v12301_v41 = vmax.f32 %v8335_v63, 0.0  ;;  %v8342_v39 = vadd.f32 %v6067_v29, %v8290_v44  ;;  %2955 = vadd.xlane.f32.xlu0 %v2934_v11 }
 0x67e   : > { %12974 = vst [vmem:[#allocation99_spill] sm:$0xff] %v8342_v39  ;;  %v12302_v18 = vmax.f32 %v8342_v39, 0.0  ;;  %v6068_v47 = vpop.f32.mrb[64].mxu0  ;;  %v2935_v19 = vmul.f32 %v8296_v45, %v12301_v41 }
 0x67f   : > { %v6069_v13 = vpop.f32.mrb[65].mxu0 }
 0x680   : > { %v6070_v61 = vadd.f32 %v6069_v13, %v6068_v47  ;;  %2957 = vadd.xlane.f32.xlu0 %v2935_v19  ;;  %v6071_v7 = vpop.f32.mrb[66].mxu0  ;;  %v2936_v29 = vmul.f32 %v8296_v45, %v12302_v18 }
 0x681   : > { %v6072_v14 = vpop.f32.mrb[67].mxu0 }
 0x682   : > { %v8349_v27 = vadd.f32 %v6070_v61, %v8290_v44  ;;  %v6073_v22 = vadd.f32 %v6072_v14, %v6071_v7 }
 0x684   : > { %12975 = vst [vmem:[#allocation100_spill] sm:$0xff] %v8349_v27  ;;  %v12305_v11 = vmax.f32 %v8349_v27, 0.0  ;;  %v8356_v42 = vadd.f32 %v6073_v22, %v8290_v44  ;;  %2959 = vadd.xlane.f32.xlu0 %v2936_v29 }
 0x686   : > { %12976 = vst [vmem:[#allocation101_spill] sm:$0xff] %v8356_v42  ;;  %v12306_v41 = vmax.f32 %v8356_v42, 0.0  ;;  %v6074_v47 = vpop.f32.mrb[68].mxu0  ;;  %v2937_v19 = vmul.f32 %v8296_v45, %v12305_v11 }
 0x687   : > { %v6075_v13 = vpop.f32.mrb[69].mxu0 }
 0x688   : > { %v6076_v61 = vadd.f32 %v6075_v13, %v6074_v47  ;;  %v6077_v7 = vpop.f32.mrb[70].mxu0  ;;  %2961 = vadd.xlane.f32.xlu0 %v2937_v19  ;;  %v2938_v22 = vmul.f32 %v8296_v45, %v12306_v41 }
 0x689   : > { %v6078_v14 = vpop.f32.mrb[71].mxu0 }
 0x68a   : > { %v8363_v18 = vadd.f32 %v6076_v61, %v8290_v44  ;;  %v6079_v20 = vadd.f32 %v6078_v14, %v6077_v7 }
 0x68c   : > { %12977 = vst [vmem:[#allocation102_spill] sm:$0xff] %v8363_v18  ;;  %v12309_v29 = vmax.f32 %v8363_v18, 0.0  ;;  %v8370_v39 = vadd.f32 %v6079_v20, %v8290_v44  ;;  %2963 = vadd.xlane.f32.xlu0 %v2938_v22 }
 0x68e   : > { %12978 = vst [vmem:[#allocation103_spill] sm:$0xff] %v8370_v39  ;;  %v12310_v11 = vmax.f32 %v8370_v39, 0.0  ;;  %v6080_v47 = vpop.f32.mrb[72].mxu0  ;;  %v2939_v19 = vmul.f32 %v8296_v45, %v12309_v29 }
 0x68f   : > { %v6081_v13 = vpop.f32.mrb[73].mxu0 }
 0x690   : > { %v6082_v61 = vadd.f32 %v6081_v13, %v6080_v47  ;;  %2965 = vadd.xlane.f32.xlu0 %v2939_v19  ;;  %v6083_v7 = vpop.f32.mrb[74].mxu0  ;;  %v2940_v20 = vmul.f32 %v8296_v45, %v12310_v11 }
 0x691   : > { %v6084_v14 = vpop.f32.mrb[75].mxu0 }
 0x692   : > { %v8377_v41 = vadd.f32 %v6082_v61, %v8290_v44  ;;  %v6085_v42 = vadd.f32 %v6084_v14, %v6083_v7 }
 0x694   : > { %12979 = vst [vmem:[#allocation104_spill] sm:$0xff] %v8377_v41  ;;  %v12313_v22 = vmax.f32 %v8377_v41, 0.0  ;;  %v8384_v27 = vadd.f32 %v6085_v42, %v8290_v44  ;;  %2967 = vadd.xlane.f32.xlu0 %v2940_v20 }
 0x696   : > { %12980 = vst [vmem:[#allocation105_spill] sm:$0xff] %v8384_v27  ;;  %v12316_v29 = vmax.f32 %v8384_v27, 0.0  ;;  %v6086_v47 = vpop.f32.mrb[76].mxu0  ;;  %v2941_v19 = vmul.f32 %v8296_v45, %v12313_v22 }
 0x697   : > { %v6087_v13 = vpop.f32.mrb[77].mxu0 }
 0x698   : > { %v6088_v61 = vadd.f32 %v6087_v13, %v6086_v47  ;;  %v6089_v7 = vpop.f32.mrb[78].mxu0  ;;  %2969 = vadd.xlane.f32.xlu0 %v2941_v19  ;;  %v2942_v42 = vmul.f32 %v8296_v45, %v12316_v29 }
 0x699   : > { %v6090_v14 = vpop.f32.mrb[79].mxu0 }
 0x69a   : > { %v8391_v11 = vadd.f32 %v6088_v61, %v8290_v44  ;;  %v6091_v39 = vadd.f32 %v6090_v14, %v6089_v7 }
 0x69c   : > { %12981 = vst [vmem:[#allocation106_spill] sm:$0xff] %v8391_v11  ;;  %v12315_v20 = vmax.f32 %v8391_v11, 0.0  ;;  %v8398_v18 = vadd.f32 %v6091_v39, %v8290_v44  ;;  %2971 = vadd.xlane.f32.xlu0 %v2942_v42 }
 0x69e   : > { %12982 = vst [vmem:[#allocation107_spill] sm:$0xff] %v8398_v18  ;;  %v12314_v22 = vmax.f32 %v8398_v18, 0.0  ;;  %v2943_v47 = vmul.f32 %v8296_v45, %v12315_v20 }
 0x6a0   : > { %2973 = vadd.xlane.f32.xlu0 %v2943_v47  ;;  %v2944_v19 = vmul.f32 %v8296_v45, %v12314_v22 }
 0x6a4   : > { %2975 = vadd.xlane.f32.xlu0 %v2944_v19 }
 0x6f5   : > { %v8407_v13 = vpop.xlane.xlu0 %2945 }
 0x6f6   : > { %v8413_v44 = vsel %vm1595_vm8, %v8407_v13, -1e+30  ;;  %6651 = vtanh.f32 %v8407_v13 }
 0x6f7   : > { %2993 = vxpose.xlu0.b32.start [1/16] (narrow) %v8413_v44, 8 }
 0x6f9   : > { %v8416_v39 = vpop.xlane.xlu0 %2947 }
 0x6fa   : > { %v8422_v45 = vsel %vm1596_vm9, %v8416_v39, -1e+30  ;;  %6653 = vtanh.f32 %v8416_v39 }
 0x6fb   : > { %2994 = vxpose.xlu0.b32.cont [2/16] (narrow) %v8422_v45, 8 }
 0x6fd   : > { %v8425_v61 = vpop.xlane.xlu0 %2949 }
 0x6fe   : > { %v8431_v7 = vsel %vm1597_vm10, %v8425_v61, -1e+30  ;;  %6655 = vtanh.f32 %v8425_v61 }
 0x6ff   : > { %2995 = vxpose.xlu0.b32.cont [3/16] (narrow) %v8431_v7, 8 }
 0x701   : > { %v8434_v14 = vpop.xlane.xlu0 %2951 }
 0x702   : > { %v8440_v42 = vsel %vm1598_vm11, %v8434_v14, -1e+30  ;;  %6657 = vtanh.f32 %v8434_v14 }
 0x703   : > { %2996 = vxpose.xlu0.b32.cont [4/16] (narrow) %v8440_v42, 8 }
 0x705   : > { %v8443_v47 = vpop.xlane.xlu0 %2953 }
 0x706   : > { %v8449_v19 = vsel %vm1599_vm12, %v8443_v47, -1e+30  ;;  %6659 = vtanh.f32 %v8443_v47  ;;  %v8808_v47 = vsel %vm1595_vm8, %v7882_v55, -1e+30  ;;  %v8828_v55 = vsel %vm1598_vm11, %v7911_v9, -1e+30 }
 0x707   : > { %2997 = vxpose.xlu0.b32.cont [5/16] (narrow) %v8449_v19, 8  ;;  %13024 = vst [vmem:[#allocation132_spill] sm:$0xff] %v8808_v47  ;;  %13028 = vst [vmem:[#allocation136_spill] sm:$0xff] %v8828_v55 }
 0x709   : > { %v8452_v22 = vpop.xlane.xlu0 %2955 }
 0x70a   : > { %v8458_v20 = vsel %vm1600_vm13, %v8452_v22, -1e+30  ;;  %6661 = vtanh.f32 %v8452_v22  ;;  %v8814_v22 = vsel %vm1596_vm9, %v7885_v8, -1e+30 }
 0x70b   : > { %2998 = vxpose.xlu0.b32.cont [6/16] (narrow) %v8458_v20, 8  ;;  %13025 = vst [vmem:[#allocation133_spill] sm:$0xff] %v8814_v22 }
 0x70d   : > { %v8461_v29 = vpop.xlane.xlu0 %2957 }
 0x70e   : > { %v8467_v18 = vsel %vm1601_vm14, %v8461_v29, -1e+30  ;;  %6663 = vtanh.f32 %v8461_v29 }
 0x70f   : > { %2999 = vxpose.xlu0.b32.cont [7/16] (narrow) %v8467_v18, 8 }
 0x711   : > { %v8470_v11 = vpop.xlane.xlu0 %2959 }
 0x712   : > { %v8476_v27 = vsel %vm1602_vm15, %v8470_v11, -1e+30  ;;  %6665 = vtanh.f32 %v8470_v11 }
 0x713   : > { %3000 = vxpose.xlu0.b32.cont [8/16] (narrow) %v8476_v27, 8 }
 0x715   : > { %v8479_v41 = vpop.xlane.xlu0 %2961 }
 0x716   : > { %12983 = vst [vmem:[#allocation108_spill] sm:$0xff] %v8479_v41  ;;  %v8485_v63 = vsel %vm12362_vm1, %v8479_v41, -1e+30 }
 0x717   : > { %3001 = vxpose.xlu0.b32.cont [9/16] (narrow) %v8485_v63, 8 }
 0x719   : > { %v8488_v1 = vpop.xlane.xlu0 %2963 }
 0x71a   : > { %12984 = vst [vmem:[#allocation109_spill] sm:$0xff] %v8488_v1  ;;  %v8494_v36 = vsel %vm1604_vm2, %v8488_v1, -1e+30 }
 0x71b   : > { %3002 = vxpose.xlu0.b32.cont [10/16] (narrow) %v8494_v36, 8 }
 0x71d   : > { %v8497_v32 = vpop.xlane.xlu0 %2965 }
 0x71e   : > { %12985 = vst [vmem:[#allocation110_spill] sm:$0xff] %v8497_v32  ;;  %v8503_v30 = vsel %vm12340_vm3, %v8497_v32, -1e+30  ;;  %vm12363_vm3 = vcmp.gt.f32.partialorder %v8067_v15, 0.0  ;;  %v12991_v15 = vld [vmem:[#allocation53_spill] sm:$0xff] }
 0x71f   : > { %3003 = vxpose.xlu0.b32.cont [11/16] (narrow) %v8503_v30, 8 }
 0x721   : > { %v8506_v41 = vpop.xlane.xlu0 %2967 }
 0x722   : > { %12986 = vst [vmem:[#allocation111_spill] sm:$0xff] %v8506_v41  ;;  %v8512_v1 = vsel %vm12358_vm4, %v8506_v41, -1e+30 }
 0x723   : > { %3004 = vxpose.xlu0.b32.cont [12/16] (narrow) %v8512_v1, 8 }
 0x725   : > { %v8515_v33 = vpop.xlane.xlu0 %2969 }
 0x726   : > { %12987 = vst [vmem:[#allocation112_spill] sm:$0xff] %v8515_v33  ;;  %v8521_v60 = vsel %vm12364_vm6, %v8515_v33, -1e+30 }
 0x727   : > { %3005 = vxpose.xlu0.b32.cont [13/16] (narrow) %v8521_v60, 8 }
 0x729   : > { %v8524_v32 = vpop.xlane.xlu0 %2971 }
 0x72a   : > { %12988 = vst [vmem:[#allocation113_spill] sm:$0xff] %v8524_v32  ;;  %v8530_v51 = vsel %vm12348_vm7, %v8524_v32, -1e+30  ;;  %v12352_v32 = vmov 0  }
 0x72b   : > { %3006 = vxpose.xlu0.b32.cont [14/16] (narrow) %v8530_v51, 8 }
 0x72d   : > { %v8533_v41 = vpop.xlane.xlu0 %2973 }
 0x72e   : > { %12989 = vst [vmem:[#allocation114_spill] sm:$0xff] %v8533_v41  ;;  %v2991_v33 = vsel %vm12347_vm0, %v8533_v41, -1e+30 }
 0x72f   : > { %3007 = vxpose.xlu0.b32.cont [15/16] (narrow) %v2991_v33, 8 }
 0x731   : > { %v8539_v25 = vpop.xlane.xlu0 %2975 }
 0x732   : > { %12990 = vst [vmem:[#allocation115_spill] sm:$0xff] %v8539_v25  ;;  %v2992_v48 = vsel %vm12363_vm3, %v8539_v25, -1e+30 }
 0x733   : > { %3008 = vxpose.xlu0.b32.end [16/16] (narrow) %v2992_v48, 8 }
 0x75c   : > { %6517 = vset.pattern.permute.xlu0 %v12352_v32 }
 0x760   : > { %3235 = vadd.xlane.f32.xlu0 %v8174_v10 }
 0x764   : > { %3247 = vadd.xlane.f32.xlu0 %v8178_v50 }
 0x768   : > { %3249 = vadd.xlane.f32.xlu0 %v8182_v0 }
 0x76c   : > { %3251 = vadd.xlane.f32.xlu0 %v8187_v37 }
 0x777   : > { %v3009_v5 = vpop.trf.xlu0 }
 0x778   : > { %v8551_v41 = vrot.slane %v3009_v5, %v12941_v28 }
 0x77a   : > { %vm3092_vm0 = vcmp.eq.f32.partialorder %v8551_v41, %v2992_v48  ;;  %vm3044_vm7 = vcmp.gt.f32.partialorder %v8551_v41, %v2992_v48  ;;  %vm3077_vm5 = vcmp.eq.f32.partialorder %v8551_v41, %v8413_v44  ;;  %vm3078_vm4 = vcmp.eq.f32.partialorder %v8551_v41, %v8422_v45  ;;  %v12992_v48 = vld [vmem:[#allocation38_spill] sm:$0xff] }
 0x77b   : > { %v5801_v25 = vsel %vm3092_vm0, 1.0, %v12899_v43  ;;  %v5785_v49 = vsel %vm3044_vm7, 1.0, %v12899_v43  ;;  %v5786_v28 = vsel %vm3077_vm5, 1.0, %v12899_v43  ;;  %vm3029_vm1 = vcmp.gt.f32.partialorder %v8551_v41, %v8413_v44  ;;  %v12993_v44 = vld [vmem:[#allocation39_spill] sm:$0xff] }
 0x77c   : > { %v3140_v32 = vmul.f32 %v5801_v25, %v12991_v15  ;;  %vm3079_vm0 = vcmp.eq.f32.partialorder %v8551_v41, %v8431_v7  ;;  %vm3091_vm3 = vcmp.eq.f32.partialorder %v8551_v41, %v2991_v33  ;;  %v5787_v25 = vsel %vm3078_vm4, 1.0, %v12899_v43 }
 0x77d   : > { %vm3030_vm7 = vcmp.gt.f32.partialorder %v8551_v41, %v8422_v45  ;;  %v3126_v15 = vmul.f32 %v5787_v25, %v12993_v44  ;;  %vm3043_vm5 = vcmp.gt.f32.partialorder %v8551_v41, %v2991_v33  ;;  %vm3080_vm6 = vcmp.eq.f32.partialorder %v8551_v41, %v8440_v42  ;;  %v13047_v44 = vld [vmem:[#allocation62_spill] sm:$0xff] }
 0x77e   : > { %v3172_v21 = vadd.f32 %v5785_v49, %v3140_v32  ;;  %v3125_v49 = vmul.f32 %v5786_v28, %v12992_v48  ;;  %v5800_v32 = vsel %vm3091_vm3, 1.0, %v12899_v43  ;;  %vm3031_vm4 = vcmp.gt.f32.partialorder %v8551_v41, %v8431_v7 }
 0x77f   : > { %v5771_v45 = vsel %vm3030_vm7, 1.0, %v12899_v43  ;;  %v3139_v2 = vmul.f32 %v5800_v32, %v12995_v16  ;;  %v5784_v17 = vsel %vm3043_vm5, 1.0, %v12899_v43  ;;  %v5789_v25 = vsel %vm3080_vm6, 1.0, %v12899_v43 }
 0x780   : > { %v3188_v5 = vmul.f32 %v3172_v21, %v8187_v37  ;;  %v5770_v21 = vsel %vm3029_vm1, 1.0, %v12899_v43  ;;  %v5788_v37 = vsel %vm3079_vm0, 1.0, %v12899_v43  ;;  %v3158_v33 = vadd.f32 %v5771_v45, %v3126_v15 }
 0x781   : > { %v3157_v12 = vadd.f32 %v5770_v21, %v3125_v49  ;;  %vm3081_vm1 = vcmp.eq.f32.partialorder %v8551_v41, %v8449_v19  ;;  %v3171_v49 = vadd.f32 %v5784_v17, %v3139_v2  ;;  %vm3032_vm3 = vcmp.gt.f32.partialorder %v8551_v41, %v8440_v42  ;;  %v12997_v2 = vld [vmem:[#allocation42_spill] sm:$0xff] }
 0x782   : > { %3219 = vadd.xlane.f32.xlu0 %v3188_v5  ;;  %v12994_v5 = vld [vmem:[#allocation40_spill] sm:$0xff]  ;;  %v5772_v7 = vsel %vm3031_vm4, 1.0, %v12899_v43  ;;  %v3174_v21 = vmul.f32 %v3158_v33, %v8143_v56  ;;  %v5790_v15 = vsel %vm3081_vm1, 1.0, %v12899_v43  ;;  %vm3082_vm6 = vcmp.eq.f32.partialorder %v8551_v41, %v8458_v20 }
 0x783   : > { %v3173_v28 = vmul.f32 %v3157_v12, %v8116_v58  ;;  %v3127_v48 = vmul.f32 %v5788_v37, %v12994_v5  ;;  %v12996_v12 = vld [vmem:[#allocation41_spill] sm:$0xff]  ;;  %v8596_v32 = vmul.f32 %v3171_v49, %v8182_v0  ;;  %v5773_v17 = vsel %vm3032_vm3, 1.0, %v12899_v43 }
 0x784   : > { %v3128_v58 = vmul.f32 %v5789_v25, %v12996_v12  ;;  %vm3033_vm0 = vcmp.gt.f32.partialorder %v8551_v41, %v8449_v19  ;;  %v3129_v42 = vmul.f32 %v5790_v15, %v12997_v2  ;;  %v5791_v0 = vsel %vm3082_vm6, 1.0, %v12899_v43  ;;  %v12998_v19 = vld [vmem:[#allocation43_spill] sm:$0xff] }
 0x785   : > { %3189 = vadd.xlane.f32.xlu1 %v3173_v28  ;;  %v3159_v37 = vadd.f32 %v5772_v7, %v3127_v48  ;;  %vm3083_vm7 = vcmp.eq.f32.partialorder %v8551_v41, %v8467_v18  ;;  %v6742_v48 = vld [vmem:[%s7321_s25] sm:$0xff]  ;;  %v5774_v28 = vsel %vm3033_vm0, 1.0, %v12899_v43  ;;  %vm3034_vm4 = vcmp.gt.f32.partialorder %v8551_v41, %v8458_v20 }
 0x786   : > { %v3160_v56 = vadd.f32 %v5773_v17, %v3128_v58  ;;  %vm1659_vm5 = vcmp.gt.f32.partialorder %v6742_v48, 0.0  ;;  %v3130_v25 = vmul.f32 %v5791_v0, %v12998_v19  ;;  %v5792_v49 = vsel %vm3083_vm7, 1.0, %v12899_v43  ;;  %v13001_v20 = vld [vmem:[#allocation44_spill] sm:$0xff]  ;;  %v6652_v19 = vpop.eup %6651 }
 0x787   : > { %v3175_v45 = vmul.f32 %v3159_v37, %v8164_v24  ;;  %v3161_v24 = vadd.f32 %v5774_v28, %v3129_v42  ;;  %v12999_v7 = vmov 0   ;;  %vm3084_vm1 = vcmp.eq.f32.partialorder %v8551_v41, %v8476_v27  ;;  %v6654_v14 = vpop.eup %6653 }
 0x788   : > { %v3176_v33 = vmul.f32 %v3160_v56, %v8193_v3  ;;  %v8617_v58 = vsel %vm1659_vm5, 1, %v12999_v7  ;;  %v5775_v37 = vsel %vm3034_vm4, 1.0, %v12899_v43  ;;  %vm3035_vm6 = vcmp.gt.f32.partialorder %v8551_v41, %v8467_v18  ;;  %v6744_v56 = vld [vmem:[%s7321_s25 + $0x10] sm:$0xff] }
 0x789   : > { %3191 = vadd.xlane.f32.xlu1 %v3174_v21  ;;  %13000 = vst [vmem:[#allocation116_spill] sm:$0xff] %v8617_v58  ;;  %v6743_v21 = vld [vmem:[%s7321_s25 + $0x8] sm:$0xff]  ;;  %v3131_v3 = vmul.f32 %v5792_v49, %v13001_v20  ;;  %v3177_v15 = vmul.f32 %v3161_v24, %v8214_v59  ;;  %v3162_v17 = vadd.f32 %v5775_v37, %v3130_v25  ;;  %v5793_v42 = vsel %vm3084_vm1, 1.0, %v12899_v43  ;;  %v6745_v24 = vld [vmem:[%s7321_s25 + $0x18] sm:$0xff] }
 0x78a   : > { %vm1660_vm3 = vcmp.gt.f32.partialorder %v6743_v21, 0.0  ;;  %vm3085_vm0 = vcmp.eq.f32.partialorder %v8551_v41, %v8485_v63  ;;  %vm1661_vm7 = vcmp.gt.f32.partialorder %v6744_v56, 0.0  ;;  %v5776_v18 = vsel %vm3035_vm6, 1.0, %v12899_v43  ;;  %v13003_v59 = vld [vmem:[#allocation45_spill] sm:$0xff] }
 0x78b   : > { %vm3036_vm5 = vcmp.gt.f32.partialorder %v8551_v41, %v8476_v27  ;;  %v3132_v0 = vmul.f32 %v5793_v42, %v13003_v59  ;;  %v3178_v48 = vmul.f32 %v3162_v17, %v8227_v57  ;;  %v3163_v28 = vadd.f32 %v5776_v18, %v3131_v3  ;;  %v13005_v57 = vld [vmem:[#allocation46_spill] sm:$0xff]  ;;  %v6746_v17 = vld [vmem:[%s7321_s25 + $0x20] sm:$0xff] }
 0x78c   : > { %v5794_v25 = vsel %vm3085_vm0, 1.0, %v12899_v43  ;;  %vm3086_vm4 = vcmp.eq.f32.partialorder %v8551_v41, %v8494_v36  ;;  %vm1662_vm1 = vcmp.gt.f32.partialorder %v6745_v24, 0.0  ;;  %v5777_v27 = vsel %vm3036_vm5, 1.0, %v12899_v43 }
 0x78d   : > { %3193 = vadd.xlane.f32.xlu1 %v3175_v45  ;;  %v8630_v45 = vsel %vm1660_vm3, 1, %v12999_v7  ;;  %vm3037_vm3 = vcmp.gt.f32.partialorder %v8551_v41, %v8485_v63  ;;  %v3133_v49 = vmul.f32 %v5794_v25, %v13005_v57  ;;  %v3164_v21 = vadd.f32 %v5777_v27, %v3132_v0 }
 0x78e   : > { %13002 = vst [vmem:[#allocation117_spill] sm:$0xff] %v8630_v45  ;;  %v3179_v37 = vmul.f32 %v3163_v28, %v8244_v54  ;;  %v5795_v3 = vsel %vm3086_vm4, 1.0, %v12899_v43  ;;  %vm3087_vm6 = vcmp.eq.f32.partialorder %v8551_v41, %v8503_v30  ;;  %vm1663_vm0 = vcmp.gt.f32.partialorder %v6746_v17, 0.0  ;;  %v13007_v54 = vld [vmem:[#allocation47_spill] sm:$0xff]  ;;  %v6747_v28 = vld [vmem:[%s7321_s25 + $0x28] sm:$0xff] }
 0x78f   : > { %v5778_v63 = vsel %vm3037_vm3, 1.0, %v12899_v43  ;;  %v3134_v42 = vmul.f32 %v5795_v3, %v13007_v54  ;;  %v3180_v56 = vmul.f32 %v3164_v21, %v8174_v10  ;;  %v5796_v0 = vsel %vm3087_vm6, 1.0, %v12899_v43  ;;  %v13009_v10 = vld [vmem:[#allocation48_spill] sm:$0xff]  ;;  %v13044_v54 = vld [vmem:[#allocation58_spill] sm:$0xff] }
 0x790   : > { %v3165_v18 = vadd.f32 %v5778_v63, %v3133_v49  ;;  %vm3088_vm5 = vcmp.eq.f32.partialorder %v8551_v41, %v8512_v1  ;;  %vm1664_vm4 = vcmp.gt.f32.partialorder %v6747_v28, 0.0  ;;  %v3135_v25 = vmul.f32 %v5796_v0, %v13009_v10 }
 0x791   : > { %3195 = vadd.xlane.f32.xlu1 %v3176_v33  ;;  %v8643_v33 = vsel %vm1661_vm7, 1, %v12999_v7  ;;  %vm3038_vm7 = vcmp.gt.f32.partialorder %v8551_v41, %v8494_v36  ;;  %v5797_v49 = vsel %vm3088_vm5, 1.0, %v12899_v43  ;;  %v8682_v21 = vsel %vm1664_vm4, 1, %v12999_v7 }
 0x792   : > { %13004 = vst [vmem:[#allocation118_spill] sm:$0xff] %v8643_v33  ;;  %v5779_v36 = vsel %vm3038_vm7, 1.0, %v12899_v43  ;;  %v3181_v24 = vmul.f32 %v3165_v18, %v8251_v4  ;;  %13010 = vst [vmem:[#allocation121_spill] sm:$0xff] %v8682_v21  ;;  %vm3089_vm3 = vcmp.eq.f32.partialorder %v8551_v41, %v8521_v60  ;;  %v13011_v4 = vld [vmem:[#allocation49_spill] sm:$0xff]  ;;  %vm3090_vm7 = vcmp.eq.f32.partialorder %v8551_v41, %v8530_v51  ;;  %v6749_v18 = vld [vmem:[%s7321_s25 + $0x38] sm:$0xff] }
 0x793   : > { %v3166_v27 = vadd.f32 %v5779_v36, %v3134_v42  ;;  %v3136_v3 = vmul.f32 %v5797_v49, %v13011_v4  ;;  %v5798_v42 = vsel %vm3089_vm3, 1.0, %v12899_v43  ;;  %vm1666_vm5 = vcmp.gt.f32.partialorder %v6749_v18, 0.0 }
 0x794   : > { %vm3041_vm4 = vcmp.gt.f32.partialorder %v8551_v41, %v8521_v60  ;;  %vm3042_vm3 = vcmp.gt.f32.partialorder %v8551_v41, %v8530_v51  ;;  %v13015_v60 = vld [vmem:[#allocation51_spill] sm:$0xff]  ;;  %v12376_v2 = vmov 3  }
 0x795   : > { %3197 = vadd.xlane.f32.xlu1 %v3177_v15  ;;  %v8656_v15 = vsel %vm1662_vm1, 1, %v12999_v7  ;;  %vm3039_vm1 = vcmp.gt.f32.partialorder %v8551_v41, %v8503_v30  ;;  %v3182_v17 = vmul.f32 %v3166_v27, %v8258_v40  ;;  %v13013_v40 = vld [vmem:[#allocation50_spill] sm:$0xff]  ;;  %v6750_v27 = vld [vmem:[%s7321_s25 + $0x48] sm:$0xff]  ;;  %v5782_v49 = vsel %vm3041_vm4, 1.0, %v12899_v43 }
 0x796   : > { %13006 = vst [vmem:[#allocation119_spill] sm:$0xff] %v8656_v15  ;;  %v5780_v30 = vsel %vm3039_vm1, 1.0, %v12899_v43  ;;  %v3137_v0 = vmul.f32 %v5798_v42, %v13013_v40  ;;  %vm1668_vm1 = vcmp.gt.f32.partialorder %v6750_v27, 0.0  ;;  %v6754_v27 = vld [vmem:[%s7321_s25 + $0x58] sm:$0xff] }
 0x797   : > { %v3167_v63 = vadd.f32 %v5780_v30, %v3135_v25  ;;  %v5799_v25 = vsel %vm3090_vm7, 1.0, %v12899_v43 }
 0x798   : > { %1692 = vperm.xlu0 %6517, %v8617_v58   ;;  %v3169_v30 = vadd.f32 %v5782_v49, %v3137_v0 }
 0x799   : > { %3199 = vadd.xlane.f32.xlu1 %v3178_v48  ;;  %v8669_v48 = vsel %vm1663_vm0, 1, %v12999_v7  ;;  %vm3040_vm0 = vcmp.gt.f32.partialorder %v8551_v41, %v8512_v1  ;;  %v3183_v28 = vmul.f32 %v3167_v63, %v8263_v52  ;;  %v3138_v52 = vmul.f32 %v5799_v25, %v13015_v60 }
 0x79a   : > { %13008 = vst [vmem:[#allocation120_spill] sm:$0xff] %v8669_v48  ;;  %v5781_v1 = vsel %vm3040_vm0, 1.0, %v12899_v43  ;;  %v5783_v63 = vsel %vm3042_vm3, 1.0, %v12899_v43  ;;  %v3185_v18 = vmul.f32 %v3169_v30, %v8273_v6  ;;  %v12372_v6 = vmov 1  }
 0x79b   : > { %v3168_v36 = vadd.f32 %v5781_v1, %v3136_v3  ;;  %v8718_v3 = vsel %vm1668_vm1, 1, %v12999_v7  ;;  %v3170_v42 = vadd.f32 %v5783_v63, %v3138_v52  ;;  %v6755_v52 = vld [vmem:[%s7321_s25 + $0x68] sm:$0xff]  ;;  %v12374_v63 = vmov 2  }
 0x79c   : > { %1695 = vperm.xlu0 %6517, %v8630_v45   ;;  %13016 = vst [vmem:[#allocation124_spill] sm:$0xff] %v8718_v3  ;;  %vm1672_vm4 = vcmp.gt.f32.partialorder %v6755_v52, 0.0 }
 0x79d   : > { %3201 = vadd.xlane.f32.xlu1 %v3179_v37  ;;  %v6748_v37 = vld [vmem:[%s7321_s25 + $0x30] sm:$0xff]  ;;  %v3186_v41 = vmul.f32 %v3170_v42, %v8178_v50  ;;  %v3222_v50 = vpop.xlane.xlu1 %3221  ;;  %v8760_v30 = vsel %vm1672_vm4, 1, %v12999_v7 }
 0x79e   : > { %vm1665_vm6 = vcmp.gt.f32.partialorder %v6748_v37, 0.0  ;;  %v3184_v37 = vmul.f32 %v3168_v36, %v8268_v34  ;;  %v6752_v34 = vld [vmem:[%s7321_s25 + $0x78] sm:$0xff]  ;;  %13021 = vst [vmem:[#allocation129_spill] sm:$0xff] %v8760_v30  ;;  %v3253_v16 = vmul.f32 0.8, %v3222_v50 }
 0x79f   : > { %vm1674_vm0 = vcmp.gt.f32.partialorder %v6752_v34, 0.0 }
 0x7a0   : > { %1698 = vperm.xlu0 %6517, %v8643_v33   ;;  %v8731_v1 = vsel %vm1674_vm0, 1, %v12999_v7  ;;  %v3269_v57 = vceil.f32 %v3253_v16 }
 0x7a1   : > { %3203 = vadd.xlane.f32.xlu1 %v3180_v56  ;;  %v8695_v56 = vsel %vm1665_vm6, 1, %v12999_v7  ;;  %13018 = vst [vmem:[#allocation126_spill] sm:$0xff] %v8731_v1  ;;  %v3224_v0 = vpop.xlane.xlu1 %3223 }
 0x7a2   : > { %13012 = vst [vmem:[#allocation122_spill] sm:$0xff] %v8695_v56  ;;  %v3254_v59 = vmul.f32 0.8, %v3224_v0 }
 0x7a4   : > { %1701 = vperm.xlu0 %6517, %v8656_v15   ;;  %v3270_v16 = vceil.f32 %v3254_v59 }
 0x7a5   : > { %3205 = vadd.xlane.f32.xlu1 %v3181_v24  ;;  %v8708_v24 = vsel %vm1666_vm5, 1, %v12999_v7  ;;  %vm1670_vm5 = vcmp.gt.f32.partialorder %v6754_v27, 0.0 }
 0x7a6   : > { %13014 = vst [vmem:[#allocation123_spill] sm:$0xff] %v8708_v24  ;;  %v8753_v49 = vsel %vm1670_vm5, 1, %v12999_v7 }
 0x7a7   : > { %13020 = vst [vmem:[#allocation128_spill] sm:$0xff] %v8753_v49 }
 0x7a8   : > { %1704 = vperm.xlu0 %6517, %v8669_v48  }
 0x7a9   : > { %3207 = vadd.xlane.f32.xlu1 %v3182_v17  ;;  %v6751_v17 = vld [vmem:[%s7321_s25 + $0x60] sm:$0xff] }
 0x7aa   : > { %vm1671_vm6 = vcmp.gt.f32.partialorder %v6751_v17, 0.0 }
 0x7ab   : > { %v8725_v51 = vsel %vm1671_vm6, 1, %v12999_v7 }
 0x7ac   : > { %1707 = vperm.xlu0 %6517, %v8682_v21   ;;  %13017 = vst [vmem:[#allocation125_spill] sm:$0xff] %v8725_v51 }
 0x7ad   : > { %3209 = vadd.xlane.f32.xlu1 %v3183_v28  ;;  %v6753_v28 = vld [vmem:[%s7321_s25 + $0x40] sm:$0xff] }
 0x7ae   : > { %vm1667_vm7 = vcmp.gt.f32.partialorder %v6753_v28, 0.0 }
 0x7af   : > { %v8746_v36 = vsel %vm1667_vm7, 1, %v12999_v7 }
 0x7b0   : > { %1710 = vperm.xlu0 %6517, %v8695_v56   ;;  %13019 = vst [vmem:[#allocation127_spill] sm:$0xff] %v8746_v36 }
 0x7b1   : > { %3211 = vadd.xlane.f32.xlu1 %v3184_v37 }
 0x7b4   : > { %1713 = vperm.xlu0 %6517, %v8708_v24  }
 0x7b5   : > { %3213 = vadd.xlane.f32.xlu1 %v3185_v18 }
 0x7b8   : > { %1719 = vperm.xlu0 %6517, %v8718_v3  }
 0x7b9   : > { %3215 = vadd.xlane.f32.xlu1 %v3186_v41 }
 0x7bc   : > { %1728 = vperm.xlu0 %6517, %v8725_v51  }
 0x7bd   : > { %3217 = vadd.xlane.f32.xlu1 %v8596_v32  ;;  %v3226_v32 = vpop.xlane.xlu1 %3225 }
 0x7be   : > { %v3255_v39 = vmul.f32 0.8, %v3226_v32 }
 0x7c0   : > { %1737 = vperm.xlu0 %6517, %v8731_v1   ;;  %v3271_v59 = vceil.f32 %v3255_v39  ;;  %v13031_v39 = vmax.f32 %v8300_v31, 0.0 }
 0x7c1   : > { %v8748_v25 = vpop.xlane.xlu1 %3227 }
 0x7c2   : > { %v3256_v11 = vmul.f32 0.8, %v8748_v25  ;;  %v6656_v25 = vpop.eup %6655 }
 0x7c4   : > { %6525 = vset.pattern.permute.xlu0 %v12372_v6 }
 0x7c5   : > { %1793 = vperm.xlu0 %6525, %v8617_v58   ;;  %v8756_v37 = vpop.xlane.xlu1 %3229 }
 0x7c9   : > { %1796 = vperm.xlu0 %6525, %v8630_v45   ;;  %v3232_v17 = vpop.xlane.xlu1 %3231 }
 0x7cd   : > { %1799 = vperm.xlu0 %6525, %v8643_v33   ;;  %v3234_v42 = vpop.xlane.xlu1 %3233 }
 0x7d1   : > { %1802 = vperm.xlu0 %6525, %v8656_v15   ;;  %v3238_v18 = vpop.xlane.xlu1 %3237 }
 0x7d2   : > { %v8845_v60 = vmul.f32 0.8, %v3238_v18 }
 0x7d5   : > { %1805 = vperm.xlu0 %6525, %v8669_v48   ;;  %v8770_v41 = vpop.xlane.xlu1 %3239 }
 0x7d9   : > { %1808 = vperm.xlu0 %6525, %v8682_v21   ;;  %v8775_v27 = vpop.xlane.xlu1 %3241 }
 0x7dd   : > { %1811 = vperm.xlu0 %6525, %v8695_v56   ;;  %v8781_v6 = vpop.xlane.xlu1 %3243 }
 0x7e1   : > { %1814 = vperm.xlu0 %6525, %v8708_v24   ;;  %v8788_v40 = vpop.xlane.xlu1 %3245 }
 0x7e5   : > { %1817 = vperm.xlu0 %6525, %v8746_v36  }
 0x7e9   : > { %1826 = vperm.xlu0 %6525, %v8753_v49  }
 0x7ed   : > { %1832 = vperm.xlu0 %6525, %v8760_v30   ;;  %v8767_v34 = vpop.xlane.xlu0 %3235 }
 0x7f1   : > { %6527 = vset.pattern.permute.xlu0 %v12374_v63  ;;  %v8773_v28 = vpop.xlane.xlu0 %3247 }
 0x7f2   : > { %1894 = vperm.xlu0 %6527, %v8617_v58   ;;  %v13057_v58 = vld [vmem:[#allocation108_spill] sm:$0xff] }
 0x7f3   : > { %6667 = vtanh.f32 %v13057_v58 }
 0x7f5   : > { %v8778_v52 = vpop.xlane.xlu0 %3249 }
 0x7f6   : > { %1900 = vperm.xlu0 %6527, %v8643_v33  }
 0x7f9   : > { %v8785_v63 = vpop.xlane.xlu0 %3251 }
 0x7fa   : > { %1903 = vperm.xlu0 %6527, %v8656_v15  }
 0x7fe   : > { %1906 = vperm.xlu0 %6527, %v8669_v48  }
 0x802   : > { %1909 = vperm.xlu0 %6527, %v8682_v21  }
 0x806   : > { %1912 = vperm.xlu0 %6527, %v8695_v56  }
 0x80a   : > { %1915 = vperm.xlu0 %6527, %v8708_v24   ;;  %v13053_v24 = vld [vmem:[#allocation95_spill] sm:$0xff] }
 0x80e   : > { %1918 = vperm.xlu0 %6527, %v8746_v36  }
 0x80f   : > { %v8791_v10 = vpop.xlane.xlu0 %3219 }
 0x812   : > { %1927 = vperm.xlu0 %6527, %v8753_v49   ;;  %v3190_v20 = vpop.xlane.xlu1 %3189  ;;  %v13060_v49 = vld [vmem:[#allocation98_spill] sm:$0xff] }
 0x813   : > { %vm3285_vm1 = vcmp.lt.f32.partialorder %v3190_v20, %v3269_v57  ;;  %v13029_v57 = vmax.f32 %v8294_v62, 0.0  ;;  %v13061_v7 = vmax.f32 %v13060_v49, 0.0 }
 0x814   : > { %v5802_v50 = vsel %vm3285_vm1, 1.0, %v12899_v43 }
 0x815   : > { %v8803_v61 = vmul.f32 %v5802_v50, %v7870_v38  ;;  %v8823_v38 = vsel %vm1597_vm10, %v7908_v26, -1e+30  ;;  %v3397_v0 = vmul.f32 %v6652_v19, %v13029_v57  ;;  %v3398_v50 = vmul.f32 %v6654_v14, %v13031_v39  ;;  %v6658_v19 = vpop.eup %6657  ;;  %v13036_v57 = vld [vmem:[#allocation55_spill] sm:$0xff] }
 0x816   : > { %1930 = vperm.xlu0 %6527, %v8725_v51   ;;  %v3192_v20 = vpop.xlane.xlu1 %3191  ;;  %13027 = vst [vmem:[#allocation135_spill] sm:$0xff] %v8823_v38  ;;  %v3257_v26 = vmul.f32 0.8, %v8756_v37  ;;  %v8858_v37 = vmul.f32 0.8, %v8770_v41  ;;  %v6660_v14 = vpop.eup %6659 }
 0x817   : > { %v8797_v13 = vpop.permute.xlu0 %1692  ;;  %13023 = vst [vmem:[#allocation131_spill] sm:$0xff] %v8803_v61  ;;  %vm3286_vm3 = vcmp.lt.f32.partialorder %v3192_v20, %v3270_v16  ;;  %3349 = vxpose.xlu1.b32.start [1/16] (narrow) %v8803_v61, 8  ;;  %v8840_v16 = vmul.f32 0.8, %v3232_v17  ;;  %v8842_v20 = vmul.f32 0.8, %v3234_v42  ;;  %v8848_v62 = vmul.f32 %v3397_v0, %v8803_v61 }
 0x818   : > { %13022 = vst [vmem:[#allocation130_spill] sm:$0xff] %v8797_v13  ;;  %v5803_v8 = vsel %vm3286_vm3, 1.0, %v12899_v43  ;;  %v13033_v17 = vld [vmem:[#allocation54_spill] sm:$0xff]  ;;  %v8863_v42 = vsel %vm1599_vm12, %v7936_v35, -1e+30  ;;  %v13040_v35 = vld [vmem:[#allocation59_spill] sm:$0xff] }
 0x819   : > { %v8835_v32 = vmul.f32 %v5803_v8, %v7879_v46  ;;  %13034 = vst [vmem:[#allocation54_spill] sm:$0xff] %v8863_v42  ;;  %v13035_v8 = vld [vmem:[#allocation56_spill] sm:$0xff]  ;;  %v8881_v4 = vsel %vm1601_vm14, %v13040_v35, -1e+30  ;;  %vm12461_vm10 = vcmp.eq.s32.totalorder %v8797_v13, 1 }
 0x81a   : > { %1939 = vperm.xlu0 %6527, %v8731_v1   ;;  %v3194_v9 = vpop.xlane.xlu1 %3193  ;;  %v8869_v0 = vsel %vm1600_vm13, %v13035_v8, -1e+30  ;;  %13042 = vst [vmem:[#allocation59_spill] sm:$0xff] %v8881_v4  ;;  %v13046_v8 = vld [vmem:[#allocation64_spill] sm:$0xff]  ;;  %v3274_v1 = vceil.f32 %v8840_v16  ;;  %v13050_v16 = vld [vmem:[#allocation94_spill] sm:$0xff]  ;;  %vm3465_vm13 = vcmp.gt.f32.partialorder %v8803_v61, 0.0 }
 0x81b   : > { %v8818_v29 = vpop.permute.xlu0 %1695  ;;  %13030 = vst [vmem:[#allocation137_spill] sm:$0xff] %v8835_v32  ;;  %vm3287_vm8 = vcmp.lt.f32.partialorder %v3194_v9, %v3271_v59  ;;  %3350 = vxpose.xlu1.b32.cont [2/16] (narrow) %v8835_v32, 8  ;;  %v8852_v46 = vmul.f32 %v3398_v50, %v8835_v32  ;;  %v3272_v59 = vceil.f32 %v3256_v11  ;;  %13037 = vst [vmem:[#allocation56_spill] sm:$0xff] %v8869_v0  ;;  %v6662_v50 = vpop.eup %6661  ;;  %v3273_v9 = vceil.f32 %v3257_v26  ;;  %v13043_v11 = vld [vmem:[#allocation60_spill] sm:$0xff] }
 0x81c   : > { %13026 = vst [vmem:[#allocation134_spill] sm:$0xff] %v8818_v29  ;;  %v5804_v18 = vsel %vm3287_vm8, 1.0, %v12899_v43  ;;  %v8886_v5 = vsel %vm1602_vm15, %v13043_v11, -1e+30  ;;  %v6664_v12 = vpop.eup %6663  ;;  %v13051_v51 = vmax.f32 %v13050_v16, 0.0  ;;  %v13054_v11 = vmax.f32 %v13053_v24, 0.0 }
 0x81d   : > { %v8872_v39 = vmul.f32 %v5804_v18, %v7894_v23  ;;  %v8876_v41 = vpack.c.bf16 %v8852_v46, %v8848_v62  ;;  %v8891_v23 = vsel %vm1604_vm2, %v13046_v8, -1e+30  ;;  %v8902_v8 = vmul.f32 0.8, %v8775_v27  ;;  %v13055_v27 = vld [vmem:[#allocation96_spill] sm:$0xff]  ;;  %v13058_v16 = vld [vmem:[#allocation97_spill] sm:$0xff] }
 0x81e   : > { %6531 = vset.pattern.permute.xlu0 %v12376_v2  ;;  %v13041_v2 = vld [vmem:[#allocation57_spill] sm:$0xff]  ;;  %13048 = vst [vmem:[#allocation60_spill] sm:$0xff] %v8891_v23  ;;  %v3196_v18 = vpop.xlane.xlu1 %3195  ;;  %v3400_v21 = vmul.f32 %v6658_v19, %v13054_v11  ;;  %v13056_v15 = vmax.f32 %v13055_v27, 0.0  ;;  %vm12438_vm14 = vcmp.eq.s32.totalorder %v8818_v29, 1  ;;  %vm3466_vm7 = vcmp.gt.f32.partialorder %v8835_v32, 0.0 }
 0x81f   : > { %1998 = vperm.xlu0 %6531, %v8630_v45   ;;  %v8855_v31 = vpop.permute.xlu0 %1698  ;;  %13038 = vst [vmem:[#allocation55_spill] sm:$0xff] %v8872_v39  ;;  %13039 = vst [vmem:[#allocation139_spill] sm:$0xff] %v8876_v41  ;;  %vm3288_vm9 = vcmp.lt.f32.partialorder %v3196_v18, %v3272_v59  ;;  %6324 = vmatpush3.bf16.msra.mxu1 %v8876_v41  ;;  %v3399_v59 = vmul.f32 %v6656_v25, %v13051_v51  ;;  %v6666_v18 = vpop.eup %6665  ;;  %v13059_v51 = vmax.f32 %v13058_v16, 0.0 }
 0x820   : > { %13032 = vst [vmem:[#allocation138_spill] sm:$0xff] %v8855_v31  ;;  %13045 = vst [vmem:[#allocation57_spill] sm:$0xff] %v8886_v5  ;;  %3351 = vxpose.xlu1.b32.cont [3/16] (narrow) %v8872_v39, 8  ;;  %v5805_v30 = vsel %vm3288_vm9, 1.0, %v12899_v43  ;;  %6325 = vmatprep.subr.bf16.mxu1 %v12899_v43  ;;  %v3401_v33 = vmul.f32 %v6660_v14, %v13056_v15  ;;  %v8925_v45 = vmul.f32 %v6664_v12, %v13061_v7  ;;  %v13064_v7 = vld [vmem:[#allocation99_spill] sm:$0xff]  ;;  %v13068_v14 = vld [vmem:[#allocation110_spill] sm:$0xff] }
 0x821   : > { %v8911_v26 = vmul.f32 %v5805_v30, %v7905_v53  ;;  %v3402_v25 = vmul.f32 %v6662_v50, %v13059_v51  ;;  %v13062_v53 = vld [vmem:[#allocation109_spill] sm:$0xff]  ;;  %v8930_v15 = vmul.f32 %v3399_v59, %v8872_v39  ;;  %v8940_v30 = vsel %vm12461_vm10, %v8808_v47, -1e+30 }
 0x822   : > { %v3198_v3 = vpop.xlane.xlu1 %3197  ;;  %6669 = vtanh.f32 %v13062_v53  ;;  %vm12426_vm15 = vcmp.eq.s32.totalorder %v8855_v31, 1  ;;  %vm3467_vm8 = vcmp.gt.f32.partialorder %v8872_v39, 0.0 }
 0x823   : > { %v8898_v35 = vpop.permute.xlu0 %1701  ;;  %2007 = vperm.xlu0 %6531, %v8669_v48   ;;  %13052 = vst [vmem:[#allocation64_spill] sm:$0xff] %v8911_v26  ;;  %v8919_v48 = vmul.f32 0.8, %v8767_v34  ;;  %vm3289_vm11 = vcmp.lt.f32.partialorder %v3198_v3, %v3273_v9  ;;  %v8933_v58 = vmul.f32 %v3400_v21, %v8911_v26  ;;  %v13065_v3 = vmax.f32 %v13064_v7, 0.0 }
 0x824   : > { %13049 = vst [vmem:[#allocation58_spill] sm:$0xff] %v8898_v35  ;;  %3352 = vxpose.xlu1.b32.cont [4/16] (narrow) %v8911_v26, 8  ;;  %v5806_v12 = vsel %vm3289_vm11, 1.0, %v12899_v43  ;;  %6671 = vtanh.f32 %v13068_v14  ;;  %v1757_v51 = vsel %vm12426_vm15, %v8823_v38, -1e+30  ;;  %vm12463_vm4 = vcmp.eq.s32.totalorder %v8898_v35, 1 }
 0x825   : > { %v8947_v49 = vmul.f32 %v6666_v18, %v13065_v3  ;;  %v8951_v21 = vmul.f32 %v5806_v12, %v13033_v17  ;;  %v8955_v34 = vpack.c.bf16 %v8933_v58, %v8930_v15  ;;  %v3276_v50 = vceil.f32 %v8919_v48 }
 0x826   : > { %v3200_v9 = vpop.xlane.xlu1 %3199  ;;  %v8974_v48 = vsel %vm3465_vm13, %v8848_v62, -1e+30  ;;  %v13075_v12 = vceil.f32 %v8842_v20 }
 0x827   : > { %v8935_v24 = vpop.permute.xlu0 %1704  ;;  %2013 = vperm.xlu0 %6531, %v8695_v56   ;;  %13066 = vst [vmem:[#allocation94_spill] sm:$0xff] %v8951_v21  ;;  %13067 = vst [vmem:[#allocation95_spill] sm:$0xff] %v8955_v34  ;;  %vm3290_vm2 = vcmp.lt.f32.partialorder %v3200_v9, %v3274_v1  ;;  %6326 = vmatpush3.bf16.msra.mxu1 %v8955_v34  ;;  %v3417_v59 = vmul.f32 %v3401_v33, %v8951_v21  ;;  %vm3469_vm6 = vcmp.gt.f32.partialorder %v8951_v21, 0.0  ;;  %v9026_v9 = vpop.eup %6667 }
 0x828   : > { %13063 = vst [vmem:[#allocation62_spill] sm:$0xff] %v8935_v24  ;;  %vm12416_vm12 = vcmp.eq.s32.totalorder %v8935_v24, 1  ;;  %3353 = vxpose.xlu1.b32.cont [5/16] (narrow) %v8951_v21, 8  ;;  %13070 = vst [vmem:[#allocation108_spill] sm:$0xff] %v8974_v48  ;;  %v5807_v18 = vsel %vm3290_vm2, 1.0, %v12899_v43  ;;  %6327 = vmatprep.subr.bf16.mxu1 %v12899_v43 }
 0x829   : > { %v1759_v19 = vsel %vm12416_vm12, %v8863_v42, -1e+30  ;;  %v8984_v33 = vsel %vm12438_vm14, %v8814_v22, -1e+30  ;;  %v8987_v1 = vmul.f32 %v5807_v18, %v13036_v57  ;;  %v8996_v27 = vsel %vm3469_vm6, %v3417_v59, -1e+30 }
 0x82a   : > { %v1771_v11 = vmax.f32 %v8940_v30, %v1759_v19  ;;  %13072 = vst [vmem:[#allocation98_spill] sm:$0xff] %v8996_v27  ;;  %v9001_v16 = vsel %vm12461_vm10, %v8974_v48, -1e+30  ;;  %v3202_v57 = vpop.xlane.xlu1 %3201  ;;  %v9011_v30 = vsel %vm12416_vm12, %v8996_v27, -1e+30 }
 0x82b   : > { %v8967_v17 = vpop.permute.xlu0 %1707  ;;  %2019 = vperm.xlu0 %6531, %v8746_v36   ;;  %13071 = vst [vmem:[#allocation97_spill] sm:$0xff] %v8987_v1  ;;  %13073 = vst [vmem:[#allocation109_spill] sm:$0xff] %v9001_v16  ;;  %vm3291_vm5 = vcmp.lt.f32.partialorder %v3202_v57, %v13075_v12  ;;  %v3418_v7 = vmul.f32 %v3402_v25, %v8987_v1  ;;  %v9022_v19 = vsel %vm3466_vm7, %v8852_v46, -1e+30  ;;  %vm3470_vm3 = vcmp.gt.f32.partialorder %v8987_v1, 0.0  ;;  %v13108_v16 = vld [vmem:[#allocation112_spill] sm:$0xff] }
 0x82c   : > { %13069 = vst [vmem:[#allocation96_spill] sm:$0xff] %v8967_v17  ;;  %vm12409_vm0 = vcmp.eq.s32.totalorder %v8967_v17, 1  ;;  %13074 = vst [vmem:[#allocation99_spill] sm:$0xff] %v9011_v30  ;;  %3354 = vxpose.xlu1.b32.cont [6/16] (narrow) %v8987_v1, 8  ;;  %v5808_v20 = vsel %vm3291_vm5, 1.0, %v12899_v43  ;;  %v9032_v25 = vpop.eup %6669 }
 0x82d   : > { %v8992_v62 = vsel %vm12409_vm0, %v8869_v0, -1e+30  ;;  %13077 = vst [vmem:[#allocation140_spill] sm:$0xff] %v9022_v19  ;;  %v9035_v18 = vmul.f32 %v5808_v20, %v13041_v2  ;;  %v9037_v46 = vpack.c.bf16 %v3418_v7, %v3417_v59  ;;  %v9049_v14 = vsel %vm12438_vm14, %v9022_v19, -1e+30 }
 0x82e   : > { %v1772_v53 = vmax.f32 %v8984_v33, %v8992_v62  ;;  %v9044_v62 = vsel %vm3470_vm3, %v3418_v7, -1e+30  ;;  %v3204_v57 = vpop.xlane.xlu1 %3203  ;;  %v1758_v59 = vsel %vm12463_vm4, %v8828_v55, -1e+30  ;;  %v9067_v20 = vpop.eup %6671  ;;  %v9083_v24 = vsel %vm3467_vm8, %v8930_v15, -1e+30 }
 0x82f   : > { %v9017_v3 = vpop.permute.xlu0 %1710  ;;  %13078 = vst [vmem:[#allocation141_spill] sm:$0xff] %v9035_v18  ;;  %13079 = vst [vmem:[#allocation142_spill] sm:$0xff] %v9037_v46  ;;  %v9055_v2 = vsel %vm12409_vm0, %v9044_v62, -1e+30  ;;  %vm3292_vm9 = vcmp.lt.f32.partialorder %v3204_v57, %v3276_v50  ;;  %6328 = vmatpush3.bf16.msra.mxu1 %v9037_v46  ;;  %v3419_v7 = vmul.f32 %v8925_v45, %v9035_v18  ;;  %vm12588_vm11 = vcmp.gt.f32.partialorder %v9035_v18, 0.0 }
 0x830   : > { %13076 = vst [vmem:[#allocation110_spill] sm:$0xff] %v9017_v3  ;;  %vm12408_vm1 = vcmp.eq.s32.totalorder %v9017_v3, 1  ;;  %13080 = vst [vmem:[#allocation143_spill] sm:$0xff] %v9044_v62  ;;  %3355 = vxpose.xlu1.b32.cont [7/16] (narrow) %v9035_v18, 8  ;;  %6329 = vmatprep.subr.bf16.mxu1 %v12899_v43  ;;  %v13088_v15 = vceil.f32 %v8845_v60  ;;  %v13090_v60 = vld [vmem:[#allocation61_spill] sm:$0xff] }
 0x831   : > { %v1761_v33 = vsel %vm12408_vm1, %v8881_v4, -1e+30  ;;  %13083 = vst [vmem:[#allocation146_spill] sm:$0xff] %v9083_v24  ;;  %vm13166_vm10 = vcmp.gt.f32.partialorder %v13090_v60, 0.0 }
 0x832   : > { %v1773_v12 = vmax.f32 %v1757_v51, %v1761_v33  ;;  %v5809_v33 = vsel %vm3292_vm9, 1.0, %v12899_v43  ;;  %v3206_v29 = vpop.xlane.xlu1 %3205  ;;  %vm3468_vm9 = vcmp.gt.f32.partialorder %v8911_v26, 0.0 }
 0x833   : > { %v9062_v51 = vpop.permute.xlu0 %1713  ;;  %v9075_v57 = vmul.f32 %v5809_v33, %v13044_v54  ;;  %v9093_v54 = vsel %vm12426_vm15, %v9083_v24, -1e+30  ;;  %vm3293_vm5 = vcmp.lt.f32.partialorder %v3206_v29, %v13088_v15  ;;  %v9129_v56 = vsel %vm3468_vm9, %v8933_v58, -1e+30 }
 0x834   : > { %13081 = vst [vmem:[#allocation144_spill] sm:$0xff] %v9062_v51  ;;  %v1775_v17 = vmax.f32 %v1771_v11, %v1773_v12  ;;  %vm12425_vm2 = vcmp.eq.s32.totalorder %v9062_v51, 1  ;;  %v9087_v11 = vsel %vm12588_vm11, %v3419_v7, -1e+30  ;;  %v13085_v12 = vld [vmem:[#allocation111_spill] sm:$0xff]  ;;  %13094 = vst [vmem:[#allocation152_spill] sm:$0xff] %v9129_v56 }
 0x835   : > { %13082 = vst [vmem:[#allocation145_spill] sm:$0xff] %v9075_v57  ;;  %v1762_v45 = vsel %vm12425_vm2, %v8886_v5, -1e+30  ;;  %13084 = vst [vmem:[#allocation147_spill] sm:$0xff] %v9087_v11  ;;  %6673 = vtanh.f32 %v13085_v12  ;;  %v9098_v33 = vsel %vm12408_vm1, %v9087_v11, -1e+30  ;;  %v3420_v12 = vmul.f32 %v8947_v49, %v9075_v57 }
 0x836   : > { %v1774_v50 = vmax.f32 %v1758_v59, %v1762_v45  ;;  %13086 = vst [vmem:[#allocation111_spill] sm:$0xff] %v9093_v54  ;;  %13087 = vst [vmem:[#allocation148_spill] sm:$0xff] %v9098_v33  ;;  %3356 = vxpose.xlu1.b32.cont [8/16] (narrow) %v9075_v57, 8  ;;  %v5810_v45 = vsel %vm3293_vm5, 1.0, %v12899_v43  ;;  %vm12569_vm0 = vcmp.gt.f32.partialorder %v9075_v57, 0.0  ;;  %v13097_v33 = vld [vmem:[#allocation69_spill] sm:$0xff]  ;;  %6675 = vtanh.f32 %v13108_v16 }
 0x837   : > { %v9105_v13 = vpop.permute.xlu0 %1719  ;;  %v9114_v29 = vmul.f32 %v5810_v45, %v13090_v60  ;;  %v9116_v15 = vpack.c.bf16 %v3420_v12, %v3419_v7  ;;  %v9123_v31 = vsel %vm12569_vm0, %v3420_v12, -1e+30  ;;  %v3264_v59 = vmul.f32 0.8, %v8781_v6  ;;  %v13106_v54 = vld [vmem:[#allocation101_spill] sm:$0xff]  ;;  %v13109_v57 = vld [vmem:[#allocation75_spill] sm:$0xff] }
 0x838   : > { %13089 = vst [vmem:[#allocation149_spill] sm:$0xff] %v9105_v13  ;;  %v1779_v3 = vmax.f32 %v1775_v17, %v1774_v50  ;;  %vm12437_vm1 = vcmp.eq.s32.totalorder %v9105_v13, 1  ;;  %13093 = vst [vmem:[#allocation151_spill] sm:$0xff] %v9123_v31  ;;  %v3208_v17 = vpop.xlane.xlu1 %3207  ;;  %v9134_v7 = vsel %vm12425_vm2, %v9123_v31, -1e+30  ;;  %v3279_v45 = vceil.f32 %v8902_v8 }
 0x839   : > { %13091 = vst [vmem:[#allocation61_spill] sm:$0xff] %v9114_v29  ;;  %13092 = vst [vmem:[#allocation150_spill] sm:$0xff] %v9116_v15  ;;  %v1764_v49 = vsel %vm12437_vm1, %v8891_v23, -1e+30  ;;  %v13096_v23 = vld [vmem:[#allocation71_spill] sm:$0xff]  ;;  %vm13098_vm5 = vcmp.gt.f32.partialorder %v13097_v33, 0.0  ;;  %v13100_v6 = vceil.f32 %v8858_v37  ;;  %6330 = vmatpush3.bf16.msra.mxu1 %v9116_v15  ;;  %v3280_v30 = vceil.f32 %v3264_v59 }
 0x83a   : > { %v1776_v50 = vmax.f32 %v1772_v53, %v1764_v49  ;;  %13095 = vst [vmem:[#allocation153_spill] sm:$0xff] %v9134_v7  ;;  %v9140_v12 = vsel %vm13098_vm5, %v13096_v23, -1e+30  ;;  %3357 = vxpose.xlu1.b32.cont [9/16] (narrow) %v9114_v29, 8  ;;  %v9151_v53 = vsel %vm12463_vm4, %v9129_v56, -1e+30  ;;  %6331 = vmatprep.subr.bf16.mxu1 %v12899_v43 }
 0x83b   : > { %13099 = vst [vmem:[#allocation71_spill] sm:$0xff] %v9140_v12  ;;  %vm3294_vm12 = vcmp.lt.f32.partialorder %v3208_v17, %v13100_v6  ;;  %v9146_v58 = vpop.permute.xlu0 %1728  ;;  %13102 = vst [vmem:[#allocation154_spill] sm:$0xff] %v9151_v53  ;;  %v13104_v6 = vld [vmem:[#allocation100_spill] sm:$0xff]  ;;  %v13110_v37 = vld [vmem:[#allocation37_spill] sm:$0xff] }
 0x83c   : > { %13101 = vst [vmem:[#allocation69_spill] sm:$0xff] %v9146_v58  ;;  %v5811_v8 = vsel %vm3294_vm12, 1.0, %v12899_v43  ;;  %v1777_v49 = vmax.f32 %v1776_v50, %v1779_v3  ;;  %vm12593_vm5 = vcmp.eq.s32.totalorder %v9146_v58, 1  ;;  %v13105_v51 = vmax.f32 %v13104_v6, 0.0 }
 0x83d   : > { %v9159_v23 = vmul.f32 %v5811_v8, %v13047_v44  ;;  %v1767_v17 = vsel %vm12593_vm5, %v9140_v12, -1e+30  ;;  %v13107_v3 = vmax.f32 %v13106_v54, 0.0  ;;  %vm13111_vm12 = vcmp.gt.f32.partialorder %v13110_v37, 0.0  ;;  %v3210_v8 = vpop.xlane.xlu1 %3209 }
 0x83e   : > { %v3405_v35 = vmul.f32 %v9026_v9, %v13105_v51  ;;  %v9174_v44 = vsel %vm13111_vm12, %v13109_v57, -1e+30  ;;  %v9176_v7 = vmax.f32 %v1767_v17, %v1777_v49  ;;  %vm3295_vm2 = vcmp.lt.f32.partialorder %v3210_v8, %v3279_v45  ;;  %v13115_v57 = vld [vmem:[#allocation113_spill] sm:$0xff]  ;;  %v13121_v8 = vld [vmem:[#allocation114_spill] sm:$0xff] }
 0x83f   : > { %13103 = vst [vmem:[#allocation155_spill] sm:$0xff] %v9159_v23  ;;  %v3406_v50 = vmul.f32 %v9032_v25, %v13107_v3  ;;  %13112 = vst [vmem:[#allocation100_spill] sm:$0xff] %v9174_v44  ;;  %3358 = vxpose.xlu1.b32.cont [10/16] (narrow) %v9159_v23, 8  ;;  %v9183_v25 = vpop.permute.xlu0 %1737  ;;  %vm12567_vm15 = vcmp.gt.f32.partialorder %v9159_v23, 0.0  ;;  %v6674_v16 = vpop.eup %6673  ;;  %v3265_v54 = vmul.f32 0.8, %v8788_v40  ;;  %6677 = vtanh.f32 %v13115_v57 }
 0x840   : > { %13113 = vst [vmem:[#allocation101_spill] sm:$0xff] %v9176_v7  ;;  %v9180_v9 = vmul.f32 %v3405_v35, %v9114_v29  ;;  %13114 = vst [vmem:[#allocation112_spill] sm:$0xff] %v9183_v25  ;;  %v5812_v59 = vsel %vm3295_vm2, 1.0, %v12899_v43  ;;  %vm12597_vm12 = vcmp.eq.s32.totalorder %v9183_v25, 1  ;;  %v13116_v45 = vld [vmem:[#allocation65_spill] sm:$0xff]  ;;  %6679 = vtanh.f32 %v13121_v8 }
 0x841   : > { %v3422_v51 = vmul.f32 %v3406_v50, %v9159_v23  ;;  %v9191_v49 = vmul.f32 %v5812_v59, %v13116_v45  ;;  %v9199_v17 = vsel %vm12597_vm12, %v9174_v44, -1e+30  ;;  %v3212_v6 = vpop.xlane.xlu1 %3211  ;;  %v3268_v57 = vmul.f32 0.8, %v8785_v63  ;;  %v13122_v59 = vld [vmem:[#allocation115_spill] sm:$0xff] }
 0x842   : > { %13119 = vst [vmem:[#allocation113_spill] sm:$0xff] %v9199_v17  ;;  %vm3296_vm2 = vcmp.lt.f32.partialorder %v3212_v6, %v3280_v30  ;;  %6681 = vtanh.f32 %v13122_v59  ;;  %v13124_v8 = vmax.f32 %v9049_v14, %v9055_v2  ;;  %v3281_v63 = vceil.f32 %v3265_v54  ;;  %v13126_v30 = vld [vmem:[#allocation66_spill] sm:$0xff] }
 0x843   : > { %13117 = vst [vmem:[#allocation75_spill] sm:$0xff] %v9191_v49  ;;  %v9194_v35 = vpack.c.bf16 %v3422_v51, %v9180_v9  ;;  %v9203_v40 = vsel %vm12567_vm15, %v3422_v51, -1e+30  ;;  %3359 = vxpose.xlu1.b32.cont [11/16] (narrow) %v9191_v49, 8  ;;  %v3266_v51 = vmul.f32 0.8, %v8773_v28  ;;  %v3284_v7 = vceil.f32 %v3268_v57 }
 0x844   : > { %13120 = vst [vmem:[#allocation156_spill] sm:$0xff] %v9203_v40  ;;  %v3538_v50 = vsel %vm12437_vm1, %v9203_v40, -1e+30  ;;  %v5813_v25 = vsel %vm3296_vm2, 1.0, %v12899_v43  ;;  %v9218_v3 = vpop.permute.xlu0 %1793  ;;  %v13128_v40 = vld [vmem:[#allocation102_spill] sm:$0xff]  ;;  %v13130_v28 = vld [vmem:[#allocation103_spill] sm:$0xff] }
 0x845   : > { %13118 = vst [vmem:[#allocation37_spill] sm:$0xff] %v9194_v35  ;;  %6332 = vmatpush3.bf16.msra.mxu1 %v9194_v35  ;;  %13123 = vst [vmem:[#allocation114_spill] sm:$0xff] %v9218_v3  ;;  %v9223_v13 = vmax.f32 %v13124_v8, %v3538_v50  ;;  %v9226_v6 = vmul.f32 %v5813_v25, %v13126_v30  ;;  %v13129_v53 = vmax.f32 %v13128_v40, 0.0  ;;  %v13131_v45 = vmax.f32 %v13130_v28, 0.0  ;;  %v3214_v17 = vpop.xlane.xlu1 %3213  ;;  %v6676_v25 = vpop.eup %6675  ;;  %v13137_v57 = vld [vmem:[#allocation70_spill] sm:$0xff]  ;;  %v13139_v8 = vld [vmem:[#allocation104_spill] sm:$0xff] }
 0x846   : > { %6333 = vmatprep.subr.bf16.mxu1 %v12899_v43  ;;  %vm3297_vm2 = vcmp.lt.f32.partialorder %v3214_v17, %v3281_v63  ;;  %v3282_v54 = vceil.f32 %v3266_v51  ;;  %vm3300_vm1 = vcmp.lt.f32.partialorder %v8791_v10, %v3284_v7  ;;  %v13140_v63 = vmax.f32 %v13139_v8, 0.0  ;;  %v13141_v28 = vld [vmem:[#allocation105_spill] sm:$0xff] }
 0x847   : > { %13125 = vst [vmem:[#allocation115_spill] sm:$0xff] %v9223_v13  ;;  %13127 = vst [vmem:[#allocation66_spill] sm:$0xff] %v9226_v6  ;;  %v3407_v59 = vmul.f32 %v9067_v20, %v13129_v53  ;;  %v3408_v58 = vmul.f32 %v6674_v16, %v13131_v45  ;;  %3360 = vxpose.xlu1.b32.cont [12/16] (narrow) %v9226_v6, 8  ;;  %v5814_v40 = vsel %vm3297_vm2, 1.0, %v12899_v43  ;;  %v3267_v20 = vmul.f32 0.8, %v8778_v52 }
 0x848   : > { %v9241_v50 = vpop.permute.xlu0 %1796  ;;  %v9246_v53 = vmul.f32 %v5814_v40, %v13097_v33  ;;  %v5817_v17 = vsel %vm3300_vm1, 1.0, %v12899_v43  ;;  %v13146_v8 = vld [vmem:[#allocation73_spill] sm:$0xff]  ;;  %vm12443_vm1 = vcmp.eq.s32.totalorder %v9218_v3, 1  ;;  %vm13269_vm15 = vmmov 0  }
 0x849   : > { %v9235_v14 = vmul.f32 %v3407_v59, %v9191_v49  ;;  %v9238_v2 = vmul.f32 %v3408_v58, %v9226_v6  ;;  %13133 = vst [vmem:[#allocation103_spill] sm:$0xff] %v9241_v50  ;;  %v6678_v45 = vpop.eup %6677  ;;  %v3216_v58 = vpop.xlane.xlu1 %3215  ;;  %v3283_v7 = vceil.f32 %v3267_v20  ;;  %v3409_v59 = vmul.f32 %v6676_v25, %v13140_v63  ;;  %v13151_v63 = vld [vmem:[#allocation107_spill] sm:$0xff] }
 0x84a   : > { %13134 = vst [vmem:[#allocation157_spill] sm:$0xff] %v9246_v53  ;;  %vm3298_vm14 = vcmp.lt.f32.partialorder %v3216_v58, %v3282_v54  ;;  %v6680_v33 = vpop.eup %6679  ;;  %v13142_v54 = vmax.f32 %v13141_v28, 0.0 }
 0x84b   : > { %13132 = vst [vmem:[#allocation102_spill] sm:$0xff] %v9235_v14  ;;  %v9250_v16 = vpack.c.bf16 %v9238_v2, %v9235_v14  ;;  %3361 = vxpose.xlu1.b32.cont [13/16] (narrow) %v9246_v53, 8  ;;  %v5815_v52 = vsel %vm3298_vm14, 1.0, %v12899_v43  ;;  %v9267_v14 = vmul.f32 %v5817_v17, %v13110_v37  ;;  %v9271_v49 = vmul.f32 %v3409_v59, %v9246_v53 }
 0x84c   : > { %v9257_v10 = vpop.permute.xlu0 %1799  ;;  %v9260_v51 = vmul.f32 %v5815_v52, %v13137_v57  ;;  %v3410_v40 = vmul.f32 %v6678_v45, %v13142_v54  ;;  %v6682_v58 = vpop.eup %6681  ;;  %v13152_v59 = vmax.f32 %v13151_v63, 0.0 }
 0x84d   : > { %13135 = vst [vmem:[#allocation158_spill] sm:$0xff] %v9250_v16  ;;  %6334 = vmatpush3.bf16.msra.mxu1 %v9250_v16  ;;  %13136 = vst [vmem:[#allocation159_spill] sm:$0xff] %v9257_v10  ;;  %v3218_v13 = vpop.xlane.xlu1 %3217 }
 0x84e   : > { %6335 = vmatprep.subr.bf16.mxu1 %v12899_v43  ;;  %13138 = vst [vmem:[#allocation70_spill] sm:$0xff] %v9260_v51  ;;  %13143 = vst [vmem:[#allocation104_spill] sm:$0xff] %v9267_v14  ;;  %vm3299_vm14 = vcmp.lt.f32.partialorder %v3218_v13, %v3283_v7  ;;  %v9274_v20 = vmul.f32 %v3410_v40, %v9260_v51  ;;  %v13149_v13 = vld [vmem:[#allocation106_spill] sm:$0xff]  ;;  %v3412_v28 = vmul.f32 %v6682_v58, %v13152_v59 }
 0x84f   : > { %3362 = vxpose.xlu1.b32.cont [14/16] (narrow) %v9260_v51, 8  ;;  %v5816_v52 = vsel %vm3299_vm14, 1.0, %v12899_v43  ;;  %v13150_v17 = vmax.f32 %v13149_v13, 0.0  ;;  %v3566_v58 = vsel %vm12443_vm1, %v8974_v48, -1e+30  ;;  %vm12450_vm14 = vcmp.eq.s32.totalorder %v9241_v50, 1 }
 0x850   : > { %13144 = vst [vmem:[#allocation105_spill] sm:$0xff] %v9274_v20  ;;  %v9277_v25 = vpop.permute.xlu0 %1802  ;;  %v9280_v45 = vmul.f32 %v5816_v52, %v13146_v8  ;;  %v9284_v37 = vpack.c.bf16 %v9274_v20, %v9271_v49  ;;  %v9297_v40 = vmul.f32 %v3412_v28, %v9267_v14  ;;  %v9328_v3 = vsel %vm12450_vm14, %v8814_v22, -1e+30 }
 0x851   : > { %13145 = vst [vmem:[#allocation160_spill] sm:$0xff] %v9277_v25  ;;  %v3411_v7 = vmul.f32 %v6680_v33, %v13150_v17  ;;  %v1856_v33 = vsel %vm12443_vm1, %v8808_v47, -1e+30 }
 0x852   : > { %13147 = vst [vmem:[#allocation161_spill] sm:$0xff] %v9280_v45  ;;  %13148 = vst [vmem:[#allocation162_spill] sm:$0xff] %v9284_v37  ;;  %6336 = vmatpush3.bf16.msra.mxu1 %v9284_v37 }
 0x853   : > { %3363 = vxpose.xlu1.b32.cont [15/16] (narrow) %v9280_v45, 8  ;;  %v9294_v54 = vmul.f32 %v3411_v7, %v9280_v45  ;;  %6337 = vmatprep.subr.bf16.mxu1 %v12899_v43 }
 0x854   : > { %v9300_v52 = vpop.permute.xlu0 %1805 }
 0x855   : > { %13153 = vst [vmem:[#allocation106_spill] sm:$0xff] %v9294_v54  ;;  %13154 = vst [vmem:[#allocation107_spill] sm:$0xff] %v9300_v52  ;;  %v9310_v13 = vpack.c.bf16 %v9297_v40, %v9294_v54  ;;  %vm12445_vm2 = vcmp.eq.s32.totalorder %v9300_v52, 1  ;;  %v9334_v52 = vsel %vm12450_vm14, %v9022_v19, -1e+30  ;;  %vm12466_vm14 = vcmp.eq.s32.totalorder %v9277_v25, 1 }
 0x856   : > { %v1860_v17 = vsel %vm12445_vm2, %v8863_v42, -1e+30  ;;  %v3570_v7 = vsel %vm12445_vm2, %v8996_v27, -1e+30  ;;  %vm12454_vm2 = vcmp.eq.s32.totalorder %v9257_v10, 1 }
 0x857   : > { %13155 = vst [vmem:[#allocation163_spill] sm:$0xff] %v9310_v13  ;;  %3364 = vxpose.xlu1.b32.end [16/16] (narrow) %v9267_v14, 8  ;;  %6338 = vmatpush3.bf16.msra.mxu1 %v9310_v13  ;;  %v1872_v63 = vmax.f32 %v1856_v33, %v1860_v17  ;;  %v3582_v59 = vmax.f32 %v3566_v58, %v3570_v7  ;;  %v13157_v33 = vld [vmem:[#allocation18_spill] sm:$0xff]  ;;  %v9359_v54 = vsel %vm12454_vm2, %v8823_v38, -1e+30 }
 0x858   : > { %6343 = vmatprep.subr.bf16.mxu1 %v8876_v41  ;;  %v9323_v28 = vpop.permute.xlu0 %1808  ;;  %13159 = vst [vmem:[#allocation166_spill] sm:$0xff] %v9359_v54  ;;  %v1859_v20 = vsel %vm12466_vm14, %v8828_v55, -1e+30  ;;  %v3569_v10 = vsel %vm12466_vm14, %v9129_v56, -1e+30 }
 0x859   : > { %13156 = vst [vmem:[#allocation164_spill] sm:$0xff] %v9323_v28  ;;  %vm12448_vm1 = vcmp.eq.s32.totalorder %v9323_v28, 1  ;;  %v9365_v28 = vsel %vm12454_vm2, %v9083_v24, -1e+30 }
 0x85a   : > { %6340 = vmatmul.mubr.bf16.vlgmr.msra.gmra.mrb[36].mxu1 %v13157_v33  ;;  %v9341_v58 = vsel %vm12448_vm1, %v8869_v0, -1e+30  ;;  %v9346_v17 = vsel %vm12448_vm1, %v9044_v62, -1e+30  ;;  %13160 = vst [vmem:[#allocation167_spill] sm:$0xff] %v9365_v28 }
 0x85b   : > { %6344 = vmatpush3.bf16.msra.mxu1 %v8876_v41 }
 0x85c   : > { %6345 = vmatprep.subr.bf16.mxu1 %v8955_v34  ;;  %v9354_v33 = vpop.permute.xlu0 %1811 }
 0x85d   : > { %13158 = vst [vmem:[#allocation165_spill] sm:$0xff] %v9354_v33  ;;  %vm12455_vm1 = vcmp.eq.s32.totalorder %v9354_v33, 1 }
 0x85e   : > { %v9371_v50 = vsel %vm12455_vm1, %v8881_v4, -1e+30  ;;  %v9376_v7 = vsel %vm12455_vm1, %v9087_v11, -1e+30  ;;  %vm12568_vm1 = vcmp.gt.f32.partialorder %v9114_v29, 0.0 }
 0x85f   : > { %13161 = vst [vmem:[#allocation168_spill] sm:$0xff] %v9371_v50  ;;  %13162 = vst [vmem:[#allocation169_spill] sm:$0xff] %v9376_v7  ;;  %6346 = vmatpush3.bf16.msra.mxu1 %v8955_v34  ;;  %v13165_v50 = vld [vmem:[#allocation63_spill] sm:$0xff] }
 0x860   : > { %6347 = vmatprep.subr.bf16.mxu1 %v9037_v46  ;;  %v9384_v8 = vpop.permute.xlu0 %1814  ;;  %v9407_v54 = vsel %vm13166_vm10, %v13165_v50, -1e+30  ;;  %vm13173_vm10 = vcmp.gt.f32.partialorder %v13126_v30, 0.0 }
 0x861   : > { %13163 = vst [vmem:[#allocation170_spill] sm:$0xff] %v9384_v8  ;;  %vm12465_vm2 = vcmp.eq.s32.totalorder %v9384_v8, 1  ;;  %13167 = vst [vmem:[#allocation63_spill] sm:$0xff] %v9407_v54  ;;  %v9413_v8 = vsel %vm12568_vm1, %v9180_v9, -1e+30 }
 0x862   : > { %v1863_v33 = vsel %vm12465_vm2, %v8886_v5, -1e+30  ;;  %v3573_v41 = vsel %vm12465_vm2, %v9123_v31, -1e+30  ;;  %13168 = vst [vmem:[#allocation172_spill] sm:$0xff] %v9413_v8  ;;  %vm12561_vm2 = vcmp.gt.f32.partialorder %v9226_v6, 0.0 }
 0x863   : > { %6348 = vmatpush3.bf16.msra.mxu1 %v9037_v46  ;;  %v1875_v34 = vmax.f32 %v1859_v20, %v1863_v33  ;;  %v3585_v7 = vmax.f32 %v3569_v10, %v3573_v41  ;;  %v13172_v20 = vld [vmem:[#allocation68_spill] sm:$0xff] }
 0x864   : > { %6349 = vmatprep.subr.bf16.mxu1 %v9116_v15  ;;  %v9402_v28 = vpop.permute.xlu0 %1817  ;;  %v9433_v33 = vsel %vm13173_vm10, %v13172_v20, -1e+30  ;;  %v13180_v20 = vmov 2   ;;  %v13188_v46 = vld [vmem:[#allocation128_spill] sm:$0xff] }
 0x865   : > { %13164 = vst [vmem:[#allocation171_spill] sm:$0xff] %v9402_v28  ;;  %vm12469_vm4 = vcmp.eq.s32.totalorder %v9402_v28, 1  ;;  %13174 = vst [vmem:[#allocation68_spill] sm:$0xff] %v9433_v33  ;;  %v9439_v28 = vsel %vm12561_vm2, %v9238_v2, -1e+30 }
 0x866   : > { %v1864_v41 = vsel %vm12469_vm4, %v9407_v54, -1e+30  ;;  %v3574_v10 = vsel %vm12469_vm4, %v9413_v8, -1e+30  ;;  %13175 = vst [vmem:[#allocation176_spill] sm:$0xff] %v9439_v28 }
 0x867   : > { %6350 = vmatpush3.bf16.msra.mxu1 %v9116_v15  ;;  %v9423_v60 = vmax.f32 %v1872_v63, %v1864_v41  ;;  %v9425_v50 = vmax.f32 %v3582_v59, %v3574_v10 }
 0x868   : > { %6351 = vmatprep.subr.bf16.mxu1 %v9194_v35  ;;  %v9428_v9 = vpop.permute.xlu0 %1826 }
 0x869   : > { %13169 = vst [vmem:[#allocation173_spill] sm:$0xff] %v9423_v60  ;;  %13170 = vst [vmem:[#allocation174_spill] sm:$0xff] %v9425_v50  ;;  %vm12472_vm14 = vcmp.eq.s32.totalorder %v9428_v9, 1 }
 0x86a   : > { %13171 = vst [vmem:[#allocation175_spill] sm:$0xff] %v9428_v9  ;;  %v1867_v63 = vsel %vm12472_vm14, %v9433_v33, -1e+30  ;;  %v3577_v59 = vsel %vm12472_vm14, %v9439_v28, -1e+30  ;;  %v13184_v9 = vmov 0  }
 0x86b   : > { %6352 = vmatpush3.bf16.msra.mxu1 %v9194_v35  ;;  %v9448_v30 = vmax.f32 %v1875_v34, %v1867_v63  ;;  %v9450_v41 = vmax.f32 %v3585_v7, %v3577_v59  ;;  %v13182_v7 = vld [vmem:[#allocation117_spill] sm:$0xff]  ;;  %v6756_v63 = vld [vmem:[%s7321_s25 + $0x50] sm:$0xff] }
 0x86c   : > { %6353 = vmatprep.subr.bf16.mxu1 %v9250_v16  ;;  %v9453_v10 = vpop.permute.xlu0 %1832  ;;  %vm1669_vm10 = vcmp.gt.f32.partialorder %v6756_v63, 0.0 }
 0x86d   : > { %13176 = vst [vmem:[#allocation177_spill] sm:$0xff] %v9448_v30  ;;  %13177 = vst [vmem:[#allocation178_spill] sm:$0xff] %v9450_v41  ;;  %v9474_v25 = vsel %vm1669_vm10, 1, %v13184_v9 }
 0x86e   : > { %13178 = vst [vmem:[#allocation179_spill] sm:$0xff] %v9453_v10  ;;  %13185 = vst [vmem:[#allocation183_spill] sm:$0xff] %v9474_v25 }
 0x86f   : > { %6354 = vmatpush3.bf16.msra.mxu1 %v9250_v16 }
 0x870   : > { %6355 = vmatprep.subr.bf16.mxu1 %v9284_v37 }
 0x871   : > { %v9457_v2 = vpop.permute.xlu0 %1894 }
 0x872   : > { %13179 = vst [vmem:[#allocation180_spill] sm:$0xff] %v9457_v2  ;;  %vm12481_vm4 = vcmp.eq.s32.totalorder %v9457_v2, 1 }
 0x873   : > { %6356 = vmatpush3.bf16.msra.mxu1 %v9284_v37  ;;  %v3603_v63 = vsel %vm12481_vm4, %v8974_v48, -1e+30 }
 0x874   : > { %6357 = vmatprep.subr.bf16.mxu1 %v9310_v13 }
 0x875   : > { %6518 = vset.pattern.permute.xlu1 %v13180_v20  ;;  %v9462_v34 = vpop.permute.xlu0 %1900 }
 0x876   : > { %13181 = vst [vmem:[#allocation181_spill] sm:$0xff] %v9462_v34  ;;  %1897 = vperm.xlu1 %6518, %v13182_v7   ;;  %v1957_v7 = vsel %vm12481_vm4, %v8808_v47, -1e+30  ;;  %vm12485_vm10 = vcmp.eq.s32.totalorder %v9462_v34, 1 }
 0x877   : > { %6358 = vmatpush3.bf16.msra.mxu1 %v9310_v13  ;;  %v9501_v41 = vsel %vm12485_vm10, %v8823_v38, -1e+30 }
 0x878   : > { %6375 = vmatprep.subr.bf16.mxu1 %v12899_v43  ;;  %13190 = vst [vmem:[#allocation187_spill] sm:$0xff] %v9501_v41  ;;  %v13198_v41 = vmov 3  }
 0x879   : > { %v9468_v59 = vpop.permute.xlu0 %1903 }
 0x87a   : > { %13183 = vst [vmem:[#allocation182_spill] sm:$0xff] %v9468_v59  ;;  %6519 = vset.pattern.permute.xlu1 %v13184_v9 }
 0x87b   : > { %1716 = vperm.xlu1 %6519, %v8746_v36  }
 0x87d   : > { %v9476_v37 = vpop.permute.xlu0 %1906 }
 0x87e   : > { %13186 = vst [vmem:[#allocation184_spill] sm:$0xff] %v9476_v37  ;;  %vm12482_vm14 = vcmp.eq.s32.totalorder %v9476_v37, 1  ;;  %v13195_v37 = vld [vmem:[#allocation124_spill] sm:$0xff] }
 0x87f   : > { %1722 = vperm.xlu1 %6519, %v9474_v25   ;;  %v1961_v36 = vsel %vm12482_vm14, %v8863_v42, -1e+30  ;;  %v3607_v13 = vsel %vm12482_vm14, %v8996_v27, -1e+30  ;;  %vm12498_vm14 = vcmp.eq.s32.totalorder %v9468_v59, 1 }
 0x880   : > { %v1973_v16 = vmax.f32 %v1957_v7, %v1961_v36  ;;  %v3619_v35 = vmax.f32 %v3603_v63, %v3607_v13  ;;  %v9507_v36 = vsel %vm12485_vm10, %v9083_v24, -1e+30  ;;  %v13192_v13 = vmov 1   ;;  %v13223_v24 = vld [vmem:[#allocation82_spill] sm:$0xff] }
 0x881   : > { %v9492_v15 = vpop.permute.xlu0 %1909  ;;  %13191 = vst [vmem:[#allocation188_spill] sm:$0xff] %v9507_v36  ;;  %v1960_v50 = vsel %vm12498_vm14, %v8828_v55, -1e+30  ;;  %v3606_v60 = vsel %vm12498_vm14, %v9129_v56, -1e+30  ;;  %v13219_v55 = vld [vmem:[#allocation79_spill] sm:$0xff] }
 0x882   : > { %13187 = vst [vmem:[#allocation185_spill] sm:$0xff] %v9492_v15 }
 0x883   : > { %1725 = vperm.xlu1 %6519, %v13188_v46  }
 0x885   : > { %v9496_v2 = vpop.permute.xlu0 %1912 }
 0x886   : > { %13189 = vst [vmem:[#allocation186_spill] sm:$0xff] %v9496_v2  ;;  %vm12489_vm4 = vcmp.eq.s32.totalorder %v9496_v2, 1 }
 0x887   : > { %6520 = vset.pattern.permute.xlu1 %v13192_v13  ;;  %v9514_v7 = vsel %vm12489_vm4, %v8881_v4, -1e+30  ;;  %v9519_v63 = vsel %vm12489_vm4, %v9087_v11, -1e+30 }
 0x888   : > { %13193 = vst [vmem:[#allocation189_spill] sm:$0xff] %v9514_v7  ;;  %13194 = vst [vmem:[#allocation190_spill] sm:$0xff] %v9519_v63  ;;  %1820 = vperm.xlu1 %6520, %v13195_v37  }
 0x889   : > { %v9526_v30 = vpop.permute.xlu0 %1915 }
 0x88a   : > { %13196 = vst [vmem:[#allocation191_spill] sm:$0xff] %v9526_v30  ;;  %vm12496_vm10 = vcmp.eq.s32.totalorder %v9526_v30, 1 }
 0x88b   : > { %v1964_v2 = vsel %vm12496_vm10, %v8886_v5, -1e+30  ;;  %v3610_v46 = vsel %vm12496_vm10, %v9123_v31, -1e+30 }
 0x88c   : > { %1823 = vperm.xlu1 %6520, %v9474_v25   ;;  %v1976_v34 = vmax.f32 %v1960_v50, %v1964_v2  ;;  %v3622_v63 = vmax.f32 %v3606_v60, %v3610_v46  ;;  %v13201_v50 = vld [vmem:[#allocation116_spill] sm:$0xff] }
 0x88d   : > { %v9542_v36 = vpop.permute.xlu0 %1918 }
 0x88e   : > { %13197 = vst [vmem:[#allocation192_spill] sm:$0xff] %v9542_v36  ;;  %vm12497_vm4 = vcmp.eq.s32.totalorder %v9542_v36, 1 }
 0x88f   : > { %v1965_v7 = vsel %vm12497_vm4, %v9407_v54, -1e+30  ;;  %v3611_v59 = vsel %vm12497_vm4, %v9413_v8, -1e+30  ;;  %vm12502_vm4 = vcmp.gt.f32.partialorder %v9246_v53, 0.0 }
 0x890   : > { %6521 = vset.pattern.permute.xlu1 %v13198_v41  ;;  %v9552_v30 = vmax.f32 %v1973_v16, %v1965_v7  ;;  %v9554_v31 = vmax.f32 %v3619_v35, %v3611_v59  ;;  %v13205_v59 = vld [vmem:[#allocation118_spill] sm:$0xff]  ;;  %v9578_v36 = vsel %vm12502_vm4, %v9271_v49, -1e+30  ;;  %v13210_v49 = vld [vmem:[#allocation119_spill] sm:$0xff] }
 0x891   : > { %1995 = vperm.xlu1 %6521, %v13201_v50   ;;  %v9557_v46 = vpop.permute.xlu0 %1927  ;;  %13207 = vst [vmem:[#allocation199_spill] sm:$0xff] %v9578_v36 }
 0x892   : > { %13199 = vst [vmem:[#allocation193_spill] sm:$0xff] %v9552_v30  ;;  %13200 = vst [vmem:[#allocation194_spill] sm:$0xff] %v9554_v31  ;;  %vm12501_vm10 = vcmp.eq.s32.totalorder %v9557_v46, 1  ;;  %v13217_v30 = vld [vmem:[#allocation36_spill] sm:$0xff] }
 0x893   : > { %13202 = vst [vmem:[#allocation195_spill] sm:$0xff] %v9557_v46  ;;  %v1968_v60 = vsel %vm12501_vm10, %v9433_v33, -1e+30  ;;  %v3614_v2 = vsel %vm12501_vm10, %v9439_v28, -1e+30  ;;  %vm12549_vm10 = vcmp.gt.f32.partialorder %v9267_v14, 0.0 }
 0x894   : > { %v9567_v16 = vmax.f32 %v1976_v34, %v1968_v60  ;;  %v9569_v35 = vmax.f32 %v3622_v63, %v3614_v2  ;;  %v13214_v63 = vld [vmem:[#allocation77_spill] sm:$0xff] }
 0x895   : > { %2001 = vperm.xlu1 %6521, %v13205_v59   ;;  %v9572_v7 = vpop.permute.xlu0 %1930  ;;  %v3429_v60 = vmul.f32 %v8803_v61, %v13214_v63  ;;  %v13220_v61 = vld [vmem:[#allocation121_spill] sm:$0xff] }
 0x896   : > { %13203 = vst [vmem:[#allocation196_spill] sm:$0xff] %v9567_v16  ;;  %13204 = vst [vmem:[#allocation197_spill] sm:$0xff] %v9569_v35  ;;  %vm12534_vm14 = vcmp.eq.s32.totalorder %v9572_v7, 1  ;;  %v13232_v35 = vld [vmem:[#allocation145_spill] sm:$0xff]  ;;  %v13255_v16 = vld [vmem:[#allocation27_spill] sm:$0xff] }
 0x897   : > { %13206 = vst [vmem:[#allocation198_spill] sm:$0xff] %v9572_v7  ;;  %v9583_v46 = vsel %vm12534_vm14, %v9140_v12, -1e+30  ;;  %v9588_v34 = vsel %vm12534_vm14, %v9578_v36, -1e+30 }
 0x898   : > { %13208 = vst [vmem:[#allocation200_spill] sm:$0xff] %v9583_v46  ;;  %13209 = vst [vmem:[#allocation201_spill] sm:$0xff] %v9588_v34  ;;  %v9602_v7 = vsel %vm12549_vm10, %v9297_v40, -1e+30  ;;  %v13215_v34 = vld [vmem:[#allocation78_spill] sm:$0xff] }
 0x899   : > { %2004 = vperm.xlu1 %6521, %v13210_v49   ;;  %v9596_v2 = vpop.permute.xlu0 %1939  ;;  %13212 = vst [vmem:[#allocation203_spill] sm:$0xff] %v9602_v7  ;;  %v3430_v31 = vmul.f32 %v8835_v32, %v13215_v34  ;;  %v13221_v34 = vld [vmem:[#allocation80_spill] sm:$0xff] }
 0x89a   : > { %13211 = vst [vmem:[#allocation202_spill] sm:$0xff] %v9596_v2  ;;  %vm12539_vm4 = vcmp.eq.s32.totalorder %v9596_v2, 1  ;;  %v3432_v32 = vmul.f32 %v8911_v26, %v13221_v34  ;;  %v13222_v2 = vld [vmem:[#allocation81_spill] sm:$0xff] }
 0x89b   : > { %v3365_v12 = vpop.trf.xlu1  ;;  %v9607_v56 = vsel %vm12539_vm4, %v9174_v44, -1e+30  ;;  %v9616_v46 = vsel %vm12539_vm4, %v9602_v7, -1e+30  ;;  %v3431_v44 = vmul.f32 %v8872_v39, %v13219_v55  ;;  %v3433_v11 = vmul.f32 %v8951_v21, %v13222_v2  ;;  %v13230_v21 = vld [vmem:[#allocation83_spill] sm:$0xff] }
 0x89c   : > { %13213 = vst [vmem:[#allocation204_spill] sm:$0xff] %v9607_v56  ;;  %13216 = vst [vmem:[#allocation77_spill] sm:$0xff] %v9616_v46  ;;  %v9619_v40 = vrot.slane %v3365_v12, %v13217_v30  ;;  %v3434_v12 = vmul.f32 %v8987_v1, %v13223_v24  ;;  %v13224_v30 = vld [vmem:[#allocation29_spill] sm:$0xff]  ;;  %v13227_v1 = vld [vmem:[#allocation123_spill] sm:$0xff] }
 0x89d   : > { %2010 = vperm.xlu1 %6521, %v13220_v61   ;;  %v13253_v56 = vld [vmem:[#allocation30_spill] sm:$0xff] }
 0x89e   : > { %13218 = vst [vmem:[#allocation78_spill] sm:$0xff] %v9619_v40  ;;  %v9636_v5 = vmul.f32 %v13224_v30, %v9619_v40  ;;  %v3449_v55 = vmul.f32 %v9619_v40, %v3429_v60  ;;  %v3450_v39 = vmul.f32 %v9619_v40, %v3430_v31  ;;  %v3451_v63 = vmul.f32 %v9619_v40, %v3431_v44  ;;  %v9641_v46 = vpop.permute.xlu0 %1998  ;;  %v13228_v31 = vld [vmem:[#allocation34_spill] sm:$0xff] }
 0x89f   : > { %13226 = vst [vmem:[#allocation80_spill] sm:$0xff] %v9641_v46  ;;  %v3452_v34 = vmul.f32 %v9619_v40, %v3432_v32  ;;  %v3453_v26 = vmul.f32 %v9619_v40, %v3433_v11  ;;  %v3454_v2 = vmul.f32 %v9619_v40, %v3434_v12  ;;  %vm12640_vm14 = vcmp.eq.s32.totalorder %v9641_v46, 1  ;;  %v13231_v11 = vld [vmem:[#allocation84_spill] sm:$0xff]  ;;  %v13326_v46 = vld [vmem:[#allocation57_spill] sm:$0xff] }
 0x8a0   : > { %13225 = vst [vmem:[#allocation79_spill] sm:$0xff] %v9636_v5  ;;  %4562 = vadd.xlane.f32.xlu0 %v9636_v5  ;;  %v3918_v24 = vpack.c.bf16 %v3450_v39, %v3449_v55  ;;  %v9651_v44 = vmul.f32 %v9619_v40, %v13228_v31  ;;  %v3435_v32 = vmul.f32 %v9035_v18, %v13230_v21  ;;  %v13233_v39 = vld [vmem:[#allocation33_spill] sm:$0xff]  ;;  %v13237_v5 = vld [vmem:[#allocation86_spill] sm:$0xff] }
 0x8a1   : > { %2016 = vperm.xlu1 %6521, %v13227_v1   ;;  %v3919_v30 = vpack.c.bf16 %v3452_v34, %v3451_v63  ;;  %v3920_v60 = vpack.c.bf16 %v3454_v2, %v3453_v26  ;;  %v3436_v12 = vmul.f32 %v13232_v35, %v13231_v11  ;;  %v9659_v55 = vmul.f32 %v13233_v39, %v9619_v40  ;;  %v13236_v34 = vld [vmem:[#allocation85_spill] sm:$0xff]  ;;  %v13238_v11 = vld [vmem:[#allocation20_spill] sm:$0xff]  ;;  %v13239_v39 = vld [vmem:[#allocation22_spill] sm:$0xff] }
 0x8a2   : > { %6359 = vmatprep.mubr.bf16.mxu1 %v3918_v24  ;;  %13229 = vst [vmem:[#allocation81_spill] sm:$0xff] %v9651_v44  ;;  %v9661_v63 = vpop.permute.xlu0 %2007  ;;  %v3437_v24 = vmul.f32 %v9114_v29, %v13236_v34  ;;  %v3438_v31 = vmul.f32 %v9159_v23, %v13237_v5  ;;  %v2059_v26 = vsel %vm12640_vm14, %v8814_v22, -1e+30  ;;  %v3455_v21 = vmul.f32 %v9619_v40, %v3435_v32 }
 0x8a3   : > { %6360 = vmatmul.mubr.bf16.vlgmr.msra.gmra.mrb[40].mxu1 %v3919_v30  ;;  %13234 = vst [vmem:[#allocation82_spill] sm:$0xff] %v9659_v55  ;;  %13235 = vst [vmem:[#allocation29_spill] sm:$0xff] %v9661_v63  ;;  %vm12611_vm4 = vcmp.eq.s32.totalorder %v9661_v63, 1  ;;  %v3456_v2 = vmul.f32 %v9619_v40, %v3436_v12  ;;  %v9685_v34 = vmul.f32 %v9619_v40, %v13239_v39  ;;  %v13245_v39 = vld [vmem:[#allocation26_spill] sm:$0xff] }
 0x8a4   : > { %4566 = vadd.xlane.f32.xlu0 %v9651_v44  ;;  %6363 = vmatprep.mubr.bf16.mxu1 %v3920_v60  ;;  %v2062_v30 = vsel %vm12611_vm4, %v8863_v42, -1e+30  ;;  %v3457_v5 = vmul.f32 %v9619_v40, %v3437_v24  ;;  %v9681_v60 = vmul.f32 %v9619_v40, %v13238_v11  ;;  %v3458_v12 = vmul.f32 %v9619_v40, %v3438_v31  ;;  %v13240_v44 = vld [vmem:[#allocation19_spill] sm:$0xff]  ;;  %v13241_v42 = vld [vmem:[#allocation21_spill] sm:$0xff]  ;;  %v13243_v11 = vld [vmem:[#allocation24_spill] sm:$0xff] }
 0x8a5   : > { %6522 = vset.pattern.permute.xlu1 %v13180_v20  ;;  %v2074_v32 = vmax.f32 %v2059_v26, %v2062_v30  ;;  %v9691_v23 = vmul.f32 %v13240_v44, %v9619_v40  ;;  %v9695_v24 = vmul.f32 %v13241_v42, %v9619_v40  ;;  %v9701_v35 = vmul.f32 %v9619_v40, %v13243_v11  ;;  %v13247_v31 = vld [vmem:[#allocation23_spill] sm:$0xff]  ;;  %v13249_v44 = vld [vmem:[#allocation25_spill] sm:$0xff]  ;;  %v13251_v42 = vld [vmem:[#allocation28_spill] sm:$0xff] }
 0x8a6   : > { %1921 = vperm.xlu1 %6522, %v13195_v37   ;;  %v9697_v29 = vpop.permute.xlu0 %2013  ;;  %v9705_v18 = vmul.f32 %v9619_v40, %v13245_v39  ;;  %v9709_v26 = vmul.f32 %v13247_v31, %v9619_v40  ;;  %v9713_v30 = vmul.f32 %v13249_v44, %v9619_v40  ;;  %v9719_v11 = vmul.f32 %v9619_v40, %v13251_v42  ;;  %v13259_v42 = vld [vmem:[#allocation31_spill] sm:$0xff]  ;;  %v13320_v63 = vld [vmem:[#allocation146_spill] sm:$0xff] }
 0x8a7   : > { %13242 = vst [vmem:[#allocation34_spill] sm:$0xff] %v9697_v29  ;;  %13244 = vst [vmem:[#allocation83_spill] sm:$0xff] %v9701_v35  ;;  %vm12615_vm10 = vcmp.eq.s32.totalorder %v9697_v29, 1  ;;  %v9723_v39 = vmul.f32 %v9619_v40, %v13253_v56  ;;  %v9727_v31 = vmul.f32 %v13255_v16, %v9619_v40  ;;  %v3922_v56 = vpack.c.bf16 %v3458_v12, %v3457_v5 }
 0x8a8   : > { %13246 = vst [vmem:[#allocation84_spill] sm:$0xff] %v9705_v18  ;;  %13248 = vst [vmem:[#allocation33_spill] sm:$0xff] %v9709_v26  ;;  %4570 = vadd.xlane.f32.xlu0 %v9659_v55  ;;  %v3921_v26 = vpack.c.bf16 %v3456_v2, %v3455_v21  ;;  %v2064_v44 = vsel %vm12615_vm10, %v8881_v4, -1e+30  ;;  %v13257_v55 = vld [vmem:[#allocation32_spill] sm:$0xff]  ;;  %v13262_v21 = vld [vmem:[#allocation87_spill] sm:$0xff] }
 0x8a9   : > { %13250 = vst [vmem:[#allocation85_spill] sm:$0xff] %v9713_v30  ;;  %13252 = vst [vmem:[#allocation86_spill] sm:$0xff] %v9719_v11  ;;  %v9734_v30 = vmul.f32 %v9619_v40, %v13257_v55  ;;  %v9738_v11 = vmul.f32 %v13259_v42, %v9619_v40  ;;  %v13263_v2 = vld [vmem:[#allocation75_spill] sm:$0xff]  ;;  %v13264_v4 = vld [vmem:[#allocation88_spill] sm:$0xff] }
 0x8aa   : > { %13254 = vst [vmem:[#allocation20_spill] sm:$0xff] %v9723_v39  ;;  %13256 = vst [vmem:[#allocation22_spill] sm:$0xff] %v9727_v31  ;;  %1924 = vperm.xlu1 %6522, %v9474_v25   ;;  %v9741_v39 = vmax.f32 %v2074_v32, %v2064_v44  ;;  %v9743_v16 = vpop.permute.xlu0 %2019  ;;  %v3439_v31 = vmul.f32 %v13263_v2, %v13262_v21  ;;  %v3440_v18 = vmul.f32 %v9226_v6, %v13264_v4  ;;  %v13265_v55 = vld [vmem:[#allocation89_spill] sm:$0xff]  ;;  %v12565_v44 = vmov 4  }
 0x8ab   : > { %13258 = vst [vmem:[#allocation19_spill] sm:$0xff] %v9734_v30  ;;  %13260 = vst [vmem:[#allocation21_spill] sm:$0xff] %v9738_v11  ;;  %6364 = vmatmul.mubr.bf16.gmra.mrb[44].mxu1 %v3921_v26  ;;  %vm12610_vm2 = vcmp.eq.s32.totalorder %v9743_v16, 1  ;;  %v3441_v42 = vmul.f32 %v9246_v53, %v13265_v55  ;;  %v13266_v11 = vld [vmem:[#allocation90_spill] sm:$0xff]  ;;  %v13268_v53 = vld [vmem:[#allocation92_spill] sm:$0xff] }
 0x8ac   : > { %13261 = vst [vmem:[#allocation24_spill] sm:$0xff] %v9743_v16  ;;  %6367 = vmatprep.mubr.bf16.mxu1 %v3922_v56  ;;  %v3442_v5 = vmul.f32 %v9260_v51, %v13266_v11  ;;  %v9757_v32 = vsel %vm12610_vm2, %v9407_v54, -1e+30  ;;  %v3459_v12 = vmul.f32 %v9619_v40, %v3439_v31  ;;  %v3460_v26 = vmul.f32 %v9619_v40, %v3440_v18  ;;  %v13267_v31 = vld [vmem:[#allocation91_spill] sm:$0xff] }
 0x8ad   : > { %v3461_v56 = vmul.f32 %v9619_v40, %v3441_v42  ;;  %v3443_v18 = vmul.f32 %v9280_v45, %v13267_v31  ;;  %v6583_v31 = vld [vmem:[#allocation8 + $0x50] sm:$0xff]  }
 0x8ae   : > { %6523 = vset.pattern.permute.xlu1 %v12565_v44  ;;  %v3462_v21 = vmul.f32 %v9619_v40, %v3442_v5  ;;  %v3923_v11 = vpack.c.bf16 %v3460_v26, %v3459_v12  ;;  %v3444_v44 = vmul.f32 %v9267_v14, %v13268_v53  ;;  %v6579_v12 = vld [vmem:[#allocation8 + $0x40] sm:$0xff]   ;;  %v6757_v53 = vld [vmem:[%s7321_s25 + $0x70] sm:$0xff]  ;;  %s5908_s25 = sshll.u32 %s7069_s13, 7  ;;  %s6906_s13 = sshll.u32 %s6997_s24, 4  ;;  %s6907_s13 = int_to_ptr.vmem [resolvable:$false] %s6906_s13 }
 0x8af   : > { %2096 = vperm.xlu1 %6523, %v13201_v50   ;;  %v3463_v4 = vmul.f32 %v9619_v40, %v3443_v18  ;;  %v6580_v26 = vld [vmem:[#allocation8] sm:$0xff]   ;;  %6117 = vmatprep.subr.bf16.mxu0 %v6579_v12  ;;  %vm1673_vm1 = vcmp.gt.f32.partialorder %v6757_v53, 0.0  ;;  %v6584_v18 = vld [vmem:[#allocation8 + $0x10] sm:$0xff]   ;;  %v6589_v53 = vld [vmem:[#allocation8 + $0x68] sm:$0xff]   ;;  %s12129_s21 = scalar_lea.hbm %s13943_s29, %s5908_s25  ;;  %s6908_s22 = scalar_lea.vmem %s6907_s13, 256 }
 0x8b0   : > { %v3924_v55 = vpack.c.bf16 %v3462_v21, %v3461_v56  ;;  %v3464_v42 = vmul.f32 %v9619_v40, %v3444_v44  ;;  %6118 = vmatpush3.bf16.msra.mxu0 %v6580_v26  ;;  %v13270_v44 = vld [vmem:[#allocation129_spill] sm:$0xff]  ;;  %v6587_v12 = vld [vmem:[#allocation8 + $0x60] sm:$0xff]   ;;  %p6909_p1 = scmp.lt.s32.totalorder %s12124_s30, %s6907_s13  ;;  %p6910_p2 = scmp.lt.s32.totalorder %s6908_s22, %s6902_s19 }
 0x8b1   : > { %v6581_v56 = vld [vmem:[#allocation8 + $0x48] sm:$0xff]   ;;  %v6588_v26 = vld [vmem:[#allocation8 + $0x20] sm:$0xff]  }
 0x8b2   : > { %v3925_v5 = vpack.c.bf16 %v3464_v42, %v3463_v4  ;;  %v9783_v4 = vsel %vm1673_vm1, 1, %v13184_v9  ;;  %v6582_v21 = vld [vmem:[#allocation8 + $0x8] sm:$0xff]   ;;  %6119 = vmatprep.subr.bf16.mxu0 %v6581_v56  ;;  %v6585_v42 = vld [vmem:[#allocation8 + $0x58] sm:$0xff]   ;;  %vm12573_vm1 = vcmp.eq.s32.totalorder %v9492_v15, 1  ;;  %p6911_p12 = por %p6910_p2, %p6909_p1 }
 0x8b3   : > { %2102 = vperm.xlu1 %6523, %v13205_v59   ;;  %6368 = vmatmul.mubr.bf16.gmra.mrb[48].mxu1 %v3923_v11  ;;  %13271 = vst [vmem:[#allocation26_spill] sm:$0xff] %v9783_v4  ;;  %v13272_v11 = vld [vmem:[#allocation125_spill] sm:$0xff] }
 0x8b4   : > { %6371 = vmatprep.mubr.bf16.mxu1 %v3924_v55  ;;  %6120 = vmatpush3.bf16.msra.mxu0 %v6582_v21  ;;  %v13273_v55 = vld [vmem:[#allocation126_spill] sm:$0xff]  ;;  %v6590_v56 = vld [vmem:[#allocation8 + $0x28] sm:$0xff]   ;;  %p6912_p9 = pnand %p6911_p12, %p6905_p11 }
 0x8b5   : > { %6121 = vmatprep.subr.bf16.mxu0 %v6583_v31  ;;  %v6591_v21 = vld [vmem:[#allocation8 + $0x70] sm:$0xff]  }
 0x8b6   : > { %v6592_v31 = vld [vmem:[#allocation8 + $0x30] sm:$0xff]  }
 0x8b7   : > { %2105 = vperm.xlu1 %6523, %v13210_v49  }
 0x8b8   : > { %6122 = vmatpush3.bf16.msra.mxu0 %v6584_v18 }
 0x8b9   : > { %6123 = vmatprep.subr.bf16.mxu0 %v6585_v42  ;;  %v9805_v42 = vsel %vm12573_vm1, %v8869_v0, -1e+30 }
 0x8bb   : > { %2111 = vperm.xlu1 %6523, %v13220_v61   ;;  %6372 = vmatmul.mubr.bf16.gmra.mrb[52].mxu1 %v3925_v5  ;;  %v12570_v5 = vmov 5  }
 0x8bc   : > { %6391 = vmatprep.mubr.msk.bf16.mxu1 %vm13269_vm15, %v12899_v43 }
 0x8bf   : > { %2117 = vperm.xlu1 %6523, %v13227_v1  }
 0x8c3   : > { %6524 = vset.pattern.permute.xlu1 %v13184_v9 }
 0x8c4   : > { %1731 = vperm.xlu1 %6524, %v13270_v44  }
 0x8c8   : > { %1734 = vperm.xlu1 %6524, %v9783_v4  }
 0x8cc   : > { %6526 = vset.pattern.permute.xlu1 %v13192_v13  ;;  %v6586_v13 = vld [vmem:[#allocation8 + $0x18] sm:$0xff]  }
 0x8cd   : > { %1829 = vperm.xlu1 %6526, %v13272_v11   ;;  %6124 = vmatpush3.bf16.msra.mxu0 %v6586_v13  ;;  %v9811_v13 = vsel %vm12573_vm1, %v9044_v62, -1e+30 }
 0x8ce   : > { %6125 = vmatprep.subr.bf16.mxu0 %v6587_v12 }
 0x8d1   : > { %1835 = vperm.xlu1 %6526, %v9783_v4   ;;  %6126 = vmatpush3.bf16.msra.mxu0 %v6588_v26  ;;  %v6593_v26 = vld [vmem:[#allocation8 + $0x78] sm:$0xff]  }
 0x8d2   : > { %6127 = vmatprep.subr.bf16.mxu0 %v6589_v53  ;;  %v6594_v53 = vld [vmem:[#allocation8 + $0x38] sm:$0xff]  }
 0x8d5   : > { %1838 = vperm.xlu1 %6526, %v13273_v55   ;;  %6128 = vmatpush3.bf16.msra.mxu0 %v6590_v56  ;;  %v13307_v55 = vld [vmem:[#allocation105_spill] sm:$0xff] }
 0x8d6   : > { %6129 = vmatprep.subr.bf16.mxu0 %v6591_v21 }
 0x8d9   : > { %6528 = vset.pattern.permute.xlu1 %v13198_v41  ;;  %6130 = vmatpush3.bf16.msra.mxu0 %v6592_v31 }
 0x8da   : > { %2022 = vperm.xlu1 %6528, %v13195_v37   ;;  %6131 = vmatprep.subr.bf16.mxu0 %v6593_v26  ;;  %v13276_v26 = vld [vmem:[#allocation101_spill] sm:$0xff] }
 0x8dd   : > { %6132 = vmatpush3.bf16.msra.mxu0 %v6594_v53  ;;  %v13280_v53 = vld [vmem:[#allocation99_spill] sm:$0xff] }
 0x8de   : > { %2025 = vperm.xlu1 %6528, %v9474_v25   ;;  %6395 = vmatprep.subr.bf16.mxu0 %v12899_v43 }
 0x8e2   : > { %6529 = vset.pattern.permute.xlu1 %v12570_v5  ;;  %v13277_v5 = vld [vmem:[#allocation113_spill] sm:$0xff] }
 0x8e3   : > { %2197 = vperm.xlu1 %6529, %v13201_v50   ;;  %v13278_v21 = vmax.f32 %v13276_v26, %v13277_v5  ;;  %v13288_v5 = vld [vmem:[#allocation102_spill] sm:$0xff]  ;;  %v13292_v26 = vld [vmem:[#allocation148_spill] sm:$0xff] }
 0x8e7   : > { %2203 = vperm.xlu1 %6529, %v13205_v59  }
 0x8eb   : > { %2206 = vperm.xlu1 %6529, %v13210_v49   ;;  %v13285_v49 = vld [vmem:[#allocation65_spill] sm:$0xff] }
 0x8ef   : > { %2212 = vperm.xlu1 %6529, %v13220_v61   ;;  %v13284_v61 = vld [vmem:[#allocation67_spill] sm:$0xff] }
 0x8f3   : > { %2218 = vperm.xlu1 %6529, %v13227_v1  }
 0x8f5   : > { %v9800_v18 = vpop.permute.xlu1 %1897 }
 0x8f6   : > { %13274 = vst [vmem:[#allocation23_spill] sm:$0xff] %v9800_v18  ;;  %vm12574_vm0 = vcmp.eq.s32.totalorder %v9800_v18, 1 }
 0x8f7   : > { %v9816_v12 = vsel %vm12574_vm0, %v8814_v22, -1e+30  ;;  %6530 = vset.pattern.permute.xlu1 %v13180_v20  ;;  %v9822_v56 = vsel %vm12574_vm0, %v9022_v19, -1e+30  ;;  %vm3475_vm0 = vcmp.gt.f32.partialorder %v13263_v2, 0.0  ;;  %v13279_v22 = vld [vmem:[#allocation109_spill] sm:$0xff] }
 0x8f8   : > { %1933 = vperm.xlu1 %6530, %v13270_v44   ;;  %v13281_v40 = vmax.f32 %v13279_v22, %v13280_v53  ;;  %v9865_v22 = vsel %vm3475_vm0, %v13288_v5, -1e+30 }
 0x8f9   : > { %13289 = vst [vmem:[#allocation27_spill] sm:$0xff] %v9865_v22 }
 0x8fa   : > { %v9829_v9 = vpop.permute.xlu1 %1716 }
 0x8fb   : > { %13275 = vst [vmem:[#allocation25_spill] sm:$0xff] %v9829_v9  ;;  %vm12586_vm1 = vcmp.eq.s32.totalorder %v9829_v9, 1  ;;  %v9854_v9 = vsel %vm12593_vm5, %v9578_v36, -1e+30  ;;  %vm3478_vm5 = vcmp.gt.f32.partialorder %v9260_v51, 0.0 }
 0x8fc   : > { %v1763_v20 = vsel %vm12586_vm1, %v9407_v54, -1e+30  ;;  %1936 = vperm.xlu1 %6530, %v9783_v4   ;;  %v3537_v31 = vsel %vm12586_vm1, %v9413_v8, -1e+30  ;;  %vm13286_vm1 = vcmp.gt.f32.partialorder %v13285_v49, 0.0 }
 0x8fd   : > { %v1780_v15 = vmax.f32 %v1763_v20, %v13278_v21  ;;  %v9847_v1 = vmax.f32 %v13281_v40, %v3537_v31  ;;  %v9859_v59 = vsel %vm13286_vm1, %v13284_v61, -1e+30  ;;  %v13290_v61 = vmov 4   ;;  %v13291_v31 = vld [vmem:[#allocation111_spill] sm:$0xff] }
 0x8fe   : > { %v9849_v54 = vpop.permute.xlu1 %1722  ;;  %13287 = vst [vmem:[#allocation30_spill] sm:$0xff] %v9859_v59  ;;  %v13293_v53 = vmax.f32 %v13291_v31, %v13292_v26  ;;  %v9900_v26 = vsel %vm12597_vm12, %v9602_v7, -1e+30  ;;  %vm13303_vm12 = vcmp.gt.f32.partialorder %v13137_v57, 0.0 }
 0x8ff   : > { %13282 = vst [vmem:[#allocation28_spill] sm:$0xff] %v9849_v54  ;;  %vm12595_vm11 = vcmp.eq.s32.totalorder %v9849_v54, 1 }
 0x900   : > { %v1765_v21 = vsel %vm12595_vm11, %v9859_v59, -1e+30  ;;  %v3539_v49 = vsel %vm12595_vm11, %v9865_v22, -1e+30  ;;  %6532 = vset.pattern.permute.xlu1 %v13290_v61  ;;  %vm12606_vm11 = vcmp.eq.s32.totalorder %v9453_v10, 1  ;;  %v13313_v10 = vld [vmem:[#allocation167_spill] sm:$0xff] }
 0x901   : > { %v1783_v20 = vmax.f32 %v1765_v21, %v1780_v15  ;;  %v9879_v18 = vmax.f32 %v13293_v53, %v3539_v49  ;;  %v13295_v15 = vld [vmem:[#allocation154_spill] sm:$0xff]  ;;  %v13296_v21 = vld [vmem:[#allocation153_spill] sm:$0xff] }
 0x902   : > { %v9881_v5 = vpop.permute.xlu1 %1725  ;;  %v13297_v4 = vmax.f32 %v13295_v15, %v13296_v21  ;;  %v13302_v15 = vld [vmem:[#allocation72_spill] sm:$0xff] }
 0x903   : > { %13294 = vst [vmem:[#allocation32_spill] sm:$0xff] %v9881_v5  ;;  %vm12596_vm1 = vcmp.eq.s32.totalorder %v9881_v5, 1  ;;  %v9918_v21 = vsel %vm13303_vm12, %v13302_v15, -1e+30  ;;  %v13305_v5 = vmax.f32 %v9328_v3, %v9341_v58 }
 0x904   : > { %v1766_v40 = vsel %vm12596_vm1, %v9433_v33, -1e+30  ;;  %v3540_v54 = vsel %vm12596_vm1, %v9439_v28, -1e+30  ;;  %13304 = vst [vmem:[#allocation87_spill] sm:$0xff] %v9918_v21  ;;  %v13306_v28 = vmax.f32 %v9334_v52, %v9346_v17  ;;  %v13314_v52 = vld [vmem:[#allocation169_spill] sm:$0xff] }
 0x905   : > { %v9890_v50 = vmax.f32 %v1766_v40, %v1783_v20  ;;  %v9895_v31 = vmax.f32 %v13297_v4, %v3540_v54  ;;  %v13300_v40 = vld [vmem:[#allocation60_spill] sm:$0xff]  ;;  %v9938_v57 = vsel %vm12606_vm11, %v9918_v21, -1e+30  ;;  %v13315_v37 = vmax.f32 %v13313_v10, %v13314_v52 }
 0x906   : > { %v13301_v4 = vld [vmem:[#allocation156_spill] sm:$0xff] }
 0x907   : > { %v9902_v53 = vpop.permute.xlu1 %1820 }
 0x908   : > { %13299 = vst [vmem:[#allocation31_spill] sm:$0xff] %v9902_v53  ;;  %vm12656_vm1 = vcmp.eq.s32.totalorder %v9902_v53, 1  ;;  %v9933_v53 = vsel %vm3478_vm5, %v13307_v55, -1e+30  ;;  %v13310_v55 = vld [vmem:[#allocation166_spill] sm:$0xff] }
 0x909   : > { %v1865_v54 = vsel %vm12656_vm1, %v13300_v40, -1e+30  ;;  %v3575_v20 = vsel %vm12656_vm1, %v13301_v4, -1e+30  ;;  %13308 = vst [vmem:[#allocation88_spill] sm:$0xff] %v9933_v53 }
 0x90a   : > { %v9923_v49 = vmax.f32 %v13305_v5, %v1865_v54  ;;  %v9928_v33 = vmax.f32 %v13306_v28, %v3575_v20  ;;  %v9945_v3 = vsel %vm12606_vm11, %v9933_v53, -1e+30  ;;  %v13311_v5 = vld [vmem:[#allocation168_spill] sm:$0xff] }
 0x90b   : > { %v9940_v15 = vpop.permute.xlu1 %1823  ;;  %v13312_v54 = vmax.f32 %v13310_v55, %v13311_v5  ;;  %v3648_v55 = vsel %vm12610_vm2, %v9413_v8, -1e+30 }
 0x90c   : > { %13309 = vst [vmem:[#allocation89_spill] sm:$0xff] %v9940_v15  ;;  %vm12608_vm12 = vcmp.eq.s32.totalorder %v9940_v15, 1 }
 0x90d   : > { %v1866_v58 = vsel %vm12608_vm12, %v9859_v59, -1e+30  ;;  %v3576_v17 = vsel %vm12608_vm12, %v9865_v22, -1e+30 }
 0x90e   : > { %v9961_v20 = vmax.f32 %v13312_v54, %v1866_v58  ;;  %v9966_v61 = vmax.f32 %v13315_v37, %v3576_v17  ;;  %v3644_v58 = vsel %vm12611_vm4, %v8996_v27, -1e+30  ;;  %v13317_v37 = vmax.f32 %v9757_v32, %v9741_v39  ;;  %v13321_v32 = vld [vmem:[#allocation147_spill] sm:$0xff] }
 0x910   : > { %v9968_v44 = vpop.permute.xlu1 %1995 }
 0x911   : > { %13316 = vst [vmem:[#allocation90_spill] sm:$0xff] %v9968_v44  ;;  %vm12641_vm11 = vcmp.eq.s32.totalorder %v9968_v44, 1  ;;  %v13327_v44 = vld [vmem:[#allocation152_spill] sm:$0xff] }
 0x912   : > { %v2058_v28 = vsel %vm12641_vm11, %v8808_v47, -1e+30  ;;  %v3640_v15 = vsel %vm12641_vm11, %v8974_v48, -1e+30 }
 0x913   : > { %v2079_v10 = vmax.f32 %v13317_v37, %v2058_v28  ;;  %v3656_v52 = vmax.f32 %v3640_v15, %v3644_v58  ;;  %v10002_v15 = vsel %vm12615_vm10, %v13321_v32, -1e+30  ;;  %v13325_v32 = vld [vmem:[#allocation136_spill] sm:$0xff] }
 0x914   : > { %v9983_v17 = vpop.permute.xlu1 %2001 }
 0x915   : > { %13318 = vst [vmem:[#allocation91_spill] sm:$0xff] %v9983_v17  ;;  %vm12639_vm12 = vcmp.eq.s32.totalorder %v9983_v17, 1  ;;  %v9989_v5 = vmax.f32 %v3656_v52, %v3648_v55  ;;  %v10014_v55 = vsel %vm12640_vm14, %v9022_v19, -1e+30 }
 0x916   : > { %v2060_v54 = vsel %vm12639_vm12, %v8823_v38, -1e+30  ;;  %v9997_v39 = vsel %vm12639_vm12, %v13320_v63, -1e+30 }
 0x917   : > { %13319 = vst [vmem:[#allocation92_spill] sm:$0xff] %v9989_v5  ;;  %v2080_v28 = vmax.f32 %v2060_v54, %v2079_v10 }
 0x918   : > { %v10006_v37 = vpop.permute.xlu1 %2004 }
 0x919   : > { %13322 = vst [vmem:[#allocation101_spill] sm:$0xff] %v10006_v37  ;;  %vm12642_vm4 = vcmp.eq.s32.totalorder %v10006_v37, 1 }
 0x91a   : > { %v2061_v17 = vsel %vm12642_vm4, %v13325_v32, -1e+30 }
 0x91c   : > { %v10008_v52 = vpop.permute.xlu1 %2010 }
 0x91d   : > { %13323 = vst [vmem:[#allocation113_spill] sm:$0xff] %v10008_v52  ;;  %vm12625_vm2 = vcmp.eq.s32.totalorder %v10008_v52, 1 }
 0x91e   : > { %v2063_v10 = vsel %vm12625_vm2, %v8869_v0, -1e+30  ;;  %v10023_v54 = vsel %vm12625_vm2, %v9044_v62, -1e+30 }
 0x91f   : > { %v2081_v58 = vmax.f32 %v2063_v10, %v2080_v28  ;;  %v10040_v28 = vsel %vm12642_vm4, %v13327_v44, -1e+30  ;;  %v13329_v10 = vld [vmem:[#allocation151_spill] sm:$0xff] }
 0x920   : > { %4540 = vadd.xlane.f32.xlu1 %v9681_v60  ;;  %v10028_v29 = vpop.permute.xlu1 %2016  ;;  %13328 = vst [vmem:[#allocation99_spill] sm:$0xff] %v10040_v28 }
 0x921   : > { %13324 = vst [vmem:[#allocation109_spill] sm:$0xff] %v10028_v29  ;;  %vm12628_vm10 = vcmp.eq.s32.totalorder %v10028_v29, 1 }
 0x922   : > { %v2065_v52 = vsel %vm12628_vm10, %v13326_v46, -1e+30  ;;  %v10045_v16 = vsel %vm12628_vm10, %v13329_v10, -1e+30 }
 0x923   : > { %13330 = vst [vmem:[#allocation67_spill] sm:$0xff] %v10045_v16  ;;  %v2077_v27 = vmax.f32 %v2061_v17, %v2065_v52  ;;  %v13332_v17 = vmax.f32 %v9816_v12, %v9805_v42  ;;  %v13335_v12 = vld [vmem:[#allocation187_spill] sm:$0xff] }
 0x924   : > { %4542 = vadd.xlane.f32.xlu1 %v9685_v34 }
 0x925   : > { %v10050_v62 = vmax.f32 %v2077_v27, %v2081_v58  ;;  %v10052_v63 = vpop.permute.xlu1 %1921  ;;  %v13333_v27 = vmax.f32 %v9822_v56, %v9811_v13  ;;  %v13339_v13 = vld [vmem:[#allocation190_spill] sm:$0xff] }
 0x926   : > { %13331 = vst [vmem:[#allocation65_spill] sm:$0xff] %v10052_v63  ;;  %vm12649_vm2 = vcmp.eq.s32.totalorder %v10052_v63, 1 }
 0x927   : > { %v1966_v37 = vsel %vm12649_vm2, %v13300_v40, -1e+30  ;;  %v3612_v29 = vsel %vm12649_vm2, %v13301_v4, -1e+30 }
 0x928   : > { %v10064_v52 = vmax.f32 %v13332_v17, %v1966_v37  ;;  %4544 = vadd.xlane.f32.xlu1 %v9691_v23  ;;  %v10070_v58 = vmax.f32 %v13333_v27, %v3612_v29  ;;  %v13336_v37 = vld [vmem:[#allocation189_spill] sm:$0xff]  ;;  %v13338_v29 = vld [vmem:[#allocation188_spill] sm:$0xff] }
 0x929   : > { %v10072_v19 = vpop.permute.xlu1 %1924  ;;  %v13337_v17 = vmax.f32 %v13335_v12, %v13336_v37  ;;  %v13340_v56 = vmax.f32 %v13338_v29, %v13339_v13  ;;  %v13344_v37 = vld [vmem:[#allocation84_spill] sm:$0xff]  ;;  %v13348_v13 = vld [vmem:[#allocation85_spill] sm:$0xff] }
 0x92a   : > { %13334 = vst [vmem:[#allocation102_spill] sm:$0xff] %v10072_v19  ;;  %vm12638_vm10 = vcmp.eq.s32.totalorder %v10072_v19, 1 }
 0x92b   : > { %v1967_v63 = vsel %vm12638_vm10, %v9859_v59, -1e+30  ;;  %v3613_v42 = vsel %vm12638_vm10, %v9865_v22, -1e+30 }
 0x92c   : > { %v10084_v5 = vmax.f32 %v13337_v17, %v1967_v63  ;;  %4546 = vadd.xlane.f32.xlu1 %v9695_v24  ;;  %v10090_v27 = vmax.f32 %v13340_v56, %v3613_v42 }
 0x92d   : > { %v10092_v8 = vpop.f32.mrb[36].mxu1 }
 0x92e   : > { %13341 = vst [vmem:[#allocation111_spill] sm:$0xff] %v10092_v8  ;;  %v10094_v48 = vpop.permute.xlu1 %2096  ;;  %v6341_v16 = vpop.f32.mrb[37].mxu1 }
 0x92f   : > { %13342 = vst [vmem:[#allocation148_spill] sm:$0xff] %v10094_v48  ;;  %v3877_v28 = vpop.f32.mrb[38].mxu1  ;;  %vm2143_vm10 = vcmp.eq.s32.totalorder %v10094_v48, 1  ;;  %v13358_v48 = vld [vmem:[#allocation74_spill] sm:$0xff] }
 0x930   : > { %4548 = vadd.xlane.f32.xlu1 %v9701_v35  ;;  %v6342_v19 = vpop.f32.mrb[39].mxu1  ;;  %v2159_v42 = vsel %vm2143_vm10, %v8808_v47, -1e+30  ;;  %v13364_v35 = vld [vmem:[#allocation106_spill] sm:$0xff] }
 0x931   : > { %v13346_v19 = vld [vmem:[#allocation33_spill] sm:$0xff] }
 0x932   : > { %v10098_v63 = vpop.permute.xlu1 %2102 }
 0x933   : > { %13343 = vst [vmem:[#allocation154_spill] sm:$0xff] %v10098_v63  ;;  %vm12671_vm12 = vcmp.eq.s32.totalorder %v10098_v63, 1  ;;  %v13350_v63 = vld [vmem:[#allocation86_spill] sm:$0xff] }
 0x934   : > { %v2161_v12 = vsel %vm12671_vm12, %v8823_v38, -1e+30  ;;  %4550 = vadd.xlane.f32.xlu1 %v13344_v37 }
 0x935   : > { %v2182_v16 = vmax.f32 %v2161_v12, %v2159_v42 }
 0x936   : > { %v10108_v28 = vpop.permute.xlu1 %2105 }
 0x937   : > { %13345 = vst [vmem:[#allocation153_spill] sm:$0xff] %v10108_v28  ;;  %vm12654_vm11 = vcmp.eq.s32.totalorder %v10108_v28, 1 }
 0x938   : > { %4552 = vadd.xlane.f32.xlu1 %v13346_v19  ;;  %v2162_v42 = vsel %vm12654_vm11, %v13325_v32, -1e+30 }
 0x93a   : > { %v10111_v17 = vpop.permute.xlu1 %2111 }
 0x93b   : > { %13347 = vst [vmem:[#allocation72_spill] sm:$0xff] %v10111_v17  ;;  %vm12670_vm14 = vcmp.eq.s32.totalorder %v10111_v17, 1  ;;  %v10132_v17 = vsel %vm12654_vm11, %v13327_v44, -1e+30 }
 0x93c   : > { %v2164_v29 = vsel %vm12670_vm14, %v8869_v0, -1e+30  ;;  %4554 = vadd.xlane.f32.xlu1 %v13348_v13  ;;  %13351 = vst [vmem:[#allocation166_spill] sm:$0xff] %v10132_v17 }
 0x93d   : > { %v2176_v56 = vmax.f32 %v2182_v16, %v2164_v29 }
 0x93e   : > { %v10119_v8 = vpop.permute.xlu1 %2117 }
 0x93f   : > { %13349 = vst [vmem:[#allocation105_spill] sm:$0xff] %v10119_v8  ;;  %vm12652_vm4 = vcmp.eq.s32.totalorder %v10119_v8, 1 }
 0x940   : > { %v2166_v12 = vsel %vm12652_vm4, %v13326_v46, -1e+30  ;;  %4556 = vadd.xlane.f32.xlu1 %v13350_v63  ;;  %v10137_v16 = vsel %vm12652_vm4, %v13329_v10, -1e+30  ;;  %v13355_v63 = vld [vmem:[#allocation20_spill] sm:$0xff]  ;;  %vm3479_vm4 = vcmp.gt.f32.partialorder %v9280_v45, 0.0 }
 0x941   : > { %13352 = vst [vmem:[#allocation168_spill] sm:$0xff] %v10137_v16  ;;  %v2178_v29 = vmax.f32 %v2162_v42, %v2166_v12  ;;  %v13359_v16 = vld [vmem:[#allocation73_spill] sm:$0xff] }
 0x942   : > { %vm13360_vm11 = vcmp.gt.f32.partialorder %v13359_v16, 0.0 }
 0x943   : > { %v10141_v13 = vmax.f32 %v2178_v29, %v2176_v56  ;;  %v10143_v19 = vpop.permute.xlu1 %1731  ;;  %v13356_v56 = vld [vmem:[#allocation115_spill] sm:$0xff]  ;;  %v10161_v17 = vsel %vm13360_vm11, %v13358_v48, -1e+30 }
 0x944   : > { %13354 = vst [vmem:[#allocation169_spill] sm:$0xff] %v10143_v19  ;;  %vm12669_vm2 = vcmp.eq.s32.totalorder %v10143_v19, 1  ;;  %4558 = vadd.xlane.f32.xlu1 %v13355_v63  ;;  %13361 = vst [vmem:[#allocation189_spill] sm:$0xff] %v10161_v17  ;;  %v13363_v19 = vmax.f32 %v9847_v1, %v9854_v9  ;;  %v13367_v9 = vmax.f32 %v9895_v31, %v9900_v26 }
 0x945   : > { %13353 = vst [vmem:[#allocation167_spill] sm:$0xff] %v10141_v13  ;;  %v1768_v28 = vsel %vm12669_vm2, %v9918_v21, -1e+30  ;;  %v3542_v8 = vsel %vm12669_vm2, %v9933_v53, -1e+30  ;;  %v13362_v13 = vld [vmem:[#allocation22_spill] sm:$0xff]  ;;  %v13373_v31 = vmax.f32 %v9923_v49, %v9938_v57 }
 0x946   : > { %v1784_v42 = vmax.f32 %v9890_v50, %v1768_v28  ;;  %v3554_v12 = vmax.f32 %v13356_v56, %v3542_v8  ;;  %v10171_v50 = vsel %vm3479_vm4, %v13364_v35, -1e+30 }
 0x947   : > { %v10156_v29 = vpop.permute.xlu1 %1734  ;;  %13365 = vst [vmem:[#allocation188_spill] sm:$0xff] %v10171_v50 }
 0x948   : > { %13357 = vst [vmem:[#allocation187_spill] sm:$0xff] %v10156_v29  ;;  %vm12661_vm1 = vcmp.eq.s32.totalorder %v10156_v29, 1  ;;  %4560 = vadd.xlane.f32.xlu1 %v13362_v13  ;;  %v3557_v37 = vmax.f32 %v13363_v19, %v3554_v12  ;;  %v13368_v19 = vld [vmem:[#allocation71_spill] sm:$0xff] }
 0x949   : > { %v1769_v8 = vsel %vm12661_vm1, %v10161_v17, -1e+30  ;;  %v3543_v48 = vsel %vm12661_vm1, %v10171_v50, -1e+30 }
 0x94a   : > { %v1785_v28 = vmax.f32 %v1769_v8, %v1784_v42  ;;  %v3555_v16 = vmax.f32 %v9879_v18, %v3543_v48  ;;  %v13369_v18 = vld [vmem:[#allocation173_spill] sm:$0xff]  ;;  %v13370_v48 = vld [vmem:[#allocation174_spill] sm:$0xff] }
 0x94c   : > { %4564 = vadd.xlane.f32.xlu1 %v9734_v30  ;;  %v10181_v1 = vpop.permute.xlu1 %1829  ;;  %v3558_v35 = vmax.f32 %v3555_v16, %v13367_v9  ;;  %v13371_v30 = vld [vmem:[#allocation21_spill] sm:$0xff]  ;;  %v13374_v16 = vmax.f32 %v9928_v33, %v9945_v3  ;;  %v13376_v3 = vld [vmem:[#allocation100_spill] sm:$0xff] }
 0x94d   : > { %13366 = vst [vmem:[#allocation190_spill] sm:$0xff] %v10181_v1  ;;  %vm12663_vm11 = vcmp.eq.s32.totalorder %v10181_v1, 1  ;;  %v1786_v1 = vrot.slane %v1785_v28, 4 }
 0x94e   : > { %v1868_v56 = vsel %vm12663_vm11, %v13368_v19, -1e+30  ;;  %v3578_v42 = vsel %vm12663_vm11, %v9578_v36, -1e+30  ;;  %v3559_v12 = vmax.f32 %v3557_v37, %v3558_v35 }
 0x94f   : > { %v1880_v8 = vmax.f32 %v13369_v18, %v1868_v56  ;;  %v3590_v29 = vmax.f32 %v13370_v48, %v3578_v42  ;;  %v1787_v33 = vmax.f32 %v1785_v28, %v1786_v1  ;;  %v13377_v48 = vld [vmem:[#allocation177_spill] sm:$0xff] }
 0x950   : > { %4568 = vadd.xlane.f32.xlu1 %v13371_v30  ;;  %v10196_v13 = vpop.permute.xlu1 %1835  ;;  %v3560_v56 = vrot.slane %v3559_v12, 4 }
 0x951   : > { %13372 = vst [vmem:[#allocation20_spill] sm:$0xff] %v10196_v13  ;;  %v1884_v26 = vmax.f32 %v1880_v8, %v13373_v31  ;;  %vm12665_vm1 = vcmp.eq.s32.totalorder %v10196_v13, 1  ;;  %v3594_v9 = vmax.f32 %v3590_v29, %v13374_v16  ;;  %v13378_v16 = vld [vmem:[#allocation178_spill] sm:$0xff]  ;;  %v1788_v13 = vrot.slane %v1787_v33, 2 }
 0x952   : > { %v1870_v37 = vsel %vm12665_vm1, %v10161_v17, -1e+30  ;;  %v3580_v35 = vsel %vm12665_vm1, %v10171_v50, -1e+30  ;;  %v3561_v18 = vmax.f32 %v3559_v12, %v3560_v56 }
 0x953   : > { %v1882_v42 = vmax.f32 %v9961_v20, %v1870_v37  ;;  %v3592_v49 = vmax.f32 %v9966_v61, %v3580_v35 }
 0x954   : > { %v10213_v57 = vpop.permute.xlu1 %1838  ;;  %v3562_v28 = vrot.slane %v3561_v18, 2 }
 0x955   : > { %13375 = vst [vmem:[#allocation115_spill] sm:$0xff] %v10213_v57  ;;  %vm12666_vm11 = vcmp.eq.s32.totalorder %v10213_v57, 1 }
 0x956   : > { %v1871_v29 = vsel %vm12666_vm11, %v13376_v3, -1e+30  ;;  %v3581_v8 = vsel %vm12666_vm11, %v9602_v7, -1e+30 }
 0x957   : > { %v1883_v31 = vmax.f32 %v13377_v48, %v1871_v29  ;;  %v3593_v20 = vmax.f32 %v13378_v16, %v3581_v8  ;;  %v1789_v16 = vmax.f32 %v1787_v33, %v1788_v13 }
 0x959   : > { %v1885_v37 = vmax.f32 %v1882_v42, %v1883_v31  ;;  %v10224_v61 = vpop.permute.xlu1 %2022  ;;  %v3595_v35 = vmax.f32 %v3592_v49, %v3593_v20  ;;  %v13380_v42 = vmax.f32 %v10014_v55, %v10023_v54  ;;  %v3563_v20 = vmax.f32 %v3561_v18, %v3562_v28 }
 0x95a   : > { %13379 = vst [vmem:[#allocation74_spill] sm:$0xff] %v10224_v61  ;;  %vm12667_vm1 = vcmp.eq.s32.totalorder %v10224_v61, 1  ;;  %v13383_v54 = vmax.f32 %v9997_v39, %v10002_v15  ;;  %v1790_v18 = vrot.slane %v1789_v16, 1 }
 0x95b   : > { %v1886_v1 = vmax.f32 %v1884_v26, %v1885_v37  ;;  %v2067_v12 = vsel %vm12667_vm1, %v13300_v40, -1e+30  ;;  %v3596_v56 = vmax.f32 %v3594_v9, %v3595_v35  ;;  %v3649_v29 = vsel %vm12667_vm1, %v13301_v4, -1e+30 }
 0x95c   : > { %v2082_v8 = vmax.f32 %v10050_v62, %v2067_v12  ;;  %v10237_v49 = vmax.f32 %v13380_v42, %v3649_v29  ;;  %v3564_v29 = vrot.slane %v3563_v20, 1 }
 0x95d   : > { %v1887_v48 = vrot.slane %v1886_v1, 4  ;;  %v10239_v31 = vpop.permute.xlu1 %2025  ;;  %v3597_v26 = vrot.slane %v3596_v56, 4 }
 0x95e   : > { %13381 = vst [vmem:[#allocation73_spill] sm:$0xff] %v10237_v49  ;;  %13382 = vst [vmem:[#allocation106_spill] sm:$0xff] %v10239_v31  ;;  %vm12668_vm11 = vcmp.eq.s32.totalorder %v10239_v31, 1  ;;  %v3565_v39 = vmax.f32 %v3563_v20, %v3564_v29  ;;  %v13431_v31 = vld [vmem:[#allocation64_spill] sm:$0xff]  ;;  %v13445_v49 = vld [vmem:[#allocation155_spill] sm:$0xff] }
 0x95f   : > { %v1888_v9 = vmax.f32 %v1886_v1, %v1887_v48  ;;  %v2068_v37 = vsel %vm12668_vm11, %v9859_v59, -1e+30  ;;  %v3598_v35 = vmax.f32 %v3596_v56, %v3597_v26  ;;  %v3650_v62 = vsel %vm12668_vm11, %v9865_v22, -1e+30 }
 0x960   : > { %v10248_v55 = vmax.f32 %v2068_v37, %v2082_v8  ;;  %v10253_v12 = vmax.f32 %v13383_v54, %v3650_v62  ;;  %v1791_v26 = vmax.f32 %v1789_v16, %v1790_v18  ;;  %vm12672_vm11 = vcmask 1040384  }
 0x961   : > { %v1889_v13 = vrot.slane %v1888_v9, 2  ;;  %v3599_v33 = vrot.slane %v3598_v35, 2 }
 0x962   : > { %13384 = vst [vmem:[#allocation173_spill] sm:$0xff] %v10253_v12  ;;  %v10255_v28 = vpop.permute.xlu1 %2197 }
 0x963   : > { %v1890_v1 = vmax.f32 %v1888_v9, %v1889_v13  ;;  %v3600_v42 = vmax.f32 %v3598_v35, %v3599_v33  ;;  %vm2244_vm1 = vcmp.eq.s32.totalorder %v10255_v28, 1  ;;  %v13679_v28 = vld [vmem:[#allocation122_spill] sm:$0xff] }
 0x964   : > { %v2260_v62 = vsel %vm2244_vm1, %v8808_v47, -1e+30 }
 0x965   : > { %v1891_v56 = vrot.slane %v1890_v1, 1  ;;  %v3601_v48 = vrot.slane %v3600_v42, 1 }
 0x966   : > { %v10258_v8 = vpop.permute.xlu1 %2203 }
 0x967   : > { %13385 = vst [vmem:[#allocation174_spill] sm:$0xff] %v10258_v8  ;;  %v1892_v37 = vmax.f32 %v1890_v1, %v1891_v56  ;;  %vm12673_vm2 = vcmp.eq.s32.totalorder %v10258_v8, 1  ;;  %v3602_v15 = vmax.f32 %v3600_v42, %v3601_v48 }
 0x968   : > { %v2262_v9 = vsel %vm12673_vm2, %v8823_v38, -1e+30 }
 0x969   : > { %v10268_v35 = vsel %vm12672_vm11, %v1791_v26, %v1892_v37  ;;  %v2277_v16 = vmax.f32 %v2262_v9, %v2260_v62  ;;  %v10271_v54 = vsel %vm12672_vm11, %v3565_v39, %v3602_v15 }
 0x96a   : > { %v10273_v13 = vpop.permute.xlu1 %2206 }
 0x96b   : > { %13386 = vst [vmem:[#allocation21_spill] sm:$0xff] %v10273_v13  ;;  %vm12682_vm12 = vcmp.eq.s32.totalorder %v10273_v13, 1 }
 0x96c   : > { %v2263_v29 = vsel %vm12682_vm12, %v13325_v32, -1e+30  ;;  %v10294_v56 = vsel %vm12682_vm12, %v13327_v44, -1e+30  ;;  %v13395_v44 = vld [vmem:[#allocation200_spill] sm:$0xff] }
 0x96d   : > { %13389 = vst [vmem:[#allocation205_spill] sm:$0xff] %v10294_v56 }
 0x96e   : > { %v10275_v33 = vpop.permute.xlu1 %2212 }
 0x96f   : > { %13387 = vst [vmem:[#allocation177_spill] sm:$0xff] %v10275_v33  ;;  %vm2249_vm14 = vcmp.eq.s32.totalorder %v10275_v33, 1 }
 0x970   : > { %v2265_v20 = vsel %vm2249_vm14, %v8869_v0, -1e+30  ;;  %v13394_v0 = vld [vmem:[#allocation193_spill] sm:$0xff] }
 0x971   : > { %v2276_v18 = vmax.f32 %v2265_v20, %v2277_v16  ;;  %v13396_v32 = vmax.f32 %v13394_v0, %v13395_v44 }
 0x972   : > { %v10282_v1 = vpop.permute.xlu1 %2218 }
 0x973   : > { %13388 = vst [vmem:[#allocation178_spill] sm:$0xff] %v10282_v1  ;;  %vm12694_vm11 = vcmp.eq.s32.totalorder %v10282_v1, 1 }
 0x974   : > { %v2267_v42 = vsel %vm12694_vm11, %v13326_v46, -1e+30  ;;  %v10299_v48 = vsel %vm12694_vm11, %v13329_v10, -1e+30  ;;  %vm2501_vm11 = vcmask 1041408  }
 0x975   : > { %13390 = vst [vmem:[#allocation206_spill] sm:$0xff] %v10299_v48  ;;  %v2279_v26 = vmax.f32 %v2263_v29, %v2267_v42 }
 0x976   : > { %v6361_v39 = vpop.f32.mrb[40].mxu1 }
 0x977   : > { %v10303_v15 = vmax.f32 %v2279_v26, %v2276_v18  ;;  %v10305_v62 = vpop.permute.xlu1 %1933  ;;  %v3960_v9 = vpop.f32.mrb[41].mxu1 }
 0x978   : > { %13392 = vst [vmem:[#allocation208_spill] sm:$0xff] %v10305_v62  ;;  %vm1954_vm2 = vcmp.eq.s32.totalorder %v10305_v62, 1  ;;  %v6362_v16 = vpop.f32.mrb[42].mxu1 }
 0x979   : > { %13391 = vst [vmem:[#allocation207_spill] sm:$0xff] %v10303_v15  ;;  %v1970_v20 = vsel %vm1954_vm2, %v9918_v21, -1e+30  ;;  %v4024_v46 = vpack.c.bf16 %v6362_v16, %v6361_v39  ;;  %v3963_v10 = vpop.f32.mrb[43].mxu1  ;;  %v3616_v29 = vsel %vm1954_vm2, %v9933_v53, -1e+30 }
 0x97a   : > { %v1982_v42 = vmax.f32 %v10064_v52, %v1970_v20  ;;  %v4023_v18 = vpack.c.bf16 %v3963_v10, %v3960_v9  ;;  %v3628_v26 = vmax.f32 %v10070_v58, %v3616_v29  ;;  %v13397_v39 = vld [vmem:[#allocation194_spill] sm:$0xff]  ;;  %v13398_v16 = vld [vmem:[#allocation201_spill] sm:$0xff]  ;;  %v13400_v10 = vld [vmem:[#allocation139_spill] sm:$0xff] }
 0x97b   : > { %v10316_v37 = vpop.permute.xlu1 %1936  ;;  %v13399_v47 = vmax.f32 %v13397_v39, %v13398_v16  ;;  %v13401_v20 = vld [vmem:[#allocation196_spill] sm:$0xff]  ;;  %v13405_v39 = vld [vmem:[#allocation77_spill] sm:$0xff] }
 0x97c   : > { %13393 = vst [vmem:[#allocation209_spill] sm:$0xff] %v10316_v37  ;;  %v1985_v38 = vmax.f32 %v13396_v32, %v1982_v42  ;;  %vm1955_vm12 = vcmp.eq.s32.totalorder %v10316_v37, 1  ;;  %4163 = vmatprep.mubr.bf16.mxu0 %v4023_v18  ;;  %v13402_v29 = vld [vmem:[#allocation204_spill] sm:$0xff] }
 0x97d   : > { %v3631_v48 = vmax.f32 %v13399_v47, %v3628_v26  ;;  %v1971_v52 = vsel %vm1955_vm12, %v10161_v17, -1e+30  ;;  %4164 = vmatmul.mubr.bf16.vlgmr.msra.gmra.mrb[80].mxu0 %v13400_v10  ;;  %v3617_v58 = vsel %vm1955_vm12, %v10171_v50, -1e+30  ;;  %v13403_v47 = vmax.f32 %v13401_v20, %v13402_v29  ;;  %v13404_v26 = vld [vmem:[#allocation197_spill] sm:$0xff] }
 0x97e   : > { %v1983_v0 = vmax.f32 %v10084_v5, %v1971_v52  ;;  %v6365_v44 = vpop.f32.mrb[44].mxu1  ;;  %4171 = vmatprep.mubr.bf16.mxu0 %v4024_v46  ;;  %v3629_v32 = vmax.f32 %v10090_v27, %v3617_v58  ;;  %v13406_v16 = vmax.f32 %v13404_v26, %v13405_v39  ;;  %v13407_v46 = vld [vmem:[#allocation95_spill] sm:$0xff] }
 0x97f   : > { %v3976_v9 = vpop.f32.mrb[45].mxu1 }
 0x980   : > { %v1986_v42 = vmax.f32 %v1983_v0, %v13403_v47  ;;  %v6366_v18 = vpop.f32.mrb[46].mxu1  ;;  %v3632_v10 = vmax.f32 %v3629_v32, %v13406_v16 }
 0x981   : > { %v4026_v56 = vpack.c.bf16 %v6366_v18, %v6365_v44  ;;  %v3979_v13 = vpop.f32.mrb[47].mxu1 }
 0x982   : > { %v1987_v1 = vmax.f32 %v1985_v38, %v1986_v42  ;;  %v4025_v12 = vpack.c.bf16 %v3979_v13, %v3976_v9  ;;  %v3633_v61 = vmax.f32 %v3631_v48, %v3632_v10  ;;  %v13408_v48 = vld [vmem:[#allocation142_spill] sm:$0xff] }
 0x984   : > { %v1988_v5 = vrot.slane %v1987_v1, 4  ;;  %v3634_v52 = vrot.slane %v3633_v61, 4 }
 0x985   : > { %4172 = vmatmul.mubr.bf16.gmra.mrb[84].mxu0 %v13407_v46  ;;  %v13412_v46 = vld [vmem:[#allocation37_spill] sm:$0xff] }
 0x986   : > { %v1989_v27 = vmax.f32 %v1987_v1, %v1988_v5  ;;  %v6369_v58 = vpop.f32.mrb[48].mxu1  ;;  %4179 = vmatprep.mubr.bf16.mxu0 %v4025_v12  ;;  %v3635_v50 = vmax.f32 %v3633_v61, %v3634_v52  ;;  %v13411_v52 = vld [vmem:[#allocation150_spill] sm:$0xff] }
 0x987   : > { %v3992_v20 = vpop.f32.mrb[49].mxu1 }
 0x988   : > { %v1990_v0 = vrot.slane %v1989_v27, 2  ;;  %v6370_v29 = vpop.f32.mrb[50].mxu1  ;;  %v3636_v47 = vrot.slane %v3635_v50, 2 }
 0x989   : > { %v4028_v17 = vpack.c.bf16 %v6370_v29, %v6369_v58  ;;  %v3995_v26 = vpop.f32.mrb[51].mxu1 }
 0x98a   : > { %v1991_v32 = vmax.f32 %v1989_v27, %v1990_v0  ;;  %v4027_v44 = vpack.c.bf16 %v3995_v26, %v3992_v20  ;;  %v3637_v18 = vmax.f32 %v3635_v50, %v3636_v47  ;;  %v13414_v27 = vld [vmem:[#allocation162_spill] sm:$0xff]  ;;  %v6758_v0 = vld [vmem:[%s12178_s8] sm:$0xff] }
 0x98c   : > { %v1992_v38 = vrot.slane %v1991_v32, 1  ;;  %v3638_v13 = vrot.slane %v3637_v18, 1 }
 0x98d   : > { %4180 = vmatmul.mubr.bf16.gmra.mrb[88].mxu0 %v13408_v48 }
 0x98e   : > { %v1993_v9 = vmax.f32 %v1991_v32, %v1992_v38  ;;  %v6373_v42 = vpop.f32.mrb[52].mxu1  ;;  %4187 = vmatprep.mubr.bf16.mxu0 %v4026_v56  ;;  %v3639_v1 = vmax.f32 %v3637_v18, %v3638_v13  ;;  %v13413_v56 = vld [vmem:[#allocation158_spill] sm:$0xff] }
 0x98f   : > { %v4008_v12 = vpop.f32.mrb[53].mxu1 }
 0x990   : > { %v10344_v61 = vsel %vm2501_vm11, %v10268_v35, %v1993_v9  ;;  %v6374_v39 = vpop.f32.mrb[54].mxu1  ;;  %v10348_v16 = vsel %vm2501_vm11, %v10271_v54, %v3639_v1  ;;  %v13415_v35 = vld [vmem:[#allocation163_spill] sm:$0xff] }
 0x991   : > { %13409 = vst [vmem:[#allocation193_spill] sm:$0xff] %v10344_v61  ;;  %13410 = vst [vmem:[#allocation200_spill] sm:$0xff] %v10348_v16  ;;  %v4030_v50 = vpack.c.bf16 %v6374_v39, %v6373_v42  ;;  %v4011_v10 = vpop.f32.mrb[55].mxu1  ;;  %v13416_v54 = vld [vmem:[#allocation35_spill] sm:$0xff] }
 0x992   : > { %v4029_v5 = vpack.c.bf16 %v4011_v10, %v4008_v12  ;;  %v4033_v58 = vsub.s32 4, %v13416_v54 }
 0x994   : > { %v10361_v29 = vrot.slane %v6758_v0, %v4033_v58 }
 0x995   : > { %4188 = vmatmul.mubr.bf16.gmra.mrb[92].mxu0 %v13411_v52 }
 0x996   : > { %4195 = vmatprep.mubr.bf16.mxu0 %v4027_v44 }
 0x99d   : > { %4196 = vmatmul.mubr.bf16.gmra.mrb[96].mxu0 %v13412_v46 }
 0x99e   : > { %4203 = vmatprep.mubr.bf16.mxu0 %v4028_v17  ;;  %v4246_v17 = vsub.s32 5, %v13416_v54 }
 0x9a0   : > { %v10367_v13 = vrot.slane %v6758_v0, %v4246_v17 }
 0x9a5   : > { %4204 = vmatmul.mubr.bf16.gmra.mrb[100].mxu0 %v13413_v56 }
 0x9a6   : > { %4211 = vmatprep.mubr.bf16.mxu0 %v4029_v5 }
 0x9ad   : > { %4212 = vmatmul.mubr.bf16.gmra.mrb[104].mxu0 %v13414_v27 }
 0x9ae   : > { %4219 = vmatprep.mubr.bf16.mxu0 %v4030_v50 }
 0x9b5   : > { %4220 = vmatmul.mubr.bf16.gmra.mrb[108].mxu0 %v13415_v35 }
 0x9b6   : > { %6411 = vmatprep.mubr.msk.bf16.mxu0 %vm13269_vm15, %v12899_v43 }
 0xa50   : > { %v6133_v20 = vpop.f32.mrb[80].mxu0 }
 0xa51   : > { %v6134_v47 = vpop.f32.mrb[81].mxu0 }
 0xa52   : > { %v6135_v26 = vadd.f32 %v6134_v47, %v6133_v20  ;;  %v6136_v32 = vpop.f32.mrb[82].mxu0 }
 0xa53   : > { %v6137_v44 = vpop.f32.mrb[83].mxu0 }
 0xa54   : > { %v10365_v18 = vadd.f32 %v6135_v26, %v10361_v29  ;;  %v6138_v38 = vadd.f32 %v6137_v44, %v6136_v32 }
 0xa56   : > { %v12701_v48 = vmax.f32 %v10365_v18, 0.0  ;;  %v10371_v9 = vadd.f32 %v6138_v38, %v10361_v29 }
 0xa58   : > { %v12700_v42 = vmax.f32 %v10371_v9, 0.0  ;;  %v6139_v1 = vpop.f32.mrb[84].mxu0  ;;  %v4248_v12 = vmul.f32 %v10367_v13, %v12701_v48 }
 0xa59   : > { %v6140_v39 = vpop.f32.mrb[85].mxu0 }
 0xa5a   : > { %v6141_v50 = vadd.f32 %v6140_v39, %v6139_v1  ;;  %v6142_v10 = vpop.f32.mrb[86].mxu0  ;;  %4264 = vadd.xlane.f32.xlu0 %v4248_v12  ;;  %v4249_v56 = vmul.f32 %v10367_v13, %v12700_v42 }
 0xa5b   : > { %v6143_v5 = vpop.f32.mrb[87].mxu0 }
 0xa5c   : > { %v10378_v52 = vadd.f32 %v6141_v50, %v10361_v29  ;;  %v6144_v46 = vadd.f32 %v6143_v5, %v6142_v10 }
 0xa5e   : > { %v12697_v27 = vmax.f32 %v10378_v52, 0.0  ;;  %v10385_v35 = vadd.f32 %v6144_v46, %v10361_v29  ;;  %4266 = vadd.xlane.f32.xlu0 %v4249_v56 }
 0xa60   : > { %v12704_v58 = vmax.f32 %v10385_v35, 0.0  ;;  %v6145_v20 = vpop.f32.mrb[88].mxu0  ;;  %v4250_v0 = vmul.f32 %v10367_v13, %v12697_v27 }
 0xa61   : > { %v6146_v17 = vpop.f32.mrb[89].mxu0 }
 0xa62   : > { %v6147_v47 = vadd.f32 %v6146_v17, %v6145_v20  ;;  %4268 = vadd.xlane.f32.xlu0 %v4250_v0  ;;  %v6148_v26 = vpop.f32.mrb[90].mxu0  ;;  %v4251_v1 = vmul.f32 %v10367_v13, %v12704_v58 }
 0xa63   : > { %v6149_v32 = vpop.f32.mrb[91].mxu0 }
 0xa64   : > { %v10392_v44 = vadd.f32 %v6147_v47, %v10361_v29  ;;  %v6150_v38 = vadd.f32 %v6149_v32, %v6148_v26 }
 0xa66   : > { %13417 = vst [vmem:[#allocation194_spill] sm:$0xff] %v10392_v44  ;;  %v12696_v12 = vmax.f32 %v10392_v44, 0.0  ;;  %v10399_v39 = vadd.f32 %v6150_v38, %v10361_v29  ;;  %4270 = vadd.xlane.f32.xlu0 %v4251_v1 }
 0xa68   : > { %13418 = vst [vmem:[#allocation201_spill] sm:$0xff] %v10399_v39  ;;  %v12695_v50 = vmax.f32 %v10399_v39, 0.0  ;;  %v6151_v10 = vpop.f32.mrb[92].mxu0  ;;  %v4252_v5 = vmul.f32 %v10367_v13, %v12696_v12  ;;  %v13443_v39 = vld [vmem:[#allocation61_spill] sm:$0xff] }
 0xa69   : > { %v6152_v46 = vpop.f32.mrb[93].mxu0 }
 0xa6a   : > { %v6153_v56 = vadd.f32 %v6152_v46, %v6151_v10  ;;  %v6154_v20 = vpop.f32.mrb[94].mxu0  ;;  %4272 = vadd.xlane.f32.xlu0 %v4252_v5  ;;  %v4253_v26 = vmul.f32 %v10367_v13, %v12695_v50 }
 0xa6b   : > { %v6155_v0 = vpop.f32.mrb[95].mxu0 }
 0xa6c   : > { %v10406_v17 = vadd.f32 %v6153_v56, %v10361_v29  ;;  %v6156_v47 = vadd.f32 %v6155_v0, %v6154_v20 }
 0xa6e   : > { %13419 = vst [vmem:[#allocation139_spill] sm:$0xff] %v10406_v17  ;;  %v12698_v32 = vmax.f32 %v10406_v17, 0.0  ;;  %v10413_v38 = vadd.f32 %v6156_v47, %v10361_v29  ;;  %4274 = vadd.xlane.f32.xlu0 %v4253_v26 }
 0xa70   : > { %13420 = vst [vmem:[#allocation196_spill] sm:$0xff] %v10413_v38  ;;  %v12699_v1 = vmax.f32 %v10413_v38, 0.0  ;;  %v6157_v10 = vpop.f32.mrb[96].mxu0  ;;  %v4254_v5 = vmul.f32 %v10367_v13, %v12698_v32  ;;  %v13440_v38 = vld [vmem:[#allocation145_spill] sm:$0xff] }
 0xa71   : > { %v6158_v46 = vpop.f32.mrb[97].mxu0  ;;  %vm13441_vm15 = vcmp.gt.f32.partialorder %v13440_v38, 0.0 }
 0xa72   : > { %v6159_v56 = vadd.f32 %v6158_v46, %v6157_v10  ;;  %4276 = vadd.xlane.f32.xlu0 %v4254_v5  ;;  %v6160_v20 = vpop.f32.mrb[98].mxu0  ;;  %v4255_v47 = vmul.f32 %v10367_v13, %v12699_v1 }
 0xa73   : > { %v6161_v0 = vpop.f32.mrb[99].mxu0 }
 0xa74   : > { %v10420_v50 = vadd.f32 %v6159_v56, %v10361_v29  ;;  %v6162_v12 = vadd.f32 %v6161_v0, %v6160_v20 }
 0xa76   : > { %13421 = vst [vmem:[#allocation204_spill] sm:$0xff] %v10420_v50  ;;  %v12702_v26 = vmax.f32 %v10420_v50, 0.0  ;;  %v10427_v27 = vadd.f32 %v6162_v12, %v10361_v29  ;;  %4278 = vadd.xlane.f32.xlu0 %v4255_v47 }
 0xa78   : > { %v12703_v32 = vmax.f32 %v10427_v27, 0.0  ;;  %v6163_v10 = vpop.f32.mrb[100].mxu0  ;;  %v4256_v5 = vmul.f32 %v10367_v13, %v12702_v26 }
 0xa79   : > { %v6164_v46 = vpop.f32.mrb[101].mxu0 }
 0xa7a   : > { %v6165_v56 = vadd.f32 %v6164_v46, %v6163_v10  ;;  %v6166_v20 = vpop.f32.mrb[102].mxu0  ;;  %4280 = vadd.xlane.f32.xlu0 %v4256_v5  ;;  %v4257_v12 = vmul.f32 %v10367_v13, %v12703_v32 }
 0xa7b   : > { %v6167_v0 = vpop.f32.mrb[103].mxu0 }
 0xa7c   : > { %v10434_v1 = vadd.f32 %v6165_v56, %v10361_v29  ;;  %v6168_v42 = vadd.f32 %v6167_v0, %v6166_v20 }
 0xa7e   : > { %13422 = vst [vmem:[#allocation197_spill] sm:$0xff] %v10434_v1  ;;  %v12706_v47 = vmax.f32 %v10434_v1, 0.0  ;;  %v10441_v48 = vadd.f32 %v6168_v42, %v10361_v29  ;;  %4282 = vadd.xlane.f32.xlu0 %v4257_v12  ;;  %v13437_v1 = vld [vmem:[#allocation141_spill] sm:$0xff] }
 0xa80   : > { %13423 = vst [vmem:[#allocation77_spill] sm:$0xff] %v10441_v48  ;;  %v12707_v26 = vmax.f32 %v10441_v48, 0.0  ;;  %v6169_v10 = vpop.f32.mrb[104].mxu0  ;;  %v4258_v5 = vmul.f32 %v10367_v13, %v12706_v47 }
 0xa81   : > { %v6170_v46 = vpop.f32.mrb[105].mxu0 }
 0xa82   : > { %v6171_v56 = vadd.f32 %v6170_v46, %v6169_v10  ;;  %v6172_v20 = vpop.f32.mrb[106].mxu0  ;;  %4284 = vadd.xlane.f32.xlu0 %v4258_v5  ;;  %v4259_v42 = vmul.f32 %v10367_v13, %v12707_v26 }
 0xa83   : > { %v6173_v0 = vpop.f32.mrb[107].mxu0 }
 0xa84   : > { %v10448_v32 = vadd.f32 %v6171_v56, %v10361_v29  ;;  %v6174_v58 = vadd.f32 %v6173_v0, %v6172_v20 }
 0xa86   : > { %13424 = vst [vmem:[#allocation95_spill] sm:$0xff] %v10448_v32  ;;  %v12708_v12 = vmax.f32 %v10448_v32, 0.0  ;;  %v10455_v54 = vadd.f32 %v6174_v58, %v10361_v29  ;;  %4286 = vadd.xlane.f32.xlu0 %v4259_v42 }
 0xa88   : > { %13425 = vst [vmem:[#allocation142_spill] sm:$0xff] %v10455_v54  ;;  %v12711_v47 = vmax.f32 %v10455_v54, 0.0  ;;  %v6175_v10 = vpop.f32.mrb[108].mxu0  ;;  %v4260_v5 = vmul.f32 %v10367_v13, %v12708_v12 }
 0xa89   : > { %v6176_v46 = vpop.f32.mrb[109].mxu0 }
 0xa8a   : > { %v6177_v56 = vadd.f32 %v6176_v46, %v6175_v10  ;;  %v6178_v20 = vpop.f32.mrb[110].mxu0  ;;  %4288 = vadd.xlane.f32.xlu0 %v4260_v5  ;;  %v4261_v58 = vmul.f32 %v10367_v13, %v12711_v47  ;;  %v10478_v46 = vpop.xlane.xlu0 %4562 }
 0xa8b   : > { %v6179_v0 = vpop.f32.mrb[111].mxu0 }
 0xa8c   : > { %v10462_v26 = vadd.f32 %v6177_v56, %v10361_v29  ;;  %v6180_v16 = vadd.f32 %v6179_v0, %v6178_v20 }
 0xa8e   : > { %13426 = vst [vmem:[#allocation150_spill] sm:$0xff] %v10462_v26  ;;  %v12709_v42 = vmax.f32 %v10462_v26, 0.0  ;;  %v10469_v61 = vadd.f32 %v6180_v16, %v10361_v29  ;;  %4290 = vadd.xlane.f32.xlu0 %v4261_v58  ;;  %v10480_v56 = vpop.xlane.xlu0 %4566  ;;  %v13428_v29 = vld [vmem:[#allocation131_spill] sm:$0xff] }
 0xa90   : > { %13427 = vst [vmem:[#allocation37_spill] sm:$0xff] %v10469_v61  ;;  %v12710_v12 = vmax.f32 %v10469_v61, 0.0  ;;  %v4262_v10 = vmul.f32 %v10367_v13, %v12709_v42  ;;  %v13430_v42 = vld [vmem:[#allocation55_spill] sm:$0xff]  ;;  %v13450_v61 = vld [vmem:[#allocation157_spill] sm:$0xff] }
 0xa92   : > { %4292 = vadd.xlane.f32.xlu0 %v4262_v10  ;;  %v4263_v5 = vmul.f32 %v10367_v13, %v12710_v12  ;;  %v10482_v20 = vpop.xlane.xlu0 %4570  ;;  %v13429_v13 = vld [vmem:[#allocation137_spill] sm:$0xff] }
 0xa96   : > { %4294 = vadd.xlane.f32.xlu0 %v4263_v5 }
 0xae7   : > { %v10484_v16 = vpop.xlane.xlu0 %4264 }
 0xae8   : > { %v10489_v0 = vsel %vm3465_vm13, %v10484_v16, -1e+30  ;;  %vm13438_vm13 = vcmp.gt.f32.partialorder %v13437_v1, 0.0 }
 0xae9   : > { %4312 = vxpose.xlu0.b32.start [1/16] (narrow) %v10489_v0, 8 }
 0xaeb   : > { %v10492_v58 = vpop.xlane.xlu0 %4266 }
 0xaec   : > { %v10497_v10 = vsel %vm3466_vm7, %v10492_v58, -1e+30  ;;  %vm13446_vm7 = vcmp.gt.f32.partialorder %v13445_v49, 0.0 }
 0xaed   : > { %4313 = vxpose.xlu0.b32.cont [2/16] (narrow) %v10497_v10, 8 }
 0xaef   : > { %v10500_v5 = vpop.xlane.xlu0 %4268 }
 0xaf0   : > { %v10505_v12 = vsel %vm3467_vm8, %v10500_v5, -1e+30  ;;  %vm13451_vm8 = vcmp.gt.f32.partialorder %v13450_v61, 0.0 }
 0xaf1   : > { %4314 = vxpose.xlu0.b32.cont [3/16] (narrow) %v10505_v12, 8 }
 0xaf3   : > { %v10508_v47 = vpop.xlane.xlu0 %4270 }
 0xaf4   : > { %v4299_v37 = vsel %vm3468_vm9, %v10508_v47, -1e+30  ;;  %6683 = vtanh.f32 %v10508_v47 }
 0xaf5   : > { %4315 = vxpose.xlu0.b32.cont [4/16] (narrow) %v4299_v37, 8  ;;  %6685 = vtanh.f32 %v10484_v16  ;;  %v13494_v16 = vld [vmem:[#allocation116_spill] sm:$0xff] }
 0xaf6   : > { %6687 = vtanh.f32 %v10492_v58 }
 0xaf7   : > { %v10513_v15 = vpop.xlane.xlu0 %4272  ;;  %6689 = vtanh.f32 %v10500_v5  ;;  %v13499_v5 = vmax.f32 %v10365_v18, 0.0  ;;  %v13512_v18 = vld [vmem:[#allocation182_spill] sm:$0xff] }
 0xaf8   : > { %13432 = vst [vmem:[#allocation158_spill] sm:$0xff] %v10513_v15  ;;  %v10518_v3 = vsel %vm3469_vm6, %v10513_v15, -1e+30  ;;  %vm13444_vm6 = vcmp.gt.f32.partialorder %v13443_v39, 0.0 }
 0xaf9   : > { %4316 = vxpose.xlu0.b32.cont [5/16] (narrow) %v10518_v3, 8 }
 0xafb   : > { %v10521_v4 = vpop.xlane.xlu0 %4274 }
 0xafc   : > { %13434 = vst [vmem:[#allocation162_spill] sm:$0xff] %v10521_v4  ;;  %v10526_v26 = vsel %vm3470_vm3, %v10521_v4, -1e+30  ;;  %vm13448_vm3 = vcmp.gt.f32.partialorder %v9226_v6, 0.0  ;;  %v13454_v6 = vld [vmem:[#allocation36_spill] sm:$0xff] }
 0xafd   : > { %4317 = vxpose.xlu0.b32.cont [6/16] (narrow) %v10526_v26, 8 }
 0xaff   : > { %v10529_v32 = vpop.xlane.xlu0 %4276 }
 0xb00   : > { %13436 = vst [vmem:[#allocation163_spill] sm:$0xff] %v10529_v32  ;;  %v10534_v50 = vsel %vm13438_vm13, %v10529_v32, -1e+30 }
 0xb01   : > { %4318 = vxpose.xlu0.b32.cont [7/16] (narrow) %v10534_v50, 8 }
 0xb03   : > { %v10537_v7 = vpop.xlane.xlu0 %4278 }
 0xb04   : > { %13439 = vst [vmem:[#allocation131_spill] sm:$0xff] %v10537_v7  ;;  %v10542_v17 = vsel %vm13441_vm15, %v10537_v7, -1e+30 }
 0xb05   : > { %4319 = vxpose.xlu0.b32.cont [8/16] (narrow) %v10542_v17, 8 }
 0xb07   : > { %v10545_v40 = vpop.xlane.xlu0 %4280 }
 0xb08   : > { %13442 = vst [vmem:[#allocation137_spill] sm:$0xff] %v10545_v40  ;;  %v10550_v44 = vsel %vm13444_vm6, %v10545_v40, -1e+30 }
 0xb09   : > { %4320 = vxpose.xlu0.b32.cont [9/16] (narrow) %v10550_v44, 8 }
 0xb0b   : > { %v10553_v1 = vpop.xlane.xlu0 %4282 }
 0xb0c   : > { %v10558_v53 = vsel %vm13446_vm7, %v10553_v1, -1e+30  ;;  %6691 = vtanh.f32 %v10553_v1 }
 0xb0d   : > { %4321 = vxpose.xlu0.b32.cont [10/16] (narrow) %v10558_v53, 8 }
 0xb0f   : > { %v10561_v38 = vpop.xlane.xlu0 %4284 }
 0xb10   : > { %13447 = vst [vmem:[#allocation55_spill] sm:$0xff] %v10561_v38  ;;  %v10566_v21 = vsel %vm3475_vm0, %v10561_v38, -1e+30  ;;  %vm13453_vm0 = vcmp.gt.f32.partialorder %v9267_v14, 0.0 }
 0xb11   : > { %4322 = vxpose.xlu0.b32.cont [11/16] (narrow) %v10566_v21, 8 }
 0xb13   : > { %v10569_v39 = vpop.xlane.xlu0 %4286 }
 0xb14   : > { %v10574_v57 = vsel %vm13448_vm3, %v10569_v39, -1e+30  ;;  %6693 = vtanh.f32 %v10569_v39  ;;  %v13559_v39 = vmov 6  }
 0xb15   : > { %4323 = vxpose.xlu0.b32.cont [12/16] (narrow) %v10574_v57, 8 }
 0xb17   : > { %v10577_v62 = vpop.xlane.xlu0 %4288 }
 0xb18   : > { %13449 = vst [vmem:[#allocation64_spill] sm:$0xff] %v10577_v62  ;;  %v10582_v54 = vsel %vm13451_vm8, %v10577_v62, -1e+30 }
 0xb19   : > { %4324 = vxpose.xlu0.b32.cont [13/16] (narrow) %v10582_v54, 8 }
 0xb1b   : > { %v10585_v2 = vpop.xlane.xlu0 %4290 }
 0xb1c   : > { %v10590_v38 = vsel %vm3478_vm5, %v10585_v2, -1e+30  ;;  %6695 = vtanh.f32 %v10585_v2 }
 0xb1d   : > { %4325 = vxpose.xlu0.b32.cont [14/16] (narrow) %v10590_v38, 8 }
 0xb1f   : > { %v10593_v40 = vpop.xlane.xlu0 %4292 }
 0xb20   : > { %13452 = vst [vmem:[#allocation210_spill] sm:$0xff] %v10593_v40  ;;  %v10598_v7 = vsel %vm3479_vm4, %v10593_v40, -1e+30  ;;  %v13455_v40 = vld [vmem:[#allocation41_spill] sm:$0xff] }
 0xb21   : > { %4326 = vxpose.xlu0.b32.cont [15/16] (narrow) %v10598_v7, 8 }
 0xb23   : > { %v10601_v61 = vpop.xlane.xlu0 %4294 }
 0xb24   : > { %v10606_v62 = vsel %vm13453_vm0, %v10601_v61, -1e+30  ;;  %6697 = vtanh.f32 %v10601_v61  ;;  %v13568_v61 = vld [vmem:[#allocation72_spill] sm:$0xff] }
 0xb25   : > { %4327 = vxpose.xlu0.b32.end [16/16] (narrow) %v10606_v62, 8 }
 0xb69   : > { %v4328_v51 = vpop.trf.xlu0 }
 0xb6a   : > { %v10610_v48 = vrot.slane %v4328_v51, %v13454_v6 }
 0xb6c   : > { %vm4399_vm9 = vcmp.eq.f32.partialorder %v10610_v48, %v4299_v37  ;;  %vm4351_vm4 = vcmp.gt.f32.partialorder %v10610_v48, %v4299_v37  ;;  %vm4396_vm5 = vcmp.eq.f32.partialorder %v10610_v48, %v10489_v0  ;;  %vm4397_vm13 = vcmp.eq.f32.partialorder %v10610_v48, %v10497_v10 }
 0xb6d   : > { %v5853_v45 = vsel %vm4399_vm9, 1.0, %v12899_v43  ;;  %v5837_v14 = vsel %vm4351_vm4, 1.0, %v12899_v43  ;;  %v5850_v6 = vsel %vm4396_vm5, 1.0, %v12899_v43  ;;  %vm4348_vm15 = vcmp.gt.f32.partialorder %v10610_v48, %v10489_v0 }
 0xb6e   : > { %v4447_v32 = vmul.f32 %v5853_v45, %v13455_v40  ;;  %vm4398_vm6 = vcmp.eq.f32.partialorder %v10610_v48, %v10505_v12  ;;  %v5851_v45 = vsel %vm4397_vm13, 1.0, %v12899_v43  ;;  %v13456_v40 = vld [vmem:[#allocation38_spill] sm:$0xff]  ;;  %vm4349_vm7 = vcmp.gt.f32.partialorder %v10610_v48, %v10497_v10 }
 0xb6f   : > { %v4444_v37 = vmul.f32 %v5850_v6, %v13456_v40  ;;  %vm4350_vm3 = vcmp.gt.f32.partialorder %v10610_v48, %v10505_v12  ;;  %v5835_v0 = vsel %vm4349_vm7, 1.0, %v12899_v43  ;;  %v13460_v12 = vld [vmem:[#allocation127_spill] sm:$0xff]  ;;  %vm4405_vm8 = vcmp.eq.f32.partialorder %v10610_v48, %v10558_v53 }
 0xb70   : > { %v4479_v4 = vadd.f32 %v5837_v14, %v4447_v32  ;;  %v5834_v14 = vsel %vm4348_vm15, 1.0, %v12899_v43  ;;  %v5836_v10 = vsel %vm4350_vm3, 1.0, %v12899_v43  ;;  %vm4407_vm0 = vcmp.eq.f32.partialorder %v10610_v48, %v10574_v57 }
 0xb71   : > { %v4476_v15 = vadd.f32 %v5834_v14, %v4444_v37  ;;  %v13459_v37 = vld [vmem:[#allocation128_spill] sm:$0xff]  ;;  %vm4357_vm9 = vcmp.gt.f32.partialorder %v10610_v48, %v10558_v53  ;;  %vm4409_vm4 = vcmp.eq.f32.partialorder %v10610_v48, %v10590_v38  ;;  %vm4359_vm5 = vcmp.gt.f32.partialorder %v10610_v48, %v10574_v57 }
 0xb72   : > { %v4495_v51 = vmul.f32 %v4479_v4, %v9695_v24  ;;  %v5852_v24 = vsel %vm4398_vm6, 1.0, %v12899_v43  ;;  %v13457_v4 = vld [vmem:[#allocation39_spill] sm:$0xff]  ;;  %v5863_v53 = vsel %vm4409_vm4, 1.0, %v12899_v43  ;;  %vm4411_vm13 = vcmp.eq.f32.partialorder %v10610_v48, %v10606_v62 }
 0xb73   : > { %v4445_v32 = vmul.f32 %v5851_v45, %v13457_v4  ;;  %v4492_v8 = vmul.f32 %v4476_v15, %v9681_v60  ;;  %v5859_v60 = vsel %vm4405_vm8, 1.0, %v12899_v43  ;;  %vm4361_vm15 = vcmp.gt.f32.partialorder %v10610_v48, %v10590_v38 }
 0xb74   : > { %4514 = vadd.xlane.f32.xlu0 %v4495_v51  ;;  %v13458_v51 = vld [vmem:[#allocation40_spill] sm:$0xff]  ;;  %v5865_v57 = vsel %vm4411_vm13, 1.0, %v12899_v43  ;;  %vm4363_vm6 = vcmp.gt.f32.partialorder %v10610_v48, %v10606_v62  ;;  %vm4400_vm7 = vcmp.eq.f32.partialorder %v10610_v48, %v10518_v3  ;;  %vm4401_vm3 = vcmp.eq.f32.partialorder %v10610_v48, %v10526_v26 }
 0xb75   : > { %v4446_v33 = vmul.f32 %v5852_v24, %v13458_v51  ;;  %v4477_v6 = vadd.f32 %v5835_v0, %v4445_v32  ;;  %4508 = vadd.xlane.f32.xlu1 %v4492_v8  ;;  %v5843_v8 = vsel %vm4357_vm9, 1.0, %v12899_v43  ;;  %v13463_v24 = vld [vmem:[#allocation51_spill] sm:$0xff]  ;;  %v5847_v51 = vsel %vm4361_vm15, 1.0, %v12899_v43 }
 0xb76   : > { %v4457_v4 = vmul.f32 %v5863_v53, %v13463_v24  ;;  %v5849_v38 = vsel %vm4363_vm6, 1.0, %v12899_v43  ;;  %v5854_v62 = vsel %vm4400_vm7, 1.0, %v12899_v43  ;;  %vm4352_vm8 = vcmp.gt.f32.partialorder %v10610_v48, %v10518_v3  ;;  %v13469_v24 = vld [vmem:[#allocation43_spill] sm:$0xff] }
 0xb77   : > { %v4493_v40 = vmul.f32 %v4477_v6, %v9685_v34  ;;  %v4478_v49 = vadd.f32 %v5836_v10, %v4446_v33  ;;  %v13462_v33 = vld [vmem:[#allocation49_spill] sm:$0xff]  ;;  %v5855_v53 = vsel %vm4401_vm3, 1.0, %v12899_v43  ;;  %vm4353_vm9 = vcmp.gt.f32.partialorder %v10610_v48, %v10526_v26 }
 0xb78   : > { %v13464_v6 = vld [vmem:[#allocation53_spill] sm:$0xff]  ;;  %vm4403_vm4 = vcmp.eq.f32.partialorder %v10610_v48, %v10542_v17  ;;  %vm4404_vm13 = vcmp.eq.f32.partialorder %v10610_v48, %v10550_v44  ;;  %vm4355_vm15 = vcmp.gt.f32.partialorder %v10610_v48, %v10542_v17  ;;  %vm4406_vm6 = vcmp.eq.f32.partialorder %v10610_v48, %v10566_v21 }
 0xb79   : > { %4510 = vadd.xlane.f32.xlu1 %v4493_v40  ;;  %v4494_v45 = vmul.f32 %v4478_v49, %v9691_v23  ;;  %v13461_v23 = vld [vmem:[#allocation47_spill] sm:$0xff]  ;;  %v5861_v49 = vsel %vm4407_vm0, 1.0, %v12899_v43  ;;  %v4459_v10 = vmul.f32 %v5865_v57, %v13464_v6  ;;  %vm4402_vm0 = vcmp.eq.f32.partialorder %v10610_v48, %v10534_v50 }
 0xb7a   : > { %v4453_v34 = vmul.f32 %v5859_v60, %v13461_v23  ;;  %v4455_v15 = vmul.f32 %v5861_v49, %v13462_v33  ;;  %v13465_v40 = vld [vmem:[#allocation79_spill] sm:$0xff]  ;;  %v4489_v60 = vadd.f32 %v5847_v51, %v4457_v4  ;;  %v13466_v23 = vld [vmem:[#allocation81_spill] sm:$0xff]  ;;  %v13467_v49 = vld [vmem:[#allocation82_spill] sm:$0xff]  ;;  %v4449_v4 = vmul.f32 %v5855_v53, %v13469_v24 }
 0xb7b   : > { %v13468_v33 = vld [vmem:[#allocation42_spill] sm:$0xff]  ;;  %v5839_v57 = vsel %vm4353_vm9, 1.0, %v12899_v43  ;;  %v13470_v51 = vld [vmem:[#allocation44_spill] sm:$0xff]  ;;  %vm4356_vm7 = vcmp.gt.f32.partialorder %v10610_v48, %v10550_v44  ;;  %v13476_v24 = vld [vmem:[#allocation129_spill] sm:$0xff]  ;;  %vm4408_vm3 = vcmp.eq.f32.partialorder %v10610_v48, %v10582_v54  ;;  %vm4360_vm9 = vcmp.gt.f32.partialorder %v10610_v48, %v10582_v54 }
 0xb7c   : > { %v4485_v14 = vadd.f32 %v5843_v8, %v4453_v34  ;;  %v4505_v34 = vmul.f32 %v4489_v60, %v13466_v23  ;;  %v4481_v26 = vadd.f32 %v5839_v57, %v4449_v4  ;;  %v5860_v4 = vsel %vm4406_vm6, 1.0, %v12899_v43  ;;  %v13477_v44 = vld [vmem:[#allocation48_spill] sm:$0xff]  ;;  %v13485_v54 = vld [vmem:[#allocation22_spill] sm:$0xff] }
 0xb7d   : > { %4512 = vadd.xlane.f32.xlu1 %v4494_v45  ;;  %v4454_v57 = vmul.f32 %v5860_v4, %v13477_v44  ;;  %v13486_v4 = vld [vmem:[#allocation122_spill] sm:$0xff] }
 0xb7e   : > { %v4501_v32 = vmul.f32 %v4485_v14, %v13355_v63  ;;  %v4491_v63 = vadd.f32 %v5849_v38, %v4459_v10  ;;  %v10688_v14 = vpop.xlane.xlu1 %4540  ;;  %v13471_v10 = vld [vmem:[#allocation83_spill] sm:$0xff]  ;;  %v13472_v38 = vld [vmem:[#allocation45_spill] sm:$0xff] }
 0xb80   : > { %v4507_v8 = vmul.f32 %v4491_v63, %v13467_v49 }
 0xb82   : > { %v10700_v3 = vpop.xlane.xlu1 %4542 }
 0xb83   : > { %v4573_v58 = vmul.f32 0.8, %v10700_v3 }
 0xb86   : > { %v10715_v49 = vpop.xlane.xlu1 %4544 }
 0xb8a   : > { %2028 = vperm.xlu0 %6531, %v13459_v37  }
 0xb8e   : > { %2120 = vperm.xlu1 %6532, %v13460_v12  }
 0xb92   : > { %2126 = vperm.xlu1 %6532, %v9474_v25  }
 0xb96   : > { %2129 = vperm.xlu1 %6532, %v13459_v37  }
 0xb9a   : > { %6533 = vset.pattern.permute.xlu1 %v13198_v41  ;;  %v5845_v41 = vsel %vm4359_vm5, 1.0, %v12899_v43  ;;  %vm4354_vm5 = vcmp.gt.f32.partialorder %v10610_v48, %v10534_v50 }
 0xb9b   : > { %2031 = vperm.xlu1 %6533, %v13272_v11   ;;  %v4487_v0 = vadd.f32 %v5845_v41, %v4455_v15  ;;  %v4448_v15 = vmul.f32 %v5854_v62, %v13468_v33  ;;  %v5838_v41 = vsel %vm4352_vm8, 1.0, %v12899_v43  ;;  %v5840_v60 = vsel %vm4354_vm5, 1.0, %v12899_v43  ;;  %v13474_v33 = vld [vmem:[#allocation46_spill] sm:$0xff] }
 0xb9c   : > { %v5841_v62 = vsel %vm4355_vm15, 1.0, %v12899_v43  ;;  %vm4358_vm8 = vcmp.gt.f32.partialorder %v10610_v48, %v10566_v21  ;;  %v13481_v21 = vld [vmem:[#allocation50_spill] sm:$0xff] }
 0xb9d   : > { %v4503_v45 = vmul.f32 %v4487_v0, %v13465_v40  ;;  %v5856_v0 = vsel %vm4402_vm0, 1.0, %v12899_v43  ;;  %vm4410_vm0 = vcmp.eq.f32.partialorder %v10610_v48, %v10598_v7 }
 0xb9e   : > { %v4450_v6 = vmul.f32 %v5856_v0, %v13470_v51  ;;  %v5842_v0 = vsel %vm4356_vm7, 1.0, %v12899_v43  ;;  %v13478_v51 = vld [vmem:[#allocation85_spill] sm:$0xff] }
 0xba0   : > { %v4482_v63 = vadd.f32 %v5840_v60, %v4450_v6  ;;  %v5844_v60 = vsel %vm4358_vm8, 1.0, %v12899_v43 }
 0xba9   : > { %4526 = vadd.xlane.f32.xlu0 %v4501_v32  ;;  %v4480_v32 = vadd.f32 %v5838_v41, %v4448_v15  ;;  %v13475_v15 = vld [vmem:[#allocation33_spill] sm:$0xff] }
 0xbaa   : > { %v4498_v53 = vmul.f32 %v4482_v63, %v13475_v15 }
 0xbab   : > { %v4496_v40 = vmul.f32 %v4480_v32, %v13471_v10  ;;  %v4547_v32 = vpop.xlane.xlu1 %4546 }
 0xbad   : > { %4530 = vadd.xlane.f32.xlu0 %v4503_v45  ;;  %v5857_v45 = vsel %vm4403_vm4, 1.0, %v12899_v43  ;;  %vm4362_vm4 = vcmp.gt.f32.partialorder %v10610_v48, %v10598_v7 }
 0xbae   : > { %v4451_v23 = vmul.f32 %v5857_v45, %v13472_v38  ;;  %v13480_v45 = vld [vmem:[#allocation117_spill] sm:$0xff]  ;;  %v5848_v44 = vsel %vm4362_vm4, 1.0, %v12899_v43 }
 0xbaf   : > { %v10744_v63 = vpop.xlane.xlu1 %4548 }
 0xbb0   : > { %v4483_v41 = vadd.f32 %v5841_v62, %v4451_v23  ;;  %v13482_v23 = vld [vmem:[#allocation86_spill] sm:$0xff]  ;;  %v13483_v62 = vld [vmem:[#allocation120_spill] sm:$0xff] }
 0xbb1   : > { %4534 = vadd.xlane.f32.xlu0 %v4505_v34  ;;  %v13473_v34 = vld [vmem:[#allocation84_spill] sm:$0xff] }
 0xbb2   : > { %v4497_v50 = vmul.f32 %v4481_v26, %v13473_v34  ;;  %v4499_v6 = vmul.f32 %v4483_v41, %v13478_v51  ;;  %v5862_v26 = vsel %vm4408_vm3, 1.0, %v12899_v43 }
 0xbb3   : > { %v4456_v38 = vmul.f32 %v5862_v26, %v13481_v21  ;;  %v13489_v26 = vld [vmem:[#allocation126_spill] sm:$0xff]  ;;  %v13490_v21 = vmov 5  }
 0xbb5   : > { %4538 = vadd.xlane.f32.xlu0 %v4507_v8  ;;  %v5858_v8 = vsel %vm4404_vm13, 1.0, %v12899_v43 }
 0xbb6   : > { %v4452_v17 = vmul.f32 %v5858_v8, %v13474_v33  ;;  %v5864_v8 = vsel %vm4410_vm0, 1.0, %v12899_v43  ;;  %v5846_v33 = vsel %vm4360_vm9, 1.0, %v12899_v43  ;;  %vm13513_vm9 = vcmp.eq.s32.totalorder %v13512_v18, 1 }
 0xbb7   : > { %v4488_v41 = vadd.f32 %v5846_v33, %v4456_v38 }
 0xbb8   : > { %v4484_v10 = vadd.f32 %v5842_v0, %v4452_v17  ;;  %v13484_v17 = vld [vmem:[#allocation52_spill] sm:$0xff]  ;;  %v10754_v0 = vpop.xlane.xlu1 %4550 }
 0xbb9   : > { %v4458_v15 = vmul.f32 %v5864_v8, %v13484_v17  ;;  %v6684_v17 = vpop.eup %6683 }
 0xbba   : > { %v4500_v34 = vmul.f32 %v4484_v10, %v13482_v23  ;;  %v13488_v10 = vld [vmem:[#allocation124_spill] sm:$0xff]  ;;  %v13491_v23 = vld [vmem:[#allocation26_spill] sm:$0xff] }
 0xbbc   : > { %v10760_v48 = vpop.xlane.xlu1 %4552 }
 0xbbf   : > { %4516 = vadd.xlane.f32.xlu1 %v4496_v40  ;;  %v13479_v40 = vmov 4  }
 0xbc3   : > { %4518 = vadd.xlane.f32.xlu1 %v4497_v50  ;;  %v4486_v50 = vadd.f32 %v5844_v60, %v4454_v57  ;;  %v13487_v57 = vld [vmem:[#allocation19_spill] sm:$0xff]  ;;  %v10764_v60 = vpop.xlane.xlu1 %4554 }
 0xbc4   : > { %v4504_v51 = vmul.f32 %v4488_v41, %v13487_v57  ;;  %v13495_v41 = vmax.f32 %v10385_v35, 0.0 }
 0xbc7   : > { %4520 = vadd.xlane.f32.xlu1 %v4498_v53  ;;  %v4502_v53 = vmul.f32 %v4486_v50, %v13485_v54  ;;  %v10768_v38 = vpop.xlane.xlu1 %4556  ;;  %v4575_v50 = vmul.f32 0.8, %v4547_v32  ;;  %v12753_v54 = vmov 7  }
 0xbc9   : > { %v4591_v33 = vceil.f32 %v4575_v50  ;;  %v13497_v50 = vld [vmem:[#allocation118_spill] sm:$0xff] }
 0xbcb   : > { %2034 = vperm.xlu0 %6531, %v13476_v24   ;;  %4522 = vadd.xlane.f32.xlu1 %v4499_v6  ;;  %v4490_v6 = vadd.f32 %v5848_v44, %v4458_v15  ;;  %v4572_v15 = vmul.f32 0.8, %v10688_v14  ;;  %v4719_v44 = vmul.f32 %v6684_v17, %v13495_v41 }
 0xbcd   : > { %v4506_v7 = vmul.f32 %v4490_v6, %v13371_v30  ;;  %v10772_v30 = vpop.xlane.xlu1 %4558  ;;  %v4588_v6 = vceil.f32 %v4572_v15 }
 0xbcf   : > { %6534 = vset.pattern.permute.xlu0 %v13479_v40  ;;  %4524 = vadd.xlane.f32.xlu1 %v4500_v34 }
 0xbd0   : > { %2099 = vperm.xlu0 %6534, %v13480_v45  }
 0xbd1   : > { %v10778_v34 = vpop.xlane.xlu1 %4560 }
 0xbd3   : > { %4528 = vadd.xlane.f32.xlu1 %v4502_v53 }
 0xbd4   : > { %2108 = vperm.xlu0 %6534, %v13483_v62  }
 0xbd5   : > { %v10784_v8 = vpop.xlane.xlu1 %4564 }
 0xbd6   : > { %13492 = vst [vmem:[#allocation41_spill] sm:$0xff] %v10784_v8 }
 0xbd7   : > { %4532 = vadd.xlane.f32.xlu1 %v4504_v51  ;;  %v12752_v51 = vmov 6  }
 0xbd8   : > { %2114 = vperm.xlu0 %6534, %v13486_v4  }
 0xbd9   : > { %v10793_v53 = vpop.xlane.xlu1 %4568 }
 0xbda   : > { %13493 = vst [vmem:[#allocation38_spill] sm:$0xff] %v10793_v53 }
 0xbdb   : > { %4536 = vadd.xlane.f32.xlu1 %v4506_v7  ;;  %v6686_v7 = vpop.eup %6685 }
 0xbdc   : > { %2123 = vperm.xlu0 %6534, %v13488_v10  }
 0xbe0   : > { %2132 = vperm.xlu0 %6534, %v13272_v11  }
 0xbe4   : > { %2141 = vperm.xlu0 %6534, %v13489_v26  }
 0xbe8   : > { %6538 = vset.pattern.permute.xlu0 %v13490_v21 }
 0xbe9   : > { %2200 = vperm.xlu0 %6538, %v13480_v45   ;;  %v13523_v45 = vld [vmem:[#allocation121_spill] sm:$0xff] }
 0xbec   : > { %2037 = vperm.xlu1 %6533, %v13491_v23  }
 0xbed   : > { %2209 = vperm.xlu0 %6538, %v13483_v62  }
 0xbf0   : > { %2040 = vperm.xlu1 %6533, %v13489_v26  }
 0xbf1   : > { %2215 = vperm.xlu0 %6538, %v13486_v4  }
 0xbf4   : > { %6535 = vset.pattern.permute.xlu1 %v13490_v21 }
 0xbf5   : > { %2221 = vperm.xlu0 %6538, %v13460_v12   ;;  %2224 = vperm.xlu1 %6535, %v13488_v10  }
 0xbf9   : > { %2230 = vperm.xlu0 %6538, %v13459_v37   ;;  %2227 = vperm.xlu1 %6535, %v9474_v25  }
 0xbfd   : > { %2233 = vperm.xlu0 %6538, %v13272_v11   ;;  %6536 = vset.pattern.permute.xlu1 %v12753_v54  ;;  %v13673_v11 = vld [vmem:[#allocation90_spill] sm:$0xff] }
 0xbfe   : > { %2399 = vperm.xlu1 %6536, %v13494_v16  }
 0xc01   : > { %2242 = vperm.xlu0 %6538, %v13489_v26   ;;  %v4515_v47 = vpop.xlane.xlu0 %4514 }
 0xc02   : > { %vm4607_vm5 = vcmp.lt.f32.partialorder %v4515_v47, %v4591_v33  ;;  %2405 = vperm.xlu1 %6536, %v13497_v50   ;;  %v4509_v35 = vpop.xlane.xlu1 %4508  ;;  %v4589_v33 = vceil.f32 %v4573_v58  ;;  %v4716_v47 = vmul.f32 %v6686_v7, %v13499_v5  ;;  %v13505_v7 = vld [vmem:[#allocation67_spill] sm:$0xff] }
 0xc03   : > { %v5869_v32 = vsel %vm4607_vm5, 1.0, %v12899_v43  ;;  %vm4604_vm15 = vcmp.lt.f32.partialorder %v4509_v35, %v4588_v6  ;;  %v6688_v6 = vpop.eup %6687  ;;  %v4574_v35 = vmul.f32 0.8, %v10715_v49  ;;  %v13510_v49 = vld [vmem:[#allocation160_spill] sm:$0xff] }
 0xc04   : > { %v10799_v57 = vmul.f32 %v5869_v32, %v13431_v31  ;;  %v5866_v3 = vsel %vm4604_vm15, 1.0, %v12899_v43  ;;  %v13501_v32 = vld [vmem:[#allocation68_spill] sm:$0xff]  ;;  %vm13511_vm0 = vcmp.eq.s32.totalorder %v13510_v49, 1 }
 0xc05   : > { %6541 = vset.pattern.permute.xlu0 %v12752_v51  ;;  %v10819_v15 = vmul.f32 %v5866_v3, %v13428_v29  ;;  %v13503_v51 = vld [vmem:[#allocation119_spill] sm:$0xff] }
 0xc06   : > { %13496 = vst [vmem:[#allocation39_spill] sm:$0xff] %v10799_v57  ;;  %v10805_v14 = vmul.f32 %v4719_v44, %v10799_v57  ;;  %vm4751_vm13 = vcmp.gt.f32.partialorder %v10799_v57, 0.0  ;;  %v13502_v44 = vld [vmem:[#allocation176_spill] sm:$0xff]  ;;  %2408 = vperm.xlu1 %6536, %v13503_v51   ;;  %v4511_v54 = vpop.xlane.xlu1 %4510  ;;  %v13504_v29 = vld [vmem:[#allocation99_spill] sm:$0xff]  ;;  %v13508_v57 = vld [vmem:[#allocation58_spill] sm:$0xff] }
 0xc07   : > { %13500 = vst [vmem:[#allocation47_spill] sm:$0xff] %v10819_v15  ;;  %v13506_v3 = vmax.f32 %v13504_v29, %v13505_v7  ;;  %vm13509_vm7 = vcmp.eq.s32.totalorder %v13508_v57, 1  ;;  %v4732_v26 = vmul.f32 %v4716_v47, %v10819_v15  ;;  %vm4748_vm3 = vcmp.gt.f32.partialorder %v10819_v15, 0.0  ;;  %v13519_v15 = vld [vmem:[#allocation114_spill] sm:$0xff] }
 0xc08   : > { %v10812_v17 = vsel %vm4751_vm13, %v10805_v14, -1e+30  ;;  %vm4605_vm8 = vcmp.lt.f32.partialorder %v4511_v54, %v4589_v33  ;;  %v13515_v57 = vmax.f32 %v10371_v9, 0.0  ;;  %v4590_v54 = vceil.f32 %v4574_v35  ;;  %v13517_v33 = vld [vmem:[#allocation130_spill] sm:$0xff] }
 0xc09   : > { %v10809_v31 = vpop.permute.xlu0 %2028  ;;  %13498 = vst [vmem:[#allocation40_spill] sm:$0xff] %v10812_v17  ;;  %v4815_v50 = vsel %vm13509_vm7, %v10812_v17, -1e+30  ;;  %v4852_v4 = vsel %vm13511_vm0, %v10812_v17, -1e+30  ;;  %vm13518_vm4 = vcmp.eq.s32.totalorder %v13517_v33, 1 }
 0xc0a   : > { %vm2053_vm6 = vcmp.eq.s32.totalorder %v10809_v31, 1  ;;  %v4889_v62 = vsel %vm13513_vm9, %v10812_v17, -1e+30  ;;  %v10850_v29 = vsel %vm4748_vm3, %v4732_v26, -1e+30  ;;  %v4717_v7 = vmul.f32 %v6688_v6, %v13515_v57  ;;  %2414 = vperm.xlu1 %6536, %v13523_v45   ;;  %v4513_v9 = vpop.xlane.xlu1 %4512  ;;  %v13524_v57 = vld [vmem:[#allocation108_spill] sm:$0xff] }
 0xc0b   : > { %v10824_v41 = vsel %vm2053_vm6, %v13501_v32, -1e+30  ;;  %v3651_v58 = vsel %vm2053_vm6, %v13502_v44, -1e+30  ;;  %13514 = vst [vmem:[#allocation51_spill] sm:$0xff] %v10850_v29  ;;  %vm13520_vm5 = vcmp.eq.s32.totalorder %v13519_v15, 1  ;;  %vm4606_vm7 = vcmp.lt.f32.partialorder %v4513_v9, %v4590_v54 }
 0xc0c   : > { %v10836_v5 = vmax.f32 %v13506_v3, %v3651_v58  ;;  %v5867_v58 = vsel %vm4605_vm8, 1.0, %v12899_v43  ;;  %v6690_v3 = vpop.eup %6689  ;;  %v4812_v49 = vsel %vm13518_vm4, %v10850_v29, -1e+30  ;;  %v4849_v18 = vsel %vm13520_vm5, %v10850_v29, -1e+30 }
 0xc0d   : > { %v10855_v47 = vmul.f32 %v5867_v58, %v13429_v13  ;;  %v4828_v6 = vmax.f32 %v4812_v49, %v4815_v50  ;;  %v4865_v13 = vmax.f32 %v4849_v18, %v4852_v4  ;;  %v3677_v33 = vsel %vm2143_vm10, %v13524_v57, -1e+30  ;;  %v13528_v4 = vld [vmem:[#allocation134_spill] sm:$0xff]  ;;  %v13530_v50 = vld [vmem:[#allocation103_spill] sm:$0xff] }
 0xc0e   : > { %13507 = vst [vmem:[#allocation49_spill] sm:$0xff] %v10836_v5  ;;  %v13521_v5 = vld [vmem:[#allocation180_spill] sm:$0xff]  ;;  %v5868_v53 = vsel %vm4606_vm7, 1.0, %v12899_v43  ;;  %vm13529_vm3 = vcmp.eq.s32.totalorder %v13528_v4, 1  ;;  %vm13531_vm8 = vcmp.eq.s32.totalorder %v13530_v50, 1  ;;  %v13542_v50 = vld [vmem:[#allocation138_spill] sm:$0xff] }
 0xc0f   : > { %13516 = vst [vmem:[#allocation53_spill] sm:$0xff] %v10855_v47  ;;  %vm13522_vm13 = vcmp.eq.s32.totalorder %v13521_v5, 1  ;;  %v4733_v35 = vmul.f32 %v4717_v7, %v10855_v47  ;;  %vm4749_vm15 = vcmp.gt.f32.partialorder %v10855_v47, 0.0  ;;  %v13527_v5 = vmax.f32 %v10378_v52, 0.0  ;;  %v13532_v7 = vld [vmem:[#allocation23_spill] sm:$0xff] }
 0xc10   : > { %v4886_v17 = vsel %vm13522_vm13, %v10850_v29, -1e+30  ;;  %vm13533_vm0 = vcmp.eq.s32.totalorder %v13532_v7, 1  ;;  %v10887_v49 = vmul.f32 %v5868_v53, %v13430_v42  ;;  %v13535_v52 = vld [vmem:[#allocation123_spill] sm:$0xff]  ;;  %v13538_v53 = vld [vmem:[#allocation172_spill] sm:$0xff]  ;;  %vm13543_vm5 = vcmp.eq.s32.totalorder %v13542_v50, 1 }
 0xc11   : > { %v4902_v58 = vmax.f32 %v4886_v17, %v4889_v62  ;;  %v10872_v15 = vsel %vm4749_vm15, %v4733_v35, -1e+30  ;;  %v4718_v29 = vmul.f32 %v6690_v3, %v13527_v5  ;;  %v5115_v8 = vpack.c.bf16 %v4733_v35, %v4732_v26  ;;  %2420 = vperm.xlu1 %6536, %v13535_v52   ;;  %v10890_v3 = vpop.permute.xlu1 %2120  ;;  %v13537_v5 = vld [vmem:[#allocation63_spill] sm:$0xff] }
 0xc12   : > { %13526 = vst [vmem:[#allocation79_spill] sm:$0xff] %v10872_v15  ;;  %v4813_v62 = vsel %vm13529_vm3, %v10872_v15, -1e+30  ;;  %v4850_v17 = vsel %vm13531_vm8, %v10872_v15, -1e+30  ;;  %13534 = vst [vmem:[#allocation81_spill] sm:$0xff] %v10887_v49 }
 0xc13   : > { %v4887_v54 = vsel %vm13533_vm0, %v10872_v15, -1e+30  ;;  %13536 = vst [vmem:[#allocation82_spill] sm:$0xff] %v10890_v3  ;;  %v10892_v26 = vmax.f32 %v4813_v62, %v4828_v6  ;;  %v10894_v18 = vmax.f32 %v4850_v17, %v4865_v13  ;;  %vm2151_vm9 = vcmp.eq.s32.totalorder %v10890_v3, 1  ;;  %6376 = vmatpush3.bf16.msra.mxu1 %v5115_v8  ;;  %v13539_v13 = vld [vmem:[#allocation167_spill] sm:$0xff] }
 0xc14   : > { %v10896_v9 = vmax.f32 %v4887_v54, %v4902_v58  ;;  %v4734_v35 = vmul.f32 %v4718_v29, %v10887_v49  ;;  %vm4750_vm4 = vcmp.gt.f32.partialorder %v10887_v49, 0.0  ;;  %v2167_v42 = vsel %vm2151_vm9, %v13537_v5, -1e+30  ;;  %6377 = vmatprep.subr.bf16.mxu1 %v12899_v43  ;;  %v13544_v7 = vld [vmem:[#allocation159_spill] sm:$0xff]  ;;  %v13550_v49 = vld [vmem:[#allocation76_spill] sm:$0xff] }
 0xc15   : > { %v3685_v6 = vsel %vm2151_vm9, %v13538_v53, -1e+30  ;;  %v2177_v58 = vmax.f32 %v2167_v42, %v13539_v13  ;;  %6537 = vset.pattern.permute.xlu1 %v13479_v40  ;;  %v10912_v8 = vpop.permute.xlu1 %2126  ;;  %vm13545_vm13 = vcmp.eq.s32.totalorder %v13544_v7, 1  ;;  %v13548_v40 = vld [vmem:[#allocation18_spill] sm:$0xff] }
 0xc16   : > { %v3693_v4 = vmax.f32 %v3677_v33, %v3685_v6  ;;  %v10909_v62 = vsel %vm4750_vm4, %v4734_v35, -1e+30  ;;  %13541 = vst [vmem:[#allocation43_spill] sm:$0xff] %v10912_v8  ;;  %v5116_v29 = vpack.c.bf16 %v10805_v14, %v4734_v35  ;;  %v13546_v33 = vld [vmem:[#allocation181_spill] sm:$0xff]  ;;  %2135 = vperm.xlu1 %6537, %v13476_v24   ;;  %v10932_v6 = vunpack.c.l.bf16 %v13548_v40 }
 0xc17   : > { %13540 = vst [vmem:[#allocation42_spill] sm:$0xff] %v10909_v62  ;;  %v10918_v17 = vsel %vm13543_vm5, %v10909_v62, -1e+30  ;;  %v10923_v54 = vsel %vm13545_vm13, %v10909_v62, -1e+30  ;;  %vm13547_vm15 = vcmp.eq.s32.totalorder %v13546_v33, 1 }
 0xc18   : > { %v10928_v42 = vsel %vm13547_vm15, %v10909_v62, -1e+30  ;;  %13549 = vst [vmem:[#allocation44_spill] sm:$0xff] %v10932_v6  ;;  %vm2153_vm7 = vcmp.eq.s32.totalorder %v10912_v8, 1  ;;  %6378 = vmatpush3.bf16.msra.mxu1 %v5116_v29  ;;  %vm13569_vm5 = vcmp.eq.s32.totalorder %v13568_v61, 1 }
 0xc19   : > { %v2169_v50 = vsel %vm2153_vm7, %v9859_v59, -1e+30  ;;  %v3687_v7 = vsel %vm2153_vm7, %v9865_v22, -1e+30  ;;  %6379 = vmatprep.subr.bf16.mxu1 %v12899_v43  ;;  %v10952_v35 = vpop.permute.xlu1 %2129  ;;  %v11035_v59 = vmul.f32 0.8, %v10744_v63 }
 0xc1a   : > { %v10948_v33 = vmax.f32 %v2169_v50, %v2177_v58  ;;  %v10950_v14 = vmax.f32 %v3687_v7, %v3693_v4  ;;  %vm2154_vm3 = vcmp.eq.s32.totalorder %v10952_v35, 1  ;;  %2138 = vperm.xlu1 %6537, %v13491_v23   ;;  %v2561_v58 = vmul.f32 %v10932_v6, %v13550_v49  ;;  %v13551_v50 = vld [vmem:[#allocation166_spill] sm:$0xff]  ;;  %v13552_v7 = vld [vmem:[#allocation168_spill] sm:$0xff] }
 0xc1b   : > { %v10959_v29 = vsel %vm2154_vm3, %v13501_v32, -1e+30  ;;  %v3688_v13 = vsel %vm2154_vm3, %v13502_v44, -1e+30  ;;  %v13553_v47 = vmax.f32 %v13551_v50, %v13552_v7  ;;  %v4581_v32 = vmul.f32 0.8, %v10772_v30 }
 0xc1c   : > { %v11007_v4 = vmul.f32 0.8, %v10482_v20  ;;  %v13561_v44 = vld [vmem:[#allocation154_spill] sm:$0xff]  ;;  %v11021_v20 = vsel %vm2244_vm1, %v13524_v57, -1e+30 }
 0xc1d   : > { %v10971_v8 = vmax.f32 %v13553_v47, %v3688_v13  ;;  %v10973_v3 = vpop.permute.xlu1 %2031  ;;  %v13555_v47 = vmax.f32 %v10824_v41, %v10248_v55  ;;  %v4583_v55 = vmul.f32 0.8, %v10478_v46  ;;  %v4585_v41 = vmul.f32 0.8, %v10480_v56  ;;  %v13560_v56 = vld [vmem:[#allocation146_spill] sm:$0xff]  ;;  %13563 = vst [vmem:[#allocation84_spill] sm:$0xff] %v11021_v20 }
 0xc1e   : > { %13554 = vst [vmem:[#allocation83_spill] sm:$0xff] %v10973_v3  ;;  %vm2054_vm8 = vcmp.eq.s32.totalorder %v10973_v3, 1  ;;  %6539 = vset.pattern.permute.xlu1 %v13490_v21  ;;  %v13558_v21 = vmov 7   ;;  %vm13562_vm4 = vcmp.eq.s32.totalorder %v13561_v44, 1  ;;  %v4603_v22 = vceil.f32 %v11007_v4 }
 0xc1f   : > { %v2070_v49 = vsel %vm2054_vm8, %v13368_v19, -1e+30  ;;  %v10985_v50 = vsel %vm2054_vm8, %v9578_v36, -1e+30  ;;  %2236 = vperm.xlu1 %6539, %v13476_v24   ;;  %v4599_v7 = vceil.f32 %v4583_v55  ;;  %v4601_v30 = vceil.f32 %v4585_v41  ;;  %v13565_v55 = vld [vmem:[#allocation155_spill] sm:$0xff]  ;;  %v13588_v24 = vld [vmem:[#allocation65_spill] sm:$0xff] }
 0xc20   : > { %2562 = vadd.xlane.f32.xlu0 %v2561_v58  ;;  %v10991_v13 = vmax.f32 %v2070_v49, %v13555_v47  ;;  %v13557_v58 = vld [vmem:[#allocation92_spill] sm:$0xff]  ;;  %v4597_v49 = vceil.f32 %v4581_v32  ;;  %v6692_v47 = vpop.eup %6691  ;;  %v11016_v2 = vsel %vm13562_vm4, %v13560_v56, -1e+30  ;;  %v13567_v41 = vld [vmem:[#allocation143_spill] sm:$0xff]  ;;  %v11054_v63 = vmul.f32 0.8, %v10754_v0 }
 0xc21   : > { %v11143_v35 = vmul.f32 0.8, %v10778_v34 }
 0xc22   : > { %13556 = vst [vmem:[#allocation45_spill] sm:$0xff] %v10991_v13 }
 0xc23   : > { %2239 = vperm.xlu1 %6539, %v13491_v23  }
 0xc27   : > { %6540 = vset.pattern.permute.xlu1 %v13558_v21 }
 0xc28   : > { %2423 = vperm.xlu1 %6540, %v13460_v12  }
 0xc2c   : > { %2429 = vperm.xlu1 %6540, %v9474_v25   ;;  %v4593_v25 = vceil.f32 %v11054_v63  ;;  %v13647_v63 = vld [vmem:[#allocation196_spill] sm:$0xff] }
 0xc30   : > { %2432 = vperm.xlu1 %6540, %v13459_v37  }
 0xc34   : > { %6542 = vset.pattern.permute.xlu1 %v13559_v39  ;;  %v6694_v39 = vpop.eup %6693 }
 0xc35   : > { %v6696_v0 = vpop.eup %6695 }
 0xc36   : > { %2298 = vperm.xlu0 %6541, %v13494_v16   ;;  %v4527_v1 = vpop.xlane.xlu0 %4526  ;;  %v13564_v16 = vmax.f32 %v10427_v27, 0.0 }
 0xc37   : > { %vm4613_vm0 = vcmp.lt.f32.partialorder %v4527_v1, %v4597_v49  ;;  %v11031_v1 = vsel %vm13569_vm5, %v13567_v41, -1e+30 }
 0xc38   : > { %v5875_v46 = vsel %vm4613_vm0, 1.0, %v12899_v43  ;;  %v4725_v32 = vmul.f32 %v6692_v47, %v13564_v16  ;;  %v11041_v47 = vsel %vm2249_vm14, %v13567_v41, -1e+30  ;;  %v13576_v41 = vld [vmem:[#allocation162_spill] sm:$0xff] }
 0xc39   : > { %v11026_v49 = vmul.f32 %v5875_v46, %v13565_v55  ;;  %13571 = vst [vmem:[#allocation33_spill] sm:$0xff] %v11041_v47  ;;  %v13572_v46 = vld [vmem:[#allocation174_spill] sm:$0xff]  ;;  %v13648_v47 = vmax.f32 %v13647_v63, 0.0 }
 0xc3a   : > { %2307 = vperm.xlu0 %6541, %v13503_v51   ;;  %v4531_v57 = vpop.xlane.xlu0 %4530  ;;  %vm13573_vm13 = vcmp.eq.s32.totalorder %v13572_v46, 1  ;;  %v13575_v55 = vld [vmem:[#allocation158_spill] sm:$0xff]  ;;  %v11057_v51 = vmul.f32 0.8, %v10760_v48  ;;  %v13584_v48 = vld [vmem:[#allocation149_spill] sm:$0xff] }
 0xc3b   : > { %13566 = vst [vmem:[#allocation46_spill] sm:$0xff] %v11026_v49  ;;  %v11046_v16 = vsel %vm13573_vm13, %v13560_v56, -1e+30  ;;  %6699 = vtanh.f32 %v13575_v55  ;;  %v11050_v4 = vmul.f32 %v4725_v32, %v11026_v49  ;;  %vm4757_vm15 = vcmp.gt.f32.partialorder %v11026_v49, 0.0  ;;  %v13577_v56 = vld [vmem:[#allocation163_spill] sm:$0xff]  ;;  %v13579_v32 = vld [vmem:[#allocation77_spill] sm:$0xff] }
 0xc3c   : > { %13574 = vst [vmem:[#allocation48_spill] sm:$0xff] %v11046_v16  ;;  %vm4615_vm0 = vcmp.lt.f32.partialorder %v4531_v57, %v4599_v7  ;;  %6701 = vtanh.f32 %v13576_v41  ;;  %v13580_v5 = vmax.f32 %v13579_v32, 0.0  ;;  %v13581_v49 = vld [vmem:[#allocation66_spill] sm:$0xff]  ;;  %v13583_v7 = vld [vmem:[#allocation131_spill] sm:$0xff]  ;;  %vm13585_vm4 = vcmp.eq.s32.totalorder %v13584_v48, 1 }
 0xc3d   : > { %v5877_v53 = vsel %vm4615_vm0, 1.0, %v12899_v43  ;;  %6703 = vtanh.f32 %v13577_v56  ;;  %v11063_v55 = vsel %vm4757_vm15, %v11050_v4, -1e+30  ;;  %v13586_v16 = vld [vmem:[#allocation31_spill] sm:$0xff]  ;;  %vm13589_vm13 = vcmp.eq.s32.totalorder %v13588_v24, 1 }
 0xc3e   : > { %13578 = vst [vmem:[#allocation85_spill] sm:$0xff] %v11063_v55  ;;  %v4727_v23 = vmul.f32 %v6694_v39, %v13580_v5  ;;  %v11068_v57 = vmul.f32 %v5877_v53, %v13581_v49  ;;  %6705 = vtanh.f32 %v13583_v7  ;;  %v4821_v41 = vsel %vm13585_vm4, %v11063_v55, -1e+30  ;;  %2313 = vperm.xlu0 %6541, %v13523_v45   ;;  %v4535_v5 = vpop.xlane.xlu0 %4534  ;;  %v13594_v45 = vld [vmem:[#allocation137_spill] sm:$0xff] }
 0xc3f   : > { %vm13587_vm5 = vcmp.eq.s32.totalorder %v13586_v16, 1  ;;  %v4895_v40 = vsel %vm13589_vm13, %v11063_v55, -1e+30  ;;  %v13590_v53 = vmax.f32 %v10892_v26, %v10918_v17  ;;  %v13591_v39 = vmax.f32 %v10894_v18, %v10923_v54  ;;  %v13595_v26 = vld [vmem:[#allocation55_spill] sm:$0xff]  ;;  %v13597_v17 = vld [vmem:[#allocation142_spill] sm:$0xff] }
 0xc40   : > { %13582 = vst [vmem:[#allocation50_spill] sm:$0xff] %v11068_v57  ;;  %v4858_v56 = vsel %vm13587_vm5, %v11063_v55, -1e+30  ;;  %v13592_v7 = vmax.f32 %v10896_v9, %v10928_v42  ;;  %v11091_v48 = vmul.f32 %v4727_v23, %v11068_v57  ;;  %v11094_v24 = vmul.f32 0.8, %v10764_v60  ;;  %v6698_v23 = vpop.eup %6697 }
 0xc41   : > { %v4830_v49 = vmax.f32 %v4821_v41, %v13590_v53  ;;  %v4867_v32 = vmax.f32 %v4858_v56, %v13591_v39  ;;  %6707 = vtanh.f32 %v13594_v45  ;;  %vm4759_vm15 = vcmp.gt.f32.partialorder %v11068_v57, 0.0  ;;  %v13601_v41 = vld [vmem:[#allocation175_spill] sm:$0xff]  ;;  %v13605_v53 = vld [vmem:[#allocation70_spill] sm:$0xff] }
 0xc42   : > { %v4904_v16 = vmax.f32 %v4895_v40, %v13592_v7  ;;  %13593 = vst [vmem:[#allocation86_spill] sm:$0xff] %v11091_v48  ;;  %vm4617_vm0 = vcmp.lt.f32.partialorder %v4535_v5, %v4601_v30  ;;  %6709 = vtanh.f32 %v13595_v26  ;;  %v11100_v18 = vsel %vm4759_vm15, %v11091_v48, -1e+30  ;;  %v13599_v40 = vld [vmem:[#allocation32_spill] sm:$0xff]  ;;  %v13603_v30 = vld [vmem:[#allocation195_spill] sm:$0xff]  ;;  %2319 = vperm.xlu0 %6541, %v13535_v52   ;;  %v13609_v52 = vld [vmem:[#allocation37_spill] sm:$0xff] }
 0xc43   : > { %13596 = vst [vmem:[#allocation52_spill] sm:$0xff] %v11100_v18  ;;  %v13598_v54 = vmax.f32 %v13597_v17, 0.0  ;;  %v5879_v42 = vsel %vm4617_vm0, 1.0, %v12899_v43  ;;  %vm13600_vm4 = vcmp.eq.s32.totalorder %v13599_v40, 1  ;;  %vm13602_vm5 = vcmp.eq.s32.totalorder %v13601_v41, 1  ;;  %v13608_v41 = vld [vmem:[#allocation64_spill] sm:$0xff] }
 0xc44   : > { %v4823_v60 = vsel %vm13600_vm4, %v11100_v18, -1e+30  ;;  %v4860_v56 = vsel %vm13602_vm5, %v11100_v18, -1e+30  ;;  %vm13604_vm13 = vcmp.eq.s32.totalorder %v13603_v30, 1  ;;  %v11115_v39 = vmul.f32 %v5879_v42, %v13605_v53  ;;  %v13614_v30 = vld [vmem:[#allocation210_spill] sm:$0xff] }
 0xc45   : > { %v4729_v9 = vmul.f32 %v6696_v0, %v13598_v54  ;;  %v4897_v5 = vsel %vm13604_vm13, %v11100_v18, -1e+30  ;;  %v4539_v0 = vpop.xlane.xlu0 %4538  ;;  %v4831_v7 = vmax.f32 %v4823_v60, %v4830_v49  ;;  %v4868_v45 = vmax.f32 %v4860_v56, %v4867_v32  ;;  %v6700_v42 = vpop.eup %6699  ;;  %v13616_v53 = vld [vmem:[#allocation169_spill] sm:$0xff] }
 0xc46   : > { %13606 = vst [vmem:[#allocation22_spill] sm:$0xff] %v11115_v39  ;;  %v4905_v26 = vmax.f32 %v4897_v5, %v4904_v16  ;;  %vm4619_vm15 = vcmp.lt.f32.partialorder %v4539_v0, %v4603_v22  ;;  %vm4761_vm0 = vcmp.gt.f32.partialorder %v11115_v39, 0.0  ;;  %v11126_v40 = vsel %vm2154_vm3, %v11100_v18, -1e+30  ;;  %v13611_v16 = vld [vmem:[#allocation104_spill] sm:$0xff]  ;;  %v6702_v60 = vpop.eup %6701  ;;  %2325 = vperm.xlu0 %6541, %v13488_v10   ;;  %v13618_v0 = vld [vmem:[#allocation179_spill] sm:$0xff] }
 0xc47   : > { %v11119_v17 = vmul.f32 %v4729_v9, %v11115_v39  ;;  %v5881_v54 = vsel %vm4619_vm15, 1.0, %v12899_v43  ;;  %6711 = vtanh.f32 %v13608_v41  ;;  %v13610_v49 = vmax.f32 %v13609_v52, 0.0 }
 0xc48   : > { %v11132_v22 = vmul.f32 %v5881_v54, %v13611_v16  ;;  %v11137_v9 = vsel %vm2053_vm6, %v11100_v18, -1e+30  ;;  %v11140_v56 = vmul.f32 0.8, %v10768_v38  ;;  %6713 = vtanh.f32 %v13614_v30  ;;  %v13625_v18 = vld [vmem:[#allocation112_spill] sm:$0xff] }
 0xc49   : > { %13607 = vst [vmem:[#allocation19_spill] sm:$0xff] %v11119_v17  ;;  %v4731_v32 = vmul.f32 %v6698_v23, %v13610_v49  ;;  %13613 = vst [vmem:[#allocation116_spill] sm:$0xff] %v11137_v9  ;;  %v11147_v5 = vsel %vm4761_vm0, %v11119_v17, -1e+30  ;;  %v6704_v23 = vpop.eup %6703  ;;  %vm13617_vm3 = vcmp.eq.s32.totalorder %v13616_v53, 1  ;;  %vm13619_vm6 = vcmp.eq.s32.totalorder %v13618_v0, 1 }
 0xc4a   : > { %13612 = vst [vmem:[#allocation124_spill] sm:$0xff] %v11132_v22  ;;  %13615 = vst [vmem:[#allocation119_spill] sm:$0xff] %v11147_v5  ;;  %v4825_v31 = vsel %vm13617_vm3, %v11147_v5, -1e+30  ;;  %v4862_v38 = vsel %vm13619_vm6, %v11147_v5, -1e+30  ;;  %v6706_v52 = vpop.eup %6705 }
 0xc4b   : > { %v4899_v34 = vsel %vm1954_vm2, %v11147_v5, -1e+30  ;;  %v11160_v41 = vmul.f32 %v4731_v32, %v11132_v22  ;;  %v11162_v49 = vmax.f32 %v4831_v7, %v4825_v31  ;;  %v11164_v16 = vmax.f32 %v4868_v45, %v4862_v38  ;;  %v13622_v53 = vld [vmem:[#allocation41_spill] sm:$0xff]  ;;  %v13623_v0 = vld [vmem:[#allocation38_spill] sm:$0xff]  ;;  %v6708_v32 = vpop.eup %6707  ;;  %v13627_v45 = vld [vmem:[#allocation115_spill] sm:$0xff] }
 0xc4c   : > { %v11166_v30 = vmax.f32 %v4905_v26, %v4899_v34  ;;  %vm4763_vm4 = vcmp.gt.f32.partialorder %v11132_v22, 0.0  ;;  %v11170_v39 = vmul.f32 0.8, %v13622_v53  ;;  %v11173_v57 = vmul.f32 0.8, %v13623_v0  ;;  %v13629_v31 = vld [vmem:[#allocation202_spill] sm:$0xff]  ;;  %v2035_v53 = vpop.permute.xlu0 %2034  ;;  %v6710_v0 = vpop.eup %6709 }
 0xc4d   : > { %13621 = vst [vmem:[#allocation99_spill] sm:$0xff] %v11160_v41  ;;  %v11176_v54 = vsel %vm4763_vm4, %v11160_v41, -1e+30  ;;  %vm13626_vm2 = vcmp.eq.s32.totalorder %v13625_v18, 1  ;;  %vm13628_vm5 = vcmp.eq.s32.totalorder %v13627_v45, 1  ;;  %vm13630_vm13 = vcmp.eq.s32.totalorder %v13629_v31, 1 }
 0xc4e   : > { %13624 = vst [vmem:[#allocation67_spill] sm:$0xff] %v11176_v54  ;;  %v11181_v7 = vsel %vm13626_vm2, %v11176_v54, -1e+30  ;;  %v11186_v26 = vsel %vm13628_vm5, %v11176_v54, -1e+30  ;;  %v13631_v34 = vld [vmem:[#allocation125_spill] sm:$0xff]  ;;  %v4592_v22 = vceil.f32 %v11035_v59  ;;  %v13638_v18 = vmax.f32 %v13557_v58, %v10985_v50 }
 0xc4f   : > { %v11191_v38 = vsel %vm13630_vm13, %v11176_v54, -1e+30  ;;  %2334 = vperm.xlu0 %6541, %v13631_v34   ;;  %vm2055_vm15 = vcmp.eq.s32.totalorder %v2035_v53, 1  ;;  %v13632_v9 = vld [vmem:[#allocation87_spill] sm:$0xff]  ;;  %v13634_v31 = vld [vmem:[#allocation88_spill] sm:$0xff]  ;;  %v13636_v34 = vld [vmem:[#allocation78_spill] sm:$0xff]  ;;  %v11237_v50 = vmul.f32 %v6706_v52, %v13648_v47 }
 0xc50   : > { %v11201_v3 = vsel %vm2055_vm15, %v13632_v9, -1e+30  ;;  %v3653_v37 = vsel %vm2055_vm15, %v13634_v31, -1e+30  ;;  %v11205_v20 = vsel %vm2055_vm15, %v11147_v5, -1e+30  ;;  %v3880_v41 = vmul.f32 %v13636_v34, %v10932_v6  ;;  %v2100_v31 = vpop.permute.xlu0 %2099 }
 0xc51   : > { %13633 = vst [vmem:[#allocation58_spill] sm:$0xff] %v11201_v3  ;;  %13635 = vst [vmem:[#allocation160_spill] sm:$0xff] %v11205_v20  ;;  %v13637_v45 = vld [vmem:[#allocation73_spill] sm:$0xff]  ;;  %v6712_v34 = vpop.eup %6711  ;;  %vm2144_vm0 = vcmp.eq.s32.totalorder %v2100_v31, 1  ;;  %v13645_v3 = vld [vmem:[#allocation139_spill] sm:$0xff] }
 0xc52   : > { %v3665_v53 = vmax.f32 %v13637_v45, %v3653_v37  ;;  %v13640_v37 = vld [vmem:[#allocation194_spill] sm:$0xff]  ;;  %v13642_v17 = vld [vmem:[#allocation117_spill] sm:$0xff]  ;;  %v6714_v20 = vpop.eup %6713  ;;  %v13646_v59 = vmax.f32 %v13645_v3, 0.0  ;;  %v13653_v3 = vmax.f32 %v10959_v29, %v10948_v33 }
 0xc53   : > { %6543 = vset.pattern.permute.xlu0 %v13558_v21  ;;  %v13641_v45 = vmax.f32 %v13640_v37, 0.0  ;;  %v13643_v5 = vld [vmem:[#allocation201_spill] sm:$0xff]  ;;  %v11242_v37 = vsel %vm2144_vm0, %v10872_v15, -1e+30  ;;  %v13662_v33 = vld [vmem:[#allocation150_spill] sm:$0xff] }
 0xc54   : > { %v11224_v6 = vmax.f32 %v13638_v18, %v3665_v53  ;;  %2402 = vperm.xlu0 %6543, %v13642_v17   ;;  %v13644_v21 = vmax.f32 %v13643_v5, 0.0  ;;  %v11233_v12 = vmul.f32 %v6704_v23, %v13646_v59  ;;  %v13649_v58 = vld [vmem:[#allocation133_spill] sm:$0xff]  ;;  %v13650_v53 = vld [vmem:[#allocation140_spill] sm:$0xff]  ;;  %v13656_v59 = vld [vmem:[#allocation95_spill] sm:$0xff]  ;;  %v13663_v29 = vmax.f32 %v13662_v33, 0.0  ;;  %3881 = vadd.xlane.f32.xlu1 %v3880_v41 }
 0xc55   : > { %v4720_v9 = vmul.f32 %v6700_v42, %v13641_v45  ;;  %v2160_v18 = vsel %vm2144_vm0, %v13649_v58, -1e+30  ;;  %v3678_v42 = vsel %vm2144_vm0, %v13650_v53, -1e+30  ;;  %v13651_v45 = vld [vmem:[#allocation204_spill] sm:$0xff]  ;;  %v13654_v47 = vld [vmem:[#allocation197_spill] sm:$0xff] }
 0xc56   : > { %13639 = vst [vmem:[#allocation182_spill] sm:$0xff] %v11224_v6  ;;  %v4721_v13 = vmul.f32 %v6702_v60, %v13644_v21  ;;  %v13652_v31 = vmax.f32 %v13651_v45, 0.0  ;;  %v4517_v21 = vpop.xlane.xlu1 %4516  ;;  %v2183_v60 = vmax.f32 %v13653_v3, %v2160_v18  ;;  %v3694_v5 = vmax.f32 %v3678_v42, %v11031_v1  ;;  %v13658_v53 = vld [vmem:[#allocation120_spill] sm:$0xff] }
 0xc57   : > { %v13655_v23 = vmax.f32 %v13654_v47, 0.0  ;;  %v13657_v63 = vmax.f32 %v13656_v59, 0.0  ;;  %vm4608_vm3 = vcmp.lt.f32.partialorder %v4517_v21, %v4592_v22  ;;  %v13659_v45 = vld [vmem:[#allocation40_spill] sm:$0xff]  ;;  %v11268_v1 = vmul.f32 %v6714_v20, %v13663_v29  ;;  %v13668_v21 = vld [vmem:[#allocation51_spill] sm:$0xff]  ;;  %v13669_v47 = vld [vmem:[#allocation94_spill] sm:$0xff] }
 0xc58   : > { %v11246_v6 = vmul.f32 %v6708_v32, %v13652_v31  ;;  %2411 = vperm.xlu0 %6543, %v13658_v53   ;;  %v2109_v32 = vpop.permute.xlu0 %2108  ;;  %v13660_v31 = vld [vmem:[#allocation153_spill] sm:$0xff]  ;;  %v13667_v22 = vmax.f32 %v10971_v8, %v10950_v14  ;;  %v11282_v3 = vsel %vm2143_vm10, %v13668_v21, -1e+30  ;;  %v11294_v8 = vsel %vm2244_vm1, %v13668_v21, -1e+30 }
 0xc59   : > { %v11254_v52 = vmul.f32 %v6710_v0, %v13655_v23  ;;  %v11258_v48 = vmul.f32 %v6712_v34, %v13657_v63  ;;  %vm13661_vm6 = vcmp.eq.s32.totalorder %v13660_v31, 1  ;;  %v13664_v0 = vld [vmem:[#allocation101_spill] sm:$0xff]  ;;  %v5870_v34 = vsel %vm4608_vm3, 1.0, %v12899_v43  ;;  %v13671_v23 = vld [vmem:[#allocation54_spill] sm:$0xff] }
 0xc5a   : > { %v11264_v58 = vsel %vm13661_vm6, %v13659_v45, -1e+30  ;;  %vm13665_vm4 = vcmp.eq.s32.totalorder %v13664_v0, 1  ;;  %v3701_v42 = vmax.f32 %v13667_v22, %v3694_v5  ;;  %vm2147_vm2 = vcmp.eq.s32.totalorder %v2109_v32, 1  ;;  %v13672_v63 = vld [vmem:[#allocation98_spill] sm:$0xff]  ;;  %v4519_v14 = vpop.xlane.xlu1 %4518  ;;  %v13676_v0 = vld [vmem:[#allocation80_spill] sm:$0xff] }
 0xc5b   : > { %v11273_v18 = vsel %vm13665_vm4, %v13659_v45, -1e+30  ;;  %v11285_v20 = vmul.f32 %v5870_v34, %v13669_v47  ;;  %v2163_v59 = vsel %vm2147_vm2, %v13671_v23, -1e+30  ;;  %v3681_v31 = vsel %vm2147_vm2, %v13672_v63, -1e+30 }
 0xc5c   : > { %13666 = vst [vmem:[#allocation130_spill] sm:$0xff] %v11273_v18  ;;  %v2186_v5 = vmax.f32 %v2163_v59, %v2183_v60  ;;  %v3704_v33 = vmax.f32 %v3681_v31, %v3701_v42  ;;  %vm13674_vm10 = vcmp.eq.s32.totalorder %v13673_v11, 1  ;;  %vm13677_vm5 = vcmp.eq.s32.totalorder %v13676_v0, 1  ;;  %2417 = vperm.xlu0 %6543, %v13679_v28   ;;  %v11309_v60 = vpop.permute.xlu0 %2114  ;;  %v13681_v59 = vld [vmem:[#allocation91_spill] sm:$0xff]  ;;  %v13686_v31 = vld [vmem:[#allocation97_spill] sm:$0xff]  ;;  %v13694_v45 = vld [vmem:[#allocation184_spill] sm:$0xff] }
 0xc5d   : > { %13670 = vst [vmem:[#allocation114_spill] sm:$0xff] %v11285_v20  ;;  %v11299_v29 = vsel %vm13674_vm10, %v13668_v21, -1e+30  ;;  %v11304_v34 = vsel %vm13677_vm5, %v10872_v15, -1e+30  ;;  %v4736_v22 = vmul.f32 %v4720_v9, %v11285_v20  ;;  %vm4752_vm13 = vcmp.gt.f32.partialorder %v11285_v20, 0.0 }
 0xc5e   : > { %13675 = vst [vmem:[#allocation180_spill] sm:$0xff] %v11299_v29  ;;  %13678 = vst [vmem:[#allocation121_spill] sm:$0xff] %v11304_v34  ;;  %vm4609_vm15 = vcmp.lt.f32.partialorder %v4519_v14, %v4593_v25  ;;  %vm13680_vm1 = vcmp.eq.s32.totalorder %v13561_v44, 1  ;;  %vm2149_vm0 = vcmp.eq.s32.totalorder %v11309_v60, 1  ;;  %vm13682_vm3 = vcmp.eq.s32.totalorder %v13681_v59, 1  ;;  %v13688_v14 = vld [vmem:[#allocation59_spill] sm:$0xff] }
 0xc5f   : > { %v11314_v42 = vsel %vm13680_vm1, %v10909_v62, -1e+30  ;;  %v5871_v47 = vsel %vm4609_vm15, 1.0, %v12899_v43  ;;  %v11321_v9 = vsel %vm13682_vm3, %v10909_v62, -1e+30  ;;  %vm13683_vm6 = vcmp.eq.s32.totalorder %v13572_v46, 1 }
 0xc60   : > { %v11326_v25 = vsel %vm13683_vm6, %v10909_v62, -1e+30  ;;  %v11328_v41 = vsel %vm4752_vm13, %v4736_v22, -1e+30  ;;  %v11331_v44 = vmul.f32 %v5871_v47, %v13686_v31  ;;  %v2165_v11 = vsel %vm2149_vm0, %v13688_v14, -1e+30  ;;  %v4521_v31 = vpop.xlane.xlu1 %4520  ;;  %2426 = vperm.xlu0 %6543, %v13488_v10  }
 0xc61   : > { %13684 = vst [vmem:[#allocation148_spill] sm:$0xff] %v11326_v25  ;;  %13685 = vst [vmem:[#allocation134_spill] sm:$0xff] %v11328_v41  ;;  %v13689_v0 = vld [vmem:[#allocation147_spill] sm:$0xff]  ;;  %v13690_v20 = vld [vmem:[#allocation62_spill] sm:$0xff]  ;;  %vm13695_vm5 = vcmp.eq.s32.totalorder %v13694_v45, 1  ;;  %v2184_v25 = vmax.f32 %v2165_v11, %v2186_v5  ;;  %v13696_v14 = vmax.f32 %v11181_v7, %v11162_v49  ;;  %v2124_v45 = vpop.permute.xlu0 %2123  ;;  %v13699_v49 = vceil.f32 %v11057_v51 }
 0xc62   : > { %13687 = vst [vmem:[#allocation103_spill] sm:$0xff] %v11331_v44  ;;  %v3683_v59 = vsel %vm2149_vm0, %v13689_v0, -1e+30  ;;  %vm13691_vm4 = vcmp.eq.s32.totalorder %v13690_v20, 1  ;;  %v13692_v46 = vld [vmem:[#allocation107_spill] sm:$0xff]  ;;  %v13697_v0 = vmax.f32 %v11186_v26, %v11164_v16  ;;  %v13698_v20 = vmax.f32 %v11191_v38, %v11166_v30  ;;  %v13701_v7 = vld [vmem:[#allocation96_spill] sm:$0xff] }
 0xc63   : > { %v4816_v21 = vsel %vm13691_vm4, %v11328_v41, -1e+30  ;;  %vm13693_vm10 = vcmp.eq.s32.totalorder %v13692_v46, 1  ;;  %v4890_v47 = vsel %vm13695_vm5, %v11328_v41, -1e+30  ;;  %v4737_v46 = vmul.f32 %v4721_v13, %v11331_v44  ;;  %v13703_v38 = vld [vmem:[#allocation164_spill] sm:$0xff] }
 0xc64   : > { %v4853_v62 = vsel %vm13693_vm10, %v11328_v41, -1e+30  ;;  %v4834_v18 = vmax.f32 %v4816_v21, %v13696_v14  ;;  %v4908_v29 = vmax.f32 %v4890_v47, %v13698_v20  ;;  %vm4753_vm13 = vcmp.gt.f32.partialorder %v11331_v44, 0.0  ;;  %v13705_v51 = vld [vmem:[#allocation185_spill] sm:$0xff]  ;;  %v4523_v11 = vpop.xlane.xlu1 %4522 }
 0xc65   : > { %v4871_v34 = vmax.f32 %v4853_v62, %v13697_v0  ;;  %v11362_v5 = vsel %vm2147_vm2, %v11328_v41, -1e+30  ;;  %vm4610_vm15 = vcmp.lt.f32.partialorder %v4521_v31, %v13699_v49  ;;  %v3695_v62 = vmax.f32 %v11016_v2, %v3683_v59  ;;  %v13707_v21 = vld [vmem:[#allocation141_spill] sm:$0xff]  ;;  %v11384_v31 = vpop.permute.xlu0 %2132  ;;  %v13710_v49 = vld [vmem:[#allocation126_spill] sm:$0xff]  ;;  %2301 = vperm.xlu1 %6542, %v13642_v17  }
 0xc66   : > { %v11367_v16 = vsel %vm4753_vm13, %v4737_v46, -1e+30  ;;  %v5872_v13 = vsel %vm4610_vm15, 1.0, %v12899_v43  ;;  %v5117_v10 = vpack.c.bf16 %v4737_v46, %v4736_v22  ;;  %vm13702_vm1 = vcmp.eq.s32.totalorder %v13701_v7, 1  ;;  %2444 = vperm.xlu0 %6543, %v13710_v49  }
 0xc67   : > { %13700 = vst [vmem:[#allocation23_spill] sm:$0xff] %v11367_v16  ;;  %v4817_v26 = vsel %vm13702_vm1, %v11367_v16, -1e+30  ;;  %vm13704_vm2 = vcmp.eq.s32.totalorder %v13703_v38, 1  ;;  %vm13706_vm3 = vcmp.eq.s32.totalorder %v13705_v51, 1  ;;  %v11382_v14 = vmul.f32 %v5872_v13, %v13707_v21  ;;  %v13714_v13 = vld [vmem:[#allocation145_spill] sm:$0xff] }
 0xc68   : > { %v4854_v32 = vsel %vm13704_vm2, %v11367_v16, -1e+30  ;;  %v4891_v2 = vsel %vm13706_vm3, %v11367_v16, -1e+30  ;;  %v4837_v0 = vmax.f32 %v4817_v26, %v4834_v18  ;;  %v3702_v22 = vmax.f32 %v3695_v62, %v3704_v33  ;;  %6380 = vmatpush3.bf16.msra.mxu1 %v5117_v10  ;;  %v4525_v26 = vpop.xlane.xlu1 %4524  ;;  %v13716_v38 = vld [vmem:[#allocation110_spill] sm:$0xff]  ;;  %v13718_v51 = vld [vmem:[#allocation165_spill] sm:$0xff] }
 0xc69   : > { %13708 = vst [vmem:[#allocation123_spill] sm:$0xff] %v11382_v14  ;;  %v4874_v59 = vmax.f32 %v4854_v32, %v4871_v34  ;;  %v4911_v47 = vmax.f32 %v4891_v2, %v4908_v29  ;;  %v4738_v20 = vmul.f32 %v11233_v12, %v11382_v14  ;;  %vm4754_vm6 = vcmp.gt.f32.partialorder %v11382_v14, 0.0  ;;  %6381 = vmatprep.subr.bf16.mxu1 %v12899_v43  ;;  %v13711_v29 = vld [vmem:[#allocation60_spill] sm:$0xff]  ;;  %v13720_v21 = vld [vmem:[#allocation186_spill] sm:$0xff] }
 0xc6a   : > { %v13709_v46 = vceil.f32 %v11094_v24  ;;  %vm2152_vm10 = vcmp.eq.s32.totalorder %v2124_v45, 1  ;;  %v13712_v34 = vld [vmem:[#allocation156_spill] sm:$0xff]  ;;  %vm2155_vm5 = vcmp.eq.s32.totalorder %v11384_v31, 1  ;;  %vm13717_vm13 = vcmp.eq.s32.totalorder %v13716_v38, 1 }
 0xc6b   : > { %v2168_v33 = vsel %vm2152_vm10, %v13711_v29, -1e+30  ;;  %v3686_v62 = vsel %vm2152_vm10, %v13712_v34, -1e+30  ;;  %v11399_v12 = vsel %vm4754_vm6, %v4738_v20, -1e+30 }
 0xc6c   : > { %vm4611_vm4 = vcmp.lt.f32.partialorder %v4523_v11, %v13709_v46  ;;  %13713 = vst [vmem:[#allocation167_spill] sm:$0xff] %v11399_v12  ;;  %v2187_v10 = vmax.f32 %v2168_v33, %v2184_v25  ;;  %v3705_v7 = vmax.f32 %v3686_v62, %v3702_v22  ;;  %v4818_v32 = vsel %vm13717_vm13, %v11399_v12, -1e+30 }
 0xc6d   : > { %v5873_v18 = vsel %vm4611_vm4, 1.0, %v12899_v43  ;;  %vm13719_vm15 = vcmp.eq.s32.totalorder %v13718_v51, 1  ;;  %vm13721_vm1 = vcmp.eq.s32.totalorder %v13720_v21, 1  ;;  %v13722_v46 = vceil.f32 %v11140_v56  ;;  %v13730_v21 = vld [vmem:[#allocation170_spill] sm:$0xff] }
 0xc6e   : > { %v11402_v24 = vmul.f32 %v5873_v18, %v13714_v13  ;;  %v4855_v2 = vsel %vm13719_vm15, %v11399_v12, -1e+30  ;;  %v4892_v11 = vsel %vm13721_vm1, %v11399_v12, -1e+30  ;;  %v4836_v18 = vmax.f32 %v4818_v32, %v4837_v0 }
 0xc6f   : > { %vm4612_vm2 = vcmp.lt.f32.partialorder %v4525_v26, %v13722_v46  ;;  %v4873_v13 = vmax.f32 %v4855_v2, %v4874_v59  ;;  %v4910_v25 = vmax.f32 %v4892_v11, %v4911_v47  ;;  %v11418_v22 = vsel %vm2149_vm0, %v11399_v12, -1e+30  ;;  %v4529_v26 = vpop.xlane.xlu1 %4528  ;;  %v13732_v46 = vld [vmem:[#allocation191_spill] sm:$0xff] }
 0xc70   : > { %13715 = vst [vmem:[#allocation138_spill] sm:$0xff] %v11402_v24  ;;  %13723 = vst [vmem:[#allocation159_spill] sm:$0xff] %v11418_v22  ;;  %v13724_v33 = vmov 0   ;;  %v4739_v38 = vmul.f32 %v11237_v50, %v11402_v24  ;;  %vm4755_vm3 = vcmp.gt.f32.partialorder %v11402_v24, 0.0  ;;  %vm13725_vm6 = vcmp.eq.s32.totalorder %v13568_v61, 1  ;;  %v13726_v50 = vld [vmem:[#allocation61_spill] sm:$0xff] }
 0xc71   : > { %6546 = vset.pattern.permute.xlu0 %v13724_v33  ;;  %v4965_v56 = vsel %vm13725_vm6, %v11367_v16, -1e+30  ;;  %v4969_v0 = vsel %vm2152_vm10, %v11063_v55, -1e+30  ;;  %v5874_v59 = vsel %vm4612_vm2, 1.0, %v12899_v43  ;;  %vm13731_vm4 = vcmp.eq.s32.totalorder %v13730_v21, 1 }
 0xc72   : > { %v4977_v60 = vmax.f32 %v11242_v37, %v4965_v56  ;;  %v2171_v47 = vsel %vm2155_vm5, %v13368_v19, -1e+30  ;;  %v11436_v32 = vsel %vm4755_vm3, %v4739_v38, -1e+30  ;;  %v11439_v51 = vmul.f32 %v5874_v59, %v13726_v50  ;;  %v13728_v37 = vld [vmem:[#allocation144_spill] sm:$0xff] }
 0xc73   : > { %v11441_v2 = vmax.f32 %v2171_v47, %v2187_v10  ;;  %v3689_v61 = vsel %vm2155_vm5, %v9578_v36, -1e+30  ;;  %vm13729_vm0 = vcmp.eq.s32.totalorder %v13728_v37, 1  ;;  %v4856_v11 = vsel %vm13731_vm4, %v11436_v32, -1e+30  ;;  %v2142_v10 = vpop.permute.xlu0 %2141  ;;  %v4533_v33 = vpop.xlane.xlu1 %4532 }
 0xc74   : > { %13727 = vst [vmem:[#allocation181_spill] sm:$0xff] %v11439_v51  ;;  %v4819_v45 = vsel %vm13729_vm0, %v11436_v32, -1e+30  ;;  %vm13733_vm10 = vcmp.eq.s32.totalorder %v13732_v46, 1  ;;  %v11455_v59 = vmax.f32 %v4977_v60, %v4969_v0  ;;  %v4877_v50 = vmax.f32 %v4873_v13, %v4856_v11  ;;  %v13743_v60 = vld [vmem:[#allocation75_spill] sm:$0xff] }
 0xc75   : > { %v4893_v56 = vsel %vm13733_vm10, %v11436_v32, -1e+30  ;;  %v4840_v47 = vmax.f32 %v4836_v18, %v4819_v45  ;;  %v4740_v37 = vmul.f32 %v11246_v6, %v11439_v51  ;;  %vm4756_vm13 = vcmp.gt.f32.partialorder %v11439_v51, 0.0  ;;  %v13735_v18 = vld [vmem:[#allocation105_spill] sm:$0xff] }
 0xc76   : > { %v4914_v62 = vmax.f32 %v4910_v25, %v4893_v56  ;;  %v11461_v30 = vmax.f32 %v3689_v61, %v3705_v7  ;;  %v13734_v21 = vceil.f32 %v11143_v35  ;;  %v5118_v46 = vpack.c.bf16 %v4739_v38, %v4738_v20  ;;  %v13737_v6 = vld [vmem:[#allocation25_spill] sm:$0xff]  ;;  %v13739_v7 = vld [vmem:[#allocation171_spill] sm:$0xff]  ;;  %v13741_v20 = vld [vmem:[#allocation192_spill] sm:$0xff] }
 0xc77   : > { %v11465_v0 = vsel %vm4756_vm13, %v4740_v37, -1e+30  ;;  %vm2158_vm1 = vcmp.eq.s32.totalorder %v2142_v10, 1  ;;  %vm13736_vm2 = vcmp.eq.s32.totalorder %v13735_v18, 1  ;;  %vm13738_vm3 = vcmp.eq.s32.totalorder %v13737_v6, 1  ;;  %v13745_v61 = vld [vmem:[#allocation118_spill] sm:$0xff] }
 0xc78   : > { %vm4614_vm15 = vcmp.lt.f32.partialorder %v4529_v26, %v13734_v21  ;;  %v4967_v13 = vsel %vm13736_vm2, %v11436_v32, -1e+30  ;;  %v4820_v25 = vsel %vm13738_vm3, %v11465_v0, -1e+30  ;;  %vm13740_vm6 = vcmp.eq.s32.totalorder %v13739_v7, 1  ;;  %6382 = vmatpush3.bf16.msra.mxu1 %v5118_v46  ;;  %2304 = vperm.xlu1 %6542, %v13745_v61   ;;  %v13746_v21 = vld [vmem:[#allocation100_spill] sm:$0xff]  ;;  %v2201_v61 = vpop.permute.xlu0 %2200 }
 0xc79   : > { %v5876_v17 = vsel %vm4614_vm15, 1.0, %v12899_v43  ;;  %v4857_v35 = vsel %vm13740_vm6, %v11465_v0, -1e+30  ;;  %vm13742_vm0 = vcmp.eq.s32.totalorder %v13741_v20, 1  ;;  %v4839_v45 = vmax.f32 %v4820_v25, %v4840_v47  ;;  %6383 = vmatprep.subr.bf16.mxu1 %v12899_v43  ;;  %v13747_v46 = vld [vmem:[#allocation203_spill] sm:$0xff]  ;;  %v4537_v47 = vpop.xlane.xlu1 %4536  ;;  %v13751_v10 = vld [vmem:[#allocation28_spill] sm:$0xff] }
 0xc7a   : > { %v4894_v38 = vsel %vm13742_vm0, %v11465_v0, -1e+30  ;;  %v11481_v26 = vmul.f32 %v5876_v17, %v13743_v60  ;;  %v4876_v11 = vmax.f32 %v4857_v35, %v4877_v50  ;;  %v11486_v18 = vsel %vm2158_vm1, %v13746_v21, -1e+30  ;;  %v13770_v17 = vld [vmem:[#allocation190_spill] sm:$0xff] }
 0xc7b   : > { %v4913_v56 = vmax.f32 %v4894_v38, %v4914_v62  ;;  %v11496_v7 = vsel %vm2158_vm1, %v13747_v46, -1e+30  ;;  %v11502_v50 = vsel %vm2158_vm1, %v11176_v54, -1e+30  ;;  %v4979_v25 = vmax.f32 %v11264_v58, %v4967_v13  ;;  %v13753_v58 = vld [vmem:[#allocation89_spill] sm:$0xff] }
 0xc7c   : > { %13744 = vst [vmem:[#allocation76_spill] sm:$0xff] %v11481_v26  ;;  %v4742_v6 = vmul.f32 %v11254_v52, %v11481_v26  ;;  %vm4758_vm4 = vcmp.gt.f32.partialorder %v11481_v26, 0.0  ;;  %13748 = vst [vmem:[#allocation166_spill] sm:$0xff] %v11502_v50  ;;  %v13749_v52 = vceil.f32 %v11170_v39  ;;  %v5119_v38 = vpack.c.bf16 %v11050_v4, %v4740_v37  ;;  %2310 = vperm.xlu1 %6542, %v13658_v53   ;;  %v13813_v50 = vld [vmem:[#allocation18_spill] sm:$0xff] }
 0xc7d   : > { %v13750_v60 = vceil.f32 %v11173_v57  ;;  %vm13752_vm15 = vcmp.eq.s32.totalorder %v13751_v10, 1  ;;  %vm13754_vm1 = vcmp.eq.s32.totalorder %v13753_v58, 1  ;;  %v11524_v4 = vmax.f32 %v4979_v25, %v11126_v40 }
 0xc7e   : > { %vm4616_vm10 = vcmp.lt.f32.partialorder %v4533_v33, %v13749_v52  ;;  %v11507_v35 = vsel %vm4758_vm4, %v4742_v6, -1e+30  ;;  %v13755_v33 = vld [vmem:[#allocation102_spill] sm:$0xff]  ;;  %v13758_v52 = vld [vmem:[#allocation157_spill] sm:$0xff]  ;;  %6384 = vmatpush3.bf16.msra.mxu1 %v5119_v38  ;;  %vm2245_vm3 = vcmp.eq.s32.totalorder %v2201_v61, 1  ;;  %v13764_v61 = vld [vmem:[#allocation140_spill] sm:$0xff] }
 0xc7f   : > { %v5878_v20 = vsel %vm4616_vm10, 1.0, %v12899_v43  ;;  %vm4618_vm13 = vcmp.lt.f32.partialorder %v4537_v47, %v13750_v60  ;;  %v4822_v62 = vsel %vm13752_vm15, %v11507_v35, -1e+30  ;;  %v4859_v39 = vsel %vm13754_vm1, %v11507_v35, -1e+30  ;;  %13757 = vst [vmem:[#allocation168_spill] sm:$0xff] %v11524_v4  ;;  %v2038_v60 = vpop.permute.xlu1 %2037  ;;  %6385 = vmatprep.subr.bf16.mxu1 %v12899_v43 }
 0xc80   : > { %vm13756_vm2 = vcmp.eq.s32.totalorder %v13755_v33, 1  ;;  %v4838_v57 = vmax.f32 %v4822_v62, %v4839_v45  ;;  %v4875_v37 = vmax.f32 %v4859_v39, %v4876_v11  ;;  %v11527_v53 = vmul.f32 %v5878_v20, %v13758_v52  ;;  %v13760_v11 = vld [vmem:[#allocation161_spill] sm:$0xff]  ;;  %2316 = vperm.xlu1 %6542, %v13679_v28   ;;  %v13763_v20 = vld [vmem:[#allocation207_spill] sm:$0xff]  ;;  %v13765_v33 = vld [vmem:[#allocation86_spill] sm:$0xff] }
 0xc81   : > { %v4896_v13 = vsel %vm13756_vm2, %v11507_v35, -1e+30  ;;  %v5880_v58 = vsel %vm4618_vm13, 1.0, %v12899_v43  ;;  %v11536_v40 = vsel %vm2249_vm14, %v11367_v16, -1e+30  ;;  %v13762_v62 = vld [vmem:[#allocation133_spill] sm:$0xff] }
 0xc82   : > { %v4912_v47 = vmax.f32 %v4896_v13, %v4913_v56  ;;  %13759 = vst [vmem:[#allocation92_spill] sm:$0xff] %v11527_v53  ;;  %v4744_v45 = vmul.f32 %v11258_v48, %v11527_v53  ;;  %vm4760_vm6 = vcmp.gt.f32.partialorder %v11527_v53, 0.0  ;;  %v11542_v56 = vmul.f32 %v5880_v58, %v13760_v11  ;;  %v13767_v58 = vld [vmem:[#allocation33_spill] sm:$0xff]  ;;  %v2210_v11 = vpop.permute.xlu0 %2209 }
 0xc83   : > { %v2261_v25 = vsel %vm2245_vm3, %v13762_v62, -1e+30  ;;  %v11548_v39 = vsel %vm2245_vm3, %v13764_v61, -1e+30  ;;  %v11551_v27 = vsel %vm2245_vm3, %v10872_v15, -1e+30  ;;  %v5120_v13 = vpack.c.bf16 %v13765_v33, %v4742_v6 }
 0xc84   : > { %13761 = vst [vmem:[#allocation154_spill] sm:$0xff] %v11542_v56  ;;  %v2281_v38 = vmax.f32 %v2261_v25, %v13763_v20  ;;  %v11554_v48 = vsel %vm4760_vm6, %v4744_v45, -1e+30  ;;  %v4746_v52 = vmul.f32 %v11268_v1, %v11542_v56  ;;  %vm4762_vm14 = vcmp.gt.f32.partialorder %v11542_v56, 0.0  ;;  %v11561_v25 = vpop.permute.xlu1 %2040  ;;  %v13768_v20 = vld [vmem:[#allocation69_spill] sm:$0xff]  ;;  %v13772_v33 = vld [vmem:[#allocation198_spill] sm:$0xff] }
 0xc85   : > { %13766 = vst [vmem:[#allocation155_spill] sm:$0xff] %v11554_v48  ;;  %vm13769_vm0 = vcmp.eq.s32.totalorder %v13768_v20, 1  ;;  %vm13771_vm4 = vcmp.eq.s32.totalorder %v13770_v17, 1  ;;  %vm13773_vm10 = vcmp.eq.s32.totalorder %v13772_v33, 1  ;;  %6386 = vmatpush3.bf16.msra.mxu1 %v5120_v13  ;;  %v13775_v20 = vld [vmem:[#allocation127_spill] sm:$0xff]  ;;  %v13778_v33 = vld [vmem:[#allocation20_spill] sm:$0xff] }
 0xc86   : > { %v4824_v10 = vsel %vm13769_vm0, %v11554_v48, -1e+30  ;;  %v4861_v6 = vsel %vm13771_vm4, %v11554_v48, -1e+30  ;;  %v4898_v1 = vsel %vm13773_vm10, %v11554_v48, -1e+30  ;;  %6387 = vmatprep.subr.bf16.mxu1 %v12899_v43  ;;  %2322 = vperm.xlu1 %6542, %v13775_v20  }
 0xc87   : > { %v4841_v28 = vmax.f32 %v4838_v57, %v4824_v10  ;;  %v4878_v53 = vmax.f32 %v4875_v37, %v4861_v6  ;;  %v4915_v26 = vmax.f32 %v4912_v47, %v4898_v1  ;;  %v11574_v51 = vsel %vm4762_vm14, %v4746_v52, -1e+30  ;;  %v13776_v17 = vld [vmem:[#allocation187_spill] sm:$0xff]  ;;  %v13785_v1 = vld [vmem:[#allocation34_spill] sm:$0xff]  ;;  %v13795_v15 = vld [vmem:[#allocation45_spill] sm:$0xff] }
 0xc88   : > { %13774 = vst [vmem:[#allocation72_spill] sm:$0xff] %v11574_v51  ;;  %vm13777_vm13 = vcmp.eq.s32.totalorder %v13776_v17, 1  ;;  %vm13779_vm15 = vcmp.eq.s32.totalorder %v13778_v33, 1  ;;  %v4900_v57 = vsel %vm1955_vm12, %v11574_v51, -1e+30  ;;  %v13781_v37 = vld [vmem:[#allocation19_spill] sm:$0xff]  ;;  %v11597_v17 = vpop.permute.xlu1 %2224 }
 0xc89   : > { %v4826_v24 = vsel %vm13777_vm13, %v11574_v51, -1e+30  ;;  %v4863_v14 = vsel %vm13779_vm15, %v11574_v51, -1e+30  ;;  %v5121_v47 = vpack.c.bf16 %v13781_v37, %v4744_v45  ;;  %v11592_v6 = vmax.f32 %v4900_v57, %v4915_v26  ;;  %v13787_v33 = vld [vmem:[#allocation106_spill] sm:$0xff]  ;;  %v2216_v57 = vpop.permute.xlu0 %2215  ;;  %v13793_v37 = vld [vmem:[#allocation183_spill] sm:$0xff] }
 0xc8a   : > { %v11588_v10 = vmax.f32 %v4826_v24, %v4841_v28  ;;  %v11590_v13 = vmax.f32 %v4863_v14, %v4878_v53  ;;  %vm13786_vm1 = vcmp.eq.s32.totalorder %v13785_v1, 1  ;;  %vm13788_vm2 = vcmp.eq.s32.totalorder %v13787_v33, 1  ;;  %v13789_v24 = vld [vmem:[#allocation189_spill] sm:$0xff]  ;;  %v13790_v53 = vld [vmem:[#allocation188_spill] sm:$0xff]  ;;  %v13791_v45 = vld [vmem:[#allocation74_spill] sm:$0xff]  ;;  %2328 = vperm.xlu1 %6542, %v13793_v37  }
 0xc8b   : > { %13784 = vst [vmem:[#allocation158_spill] sm:$0xff] %v11592_v6  ;;  %v4929_v20 = vsel %vm13786_vm1, %v11399_v12, -1e+30  ;;  %v4933_v44 = vsel %vm13788_vm2, %v11507_v35, -1e+30  ;;  %vm2056_vm12 = vcmp.eq.s32.totalorder %v2038_v60, 1  ;;  %6388 = vmatpush3.bf16.msra.mxu1 %v5121_v47 }
 0xc8c   : > { %13782 = vst [vmem:[#allocation177_spill] sm:$0xff] %v11588_v10  ;;  %13783 = vst [vmem:[#allocation174_spill] sm:$0xff] %v11590_v13  ;;  %v4941_v56 = vmax.f32 %v11321_v9, %v4929_v20  ;;  %vm2248_vm3 = vcmp.eq.s32.totalorder %v2210_v11, 1  ;;  %v2072_v14 = vsel %vm2056_vm12, %v13789_v24, -1e+30  ;;  %6389 = vmatprep.subr.bf16.mxu1 %v12899_v43  ;;  %vm13792_vm6 = vcmp.eq.s32.totalorder %v13791_v45, 1  ;;  %v11623_v37 = vpop.permute.xlu1 %2227 }
 0xc8d   : > { %v3654_v26 = vsel %vm2056_vm12, %v13790_v53, -1e+30  ;;  %v4932_v28 = vsel %vm13792_vm6, %v11063_v55, -1e+30  ;;  %v13794_v33 = vld [vmem:[#allocation58_spill] sm:$0xff]  ;;  %v13797_v11 = vld [vmem:[#allocation173_spill] sm:$0xff] }
 0xc8e   : > { %v4945_v1 = vmax.f32 %v4941_v56, %v4933_v44  ;;  %v13796_v9 = vmax.f32 %v13794_v33, %v13795_v15  ;;  %v3666_v47 = vmax.f32 %v13797_v11, %v3654_v26  ;;  %v4937_v20 = vsel %vm2056_vm12, %v11574_v51, -1e+30  ;;  %v13798_v62 = vld [vmem:[#allocation99_spill] sm:$0xff]  ;;  %v13799_v15 = vld [vmem:[#allocation84_spill] sm:$0xff]  ;;  %v13800_v33 = vld [vmem:[#allocation29_spill] sm:$0xff] }
 0xc8f   : > { %v2264_v61 = vsel %vm2248_vm3, %v13671_v23, -1e+30  ;;  %v11617_v43 = vsel %vm2248_vm3, %v13672_v63, -1e+30  ;;  %v11620_v45 = vsel %vm2248_vm3, %v11328_v41, -1e+30  ;;  %v5122_v6 = vpack.c.bf16 %v13798_v62, %v4746_v52 }
 0xc90   : > { %v2087_v60 = vmax.f32 %v2072_v14, %v13796_v9  ;;  %v4949_v44 = vmax.f32 %v4945_v1, %v4937_v20  ;;  %v2280_v56 = vmax.f32 %v2264_v61, %v2281_v38  ;;  %vm13801_vm14 = vcmp.eq.s32.totalorder %v13800_v33, 1  ;;  %v13802_v11 = vld [vmem:[#allocation113_spill] sm:$0xff]  ;;  %v13806_v38 = vld [vmem:[#allocation128_spill] sm:$0xff]  ;;  %v13812_v23 = vld [vmem:[#allocation130_spill] sm:$0xff]  ;;  %v11652_v20 = vpop.permute.xlu1 %2399 }
 0xc91   : > { %v4927_v9 = vsel %vm13801_vm14, %v11328_v41, -1e+30  ;;  %vm13803_vm0 = vcmp.eq.s32.totalorder %v13802_v11, 1  ;;  %v13804_v62 = vld [vmem:[#allocation109_spill] sm:$0xff]  ;;  %6390 = vmatpush3.bf16.msra.mxu1 %v5122_v6  ;;  %2331 = vperm.xlu1 %6542, %v13806_v38   ;;  %v13807_v61 = vld [vmem:[#allocation24_spill] sm:$0xff]  ;;  %vm2057_vm13 = vcmp.eq.s32.totalorder %v11561_v25, 1  ;;  %v2222_v6 = vpop.permute.xlu0 %2221 }
 0xc92   : > { %v4928_v63 = vsel %vm13803_vm0, %v11367_v16, -1e+30  ;;  %vm13805_vm4 = vcmp.eq.s32.totalorder %v13804_v62, 1  ;;  %vm13808_vm10 = vcmp.eq.s32.totalorder %v13807_v61, 1  ;;  %v4935_v33 = vsel %vm2054_vm8, %v11554_v48, -1e+30 }
 0xc93   : > { %v4930_v52 = vsel %vm13805_vm4, %v11436_v32, -1e+30  ;;  %v4931_v1 = vsel %vm13808_vm10, %v11465_v0, -1e+30  ;;  %v13810_v26 = vld [vmem:[#allocation180_spill] sm:$0xff]  ;;  %v13811_v41 = vld [vmem:[#allocation121_spill] sm:$0xff] }
 0xc94   : > { %v4939_v14 = vmax.f32 %v13810_v26, %v4927_v9  ;;  %v4940_v11 = vmax.f32 %v13811_v41, %v4928_v63  ;;  %v4942_v13 = vmax.f32 %v13812_v23, %v4930_v52  ;;  %vm2250_vm15 = vcmp.eq.s32.totalorder %v2216_v57, 1  ;;  %6392 = vmatmul.mubr.bf16.vlgmr.msra.gmra.mrb[56].mxu1 %v13813_v50  ;;  %v13814_v26 = vld [vmem:[#allocation116_spill] sm:$0xff]  ;;  %v13815_v23 = vld [vmem:[#allocation49_spill] sm:$0xff]  ;;  %v13819_v51 = vld [vmem:[#allocation147_spill] sm:$0xff] }
 0xc95   : > { %vm2253_vm1 = vcmp.eq.s32.totalorder %v11597_v17, 1  ;;  %v2073_v61 = vsel %vm2057_vm13, %v13746_v21, -1e+30  ;;  %v3655_v10 = vsel %vm2057_vm13, %v13747_v46, -1e+30  ;;  %v13816_v52 = vld [vmem:[#allocation129_spill] sm:$0xff] }
 0xc96   : > { %v4943_v62 = vmax.f32 %v4939_v14, %v4931_v1  ;;  %v4944_v38 = vmax.f32 %v4940_v11, %v4932_v28  ;;  %v4946_v63 = vmax.f32 %v4942_v13, %v13814_v26  ;;  %v2088_v41 = vmax.f32 %v2073_v61, %v2087_v60  ;;  %2337 = vperm.xlu1 %6542, %v13816_v52   ;;  %v13817_v14 = vld [vmem:[#allocation160_spill] sm:$0xff]  ;;  %v13818_v1 = vld [vmem:[#allocation59_spill] sm:$0xff] }
 0xc97   : > { %v3667_v9 = vmax.f32 %v13815_v23, %v3655_v10  ;;  %v4938_v25 = vsel %vm2057_vm13, %v11176_v54, -1e+30  ;;  %v2266_v11 = vsel %vm2250_vm15, %v13818_v1, -1e+30  ;;  %v3720_v53 = vsel %vm2250_vm15, %v13819_v51, -1e+30 }
 0xc98   : > { %v4947_v4 = vmax.f32 %v4943_v62, %v4935_v33  ;;  %v4948_v28 = vmax.f32 %v4944_v38, %v13817_v14  ;;  %v2089_v24 = vrot.slane %v2088_v41, 4  ;;  %v4950_v22 = vmax.f32 %v4946_v63, %v4938_v25  ;;  %v13820_v61 = vld [vmem:[#allocation48_spill] sm:$0xff]  ;;  %v11670_v62 = vpop.permute.xlu1 %2405  ;;  %v13821_v23 = vld [vmem:[#allocation182_spill] sm:$0xff]  ;;  %v2231_v63 = vpop.permute.xlu0 %2230 }
 0xc99   : > { %v3669_v50 = vmax.f32 %v3666_v47, %v3667_v9  ;;  %v2282_v13 = vmax.f32 %v2266_v11, %v2280_v56  ;;  %v3732_v10 = vmax.f32 %v13820_v61, %v3720_v53  ;;  %v5003_v26 = vsel %vm2250_vm15, %v11399_v12, -1e+30  ;;  %v13822_v1 = vld [vmem:[#allocation148_spill] sm:$0xff]  ;;  %v13823_v56 = vld [vmem:[#allocation26_spill] sm:$0xff]  ;;  %v13860_v12 = vld [vmem:[#allocation151_spill] sm:$0xff] }
 0xc9a   : > { %v4951_v60 = vmax.f32 %v4947_v4, %v4948_v28  ;;  %v2269_v33 = vsel %vm2253_vm1, %v13711_v29, -1e+30  ;;  %v2090_v38 = vmax.f32 %v2088_v41, %v2089_v24  ;;  %v4952_v51 = vmax.f32 %v4949_v44, %v4950_v22  ;;  %2340 = vperm.xlu1 %6542, %v13823_v56  }
 0xc9b   : > { %v3670_v14 = vmax.f32 %v13821_v23, %v3669_v50  ;;  %v5015_v47 = vmax.f32 %v13822_v1, %v5003_v26  ;;  %v2283_v4 = vmax.f32 %v2269_v33, %v2282_v13  ;;  %v3723_v53 = vsel %vm2253_vm1, %v13712_v34, -1e+30  ;;  %v13826_v1 = vld [vmem:[#allocation63_spill] sm:$0xff]  ;;  %v13827_v50 = vld [vmem:[#allocation172_spill] sm:$0xff] }
 0xc9c   : > { %v5006_v57 = vsel %vm2253_vm1, %v11063_v55, -1e+30  ;;  %vm2252_vm8 = vcmp.eq.s32.totalorder %v2222_v6, 1  ;;  %v2091_v9 = vrot.slane %v2090_v38, 2  ;;  %v11681_v41 = vmax.f32 %v4951_v60, %v4952_v51  ;;  %v11696_v13 = vpop.permute.xlu1 %2408 }
 0xc9d   : > { %v3671_v24 = vrot.slane %v3670_v14, 4  ;;  %v13824_v22 = vmax.f32 %v11548_v39, %v13767_v58  ;;  %v13825_v25 = vmax.f32 %v11551_v27, %v11536_v40  ;;  %v2268_v11 = vsel %vm2252_vm8, %v13826_v1, -1e+30 }
 0xc9e   : > { %v3722_v17 = vsel %vm2252_vm8, %v13827_v50, -1e+30  ;;  %v5005_v6 = vsel %vm2252_vm8, %v11465_v0, -1e+30  ;;  %v2092_v51 = vmax.f32 %v2090_v38, %v2091_v9  ;;  %v2284_v61 = vmax.f32 %v2268_v11, %v2283_v4  ;;  %2343 = vperm.xlu1 %6542, %v13710_v49   ;;  %v13830_v38 = vld [vmem:[#allocation30_spill] sm:$0xff]  ;;  %v13831_v4 = vld [vmem:[#allocation27_spill] sm:$0xff] }
 0xc9f   : > { %v11686_v44 = vmax.f32 %v13824_v22, %v3723_v53  ;;  %v11691_v28 = vmax.f32 %v13825_v25, %v5006_v57  ;;  %v3672_v60 = vmax.f32 %v3670_v14, %v3671_v24  ;;  %v13828_v39 = vmax.f32 %v13799_v15, %v11617_v43  ;;  %v2234_v14 = vpop.permute.xlu0 %2233  ;;  %v13832_v15 = vld [vmem:[#allocation68_spill] sm:$0xff] }
 0xca0   : > { %v13829_v40 = vmax.f32 %v11294_v8, %v11620_v45  ;;  %vm2254_vm2 = vcmp.eq.s32.totalorder %v11623_v37, 1  ;;  %vm2255_vm12 = vcmp.eq.s32.totalorder %v2231_v63, 1  ;;  %vm2503_vm3 = vcmask 1042432   ;;  %v2415_v8 = vpop.permute.xlu1 %2414  ;;  %v13834_v11 = vld [vmem:[#allocation176_spill] sm:$0xff]  ;;  %v13850_v63 = vld [vmem:[#allocation135_spill] sm:$0xff] }
 0xca1   : > { %v11702_v58 = vmax.f32 %v13828_v39, %v3722_v17  ;;  %v2093_v26 = vrot.slane %v2092_v51, 1  ;;  %v3673_v33 = vrot.slane %v3672_v60, 2  ;;  %v2270_v23 = vsel %vm2254_vm2, %v13830_v38, -1e+30  ;;  %v13837_v39 = vld [vmem:[#allocation125_spill] sm:$0xff] }
 0xca2   : > { %v11707_v27 = vmax.f32 %v13829_v40, %v5005_v6  ;;  %v2287_v49 = vmax.f32 %v2270_v23, %v2284_v61  ;;  %v3724_v53 = vsel %vm2254_vm2, %v13831_v4, -1e+30  ;;  %v5007_v43 = vsel %vm2254_vm2, %v11507_v35, -1e+30  ;;  %v13835_v6 = vld [vmem:[#allocation178_spill] sm:$0xff]  ;;  %v13838_v40 = vld [vmem:[#allocation193_spill] sm:$0xff] }
 0xca3   : > { %v2271_v57 = vsel %vm2255_vm12, %v13832_v15, -1e+30  ;;  %v2094_v45 = vmax.f32 %v2092_v51, %v2093_v26  ;;  %v3674_v9 = vmax.f32 %v3672_v60, %v3673_v33  ;;  %v11715_v24 = vmax.f32 %v3732_v10, %v3724_v53  ;;  %v13839_v60 = vld [vmem:[#allocation40_spill] sm:$0xff]  ;;  %v13840_v26 = vld [vmem:[#allocation21_spill] sm:$0xff]  ;;  %v13843_v23 = vld [vmem:[#allocation206_spill] sm:$0xff] }
 0xca4   : > { %v13833_v37 = vmov 7   ;;  %v11718_v22 = vmax.f32 %v5015_v47, %v5007_v43  ;;  %v2285_v25 = vmax.f32 %v2271_v57, %v2287_v49  ;;  %v3725_v17 = vsel %vm2255_vm12, %v13834_v11, -1e+30  ;;  %v13842_v33 = vld [vmem:[#allocation205_spill] sm:$0xff]  ;;  %v13845_v43 = vld [vmem:[#allocation52_spill] sm:$0xff] }
 0xca5   : > { %6544 = vset.pattern.permute.xlu1 %v13833_v37  ;;  %vm13836_vm6 = vcmp.eq.s32.totalorder %v13835_v6, 1  ;;  %v11728_v51 = vsel %vm2503_vm3, %v13838_v40, %v2094_v45  ;;  %v3675_v10 = vrot.slane %v3674_v9, 1  ;;  %vm13841_vm14 = vcmp.eq.s32.totalorder %v13840_v26, 1  ;;  %v2421_v6 = vpop.permute.xlu1 %2420  ;;  %v2243_v26 = vpop.permute.xlu0 %2242 }
 0xca6   : > { %v5004_v61 = vsel %vm13836_vm6, %v11436_v32, -1e+30  ;;  %2435 = vperm.xlu1 %6544, %v13837_v39   ;;  %v5000_v47 = vsel %vm13841_vm14, %v13839_v60, -1e+30  ;;  %v13844_v49 = vmax.f32 %v13842_v33, %v13843_v23  ;;  %v5008_v57 = vsel %vm2255_vm12, %v13845_v43, -1e+30 }
 0xca7   : > { %v5016_v37 = vmax.f32 %v5000_v47, %v5004_v61  ;;  %vm2256_vm0 = vcmp.eq.s32.totalorder %v2234_v14, 1  ;;  %vm2446_vm4 = vcmp.eq.s32.totalorder %v11652_v20, 1  ;;  %v3676_v45 = vmax.f32 %v3674_v9, %v3675_v10  ;;  %v13846_v9 = vld [vmem:[#allocation132_spill] sm:$0xff]  ;;  %v13848_v23 = vld [vmem:[#allocation51_spill] sm:$0xff] }
 0xca8   : > { %v11736_v53 = vmax.f32 %v13844_v49, %v3725_v17  ;;  %v2272_v39 = vsel %vm2256_vm0, %v13368_v19, -1e+30  ;;  %v11743_v40 = vsel %vm2256_vm0, %v9578_v36, -1e+30  ;;  %v11752_v17 = vsel %vm2256_vm0, %v11554_v48, -1e+30 }
 0xca9   : > { %v11745_v55 = vmax.f32 %v5016_v37, %v5008_v57  ;;  %v11747_v33 = vmax.f32 %v2272_v39, %v2285_v25  ;;  %v2462_v61 = vsel %vm2446_vm4, %v13846_v9, -1e+30  ;;  %v13847_v10 = vld [vmem:[#allocation108_spill] sm:$0xff]  ;;  %v5071_v25 = vsel %vm2446_vm4, %v13848_v23, -1e+30  ;;  %v2136_v37 = vpop.permute.xlu1 %2135  ;;  %v13851_v23 = vld [vmem:[#allocation146_spill] sm:$0xff] }
 0xcaa   : > { %2438 = vperm.xlu1 %6544, %v13816_v52   ;;  %v3788_v47 = vsel %vm2446_vm4, %v13847_v10, -1e+30  ;;  %vm2259_vm10 = vcmp.eq.s32.totalorder %v2243_v26, 1  ;;  %vm2448_vm13 = vcmp.eq.s32.totalorder %v11670_v62, 1  ;;  %vm2449_vm15 = vcmp.eq.s32.totalorder %v11696_v13, 1  ;;  %v13849_v39 = vld [vmem:[#allocation200_spill] sm:$0xff] }
 0xcab   : > { %v11764_v49 = vsel %vm2259_vm10, %v13746_v21, -1e+30  ;;  %v11767_v52 = vsel %vm2259_vm10, %v13747_v46, -1e+30  ;;  %v11770_v57 = vsel %vm2259_vm10, %v11176_v54, -1e+30  ;;  %v11774_v20 = vsel %vm2503_vm3, %v13849_v39, %v3676_v45 }
 0xcac   : > { %v2286_v26 = vmax.f32 %v11764_v49, %v11747_v33  ;;  %v2464_v36 = vsel %vm2448_vm13, %v13850_v63, -1e+30  ;;  %v3790_v10 = vsel %vm2448_vm13, %v13851_v23, -1e+30  ;;  %v13852_v9 = vld [vmem:[#allocation42_spill] sm:$0xff]  ;;  %v13853_v45 = vld [vmem:[#allocation136_spill] sm:$0xff]  ;;  %v13858_v13 = vmax.f32 %v11282_v3, %v11362_v5 }
 0xcad   : > { %v2485_v19 = vmax.f32 %v2464_v36, %v2462_v61  ;;  %v5073_v54 = vsel %vm2448_vm13, %v13852_v9, -1e+30  ;;  %v2465_v39 = vsel %vm2449_vm15, %v13853_v45, -1e+30  ;;  %v3811_v33 = vmax.f32 %v3790_v10, %v3788_v47  ;;  %v13854_v46 = vld [vmem:[#allocation152_spill] sm:$0xff]  ;;  %v2139_v10 = vpop.permute.xlu1 %2138  ;;  %v13859_v36 = vld [vmem:[#allocation57_spill] sm:$0xff] }
 0xcae   : > { %2441 = vperm.xlu1 %6544, %v13823_v56   ;;  %v5094_v49 = vmax.f32 %v5073_v54, %v5071_v25  ;;  %v3791_v62 = vsel %vm2449_vm15, %v13854_v46, -1e+30  ;;  %v5074_v14 = vsel %vm2449_vm15, %v13839_v60, -1e+30  ;;  %vm2451_vm1 = vcmp.eq.s32.totalorder %v2415_v8, 1  ;;  %v13856_v54 = vld [vmem:[#allocation56_spill] sm:$0xff] }
 0xcaf   : > { %vm2453_vm8 = vcmp.eq.s32.totalorder %v2421_v6, 1  ;;  %v4968_v56 = vsel %vm2151_vm9, %v11465_v0, -1e+30  ;;  %v4972_v61 = vsel %vm2155_vm5, %v11554_v48, -1e+30  ;;  %v13857_v25 = vld [vmem:[#allocation143_spill] sm:$0xff] }
 0xcb0   : > { %v2467_v47 = vsel %vm2451_vm1, %v13856_v54, -1e+30  ;;  %v3793_v9 = vsel %vm2451_vm1, %v13857_v25, -1e+30  ;;  %v5076_v23 = vsel %vm2451_vm1, %v11367_v16, -1e+30  ;;  %v4980_v8 = vmax.f32 %v13858_v13, %v4968_v56 }
 0xcb1   : > { %v2479_v6 = vmax.f32 %v2485_v19, %v2467_v47  ;;  %v3805_v63 = vmax.f32 %v3811_v33, %v3793_v9  ;;  %v5088_v21 = vmax.f32 %v5094_v49, %v5076_v23  ;;  %v2469_v34 = vsel %vm2453_vm8, %v13859_v36, -1e+30  ;;  %v13862_v19 = vld [vmem:[#allocation87_spill] sm:$0xff]  ;;  %v13863_v9 = vld [vmem:[#allocation88_spill] sm:$0xff] }
 0xcb2   : > { %v2481_v29 = vmax.f32 %v2465_v39, %v2469_v34  ;;  %v3795_v31 = vsel %vm2453_vm8, %v13860_v12, -1e+30  ;;  %v5078_v48 = vsel %vm2453_vm8, %v11436_v32, -1e+30  ;;  %v4984_v60 = vmax.f32 %v4980_v8, %v4972_v61  ;;  %v13864_v33 = vld [vmem:[#allocation119_spill] sm:$0xff]  ;;  %v2237_v39 = vpop.permute.xlu1 %2236  ;;  %v13871_v13 = vld [vmem:[#allocation72_spill] sm:$0xff] }
 0xcb3   : > { %v3807_v54 = vmax.f32 %v3791_v62, %v3795_v31  ;;  %v5090_v46 = vmax.f32 %v5074_v14, %v5078_v48  ;;  %vm2156_vm9 = vcmp.eq.s32.totalorder %v2136_v37, 1  ;;  %v4970_v25 = vsel %vm2153_vm7, %v11507_v35, -1e+30  ;;  %v13867_v62 = vld [vmem:[#allocation159_spill] sm:$0xff] }
 0xcb4   : > { %v11813_v3 = vmax.f32 %v2481_v29, %v2479_v6  ;;  %v2172_v5 = vsel %vm2156_vm9, %v13862_v19, -1e+30  ;;  %v3690_v23 = vsel %vm2156_vm9, %v13863_v9, -1e+30  ;;  %v4973_v34 = vsel %vm2156_vm9, %v13864_v33, -1e+30 }
 0xcb5   : > { %v11818_v49 = vmax.f32 %v3807_v54, %v3805_v63  ;;  %v11820_v56 = vmax.f32 %v5090_v46, %v5088_v21  ;;  %v13865_v48 = vmax.f32 %v11441_v2, %v11486_v18  ;;  %v13866_v16 = vmax.f32 %v11461_v30, %v11496_v7  ;;  %v13869_v63 = vld [vmem:[#allocation189_spill] sm:$0xff]  ;;  %v13870_v21 = vld [vmem:[#allocation188_spill] sm:$0xff] }
 0xcb6   : > { %v4985_v37 = vmax.f32 %v11455_v59, %v4973_v34  ;;  %v13868_v61 = vmax.f32 %v11314_v42, %v13867_v62  ;;  %vm2157_vm7 = vcmp.eq.s32.totalorder %v2139_v10, 1  ;;  %vm2257_vm5 = vcmp.eq.s32.totalorder %v2237_v39, 1  ;;  %v2240_v30 = vpop.permute.xlu1 %2239 }
 0xcb7   : > { %v2188_v14 = vmax.f32 %v13865_v48, %v2172_v5  ;;  %v3706_v29 = vmax.f32 %v13866_v16, %v3690_v23  ;;  %v2173_v54 = vsel %vm2157_vm7, %v13869_v63, -1e+30  ;;  %v3691_v46 = vsel %vm2157_vm7, %v13870_v21, -1e+30  ;;  %v13872_v5 = vld [vmem:[#allocation168_spill] sm:$0xff]  ;;  %v13873_v23 = vld [vmem:[#allocation166_spill] sm:$0xff] }
 0xcb8   : > { %v4982_v47 = vmax.f32 %v13868_v61, %v4970_v25  ;;  %v4974_v8 = vsel %vm2157_vm7, %v13871_v13, -1e+30  ;;  %v4988_v2 = vmax.f32 %v4984_v60, %v4985_v37  ;;  %v2273_v7 = vsel %vm2257_vm5, %v13862_v19, -1e+30  ;;  %v13875_v16 = vld [vmem:[#allocation177_spill] sm:$0xff] }
 0xcb9   : > { %v2189_v18 = vmax.f32 %v2173_v54, %v2188_v14  ;;  %v3707_v6 = vmax.f32 %v3691_v46, %v3706_v29  ;;  %v3727_v59 = vsel %vm2257_vm5, %v13863_v9, -1e+30  ;;  %v5010_v42 = vsel %vm2257_vm5, %v13864_v33, -1e+30 }
 0xcba   : > { %v4986_v31 = vmax.f32 %v4982_v47, %v4974_v8  ;;  %v13874_v34 = vmax.f32 %v13872_v5, %v13873_v23  ;;  %v2289_v48 = vmax.f32 %v2286_v26, %v2273_v7  ;;  %v4843_v62 = vrot.slane %v13875_v16, 4 }
 0xcbb   : > { %v2190_v25 = vrot.slane %v2189_v18, 4  ;;  %v3708_v10 = vrot.slane %v3707_v6, 4  ;;  %v3739_v60 = vmax.f32 %v11686_v44, %v3727_v59  ;;  %v5022_v14 = vmax.f32 %v11691_v28, %v5010_v42  ;;  %v2424_v28 = vpop.permute.xlu1 %2423 }
 0xcbc   : > { %v4989_v39 = vmax.f32 %v4986_v31, %v13874_v34  ;;  %vm2258_vm2 = vcmp.eq.s32.totalorder %v2240_v30, 1  ;;  %v13876_v54 = vmax.f32 %v11702_v58, %v11743_v40  ;;  %v13877_v26 = vmax.f32 %v11707_v27, %v11752_v17  ;;  %v13879_v58 = vld [vmem:[#allocation174_spill] sm:$0xff] }
 0xcbd   : > { %v2191_v29 = vmax.f32 %v2189_v18, %v2190_v25  ;;  %v3709_v37 = vmax.f32 %v3707_v6, %v3708_v10  ;;  %v2274_v47 = vsel %vm2258_vm2, %v13869_v63, -1e+30  ;;  %v3728_v44 = vsel %vm2258_vm2, %v13870_v21, -1e+30 }
 0xcbe   : > { %v4990_v61 = vmax.f32 %v4988_v2, %v4989_v39  ;;  %v3742_v46 = vmax.f32 %v13876_v54, %v3739_v60  ;;  %v5025_v8 = vmax.f32 %v13877_v26, %v5022_v14  ;;  %v2290_v31 = vmax.f32 %v2274_v47, %v2289_v48  ;;  %v11880_v26 = vpop.xlane.xlu0 %2562 }
 0xcbf   : > { %v13878_v18 = vrot.slane %v11681_v41, 4  ;;  %v2192_v6 = vrot.slane %v2191_v29, 2  ;;  %v3710_v7 = vrot.slane %v3709_v37, 2  ;;  %v3740_v59 = vmax.f32 %v11715_v24, %v3728_v44  ;;  %v2430_v39 = vpop.permute.xlu1 %2429 }
 0xcc0   : > { %v4880_v40 = vrot.slane %v13879_v58, 4  ;;  %v2291_v42 = vrot.slane %v2290_v31, 4  ;;  %v5011_v27 = vsel %vm2258_vm2, %v13871_v13, -1e+30  ;;  %vm2454_vm12 = vcmp.eq.s32.totalorder %v2424_v28, 1 }
 0xcc1   : > { %v11857_v2 = vmax.f32 %v11681_v41, %v13878_v18  ;;  %v2193_v17 = vmax.f32 %v2191_v29, %v2192_v6  ;;  %v4991_v25 = vrot.slane %v4990_v61, 4  ;;  %v13880_v10 = vmax.f32 %v11736_v53, %v11767_v52 }
 0xcc2   : > { %v11867_v41 = vmax.f32 %v13875_v16, %v4843_v62  ;;  %v2292_v23 = vmax.f32 %v2290_v31, %v2291_v42  ;;  %v5023_v34 = vmax.f32 %v11718_v22, %v5011_v27  ;;  %v2470_v24 = vsel %vm2454_vm12, %v13826_v1, -1e+30  ;;  %v11893_v42 = vpop.permute.xlu0 %2298 }
 0xcc3   : > { %v3743_v5 = vmax.f32 %v3740_v59, %v13880_v10  ;;  %v3796_v30 = vsel %vm2454_vm12, %v13827_v50, -1e+30  ;;  %v4956_v48 = vrot.slane %v11857_v2, 2  ;;  %v2194_v60 = vrot.slane %v2193_v17, 1 }
 0xcc4   : > { %v3711_v14 = vmax.f32 %v3709_v37, %v3710_v7  ;;  %v2293_v53 = vrot.slane %v2292_v23, 2  ;;  %v13881_v52 = vmax.f32 %v11745_v55, %v11770_v57  ;;  %v2480_v62 = vmax.f32 %v2470_v24, %v11813_v3 }
 0xcc5   : > { %v3744_v29 = vmax.f32 %v3742_v46, %v3743_v5  ;;  %v3806_v22 = vmax.f32 %v3796_v30, %v11818_v49  ;;  %v4992_v47 = vmax.f32 %v4990_v61, %v4991_v25  ;;  %vm2506_vm6 = vcmask 1044480   ;;  %v2433_v49 = vpop.permute.xlu1 %2432 }
 0xcc6   : > { %v5026_v16 = vmax.f32 %v5023_v34, %v13881_v52  ;;  %v4881_v31 = vmax.f32 %v13879_v58, %v4880_v40  ;;  %v2294_v44 = vmax.f32 %v2292_v23, %v2293_v53  ;;  %v5079_v37 = vsel %vm2454_vm12, %v11465_v0, -1e+30  ;;  %v2308_v53 = vpop.permute.xlu0 %2307 }
 0xcc7   : > { %v3745_v54 = vrot.slane %v3744_v29, 4  ;;  %vm2456_vm14 = vcmp.eq.s32.totalorder %v2430_v39, 1  ;;  %v3712_v46 = vrot.slane %v3711_v14, 1  ;;  %v5089_v57 = vmax.f32 %v5079_v37, %v11820_v56 }
 0xcc8   : > { %v5027_v18 = vmax.f32 %v5025_v8, %v5026_v16  ;;  %v2472_v3 = vsel %vm2456_vm14, %v13830_v38, -1e+30  ;;  %v2195_v61 = vmax.f32 %v2193_v17, %v2194_v60  ;;  %v2295_v6 = vrot.slane %v2294_v44, 1 }
 0xcc9   : > { %v3746_v55 = vmax.f32 %v3744_v29, %v3745_v54  ;;  %v11887_v7 = vmax.f32 %v2472_v3, %v2480_v62  ;;  %v3798_v59 = vsel %vm2456_vm14, %v13831_v4, -1e+30  ;;  %v5081_v28 = vsel %vm2456_vm14, %v11507_v35, -1e+30 }
 0xcca   : > { %v5028_v40 = vrot.slane %v5027_v18, 4  ;;  %v11890_v8 = vmax.f32 %v3798_v59, %v3806_v22  ;;  %v4993_v27 = vrot.slane %v4992_v47, 2  ;;  %v2296_v25 = vmax.f32 %v2294_v44, %v2295_v6  ;;  %v13885_v59 = vld [vmem:[#allocation152_spill] sm:$0xff] }
 0xccb   : > { %v3747_v58 = vrot.slane %v3746_v55, 2  ;;  %v11895_v56 = vmax.f32 %v5081_v28, %v5089_v57  ;;  %vm2457_vm0 = vcmp.eq.s32.totalorder %v2433_v49, 1  ;;  %v3713_v34 = vmax.f32 %v3711_v14, %v3712_v46  ;;  %v11921_v46 = vpop.permute.xlu0 %2313  ;;  %v13884_v57 = vld [vmem:[#allocation158_spill] sm:$0xff] }
 0xccc   : > { %v11898_v17 = vsel %vm2457_vm0, %v13832_v15, -1e+30  ;;  %v11901_v5 = vsel %vm2457_vm0, %v13834_v11, -1e+30  ;;  %v11904_v23 = vsel %vm2457_vm0, %v13845_v43, -1e+30  ;;  %v5029_v29 = vmax.f32 %v5027_v18, %v5028_v40 }
 0xccd   : > { %v3748_v10 = vmax.f32 %v3746_v55, %v3747_v58  ;;  %v2489_v24 = vmax.f32 %v11898_v17, %v11887_v7  ;;  %v3815_v30 = vmax.f32 %v11901_v5, %v11890_v8  ;;  %v5098_v39 = vmax.f32 %v11904_v23, %v11895_v56  ;;  %v13900_v8 = vld [vmem:[#allocation103_spill] sm:$0xff] }
 0xcce   : > { %vm13882_vm4 = vcmask 1043456   ;;  %v4845_v16 = vrot.slane %v11867_v41, 2  ;;  %v4957_v22 = vmax.f32 %v11857_v2, %v4956_v48  ;;  %v4994_v54 = vmax.f32 %v4992_v47, %v4993_v27  ;;  %v13901_v56 = vld [vmem:[#allocation59_spill] sm:$0xff] }
 0xccf   : > { %v3749_v60 = vrot.slane %v3748_v10, 1  ;;  %v2505_v52 = vsel %vm13882_vm4, %v11728_v51, %v2195_v61  ;;  %vm13883_vm10 = vmmov %vm13882_vm4  ;;  %v5030_v37 = vrot.slane %v5029_v29, 2  ;;  %v4882_v55 = vrot.slane %v4881_v31, 2  ;;  %v2320_v40 = vpop.permute.xlu0 %2319 }
 0xcd0   : > { %v11916_v14 = vsel %vm2506_vm6, %v2505_v52, %v2296_v25  ;;  %v3828_v44 = vsel %vm13883_vm10, %v11774_v20, %v3713_v34  ;;  %v4846_v51 = vmax.f32 %v11867_v41, %v4845_v16  ;;  %vm2348_vm13 = vcmp.eq.s32.totalorder %v2308_v53, 1  ;;  %v13886_v41 = vld [vmem:[#allocation40_spill] sm:$0xff]  ;;  %v13887_v25 = vld [vmem:[#allocation47_spill] sm:$0xff]  ;;  %vm13891_vm8 = vmmov %vm13882_vm4 }
 0xcd1   : > { %v3750_v62 = vmax.f32 %v3748_v10, %v3749_v60  ;;  %v4917_v3 = vrot.slane %v13884_v57, 4  ;;  %v4883_v49 = vmax.f32 %v4881_v31, %v4882_v55  ;;  %v4958_v61 = vrot.slane %v4957_v22, 1  ;;  %v13927_v52 = vld [vmem:[#allocation92_spill] sm:$0xff] }
 0xcd2   : > { %v4995_v6 = vrot.slane %v4994_v54, 1  ;;  %v4847_v2 = vrot.slane %v4846_v51, 1  ;;  %v5031_v47 = vmax.f32 %v5029_v29, %v5030_v37  ;;  %v11930_v20 = vsel %vm2348_vm13, %v13853_v45, -1e+30  ;;  %v13889_v37 = vld [vmem:[#allocation53_spill] sm:$0xff] }
 0xcd3   : > { %v11924_v18 = vsel %vm2506_vm6, %v3828_v44, %v3750_v62  ;;  %v4918_v48 = vmax.f32 %v13884_v57, %v4917_v3  ;;  %v11933_v58 = vsel %vm2348_vm13, %v13885_v59, -1e+30  ;;  %v4884_v28 = vrot.slane %v4883_v49, 1  ;;  %v6595_v57 = vld [vmem:[#allocation10 + $0x40] sm:$0xff]  }
 0xcd4   : > { %v11936_v27 = vsel %vm2348_vm13, %v13886_v41, -1e+30  ;;  %vm2352_vm15 = vcmp.eq.s32.totalorder %v2320_v40, 1  ;;  %v4848_v31 = vmax.f32 %v4846_v51, %v4847_v2  ;;  %v5032_v44 = vrot.slane %v5031_v47, 1  ;;  %v6596_v3 = vld [vmem:[#allocation10] sm:$0xff]   ;;  %6190 = vmatprep.subr.bf16.mxu1 %v6595_v57  ;;  %v6598_v41 = vld [vmem:[#allocation10 + $0x8] sm:$0xff]  }
 0xcd5   : > { %v4919_v10 = vrot.slane %v4918_v48, 2  ;;  %v11940_v34 = vsel %vm2352_vm15, %v13859_v36, -1e+30  ;;  %v11943_v60 = vsel %vm2352_vm15, %v13860_v12, -1e+30  ;;  %v4885_v29 = vmax.f32 %v4883_v49, %v4884_v28  ;;  %v11954_v36 = vpop.permute.xlu0 %2325  ;;  %v6597_v49 = vld [vmem:[#allocation10 + $0x48] sm:$0xff]   ;;  %6191 = vmatpush3.bf16.msra.mxu1 %v6596_v3 }
 0xcd6   : > { %v11946_v45 = vsel %vm2352_vm15, %v11436_v32, -1e+30  ;;  %vm13888_vm1 = vcmask 1040384   ;;  %v4959_v51 = vmax.f32 %v4957_v22, %v4958_v61  ;;  %v4996_v55 = vmax.f32 %v4994_v54, %v4995_v6  ;;  %v13890_v28 = vld [vmem:[#allocation81_spill] sm:$0xff]  ;;  %6192 = vmatprep.subr.bf16.mxu1 %v6597_v49  ;;  %v13892_v61 = vld [vmem:[#allocation39_spill] sm:$0xff]  ;;  %v13896_v57 = vld [vmem:[#allocation114_spill] sm:$0xff] }
 0xcd7   : > { %4668 = vxpose.xlu1.b32.start [1/16] (narrow) %v13887_v25, 8  ;;  %v4920_v62 = vmax.f32 %v4918_v48, %v4919_v10  ;;  %v5108_v12 = vsel %vm13888_vm1, %v4848_v31, %v4885_v29  ;;  %v5033_v59 = vmax.f32 %v5031_v47, %v5032_v44  ;;  %v6599_v31 = vld [vmem:[#allocation10 + $0x50] sm:$0xff]   ;;  %v13893_v10 = vld [vmem:[#allocation133_spill] sm:$0xff]  ;;  %vm2350_vm2 = vcmp.eq.s32.totalorder %v11921_v46, 1 }
 0xcd8   : > { %v6600_v47 = vld [vmem:[#allocation10 + $0x10] sm:$0xff]   ;;  %vm2354_vm12 = vcmp.eq.s32.totalorder %v11954_v36, 1  ;;  %vm2345_vm14 = vcmp.eq.s32.totalorder %v11893_v42, 1 }
 0xcd9   : > { %v4921_v32 = vrot.slane %v4920_v62, 1  ;;  %v11958_v40 = vpop.permute.xlu0 %2334  ;;  %6193 = vmatpush3.bf16.msra.mxu1 %v6598_v41  ;;  %v13897_v49 = vld [vmem:[#allocation54_spill] sm:$0xff] }
 0xcda   : > { %6194 = vmatprep.subr.bf16.mxu1 %v6599_v31  ;;  %vm2357_vm13 = vcmp.eq.s32.totalorder %v11958_v40, 1 }
 0xcdb   : > { %4669 = vxpose.xlu1.b32.cont [2/16] (narrow) %v13889_v37, 8  ;;  %v4922_v2 = vmax.f32 %v4920_v62, %v4921_v32  ;;  %v13894_v62 = vld [vmem:[#allocation140_spill] sm:$0xff] }
 0xcdd   : > { %v5109_v48 = vsel %vm2501_vm11, %v5108_v12, %v4922_v2  ;;  %v2403_v6 = vpop.permute.xlu0 %2402  ;;  %v13895_v12 = vld [vmem:[#allocation79_spill] sm:$0xff]  ;;  %6195 = vmatpush3.bf16.msra.mxu1 %v6600_v47 }
 0xcde   : > { %v5110_v25 = vsel %vm2503_vm3, %v5109_v48, %v4959_v51  ;;  %vm2447_vm9 = vcmp.eq.s32.totalorder %v2403_v6, 1  ;;  %v13899_v48 = vld [vmem:[#allocation134_spill] sm:$0xff]  ;;  %v13904_v47 = vld [vmem:[#allocation123_spill] sm:$0xff] }
 0xcdf   : > { %4670 = vxpose.xlu1.b32.cont [3/16] (narrow) %v13890_v28, 8  ;;  %v5111_v22 = vsel %vm13891_vm8, %v5110_v25, %v4996_v55  ;;  %v2463_v29 = vsel %vm2447_vm9, %v13893_v10, -1e+30  ;;  %v3789_v44 = vsel %vm2447_vm9, %v13894_v62, -1e+30  ;;  %v13903_v25 = vld [vmem:[#allocation167_spill] sm:$0xff] }
 0xce0   : > { %v11965_v54 = vsel %vm2506_vm6, %v5111_v22, %v5033_v59  ;;  %v5072_v37 = vsel %vm2447_vm9, %v13895_v12, -1e+30  ;;  %v2482_v32 = vmax.f32 %v2463_v29, %v2489_v24  ;;  %v3808_v51 = vmax.f32 %v3789_v44, %v3815_v30  ;;  %v13898_v59 = vld [vmem:[#allocation98_spill] sm:$0xff]  ;;  %v13902_v30 = vld [vmem:[#allocation147_spill] sm:$0xff]  ;;  %v13905_v44 = vld [vmem:[#allocation60_spill] sm:$0xff] }
 0xce1   : > { %v5091_v55 = vmax.f32 %v5072_v37, %v5098_v39  ;;  %v2412_v3 = vpop.permute.xlu0 %2411 }
 0xce2   : > { %vm2450_vm11 = vcmp.eq.s32.totalorder %v2412_v3, 1 }
 0xce3   : > { %4671 = vxpose.xlu1.b32.cont [4/16] (narrow) %v13892_v61, 8  ;;  %v2466_v2 = vsel %vm2450_vm11, %v13897_v49, -1e+30  ;;  %v3792_v28 = vsel %vm2450_vm11, %v13898_v59, -1e+30 }
 0xce4   : > { %v5075_v7 = vsel %vm2450_vm11, %v13899_v48, -1e+30  ;;  %v2486_v17 = vmax.f32 %v2482_v32, %v2466_v2  ;;  %v3812_v24 = vmax.f32 %v3808_v51, %v3792_v28  ;;  %v13906_v32 = vld [vmem:[#allocation156_spill] sm:$0xff] }
 0xce5   : > { %v5095_v41 = vmax.f32 %v5091_v55, %v5075_v7  ;;  %v2418_v5 = vpop.permute.xlu0 %2417  ;;  %v13907_v55 = vld [vmem:[#allocation85_spill] sm:$0xff]  ;;  %v13908_v7 = vld [vmem:[#allocation138_spill] sm:$0xff] }
 0xce6   : > { %vm2452_vm3 = vcmp.eq.s32.totalorder %v2418_v5, 1  ;;  %v13910_v5 = vld [vmem:[#allocation203_spill] sm:$0xff]  ;;  %v5043_v36 = vsel %vm2354_vm12, %v13907_v55, -1e+30 }
 0xce7   : > { %4672 = vxpose.xlu1.b32.cont [5/16] (narrow) %v13896_v57, 8  ;;  %v2468_v23 = vsel %vm2452_vm3, %v13901_v56, -1e+30  ;;  %v3794_v39 = vsel %vm2452_vm3, %v13902_v30, -1e+30 }
 0xce8   : > { %v5077_v31 = vsel %vm2452_vm3, %v13903_v25, -1e+30  ;;  %v2487_v22 = vmax.f32 %v2468_v23, %v2486_v17  ;;  %v3813_v61 = vmax.f32 %v3794_v39, %v3812_v24  ;;  %v2564_v17 = vmax.f32 %v11880_v26, 1.0  ;;  %v13909_v24 = vld [vmem:[#allocation100_spill] sm:$0xff]  ;;  %v13911_v39 = vld [vmem:[#allocation67_spill] sm:$0xff] }
 0xce9   : > { %v5096_v6 = vmax.f32 %v5077_v31, %v5095_v41  ;;  %v2427_v29 = vpop.permute.xlu0 %2426 }
 0xcea   : > { %vm2455_vm7 = vcmp.eq.s32.totalorder %v2427_v29, 1  ;;  %6715 = vrcp.f32 %v2564_v17 }
 0xceb   : > { %4673 = vxpose.xlu1.b32.cont [6/16] (narrow) %v13900_v8, 8  ;;  %v2471_v37 = vsel %vm2455_vm7, %v13905_v44, -1e+30  ;;  %v3797_v51 = vsel %vm2455_vm7, %v13906_v32, -1e+30 }
 0xcec   : > { %v5080_v57 = vsel %vm2455_vm7, %v13907_v55, -1e+30  ;;  %v2490_v3 = vmax.f32 %v2471_v37, %v2487_v22  ;;  %v3816_v2 = vmax.f32 %v3797_v51, %v3813_v61  ;;  %v3882_v61 = vpop.xlane.xlu1 %3881  ;;  %v13914_v37 = vld [vmem:[#allocation56_spill] sm:$0xff] }
 0xced   : > { %v5099_v28 = vmax.f32 %v5080_v57, %v5096_v6  ;;  %v2445_v8 = vpop.permute.xlu0 %2444  ;;  %v3883_v26 = vmax.f32 %v3882_v61, 1.0  ;;  %v13913_v6 = vld [vmem:[#allocation46_spill] sm:$0xff]  ;;  %v2366_v51 = vsel %vm2350_vm2, %v13914_v37, -1e+30  ;;  %v2370_v61 = vsel %vm2354_vm12, %v13905_v44, -1e+30 }
 0xcee   : > { %vm2461_vm5 = vcmp.eq.s32.totalorder %v2445_v8, 1  ;;  %v13921_v44 = vld [vmem:[#allocation50_spill] sm:$0xff] }
 0xcef   : > { %4674 = vxpose.xlu1.b32.cont [7/16] (narrow) %v13904_v47, 8  ;;  %v2477_v41 = vsel %vm2461_vm5, %v13909_v24, -1e+30  ;;  %v3803_v23 = vsel %vm2461_vm5, %v13910_v5, -1e+30  ;;  %v13912_v47 = vld [vmem:[#allocation181_spill] sm:$0xff]  ;;  %6717 = vrcp.f32 %v3883_v26 }
 0xcf0   : > { %v5086_v31 = vsel %vm2461_vm5, %v13911_v39, -1e+30  ;;  %v11998_v29 = vmax.f32 %v2477_v41, %v2490_v3  ;;  %v12000_v16 = vmax.f32 %v3803_v23, %v3816_v2  ;;  %v2302_v57 = vpop.permute.xlu1 %2301  ;;  %v3760_v26 = vsel %vm2354_vm12, %v13906_v32, -1e+30  ;;  %v13922_v32 = vld [vmem:[#allocation132_spill] sm:$0xff] }
 0xcf1   : > { %v12002_v22 = vmax.f32 %v5086_v31, %v5099_v28  ;;  %vm2346_vm6 = vcmp.eq.s32.totalorder %v2302_v57, 1  ;;  %v13917_v31 = vld [vmem:[#allocation76_spill] sm:$0xff]  ;;  %v2361_v55 = vsel %vm2345_vm14, %v13922_v32, -1e+30  ;;  %vm2508_vm12 = vcmask 1045504  }
 0xcf2   : > { %v2362_v2 = vsel %vm2346_vm6, %v13893_v10, -1e+30  ;;  %v3752_v28 = vsel %vm2346_vm6, %v13894_v62, -1e+30  ;;  %v5035_v46 = vsel %vm2346_vm6, %v13895_v12, -1e+30 }
 0xcf3   : > { %4675 = vxpose.xlu1.b32.cont [8/16] (narrow) %v13908_v7, 8  ;;  %v13915_v7 = vld [vmem:[#allocation143_spill] sm:$0xff]  ;;  %v2378_v17 = vmax.f32 %v2362_v2, %v2366_v51  ;;  %vm2510_vm6 = vcmask 1046528  }
 0xcf4   : > { %v3756_v8 = vsel %vm2350_vm2, %v13915_v7, -1e+30  ;;  %v6716_v37 = vpop.eup %6715  ;;  %v13918_v51 = vld [vmem:[#allocation135_spill] sm:$0xff]  ;;  %v13919_v7 = vld [vmem:[#allocation146_spill] sm:$0xff] }
 0xcf5   : > { %v3768_v41 = vmax.f32 %v3752_v28, %v3756_v8  ;;  %v12018_v10 = vmax.f32 %v2378_v17, %v2370_v61 }
 0xcf7   : > { %4676 = vxpose.xlu1.b32.cont [9/16] (narrow) %v13912_v47, 8  ;;  %v13916_v47 = vld [vmem:[#allocation23_spill] sm:$0xff]  ;;  %v12020_v62 = vmax.f32 %v3768_v41, %v3760_v26 }
 0xcf8   : > { %v5039_v3 = vsel %vm2350_vm2, %v13916_v47, -1e+30  ;;  %v13920_v47 = vld [vmem:[#allocation42_spill] sm:$0xff]  ;;  %v13924_v41 = vld [vmem:[#allocation51_spill] sm:$0xff] }
 0xcf9   : > { %v5051_v23 = vmax.f32 %v5035_v46, %v5039_v3  ;;  %v6718_v28 = vpop.eup %6717  ;;  %v13923_v46 = vld [vmem:[#allocation108_spill] sm:$0xff] }
 0xcfa   : > { %v3751_v17 = vsel %vm2345_vm14, %v13923_v46, -1e+30 }
 0xcfb   : > { %4677 = vxpose.xlu1.b32.cont [10/16] (narrow) %v13913_v6, 8  ;;  %v2305_v6 = vpop.permute.xlu1 %2304  ;;  %v12022_v12 = vmax.f32 %v5051_v23, %v5043_v36  ;;  %v5034_v23 = vsel %vm2345_vm14, %v13924_v41, -1e+30  ;;  %v13928_v41 = vld [vmem:[#allocation22_spill] sm:$0xff] }
 0xcfc   : > { %vm2347_vm0 = vcmp.eq.s32.totalorder %v2305_v6, 1 }
 0xcfd   : > { %v2363_v57 = vsel %vm2347_vm0, %v13918_v51, -1e+30  ;;  %v3753_v8 = vsel %vm2347_vm0, %v13919_v7, -1e+30  ;;  %v5036_v3 = vsel %vm2347_vm0, %v13920_v47, -1e+30 }
 0xcfe   : > { %v13926_v51 = vld [vmem:[#allocation111_spill] sm:$0xff] }
 0xcff   : > { %4678 = vxpose.xlu1.b32.cont [11/16] (narrow) %v13917_v31, 8  ;;  %v2311_v2 = vpop.permute.xlu1 %2310  ;;  %v13925_v31 = vld [vmem:[#allocation93_spill] sm:$0xff]  ;;  %v3885_v7 = vmul.f32 %v6718_v28, %v13926_v51 }
 0xd00   : > { %vm2349_vm4 = vcmp.eq.s32.totalorder %v2311_v2, 1  ;;  %v2566_v61 = vmul.f32 %v6716_v37, %v13925_v31  ;;  %v13929_v31 = vld [vmem:[#allocation154_spill] sm:$0xff] }
 0xd01   : > { %v2365_v26 = vsel %vm2349_vm4, %v13897_v49, -1e+30  ;;  %v3755_v36 = vsel %vm2349_vm4, %v13898_v59, -1e+30  ;;  %v5038_v6 = vsel %vm2349_vm4, %v13899_v48, -1e+30 }
 0xd02   : > { %v2377_v47 = vmax.f32 %v2361_v55, %v2365_v26  ;;  %v5050_v32 = vmax.f32 %v5034_v23, %v5038_v6  ;;  %v12043_v53 = vadd.f32 %v3885_v7, %v2566_v61  ;;  %v13932_v61 = vld [vmem:[#allocation155_spill] sm:$0xff] }
 0xd03   : > { %4679 = vxpose.xlu1.b32.cont [12/16] (narrow) %v13921_v44, 8  ;;  %v3767_v44 = vmax.f32 %v3751_v17, %v3755_v36  ;;  %v2317_v46 = vpop.permute.xlu1 %2316  ;;  %v5046_v26 = vsel %vm2357_vm13, %v13932_v61, -1e+30 }
 0xd04   : > { %vm2351_vm10 = vcmp.eq.s32.totalorder %v2317_v46, 1 }
 0xd05   : > { %v2367_v42 = vsel %vm2351_vm10, %v13901_v56, -1e+30  ;;  %v3757_v37 = vsel %vm2351_vm10, %v13902_v30, -1e+30  ;;  %v5040_v49 = vsel %vm2351_vm10, %v13903_v25, -1e+30 }
 0xd06   : > { %v2379_v59 = vmax.f32 %v2363_v57, %v2367_v42  ;;  %v3769_v2 = vmax.f32 %v3753_v8, %v3757_v37  ;;  %v5052_v48 = vmax.f32 %v5036_v3, %v5040_v49  ;;  %v13930_v25 = vld [vmem:[#allocation71_spill] sm:$0xff] }
 0xd07   : > { %4680 = vxpose.xlu1.b32.cont [13/16] (narrow) %v13927_v52, 8  ;;  %v2323_v55 = vpop.permute.xlu1 %2322  ;;  %v2373_v57 = vsel %vm2357_vm13, %v13930_v25, -1e+30  ;;  %v13931_v8 = vld [vmem:[#allocation199_spill] sm:$0xff] }
 0xd08   : > { %vm2353_vm15 = vcmp.eq.s32.totalorder %v2323_v55, 1  ;;  %v3763_v3 = vsel %vm2357_vm13, %v13931_v8, -1e+30 }
 0xd09   : > { %v2369_v52 = vsel %vm2353_vm15, %v13826_v1, -1e+30  ;;  %v3759_v28 = vsel %vm2353_vm15, %v13827_v50, -1e+30  ;;  %v5042_v17 = vsel %vm2353_vm15, %v11465_v0, -1e+30 }
 0xd0a   : > { %v2381_v56 = vmax.f32 %v2377_v47, %v2369_v52  ;;  %v3771_v23 = vmax.f32 %v3767_v44, %v3759_v28  ;;  %v5054_v30 = vmax.f32 %v5050_v32, %v5042_v17  ;;  %v13933_v32 = vld [vmem:[#allocation124_spill] sm:$0xff] }
 0xd0b   : > { %4681 = vxpose.xlu1.b32.cont [14/16] (narrow) %v13928_v41, 8  ;;  %v2329_v36 = vpop.permute.xlu1 %2328 }
 0xd0c   : > { %v2385_v40 = vmax.f32 %v2381_v56, %v2373_v57  ;;  %v3775_v6 = vmax.f32 %v3771_v23, %v3763_v3  ;;  %v5058_v51 = vmax.f32 %v5054_v30, %v5046_v26  ;;  %vm2355_vm1 = vcmp.eq.s32.totalorder %v2329_v36, 1 }
 0xd0d   : > { %v2371_v1 = vsel %vm2355_vm1, %v13830_v38, -1e+30  ;;  %v3761_v0 = vsel %vm2355_vm1, %v13831_v4, -1e+30  ;;  %v5044_v50 = vsel %vm2355_vm1, %v11507_v35, -1e+30  ;;  %v13934_v38 = vmax.f32 %v11930_v20, %v11940_v34 }
 0xd0e   : > { %v2383_v7 = vmax.f32 %v2379_v59, %v2371_v1  ;;  %v3773_v47 = vmax.f32 %v3769_v2, %v3761_v0  ;;  %v5056_v44 = vmax.f32 %v5052_v48, %v5044_v50  ;;  %v13935_v35 = vmax.f32 %v11933_v58, %v11943_v60 }
 0xd0f   : > { %4682 = vxpose.xlu1.b32.cont [15/16] (narrow) %v13929_v31, 8  ;;  %v13936_v59 = vmax.f32 %v11936_v27, %v11946_v45 }
 0xd10   : > { %v2332_v46 = vpop.permute.xlu1 %2331 }
 0xd11   : > { %vm2356_vm8 = vcmp.eq.s32.totalorder %v2332_v46, 1 }
 0xd12   : > { %v2372_v42 = vsel %vm2356_vm8, %v13832_v15, -1e+30  ;;  %v3762_v37 = vsel %vm2356_vm8, %v13834_v11, -1e+30  ;;  %v5045_v49 = vsel %vm2356_vm8, %v13845_v43, -1e+30 }
 0xd13   : > { %4683 = vxpose.xlu1.b32.end [16/16] (narrow) %v13933_v32, 8  ;;  %v2384_v41 = vmax.f32 %v13934_v38, %v2372_v42  ;;  %v3774_v4 = vmax.f32 %v13935_v35, %v3762_v37  ;;  %v5057_v2 = vmax.f32 %v13936_v59, %v5045_v49 }
 0xd15   : > { %v2338_v48 = vpop.permute.xlu1 %2337 }
 0xd16   : > { %vm2358_vm9 = vcmp.eq.s32.totalorder %v2338_v48, 1 }
 0xd17   : > { %v2374_v15 = vsel %vm2358_vm9, %v13862_v19, -1e+30  ;;  %v3764_v11 = vsel %vm2358_vm9, %v13863_v9, -1e+30  ;;  %v5047_v43 = vsel %vm2358_vm9, %v13864_v33, -1e+30 }
 0xd18   : > { %v2386_v55 = vmax.f32 %v12018_v10, %v2374_v15  ;;  %v3776_v20 = vmax.f32 %v12020_v62, %v3764_v11  ;;  %v5059_v34 = vmax.f32 %v12022_v12, %v5047_v43 }
 0xd19   : > { %v2341_v58 = vpop.permute.xlu1 %2340 }
 0xd1a   : > { %v2389_v60 = vmax.f32 %v2385_v40, %v2386_v55  ;;  %v3779_v52 = vmax.f32 %v3775_v6, %v3776_v20  ;;  %v5062_v28 = vmax.f32 %v5058_v51, %v5059_v34  ;;  %vm2359_vm11 = vcmp.eq.s32.totalorder %v2341_v58, 1 }
 0xd1b   : > { %v2375_v27 = vsel %vm2359_vm11, %v13869_v63, -1e+30  ;;  %v3765_v45 = vsel %vm2359_vm11, %v13870_v21, -1e+30  ;;  %v5048_v17 = vsel %vm2359_vm11, %v13871_v13, -1e+30 }
 0xd1c   : > { %v2387_v56 = vmax.f32 %v2383_v7, %v2375_v27  ;;  %v3777_v23 = vmax.f32 %v3773_v47, %v3765_v45  ;;  %v5060_v30 = vmax.f32 %v5056_v44, %v5048_v17 }
 0xd1d   : > { %v2344_v31 = vpop.permute.xlu1 %2343 }
 0xd1e   : > { %vm2360_vm3 = vcmp.eq.s32.totalorder %v2344_v31, 1 }
 0xd1f   : > { %v2376_v10 = vsel %vm2360_vm3, %v13909_v24, -1e+30  ;;  %v3766_v62 = vsel %vm2360_vm3, %v13910_v5, -1e+30  ;;  %v5049_v12 = vsel %vm2360_vm3, %v13911_v39, -1e+30 }
 0xd20   : > { %v2388_v57 = vmax.f32 %v2384_v41, %v2376_v10  ;;  %v3778_v3 = vmax.f32 %v3774_v4, %v3766_v62  ;;  %v5061_v26 = vmax.f32 %v5057_v2, %v5049_v12 }
 0xd22   : > { %v2390_v40 = vmax.f32 %v2387_v56, %v2388_v57  ;;  %v3780_v6 = vmax.f32 %v3777_v23, %v3778_v3  ;;  %v5063_v51 = vmax.f32 %v5060_v30, %v5061_v26 }
 0xd24   : > { %v2391_v7 = vmax.f32 %v2389_v60, %v2390_v40  ;;  %v3781_v24 = vmax.f32 %v3779_v52, %v3780_v6  ;;  %v5064_v47 = vmax.f32 %v5062_v28, %v5063_v51  ;;  %v13937_v28 = vmov 0  }
 0xd25   : > { %v2436_v36 = vpop.permute.xlu1 %2435 }
 0xd26   : > { %vm2458_vm7 = vcmp.eq.s32.totalorder %v2436_v36, 1  ;;  %v2392_v46 = vrot.slane %v2391_v7, 4  ;;  %v3782_v42 = vrot.slane %v3781_v24, 4  ;;  %v5065_v37 = vrot.slane %v5064_v47, 4 }
 0xd27   : > { %v2474_v1 = vsel %vm2458_vm7, %v13930_v25, -1e+30  ;;  %v3800_v0 = vsel %vm2458_vm7, %v13931_v8, -1e+30  ;;  %v5083_v50 = vsel %vm2458_vm7, %v13932_v61, -1e+30 }
 0xd28   : > { %v2488_v5 = vmax.f32 %v11998_v29, %v2474_v1  ;;  %v3814_v39 = vmax.f32 %v12000_v16, %v3800_v0  ;;  %v5097_v44 = vmax.f32 %v12002_v22, %v5083_v50  ;;  %v2393_v49 = vmax.f32 %v2391_v7, %v2392_v46  ;;  %v6601_v46 = vld [vmem:[#allocation10 + $0x58] sm:$0xff]  }
 0xd29   : > { %v2439_v32 = vpop.permute.xlu1 %2438  ;;  %v3783_v38 = vmax.f32 %v3781_v24, %v3782_v42  ;;  %v5066_v41 = vmax.f32 %v5064_v47, %v5065_v37  ;;  %v6602_v42 = vld [vmem:[#allocation10 + $0x18] sm:$0xff]   ;;  %v6603_v37 = vld [vmem:[#allocation10 + $0x60] sm:$0xff]   ;;  %6196 = vmatprep.subr.bf16.mxu1 %v6601_v46 }
 0xd2a   : > { %vm2459_vm5 = vcmp.eq.s32.totalorder %v2439_v32, 1  ;;  %v2394_v59 = vrot.slane %v2393_v49, 2  ;;  %6197 = vmatpush3.bf16.msra.mxu1 %v6602_v42 }
 0xd2b   : > { %v2475_v25 = vsel %vm2459_vm5, %v13862_v19, -1e+30  ;;  %v3801_v8 = vsel %vm2459_vm5, %v13863_v9, -1e+30  ;;  %v5084_v61 = vsel %vm2459_vm5, %v13864_v33, -1e+30  ;;  %6198 = vmatprep.subr.bf16.mxu1 %v6603_v37 }
 0xd2c   : > { %v2491_v35 = vmax.f32 %v2488_v5, %v2475_v25  ;;  %v3817_v29 = vmax.f32 %v3814_v39, %v3801_v8  ;;  %v5100_v4 = vmax.f32 %v5097_v44, %v5084_v61  ;;  %v3784_v22 = vrot.slane %v3783_v38, 2  ;;  %v13938_v39 = vld [vmem:[#allocation36_spill] sm:$0xff] }
 0xd2d   : > { %v2442_v16 = vpop.permute.xlu1 %2441  ;;  %v5067_v2 = vrot.slane %v5066_v41, 2  ;;  %v2395_v9 = vmax.f32 %v2393_v49, %v2394_v59  ;;  %v13939_v44 = vld [vmem:[#allocation44_spill] sm:$0xff] }
 0xd2e   : > { %vm2460_vm2 = vcmp.eq.s32.totalorder %v2442_v16, 1  ;;  %v3785_v11 = vmax.f32 %v3783_v38, %v3784_v22  ;;  %v6604_v49 = vld [vmem:[#allocation10 + $0x20] sm:$0xff]   ;;  %v6609_v16 = vld [vmem:[#allocation10 + $0x78] sm:$0xff]   ;;  %v6612_v22 = vld [vmem:[#allocation10 + $0x88] sm:$0xff]  }
 0xd2f   : > { %v2476_v48 = vsel %vm2460_vm2, %v13869_v63, -1e+30  ;;  %v3802_v15 = vsel %vm2460_vm2, %v13870_v21, -1e+30  ;;  %v5085_v19 = vsel %vm2460_vm2, %v13871_v13, -1e+30  ;;  %v5068_v33 = vmax.f32 %v5066_v41, %v5067_v2  ;;  %6199 = vmatpush3.bf16.msra.mxu1 %v6604_v49 }
 0xd30   : > { %v2492_v43 = vmax.f32 %v2476_v48, %v2491_v35  ;;  %v3818_v55 = vmax.f32 %v3802_v15, %v3817_v29  ;;  %v5101_v20 = vmax.f32 %v5085_v19, %v5100_v4  ;;  %v2396_v34 = vrot.slane %v2395_v9, 1  ;;  %v6605_v41 = vld [vmem:[#allocation10 + $0x68] sm:$0xff]   ;;  %v6607_v29 = vld [vmem:[#allocation10 + $0x70] sm:$0xff]   ;;  %v6611_v59 = vld [vmem:[#allocation10 + $0x80] sm:$0xff]  }
 0xd31   : > { %v3786_v58 = vrot.slane %v3785_v11, 1  ;;  %v5069_v60 = vrot.slane %v5068_v33, 1  ;;  %6545 = vset.pattern.permute.xlu1 %v13937_v28  ;;  %6200 = vmatprep.subr.bf16.mxu1 %v6605_v41  ;;  %v6606_v35 = vld [vmem:[#allocation10 + $0x28] sm:$0xff]   ;;  %v6608_v4 = vld [vmem:[#allocation10 + $0x30] sm:$0xff]   ;;  %v6610_v2 = vld [vmem:[#allocation10 + $0x38] sm:$0xff]   ;;  %v13940_v48 = vmov 0.0  }
 0xd32   : > { %v2493_v52 = vrot.slane %v2492_v43, 4  ;;  %v3819_v27 = vrot.slane %v3818_v55, 4  ;;  %v5102_v45 = vrot.slane %v5101_v20, 4  ;;  %v2397_v63 = vmax.f32 %v2395_v9, %v2396_v34  ;;  %6396 = vmatpush3.bf16.msra.mxu0 %v6611_v59  ;;  %v6613_v15 = vld [vmem:[#allocation10 + $0x90] sm:$0xff]   ;;  %v6614_v19 = vld [vmem:[#allocation10 + $0x98] sm:$0xff]   ;;  %v6615_v9 = vld [vmem:[#allocation10 + $0xa0] sm:$0xff]  }
 0xd33   : > { %v3787_v17 = vmax.f32 %v3785_v11, %v3786_v58  ;;  %v5070_v21 = vmax.f32 %v5068_v33, %v5069_v60  ;;  %6201 = vmatpush3.bf16.msra.mxu1 %v6606_v35  ;;  %6397 = vmatprep.subr.bf16.mxu0 %v13940_v48  ;;  %v6616_v11 = vld [vmem:[#allocation10 + $0xa8] sm:$0xff]   ;;  %v6617_v33 = vld [vmem:[#allocation10 + $0xb0] sm:$0xff]   ;;  %v6618_v28 = vld [vmem:[#allocation10 + $0xb8] sm:$0xff]  }
 0xd34   : > { %v2494_v56 = vmax.f32 %v2492_v43, %v2493_v52  ;;  %v3820_v13 = vmax.f32 %v3818_v55, %v3819_v27  ;;  %v5103_v23 = vmax.f32 %v5101_v20, %v5102_v45  ;;  %v2509_v31 = vsel %vm2508_vm12, %v11916_v14, %v2397_v63  ;;  %6202 = vmatprep.subr.bf16.mxu1 %v6607_v29  ;;  %v13941_v27 = vld [vmem:[#allocation35_spill] sm:$0xff] }
 0xd35   : > { %v3830_v10 = vsel %vm2508_vm12, %v11924_v18, %v3787_v17  ;;  %v5113_v62 = vsel %vm2508_vm12, %v11965_v54, %v5070_v21  ;;  %v5229_v45 = vsub.s32 6, %v13941_v27  ;;  %v6759_v17 = vld [vmem:[%s12178_s8] sm:$0xff] }
 0xd36   : > { %v2495_v30 = vrot.slane %v2494_v56, 2  ;;  %v3821_v12 = vrot.slane %v3820_v13, 2  ;;  %v5104_v57 = vrot.slane %v5103_v23, 2  ;;  %6398 = vmatpush3.bf16.msra.mxu0 %v6612_v22 }
 0xd37   : > { %6203 = vmatpush3.bf16.msra.mxu1 %v6608_v4  ;;  %6399 = vmatprep.subr.bf16.mxu0 %v13940_v48  ;;  %v5230_v21 = vrot.slane %v6759_v17, %v5229_v45 }
 0xd38   : > { %v2496_v3 = vmax.f32 %v2494_v56, %v2495_v30  ;;  %v3822_v26 = vmax.f32 %v3820_v13, %v3821_v12  ;;  %v5105_v36 = vmax.f32 %v5103_v23, %v5104_v57  ;;  %6204 = vmatprep.subr.bf16.mxu1 %v6609_v16  ;;  %v517_v57 = vld [vmem:[%s12178_s8 + $0x8] sm:$0xff] }
 0xd3a   : > { %v2497_v40 = vrot.slane %v2496_v3, 1  ;;  %v3823_v6 = vrot.slane %v3822_v26, 1  ;;  %v5106_v51 = vrot.slane %v5105_v36, 1  ;;  %6400 = vmatpush3.bf16.msra.mxu0 %v6613_v15 }
 0xd3b   : > { %6205 = vmatpush3.bf16.msra.mxu1 %v6610_v2  ;;  %6401 = vmatprep.subr.bf16.mxu0 %v13940_v48 }
 0xd3c   : > { %v2498_v1 = vmax.f32 %v2496_v3, %v2497_v40  ;;  %v3824_v0 = vmax.f32 %v3822_v26, %v3823_v6  ;;  %v5107_v50 = vmax.f32 %v5105_v36, %v5106_v51  ;;  %v5465_v36 = vrot.slane %v517_v57, %v13938_v39 }
 0xd3e   : > { %v2511_v7 = vsel %vm2510_vm6, %v2509_v31, %v2498_v1  ;;  %v3831_v24 = vsel %vm2510_vm6, %v3830_v10, %v3824_v0  ;;  %v5114_v47 = vsel %vm2510_vm6, %v5113_v62, %v5107_v50  ;;  %6402 = vmatpush3.bf16.msra.mxu0 %v6614_v19  ;;  %v5371_v62 = vsub.s32 7, %v13941_v27 }
 0xd3f   : > { %v5173_v14 = vadd.f32 %v3831_v24, %v2511_v7  ;;  %6403 = vmatprep.subr.bf16.mxu0 %v13940_v48  ;;  %v13942_v50 = vsub.s32 1, %v13941_v27 }
 0xd40   : > { %v5372_v12 = vrot.slane %v6759_v17, %v5371_v62 }
 0xd41   : > { %v5175_v5 = vadd.f32 %v5173_v14, %v5114_v47  ;;  %v5472_v7 = vrot.slane %v517_v57, %v13942_v50 }
 0xd42   : > { %6404 = vmatpush3.bf16.msra.mxu0 %v6615_v9 }
 0xd43   : > { %6405 = vmatprep.subr.bf16.mxu0 %v13940_v48  ;;  %v5225_v52 = vpack.c.bf16 %v5175_v5, %v5175_v5 }
 0xd46   : > { %6406 = vmatpush3.bf16.msra.mxu0 %v6616_v11 }
 0xd47   : > { %6407 = vmatprep.subr.bf16.mxu0 %v13940_v48 }
 0xd4a   : > { %6408 = vmatpush3.bf16.msra.mxu0 %v6617_v33 }
 0xd4b   : > { %6409 = vmatprep.subr.bf16.mxu0 %v13940_v48 }
 0xd4e   : > { %6410 = vmatpush3.bf16.msra.mxu0 %v6618_v28 }
 0xd57   : > { %v4684_v18 = vpop.trf.xlu1 }
 0xd58   : > { %v5166_v54 = vrot.slane %v4684_v18, %v13938_v39 }
 0xd5a   : > { %v5167_v32 = vmul.f32 %v5166_v54, %v13939_v44 }
 0xd5c   : > { %5168 = vadd.xlane.f32.xlu1 %v5167_v32 }
 0xd67   : > { %v5157_v25 = vpop.f32.mrb[56].mxu1 }
 0xd68   : > { %v6393_v8 = vpop.f32.mrb[57].mxu1 }
 0xd69   : > { %v5160_v61 = vpop.f32.mrb[58].mxu1 }
 0xd6a   : > { %v6394_v38 = vpop.f32.mrb[59].mxu1 }
 0xde9   : > { %v5169_v43 = vpop.xlane.xlu1 %5168 }
 0xdea   : > { %v5170_v55 = vmax.f32 %v5169_v43, 1.0 }
 0xdec   : > { %6719 = vrcp.f32 %v5170_v55 }
 0xdf6   : > { %v6720_v20 = vpop.eup %6719 }
 0xdf7   : > { %v5172_v34 = vmul.f32 %v6720_v20, %v5157_v25 }
 0xdf9   : > { %v5176_v58 = vadd.f32 %v12043_v53, %v5172_v34 }
 0xdfb   : > { %v5226_v60 = vpack.c.bf16 %v5176_v58, %v5176_v58 }
 0xdfd   : > { %5359 = vmatprep.mubr.bf16.mxu1 %v5226_v60 }
 0xdfe   : > { %5360 = vmatmul.mubr.bf16.vlgmr.msra.gmra.mrb[60].mxu1 %v5225_v52 }
 0xed1   : > { %v6206_v63 = vpop.f32.mrb[60].mxu1 }
 0xed2   : > { %v6207_v56 = vpop.f32.mrb[61].mxu1 }
 0xed3   : > { %v6208_v13 = vadd.f32 %v6207_v56, %v6206_v63  ;;  %v6209_v23 = vpop.f32.mrb[62].mxu1 }
 0xed4   : > { %v6210_v30 = vpop.f32.mrb[63].mxu1 }
 0xed5   : > { %v5362_v31 = vadd.f32 %v6208_v13, %v5230_v21 }
 0xed7   : > { %v5367_v53 = vmax.f32 %v5362_v31, 0.0 }
 0xed9   : > { %v5368_v10 = vpack.c.bf16 %v5367_v53, %v5367_v53 }
 0xedb   : > { %6412 = vmatmul.mubr.bf16.vlgmr.msra.gmra.mrb[112].mxu0 %v5368_v10 }
 0xfae   : > { %v5455_v3 = vpop.f32.mrb[112].mxu0 }
 0xfaf   : > { %v5456_v26 = vadd.f32 %v5455_v3, %v5372_v12  ;;  %v6413_v40 = vpop.f32.mrb[113].mxu0 }
 0xfb0   : > { %v5458_v6 = vpop.f32.mrb[114].mxu0 }
 0xfb1   : > { %v5461_v51 = vmax.f32 %v5456_v26, 0.0  ;;  %v6414_v1 = vpop.f32.mrb[115].mxu0 }
 0xfb3   : > { %v5466_v0 = vmul.f32 %v5465_v36, %v5461_v51 }
 0xfb5   : > { %5467 = vadd.xlane.f32.xlu0 %v5466_v0 }
0x1042   : > { %v5468_v24 = vpop.xlane.xlu0 %5467 }
0x1043   : > { %v5473_v47 = vadd.f32 %v5472_v7, %v5468_v24 }
0x1045   : > { %v5906_v14 = vmul.f32 -1.442695, %v5473_v47 }
0x1047   : > { %6721 = vpow2.f32 %v5906_v14 }
0x1051   : > { %v6722_v5 = vpop.eup %6721 }
0x1052   : > { %v5477_v18 = vadd.f32 1.0, %v6722_v5 }
0x1054   : > { %6723 = vrcp.f32 %v5477_v18 }
0x105e   : > { %v6724_v39 = vpop.eup %6723 }
0x105f   : > { %5482 = vperm.xlu1 %6545, %v6724_v39  }
0x10de   : > { %v5483_v54 = vpop.permute.xlu1 %5482 }
0x10df   : > { %5485 = vst [vmem:[%s451_s9] sm:$0xff] %v5483_v54 }
0x10e0   : > { %6915 = shalt.err (!%p6912_p9)
}
0x10e1   : > { %s6916_s18 = scalar_lea.hbm %s12129_s21, 128  ;;  %s6920_s20 = scalar_lea.hbm %s13943_s29, 512 }
0x10e2   : > { %p6917_p13 = scmp.ne.s32.totalorder %s12129_s21, %s6916_s18  ;;  %p6921_p8 = scmp.lt.u32.totalorder %s12129_s21, %s13943_s29 }
0x10e3   : > { %p6922_p6 = scmp.lt.u32.totalorder %s6920_s20, %s6916_s18  ;;  %p6924_p5 = scmp.lt.u32.totalorder %s6916_s18, %s12129_s21 }
0x10e4   : > { %p6918_p10 = pnand %p6917_p13, %p7218_p0 }
0x10e5   : > { %p6923_p3 = por %p6922_p6, %p6921_p8 }
0x10e6   : > { %p6919_p4 = pneg %p6918_p10 }
0x10e7   : > { %p6925_p7 = por %p6924_p5, %p6923_p3 }
0x10e9   : > { %p6926_p11 = pnand %p6925_p7, %p6919_p4 }
0x10eb   : > { %6929 = shalt.err (!%p6926_p11)
}
0x10ec   : > { %6434 = dma.vmem_to_hbm [thread:$0]  (%p7218_p0), %s12124_s30, 128, %s12129_s21, %s5487_s15  }
0x10ed PF: > { %s13944_s26 = sld [smem:[#allocation16_spill]]  ;;  %s13945_s17 = sld [smem:[#allocation17_spill]] }
0x10ee   : > { %p6466_p1 = scmp.ge.s32.totalorder %s6976_s12, 2 }
0x10f3   : > { %s5512_s19 = sand.u32 1, %s13944_s26   ;;  %p13946_p2 = scmp.ne.s32.totalorder %s13945_s17, 0 }
0x10f4   : > { %s5513_s24 = scalar_lea.sflag [#allocation4], %s5512_s19 }
0x10f5   : > { %p6454_p12 = pnand %p6466_p1, %p13946_p2 }
0x10f7   : > { %6959 = dma.done.wait (!%p6454_p12), %s5513_s24, 128  }
0x10f8   : > { %6961 = vsyncadd (!%p6454_p12), %s5513_s24, 4294967168  ;;  %p24_p9 = scmp.ge.s32.totalorder %s7208_s14, 6   ;;  %s13947_s30 = smov %s6968_s10 }
0x10f9   : > { %s13948_s10 = smov %s6972_s11  ;;  %s13949_s11 = smov %s7224_s28 }
0x10fa   : > { %s13950_s12 = smov %s7208_s14  ;;  %26 = sbr.rel (!%p24_p9) target bundleno = 9 (0x9), region = 126 }
0x1101   :  { %5518 = vsyncpa [#allocation3], 1 }
0x1102   :  { %5520 = vsyncpa [#allocation3 + $0x1], 1 }
0x1103   :  { %5521 = vsyncpa [#allocation6], 1 }
0x1104   :  { %5522 = vsyncpa [#allocation9], 1 }
0x1105   :  { %5523 = vsyncpa [#allocation4], 1 }
0x1106   :  { %5525 = vsyncpa [#allocation4 + $0x1], 1 }

</bundles_post_ra>
